<compile_context>
chip_gen: v5e
topology: v5e:2x2
jax: 0.10.0
libtpu: 0.0.40
codegen_flags: <defaults>
</compile_context>

<pallas_src>
import functools

import jax
import jax.numpy as jnp
from jax.experimental import pallas as pl
from jax.experimental.pallas import tpu as pltpu


ENCODED_SPACE_DIM = 64
OC = 4  # outChannels

# Static architecture config (Python ints so strides / paddings stay static).
ENC_CONV_CFG = [  # (cout, cin, k, stride)   all with padding=1, ReLU
    (OC, 1, 3, 1),
    (OC, OC, 3, 1),
    (2 * OC, OC, 3, 2),
    (4 * OC, 2 * OC, 3, 2),
    (8 * OC, 4 * OC, 3, 2),
    (16 * OC, 8 * OC, 3, 2),
]
DEC_CONV_CFG = [  # (cin, cout, k, stride, padding, output_padding, act)
    (16 * OC, 8 * OC, 3, 2, 1, 0, "relu"),
    (8 * OC, 4 * OC, 3, 2, 1, 0, "relu"),
    (4 * OC, 2 * OC, 3, 2, 1, 1, "relu"),
    (2 * OC, OC, 3, 2, 1, 1, "relu"),
    (OC, OC, 4, 1, 1, 0, "relu"),
    (OC, 1, 5, 1, 1, 0, "sigmoid"),
]


def _round_up(x, m):
    return ((x + m - 1) // m) * m


def _vmem_limit(*buf_bytes):
    """Double-buffered pipeline tiles + Mosaic scratch headroom, v7x-safe cap."""
    need = 2 * sum(int(b) for b in buf_bytes) + 4 * 1024 * 1024
    return int(min(max(need, 8 * 1024 * 1024), 48 * 1024 * 1024))


def _choose_tile(M, max_tile=1024):
    """Lane-dense M tile (multiple of 128) with >=2 tiles whenever possible."""
    m128 = _round_up(M, 128)
    tm = min(max_tile, m128)
    if tm == m128 and m128 >= 256:
        tm = _round_up(m128 // 2, 128)   # >=2 grid steps so v7x's 2nd TC gets work
    m_pad = _round_up(m128, tm)
    return tm, m_pad


# ----------------------------------------------------------------------------
# Pallas kernel 1: transposed GEMM + bias + activation (every conv layer)
#   W^T: (Cout, K) bf16   b: (Cout, 1) f32   X^T tile: (K, TM) bf16
#   out tile: (Cout, TM).  Tiny layers (K<=36, Cout<=8) use a VPU FMA loop.
# ----------------------------------------------------------------------------
def _gemm_t_kernel(w_ref, b_ref, x_ref, o_ref, *, act, use_mxu):
    if use_mxu:
        y = jnp.dot(w_ref[...], x_ref[...], preferred_element_type=jnp.float32)
    else:
        # Tiny-layer path: K-tap FMA on the VPU, keeps the MXU free (review #4).
        w = w_ref[...].astype(jnp.float32)        # (Cout, K)
        x = x_ref[...].astype(jnp.float32)        # (K, TM)
        cout, k = w.shape
        y = jnp.zeros((cout, x.shape[1]), jnp.float32)
        for kk in range(k):
            y = y + w[:, kk:kk + 1] * x[kk:kk + 1, :]
    y = y + b_ref[...]                            # (Cout, 1) broadcast over lanes
    if act == "relu":
        y = jnp.maximum(y, 0.0)
    elif act == "sigmoid":
        y = jax.nn.sigmoid(y)
    o_ref[...] = y.astype(o_ref.dtype)


def gemm_t_bias_act(w_t, b, x_t, act="none", *, out_dtype=jnp.bfloat16,
                    max_tile=1024):
    """act(w_t @ x_t + b) gridded over the (large, lane-dense) M axis."""
    Cout, K = w_t.shape
    K2, M = x_t.shape
    assert K == K2, (K, K2)

    tm, m_pad = _choose_tile(M, max_tile)
    if m_pad != M:
        x_t = jnp.pad(x_t, ((0, 0), (0, m_pad - M)))

    use_mxu = not (K <= 36 and Cout <= 8)
    out_bytes = 4 if out_dtype == jnp.float32 else 2
    vmem = _vmem_limit(w_t.size * w_t.dtype.itemsize, Cout * 4,
                       K * tm * 2, Cout * tm * out_bytes)

    out = pl.pallas_call(
        functools.partial(_gemm_t_kernel, act=act, use_mxu=use_mxu),
        out_shape=jax.ShapeDtypeStruct((Cout, m_pad), out_dtype),
        grid=(m_pad // tm,),
        in_specs=[
            pl.BlockSpec((Cout, K), lambda i: (0, 0)),   # weights resident
            pl.BlockSpec((Cout, 1), lambda i: (0, 0)),   # bias resident
            pl.BlockSpec((K, tm), lambda i: (0, i)),     # patch tile (K on sublanes)
        ],
        out_specs=pl.BlockSpec((Cout, tm), lambda i: (0, i)),
        compiler_params=pltpu.CompilerParams(
            dimension_semantics=("parallel",),           # megacore / v7x sharding
            vmem_limit_bytes=vmem,
        ),
    )(w_t, b, x_t)
    return out[:, :M] if m_pad != M else out


# ----------------------------------------------------------------------------
# Pallas kernel 2: fused linear head (enc_lin1 -> enc_lin2 -> dec_lin1 ->
# dec_lin2), gridded over batch row blocks, weights VMEM-resident.
# ----------------------------------------------------------------------------
def _linear_head_kernel(x_ref, w1, b1, w2, b2, w3, b3, w4, b4, o_ref):
    h = jnp.dot(x_ref[...], w1[...], preferred_element_type=jnp.float32) + b1[...]
    h = jnp.maximum(h, 0.0).astype(jnp.bfloat16)               # ReLU
    h = jnp.dot(h, w2[...], preferred_element_type=jnp.float32) + b2[...]
    h = jnp.maximum(h, 0.0).astype(jnp.bfloat16)               # ReLU (latent)
    h = jnp.dot(h, w3[...], preferred_element_type=jnp.float32) + b3[...]
    h = jnp.maximum(h, 0.0).astype(jnp.bfloat16)               # ReLU
    h = jnp.dot(h, w4[...], preferred_element_type=jnp.float32) + b4[...]
    o_ref[...] = h.astype(o_ref.dtype)                         # no act after dec_lin2


def linear_head(prep, x):
    """(N, 576) -> (N, 576): all four linear layers in one pipelined Pallas call."""
    N, d_in = x.shape
    layers = [prep["enc_lin1"], prep["enc_lin2"],
              prep["dec_lin1"], prep["dec_lin2"]]
    d_out = layers[-1][0].shape[1]

    bn = min(256, max(8, _round_up(N, 8)))
    n_pad = _round_up(N, bn)
    if n_pad // bn < 2:
        n_pad = 2 * bn                     # >= 2 row blocks so v7x's 2nd TC gets work
    if n_pad != N:
        x = jnp.pad(x, ((0, n_pad - N), (0, 0)))

    args = [x]
    in_specs = [pl.BlockSpec((bn, d_in), lambda i: (i, 0))]
    w_bytes = 0
    for (w, b) in layers:
        args += [w, b]
        in_specs += [pl.BlockSpec(w.shape, lambda i: (0, 0)),   # resident
                     pl.BlockSpec(b.shape, lambda i: (0, 0))]
        w_bytes += w.size * w.dtype.itemsize + b.size * b.dtype.itemsize

    vmem = _vmem_limit(bn * d_in * 2, w_bytes, bn * d_out * 2)
    out = pl.pallas_call(
        _linear_head_kernel,
        out_shape=jax.ShapeDtypeStruct((n_pad, d_out), jnp.bfloat16),
        grid=(n_pad // bn,),
        in_specs=in_specs,
        out_specs=pl.BlockSpec((bn, d_out), lambda i: (i, 0)),
        compiler_params=pltpu.CompilerParams(
            dimension_semantics=("parallel",),
            vmem_limit_bytes=vmem,
        ),
    )(*args)
    return out[:N]


# ----------------------------------------------------------------------------
# JAX glue: transposed im2col (CNHW layout) + conv / conv-transpose lowering
# ----------------------------------------------------------------------------
def _im2col_t(x_cnhw, kh, kw, stride, pad_hw):
    """Patches in transposed layout: ((kh*kw*C, N*Ho*Wo), (N, Ho, Wo))."""
    (pt, pb), (pleft, pright) = pad_hw
    C, N, H, W = x_cnhw.shape
    xp = jnp.pad(x_cnhw, ((0, 0), (0, 0), (pt, pb), (pleft, pright)))
    Hp, Wp = H + pt + pb, W + pleft + pright
    Ho = (Hp - kh) // stride + 1
    Wo = (Wp - kw) // stride + 1
    cols = []
    for i in range(kh):
        for j in range(kw):
            cols.append(xp[:, :, i:i + stride * Ho:stride, j:j + stride * Wo:stride])
    patches = jnp.stack(cols, axis=0)              # (kh*kw, C, N, Ho, Wo)
    return patches.reshape(kh * kw * C, N * Ho * Wo), (N, Ho, Wo)


def conv2d(x_cnhw, w_t, b, *, k, stride, padding, act):
    """PyTorch-semantics Conv2d on CNHW input; w_t is prepared (Cout, k*k*Cin)."""
    Cout = w_t.shape[0]
    patches, (N, Ho, Wo) = _im2col_t(
        x_cnhw, k, k, stride, ((padding, padding), (padding, padding)))
    y = gemm_t_bias_act(w_t, b, patches, act)       # (Cout, N*Ho*Wo) bf16
    return y.reshape(Cout, N, Ho, Wo)


def conv_transpose2d(x_cnhw, w_eq, b, *, k, stride, padding, output_padding,
                     act, out_dtype=jnp.bfloat16):
    """PyTorch-semantics ConvTranspose2d on CNHW input; w_eq is the prepared
    equivalent stride-1 conv matrix (Cout, k*k*Cin) with flipped taps.

    Rewritten as: zero-dilate input by `stride`, pad by (k-1-p) (+output_padding
    on bottom/right), then a stride-1 conv.
    """
    Cout = w_eq.shape[0]
    C, N, H, W = x_cnhw.shape
    if stride > 1:
        Hd, Wd = (H - 1) * stride + 1, (W - 1) * stride + 1
        xd = jnp.zeros((C, N, Hd, Wd), x_cnhw.dtype)
        xd = xd.at[:, :, ::stride, ::stride].set(x_cnhw)
    else:
        xd = x_cnhw
    pt = k - 1 - padding
    pb = k - 1 - padding + output_padding
    patches, (N2, Ho, Wo) = _im2col_t(xd, k, k, 1, ((pt, pb), (pt, pb)))
    y = gemm_t_bias_act(w_eq, b, patches, act, out_dtype=out_dtype)
    return y.reshape(Cout, N, Ho, Wo)


# ----------------------------------------------------------------------------
# Parameter construction (deterministic, PyTorch-default-like uniform init)
# and one-time preparation into GEMM-ready bf16 matrices.
# ----------------------------------------------------------------------------
def _uniform(key, shape, fan_in):
    bound = 1.0 / jnp.sqrt(jnp.float32(fan_in))
    return jax.random.uniform(key, shape, jnp.float32, -bound, bound)


def init_params(seed=0):
    key = jax.random.PRNGKey(seed)
    keys = iter(jax.random.split(key, 64))

    def conv_wb(cout, cin, k):
        fan_in = cin * k * k
        return (_uniform(next(keys), (cout, cin, k, k), fan_in),
                _uniform(next(keys), (cout,), fan_in))

    def convt_wb(cin, cout, k):
        fan_in = cout * k * k
        return (_uniform(next(keys), (cin, cout, k, k), fan_in),
                _uniform(next(keys), (cout,), fan_in))

    def lin_wb(din, dout):
        return (_uniform(next(keys), (din, dout), din),
                _uniform(next(keys), (dout,), din))

    return {
        "enc_convs": [conv_wb(co, ci, k) for (co, ci, k, _s) in ENC_CONV_CFG],
        "enc_lin1": lin_wb(64 * 3 * 3, 128),
        "enc_lin2": lin_wb(128, ENCODED_SPACE_DIM),
        "dec_lin1": lin_wb(ENCODED_SPACE_DIM, 128),
        "dec_lin2": lin_wb(128, 64 * 3 * 3),
        "dec_convs": [convt_wb(ci, co, k)
                      for (ci, co, k, _s, _p, _op, _a) in DEC_CONV_CFG],
    }


def prepare_params(params):
    """One-time: PyTorch-layout f32 params -> GEMM-ready bf16 matrices."""
    prep = {"enc_convs": [], "dec_convs": []}
    for (w, b) in params["enc_convs"]:
        cout, cin, kh, kw = w.shape
        # feature order along K is ((i,j), cin) -> (Cout, kh*kw*Cin)
        w_t = jnp.transpose(w, (0, 2, 3, 1)).reshape(cout, kh * kw * cin)
        prep["enc_convs"].append((w_t.astype(jnp.bfloat16),
                                  b.reshape(cout, 1).astype(jnp.float32)))
    for (w, b) in params["dec_convs"]:
        cin, cout, kh, kw = w.shape
        # equivalent conv weight: w_eq[cout, ((i,j),cin)] = w[cin,cout,kh-1-i,kw-1-j]
        w_eq = jnp.transpose(w[:, :, ::-1, ::-1], (1, 2, 3, 0)
                             ).reshape(cout, kh * kw * cin)
        prep["dec_convs"].append((w_eq.astype(jnp.bfloat16),
                                  b.reshape(cout, 1).astype(jnp.float32)))
    for name in ("enc_lin1", "enc_lin2", "dec_lin1", "dec_lin2"):
        w, b = params[name]
        prep[name] = (w.astype(jnp.bfloat16),
                      b.reshape(1, -1).astype(jnp.float32))
    return prep


# ----------------------------------------------------------------------------
# Full forward pass (ConvAutoencoder.forward) — jit this.
# ----------------------------------------------------------------------------
def conv_autoencoder_forward(prep, x):
    # x.view(-1, 1, 39, 39)
    x = x.reshape(-1, 1, 39, 39).astype(jnp.bfloat16)
    N = x.shape[0]
    h = jnp.transpose(x, (1, 0, 2, 3))  # NCHW -> CNHW (1, N, 39, 39)

    # ---- Encoder CNN ----
    for (w_t, b), (_co, _ci, k, s) in zip(prep["enc_convs"], ENC_CONV_CFG):
        h = conv2d(h, w_t, b, k=k, stride=s, padding=1, act="relu")

    # (64, N, 3, 3) CNHW -> PyTorch Flatten over NCHW -> (N, 64*3*3)
    flat = jnp.transpose(h, (1, 0, 2, 3)).reshape(N, 64 * 3 * 3)

    # ---- Fused linear head: enc_lin1 -> enc_lin2 -> dec_lin1 -> dec_lin2 ----
    flat = linear_head(prep, flat)  # (N, 576) bf16

    # Unflatten -> (N, 64, 3, 3) NCHW, then to CNHW for the conv glue
    h = jnp.transpose(flat.reshape(N, 64, 3, 3), (1, 0, 2, 3))

    # ---- Decoder CNN ----
    for (w_eq, b), (_ci, _co, k, s, p, op, act) in zip(prep["dec_convs"],
                                                       DEC_CONV_CFG):
        out_dtype = jnp.float32 if act == "sigmoid" else jnp.bfloat16
        h = conv_transpose2d(h, w_eq, b, k=k, stride=s, padding=p,
                             output_padding=op, act=act, out_dtype=out_dtype)

    # CNHW (1, N, 39, 39) -> NCHW (N, 1, 39, 39)
    return jnp.transpose(h, (1, 0, 2, 3)).astype(jnp.float32)


if __name__ == "__main__":
    params = init_params(seed=0)
    prepared = prepare_params(params)          # one-time weight prep (outside jit)
    forward = jax.jit(conv_autoencoder_forward)

    key = jax.random.PRNGKey(0)
    batch = 2
    x = jax.random.normal(key, (batch, 1, 39, 39), dtype=jnp.float32)

    out = jax.block_until_ready(forward(prepared, x))

    assert out.shape == (batch, 1, 39, 39), out.shape
    assert bool(jnp.all(jnp.isfinite(out)))
    assert bool(jnp.all(out >= 0.0)) and bool(jnp.all(out <= 1.0))  # sigmoid output
    print("KERNEL_OK")
</pallas_src>

<mosaic_0001>
module attributes {stable_mosaic.version = 11 : i64} {
  func.func @_gemm_t_kernel(%arg0: i32, %arg1: memref<4x9xbf16, #tpu.memory_space<vmem>>, %arg2: memref<4x1xf32, #tpu.memory_space<vmem>>, %arg3: memref<9x1024xbf16, #tpu.memory_space<vmem>>, %arg4: memref<4x1024xbf16, #tpu.memory_space<vmem>>) attributes {dimension_semantics = [#tpu.dimension_semantics<parallel>], iteration_bounds = array<i64: 3>, scalar_prefetch = 0 : i64, scratch_operands = 0 : i64, tpu.core_type = #tpu.core_type<tc>, window_params = [{pipeline_mode = #tpu.pipeline_mode<synchronous>, transform_indices = @transform_0, window_bounds = array<i64: 4, 9>}, {pipeline_mode = #tpu.pipeline_mode<synchronous>, transform_indices = @transform_1, window_bounds = array<i64: 4, 1>}, {transform_indices = @transform_2, window_bounds = array<i64: 9, 1024>}, {transform_indices = @transform_3, window_bounds = array<i64: 4, 1024>}]} {
    %c0 = arith.constant 0 : index
    %c0_0 = arith.constant 0 : index
    %0 = vector.load %arg1[%c0, %c0_0] : memref<4x9xbf16, #tpu.memory_space<vmem>>, vector<4x9xbf16>
    %1 = arith.extf %0 : vector<4x9xbf16> to vector<4x9xf32>
    %c0_1 = arith.constant 0 : index
    %c0_2 = arith.constant 0 : index
    %2 = vector.load %arg3[%c0_1, %c0_2] : memref<9x1024xbf16, #tpu.memory_space<vmem>>, vector<9x1024xbf16>
    %3 = arith.extf %2 : vector<9x1024xbf16> to vector<9x1024xf32>
    %cst = arith.constant 0.000000e+00 : f32
    %4 = vector.broadcast %cst : f32 to vector<4x1024xf32>
    %5 = vector.extract_strided_slice %1 {offsets = [0, 0], sizes = [4, 1], strides = [1, 1]} : vector<4x9xf32> to vector<4x1xf32>
    %6 = vector.extract_strided_slice %3 {offsets = [0, 0], sizes = [1, 1024], strides = [1, 1]} : vector<9x1024xf32> to vector<1x1024xf32>
    %7 = vector.broadcast %5 : vector<4x1xf32> to vector<4x1024xf32>
    %8 = vector.broadcast %6 : vector<1x1024xf32> to vector<4x1024xf32>
    %9 = arith.mulf %7, %8 : vector<4x1024xf32>
    %10 = arith.addf %4, %9 : vector<4x1024xf32>
    %11 = vector.extract_strided_slice %1 {offsets = [0, 1], sizes = [4, 1], strides = [1, 1]} : vector<4x9xf32> to vector<4x1xf32>
    %12 = vector.extract_strided_slice %3 {offsets = [1, 0], sizes = [1, 1024], strides = [1, 1]} : vector<9x1024xf32> to vector<1x1024xf32>
    %13 = vector.broadcast %11 : vector<4x1xf32> to vector<4x1024xf32>
    %14 = vector.broadcast %12 : vector<1x1024xf32> to vector<4x1024xf32>
    %15 = arith.mulf %13, %14 : vector<4x1024xf32>
    %16 = arith.addf %10, %15 : vector<4x1024xf32>
    %17 = vector.extract_strided_slice %1 {offsets = [0, 2], sizes = [4, 1], strides = [1, 1]} : vector<4x9xf32> to vector<4x1xf32>
    %18 = vector.extract_strided_slice %3 {offsets = [2, 0], sizes = [1, 1024], strides = [1, 1]} : vector<9x1024xf32> to vector<1x1024xf32>
    %19 = vector.broadcast %17 : vector<4x1xf32> to vector<4x1024xf32>
    %20 = vector.broadcast %18 : vector<1x1024xf32> to vector<4x1024xf32>
    %21 = arith.mulf %19, %20 : vector<4x1024xf32>
    %22 = arith.addf %16, %21 : vector<4x1024xf32>
    %23 = vector.extract_strided_slice %1 {offsets = [0, 3], sizes = [4, 1], strides = [1, 1]} : vector<4x9xf32> to vector<4x1xf32>
    %24 = vector.extract_strided_slice %3 {offsets = [3, 0], sizes = [1, 1024], strides = [1, 1]} : vector<9x1024xf32> to vector<1x1024xf32>
    %25 = vector.broadcast %23 : vector<4x1xf32> to vector<4x1024xf32>
    %26 = vector.broadcast %24 : vector<1x1024xf32> to vector<4x1024xf32>
    %27 = arith.mulf %25, %26 : vector<4x1024xf32>
    %28 = arith.addf %22, %27 : vector<4x1024xf32>
    %29 = vector.extract_strided_slice %1 {offsets = [0, 4], sizes = [4, 1], strides = [1, 1]} : vector<4x9xf32> to vector<4x1xf32>
    %30 = vector.extract_strided_slice %3 {offsets = [4, 0], sizes = [1, 1024], strides = [1, 1]} : vector<9x1024xf32> to vector<1x1024xf32>
    %31 = vector.broadcast %29 : vector<4x1xf32> to vector<4x1024xf32>
    %32 = vector.broadcast %30 : vector<1x1024xf32> to vector<4x1024xf32>
    %33 = arith.mulf %31, %32 : vector<4x1024xf32>
    %34 = arith.addf %28, %33 : vector<4x1024xf32>
    %35 = vector.extract_strided_slice %1 {offsets = [0, 5], sizes = [4, 1], strides = [1, 1]} : vector<4x9xf32> to vector<4x1xf32>
    %36 = vector.extract_strided_slice %3 {offsets = [5, 0], sizes = [1, 1024], strides = [1, 1]} : vector<9x1024xf32> to vector<1x1024xf32>
    %37 = vector.broadcast %35 : vector<4x1xf32> to vector<4x1024xf32>
    %38 = vector.broadcast %36 : vector<1x1024xf32> to vector<4x1024xf32>
    %39 = arith.mulf %37, %38 : vector<4x1024xf32>
    %40 = arith.addf %34, %39 : vector<4x1024xf32>
    %41 = vector.extract_strided_slice %1 {offsets = [0, 6], sizes = [4, 1], strides = [1, 1]} : vector<4x9xf32> to vector<4x1xf32>
    %42 = vector.extract_strided_slice %3 {offsets = [6, 0], sizes = [1, 1024], strides = [1, 1]} : vector<9x1024xf32> to vector<1x1024xf32>
    %43 = vector.broadcast %41 : vector<4x1xf32> to vector<4x1024xf32>
    %44 = vector.broadcast %42 : vector<1x1024xf32> to vector<4x1024xf32>
    %45 = arith.mulf %43, %44 : vector<4x1024xf32>
    %46 = arith.addf %40, %45 : vector<4x1024xf32>
    %47 = vector.extract_strided_slice %1 {offsets = [0, 7], sizes = [4, 1], strides = [1, 1]} : vector<4x9xf32> to vector<4x1xf32>
    %48 = vector.extract_strided_slice %3 {offsets = [7, 0], sizes = [1, 1024], strides = [1, 1]} : vector<9x1024xf32> to vector<1x1024xf32>
    %49 = vector.broadcast %47 : vector<4x1xf32> to vector<4x1024xf32>
    %50 = vector.broadcast %48 : vector<1x1024xf32> to vector<4x1024xf32>
    %51 = arith.mulf %49, %50 : vector<4x1024xf32>
    %52 = arith.addf %46, %51 : vector<4x1024xf32>
    %53 = vector.extract_strided_slice %1 {offsets = [0, 8], sizes = [4, 1], strides = [1, 1]} : vector<4x9xf32> to vector<4x1xf32>
    %54 = vector.extract_strided_slice %3 {offsets = [8, 0], sizes = [1, 1024], strides = [1, 1]} : vector<9x1024xf32> to vector<1x1024xf32>
    %55 = vector.broadcast %53 : vector<4x1xf32> to vector<4x1024xf32>
    %56 = vector.broadcast %54 : vector<1x1024xf32> to vector<4x1024xf32>
    %57 = arith.mulf %55, %56 : vector<4x1024xf32>
    %58 = arith.addf %52, %57 : vector<4x1024xf32>
    %c0_3 = arith.constant 0 : index
    %c0_4 = arith.constant 0 : index
    %59 = vector.load %arg2[%c0_3, %c0_4] : memref<4x1xf32, #tpu.memory_space<vmem>>, vector<4x1xf32>
    %60 = vector.broadcast %59 : vector<4x1xf32> to vector<4x1024xf32>
    %61 = arith.addf %58, %60 : vector<4x1024xf32>
    %cst_5 = arith.constant 0.000000e+00 : f32
    %62 = vector.broadcast %cst_5 : f32 to vector<4x1024xf32>
    %63 = arith.maximumf %61, %62 : vector<4x1024xf32>
    %64 = arith.truncf %63 : vector<4x1024xf32> to vector<4x1024xbf16>
    %c0_6 = arith.constant 0 : index
    %c0_7 = arith.constant 0 : index
    %65 = vector.load %arg4[%c0_6, %c0_7] : memref<4x1024xbf16, #tpu.memory_space<vmem>>, vector<4x1024xbf16>
    tpu.vector_store %arg4[%c0_6, %c0_7], %64 {strides = array<i32>} : memref<4x1024xbf16, #tpu.memory_space<vmem>>, vector<4x1024xbf16>,
    return
  }
  func.func @transform_0(%arg0: i32) -> (i32, i32) {
    %c0_i32 = arith.constant 0 : i32
    %c0_i32_0 = arith.constant 0 : i32
    %c0_i32_1 = arith.constant 0 : i32
    return %c0_i32, %c0_i32_0 : i32, i32
  }
  func.func @transform_1(%arg0: i32) -> (i32, i32) {
    %c0_i32 = arith.constant 0 : i32
    %c0_i32_0 = arith.constant 0 : i32
    %c0_i32_1 = arith.constant 0 : i32
    return %c0_i32, %c0_i32_0 : i32, i32
  }
  func.func @transform_2(%arg0: i32) -> (i32, i32) {
    %c0_i32 = arith.constant 0 : i32
    %c0_i32_0 = arith.constant 0 : i32
    return %c0_i32, %arg0 : i32, i32
  }
  func.func @transform_3(%arg0: i32) -> (i32, i32) {
    %c0_i32 = arith.constant 0 : i32
    %c0_i32_0 = arith.constant 0 : i32
    return %c0_i32, %arg0 : i32, i32
  }
}

module attributes {stable_mosaic.version = 11 : i64} {
  func.func @_gemm_t_kernel(%arg0: i32, %arg1: memref<4x36xbf16, #tpu.memory_space<vmem>>, %arg2: memref<4x1xf32, #tpu.memory_space<vmem>>, %arg3: memref<36x1024xbf16, #tpu.memory_space<vmem>>, %arg4: memref<4x1024xbf16, #tpu.memory_space<vmem>>) attributes {dimension_semantics = [#tpu.dimension_semantics<parallel>], iteration_bounds = array<i64: 3>, scalar_prefetch = 0 : i64, scratch_operands = 0 : i64, tpu.core_type = #tpu.core_type<tc>, window_params = [{pipeline_mode = #tpu.pipeline_mode<synchronous>, transform_indices = @transform_0, window_bounds = array<i64: 4, 36>}, {pipeline_mode = #tpu.pipeline_mode<synchronous>, transform_indices = @transform_1, window_bounds = array<i64: 4, 1>}, {transform_indices = @transform_2, window_bounds = array<i64: 36, 1024>}, {transform_indices = @transform_3, window_bounds = array<i64: 4, 1024>}]} {
    %c0 = arith.constant 0 : index
    %c0_0 = arith.constant 0 : index
    %0 = vector.load %arg1[%c0, %c0_0] : memref<4x36xbf16, #tpu.memory_space<vmem>>, vector<4x36xbf16>
    %1 = arith.extf %0 : vector<4x36xbf16> to vector<4x36xf32>
    %c0_1 = arith.constant 0 : index
    %c0_2 = arith.constant 0 : index
    %2 = vector.load %arg3[%c0_1, %c0_2] : memref<36x1024xbf16, #tpu.memory_space<vmem>>, vector<36x1024xbf16>
    %3 = arith.extf %2 : vector<36x1024xbf16> to vector<36x1024xf32>
    %cst = arith.constant 0.000000e+00 : f32
    %4 = vector.broadcast %cst : f32 to vector<4x1024xf32>
    %5 = vector.extract_strided_slice %1 {offsets = [0, 0], sizes = [4, 1], strides = [1, 1]} : vector<4x36xf32> to vector<4x1xf32>
    %6 = vector.extract_strided_slice %3 {offsets = [0, 0], sizes = [1, 1024], strides = [1, 1]} : vector<36x1024xf32> to vector<1x1024xf32>
    %7 = vector.broadcast %5 : vector<4x1xf32> to vector<4x1024xf32>
    %8 = vector.broadcast %6 : vector<1x1024xf32> to vector<4x1024xf32>
    %9 = arith.mulf %7, %8 : vector<4x1024xf32>
    %10 = arith.addf %4, %9 : vector<4x1024xf32>
    %11 = vector.extract_strided_slice %1 {offsets = [0, 1], sizes = [4, 1], strides = [1, 1]} : vector<4x36xf32> to vector<4x1xf32>
    %12 = vector.extract_strided_slice %3 {offsets = [1, 0], sizes = [1, 1024], strides = [1, 1]} : vector<36x1024xf32> to vector<1x1024xf32>
    %13 = vector.broadcast %11 : vector<4x1xf32> to vector<4x1024xf32>
    %14 = vector.broadcast %12 : vector<1x1024xf32> to vector<4x1024xf32>
    %15 = arith.mulf %13, %14 : vector<4x1024xf32>
    %16 = arith.addf %10, %15 : vector<4x1024xf32>
    %17 = vector.extract_strided_slice %1 {offsets = [0, 2], sizes = [4, 1], strides = [1, 1]} : vector<4x36xf32> to vector<4x1xf32>
    %18 = vector.extract_strided_slice %3 {offsets = [2, 0], sizes = [1, 1024], strides = [1, 1]} : vector<36x1024xf32> to vector<1x1024xf32>
    %19 = vector.broadcast %17 : vector<4x1xf32> to vector<4x1024xf32>
    %20 = vector.broadcast %18 : vector<1x1024xf32> to vector<4x1024xf32>
    %21 = arith.mulf %19, %20 : vector<4x1024xf32>
    %22 = arith.addf %16, %21 : vector<4x1024xf32>
    %23 = vector.extract_strided_slice %1 {offsets = [0, 3], sizes = [4, 1], strides = [1, 1]} : vector<4x36xf32> to vector<4x1xf32>
    %24 = vector.extract_strided_slice %3 {offsets = [3, 0], sizes = [1, 1024], strides = [1, 1]} : vector<36x1024xf32> to vector<1x1024xf32>
    %25 = vector.broadcast %23 : vector<4x1xf32> to vector<4x1024xf32>
    %26 = vector.broadcast %24 : vector<1x1024xf32> to vector<4x1024xf32>
    %27 = arith.mulf %25, %26 : vector<4x1024xf32>
    %28 = arith.addf %22, %27 : vector<4x1024xf32>
    %29 = vector.extract_strided_slice %1 {offsets = [0, 4], sizes = [4, 1], strides = [1, 1]} : vector<4x36xf32> to vector<4x1xf32>
    %30 = vector.extract_strided_slice %3 {offsets = [4, 0], sizes = [1, 1024], strides = [1, 1]} : vector<36x1024xf32> to vector<1x1024xf32>
    %31 = vector.broadcast %29 : vector<4x1xf32> to vector<4x1024xf32>
    %32 = vector.broadcast %30 : vector<1x1024xf32> to vector<4x1024xf32>
    %33 = arith.mulf %31, %32 : vector<4x1024xf32>
    %34 = arith.addf %28, %33 : vector<4x1024xf32>
    %35 = vector.extract_strided_slice %1 {offsets = [0, 5], sizes = [4, 1], strides = [1, 1]} : vector<4x36xf32> to vector<4x1xf32>
    %36 = vector.extract_strided_slice %3 {offsets = [5, 0], sizes = [1, 1024], strides = [1, 1]} : vector<36x1024xf32> to vector<1x1024xf32>
    %37 = vector.broadcast %35 : vector<4x1xf32> to vector<4x1024xf32>
    %38 = vector.broadcast %36 : vector<1x1024xf32> to vector<4x1024xf32>
    %39 = arith.mulf %37, %38 : vector<4x1024xf32>
    %40 = arith.addf %34, %39 : vector<4x1024xf32>
    %41 = vector.extract_strided_slice %1 {offsets = [0, 6], sizes = [4, 1], strides = [1, 1]} : vector<4x36xf32> to vector<4x1xf32>
    %42 = vector.extract_strided_slice %3 {offsets = [6, 0], sizes = [1, 1024], strides = [1, 1]} : vector<36x1024xf32> to vector<1x1024xf32>
    %43 = vector.broadcast %41 : vector<4x1xf32> to vector<4x1024xf32>
    %44 = vector.broadcast %42 : vector<1x1024xf32> to vector<4x1024xf32>
    %45 = arith.mulf %43, %44 : vector<4x1024xf32>
    %46 = arith.addf %40, %45 : vector<4x1024xf32>
    %47 = vector.extract_strided_slice %1 {offsets = [0, 7], sizes = [4, 1], strides = [1, 1]} : vector<4x36xf32> to vector<4x1xf32>
    %48 = vector.extract_strided_slice %3 {offsets = [7, 0], sizes = [1, 1024], strides = [1, 1]} : vector<36x1024xf32> to vector<1x1024xf32>
    %49 = vector.broadcast %47 : vector<4x1xf32> to vector<4x1024xf32>
    %50 = vector.broadcast %48 : vector<1x1024xf32> to vector<4x1024xf32>
    %51 = arith.mulf %49, %50 : vector<4x1024xf32>
    %52 = arith.addf %46, %51 : vector<4x1024xf32>
    %53 = vector.extract_strided_slice %1 {offsets = [0, 8], sizes = [4, 1], strides = [1, 1]} : vector<4x36xf32> to vector<4x1xf32>
    %54 = vector.extract_strided_slice %3 {offsets = [8, 0], sizes = [1, 1024], strides = [1, 1]} : vector<36x1024xf32> to vector<1x1024xf32>
    %55 = vector.broadcast %53 : vector<4x1xf32> to vector<4x1024xf32>
    %56 = vector.broadcast %54 : vector<1x1024xf32> to vector<4x1024xf32>
    %57 = arith.mulf %55, %56 : vector<4x1024xf32>
    %58 = arith.addf %52, %57 : vector<4x1024xf32>
    %59 = vector.extract_strided_slice %1 {offsets = [0, 9], sizes = [4, 1], strides = [1, 1]} : vector<4x36xf32> to vector<4x1xf32>
    %60 = vector.extract_strided_slice %3 {offsets = [9, 0], sizes = [1, 1024], strides = [1, 1]} : vector<36x1024xf32> to vector<1x1024xf32>
    %61 = vector.broadcast %59 : vector<4x1xf32> to vector<4x1024xf32>
    %62 = vector.broadcast %60 : vector<1x1024xf32> to vector<4x1024xf32>
    %63 = arith.mulf %61, %62 : vector<4x1024xf32>
    %64 = arith.addf %58, %63 : vector<4x1024xf32>
    %65 = vector.extract_strided_slice %1 {offsets = [0, 10], sizes = [4, 1], strides = [1, 1]} : vector<4x36xf32> to vector<4x1xf32>
    %66 = vector.extract_strided_slice %3 {offsets = [10, 0], sizes = [1, 1024], strides = [1, 1]} : vector<36x1024xf32> to vector<1x1024xf32>
    %67 = vector.broadcast %65 : vector<4x1xf32> to vector<4x1024xf32>
    %68 = vector.broadcast %66 : vector<1x1024xf32> to vector<4x1024xf32>
    %69 = arith.mulf %67, %68 : vector<4x1024xf32>
    %70 = arith.addf %64, %69 : vector<4x1024xf32>
    %71 = vector.extract_strided_slice %1 {offsets = [0, 11], sizes = [4, 1], strides = [1, 1]} : vector<4x36xf32> to vector<4x1xf32>
    %72 = vector.extract_strided_slice %3 {offsets = [11, 0], sizes = [1, 1024], strides = [1, 1]} : vector<36x1024xf32> to vector<1x1024xf32>
    %73 = vector.broadcast %71 : vector<4x1xf32> to vector<4x1024xf32>
    %74 = vector.broadcast %72 : vector<1x1024xf32> to vector<4x1024xf32>
    %75 = arith.mulf %73, %74 : vector<4x1024xf32>
    %76 = arith.addf %70, %75 : vector<4x1024xf32>
    %77 = vector.extract_strided_slice %1 {offsets = [0, 12], sizes = [4, 1], strides = [1, 1]} : vector<4x36xf32> to vector<4x1xf32>
    %78 = vector.extract_strided_slice %3 {offsets = [12, 0], sizes = [1, 1024], strides = [1, 1]} : vector<36x1024xf32> to vector<1x1024xf32>
    %79 = vector.broadcast %77 : vector<4x1xf32> to vector<4x1024xf32>
    %80 = vector.broadcast %78 : vector<1x1024xf32> to vector<4x1024xf32>
    %81 = arith.mulf %79, %80 : vector<4x1024xf32>
    %82 = arith.addf %76, %81 : vector<4x1024xf32>
    %83 = vector.extract_strided_slice %1 {offsets = [0, 13], sizes = [4, 1], strides = [1, 1]} : vector<4x36xf32> to vector<4x1xf32>
    %84 = vector.extract_strided_slice %3 {offsets = [13, 0], sizes = [1, 1024], strides = [1, 1]} : vector<36x1024xf32> to vector<1x1024xf32>
    %85 = vector.broadcast %83 : vector<4x1xf32> to vector<4x1024xf32>
    %86 = vector.broadcast %84 : vector<1x1024xf32> to vector<4x1024xf32>
    %87 = arith.mulf %85, %86 : vector<4x1024xf32>
    %88 = arith.addf %82, %87 : vector<4x1024xf32>
    %89 = vector.extract_strided_slice %1 {offsets = [0, 14], sizes = [4, 1], strides = [1, 1]} : vector<4x36xf32> to vector<4x1xf32>
    %90 = vector.extract_strided_slice %3 {offsets = [14, 0], sizes = [1, 1024], strides = [1, 1]} : vector<36x1024xf32> to vector<1x1024xf32>
    %91 = vector.broadcast %89 : vector<4x1xf32> to vector<4x1024xf32>
    %92 = vector.broadcast %90 : vector<1x1024xf32> to vector<4x1024xf32>
    %93 = arith.mulf %91, %92 : vector<4x1024xf32>
    %94 = arith.addf %88, %93 : vector<4x1024xf32>
    %95 = vector.extract_strided_slice %1 {offsets = [0, 15], sizes = [4, 1], strides = [1, 1]} : vector<4x36xf32> to vector<4x1xf32>
    %96 = vector.extract_strided_slice %3 {offsets = [15, 0], sizes = [1, 1024], strides = [1, 1]} : vector<36x1024xf32> to vector<1x1024xf32>
    %97 = vector.broadcast %95 : vector<4x1xf32> to vector<4x1024xf32>
    %98 = vector.broadcast %96 : vector<1x1024xf32> to vector<4x1024xf32>
    %99 = arith.mulf %97, %98 : vector<4x1024xf32>
    %100 = arith.addf %94, %99 : vector<4x1024xf32>
    %101 = vector.extract_strided_slice %1 {offsets = [0, 16], sizes = [4, 1], strides = [1, 1]} : vector<4x36xf32> to vector<4x1xf32>
    %102 = vector.extract_strided_slice %3 {offsets = [16, 0], sizes = [1, 1024], strides = [1, 1]} : vector<36x1024xf32> to vector<1x1024xf32>
    %103 = vector.broadcast %101 : vector<4x1xf32> to vector<4x1024xf32>
    %104 = vector.broadcast %102 : vector<1x1024xf32> to vector<4x1024xf32>
    %105 = arith.mulf %103, %104 : vector<4x1024xf32>
    %106 = arith.addf %100, %105 : vector<4x1024xf32>
    %107 = vector.extract_strided_slice %1 {offsets = [0, 17], sizes = [4, 1], strides = [1, 1]} : vector<4x36xf32> to vector<4x1xf32>
    %108 = vector.extract_strided_slice %3 {offsets = [17, 0], sizes = [1, 1024], strides = [1, 1]} : vector<36x1024xf32> to vector<1x1024xf32>
    %109 = vector.broadcast %107 : vector<4x1xf32> to vector<4x1024xf32>
    %110 = vector.broadcast %108 : vector<1x1024xf32> to vector<4x1024xf32>
    %111 = arith.mulf %109, %110 : vector<4x1024xf32>
    %112 = arith.addf %106, %111 : vector<4x1024xf32>
    %113 = vector.extract_strided_slice %1 {offsets = [0, 18], sizes = [4, 1], strides = [1, 1]} : vector<4x36xf32> to vector<4x1xf32>
    %114 = vector.extract_strided_slice %3 {offsets = [18, 0], sizes = [1, 1024], strides = [1, 1]} : vector<36x1024xf32> to vector<1x1024xf32>
    %115 = vector.broadcast %113 : vector<4x1xf32> to vector<4x1024xf32>
    %116 = vector.broadcast %114 : vector<1x1024xf32> to vector<4x1024xf32>
    %117 = arith.mulf %115, %116 : vector<4x1024xf32>
    %118 = arith.addf %112, %117 : vector<4x1024xf32>
    %119 = vector.extract_strided_slice %1 {offsets = [0, 19], sizes = [4, 1], strides = [1, 1]} : vector<4x36xf32> to vector<4x1xf32>
    %120 = vector.extract_strided_slice %3 {offsets = [19, 0], sizes = [1, 1024], strides = [1, 1]} : vector<36x1024xf32> to vector<1x1024xf32>
    %121 = vector.broadcast %119 : vector<4x1xf32> to vector<4x1024xf32>
    %122 = vector.broadcast %120 : vector<1x1024xf32> to vector<4x1024xf32>
    %123 = arith.mulf %121, %122 : vector<4x1024xf32>
    %124 = arith.addf %118, %123 : vector<4x1024xf32>
    %125 = vector.extract_strided_slice %1 {offsets = [0, 20], sizes = [4, 1], strides = [1, 1]} : vector<4x36xf32> to vector<4x1xf32>
    %126 = vector.extract_strided_slice %3 {offsets = [20, 0], sizes = [1, 1024], strides = [1, 1]} : vector<36x1024xf32> to vector<1x1024xf32>
    %127 = vector.broadcast %125 : vector<4x1xf32> to vector<4x1024xf32>
    %128 = vector.broadcast %126 : vector<1x1024xf32> to vector<4x1024xf32>
    %129 = arith.mulf %127, %128 : vector<4x1024xf32>
    %130 = arith.addf %124, %129 : vector<4x1024xf32>
    %131 = vector.extract_strided_slice %1 {offsets = [0, 21], sizes = [4, 1], strides = [1, 1]} : vector<4x36xf32> to vector<4x1xf32>
    %132 = vector.extract_strided_slice %3 {offsets = [21, 0], sizes = [1, 1024], strides = [1, 1]} : vector<36x1024xf32> to vector<1x1024xf32>
    %133 = vector.broadcast %131 : vector<4x1xf32> to vector<4x1024xf32>
    %134 = vector.broadcast %132 : vector<1x1024xf32> to vector<4x1024xf32>
    %135 = arith.mulf %133, %134 : vector<4x1024xf32>
    %136 = arith.addf %130, %135 : vector<4x1024xf32>
    %137 = vector.extract_strided_slice %1 {offsets = [0, 22], sizes = [4, 1], strides = [1, 1]} : vector<4x36xf32> to vector<4x1xf32>
    %138 = vector.extract_strided_slice %3 {offsets = [22, 0], sizes = [1, 1024], strides = [1, 1]} : vector<36x1024xf32> to vector<1x1024xf32>
    %139 = vector.broadcast %137 : vector<4x1xf32> to vector<4x1024xf32>
    %140 = vector.broadcast %138 : vector<1x1024xf32> to vector<4x1024xf32>
    %141 = arith.mulf %139, %140 : vector<4x1024xf32>
    %142 = arith.addf %136, %141 : vector<4x1024xf32>
    %143 = vector.extract_strided_slice %1 {offsets = [0, 23], sizes = [4, 1], strides = [1, 1]} : vector<4x36xf32> to vector<4x1xf32>
    %144 = vector.extract_strided_slice %3 {offsets = [23, 0], sizes = [1, 1024], strides = [1, 1]} : vector<36x1024xf32> to vector<1x1024xf32>
    %145 = vector.broadcast %143 : vector<4x1xf32> to vector<4x1024xf32>
    %146 = vector.broadcast %144 : vector<1x1024xf32> to vector<4x1024xf32>
    %147 = arith.mulf %145, %146 : vector<4x1024xf32>
    %148 = arith.addf %142, %147 : vector<4x1024xf32>
    %149 = vector.extract_strided_slice %1 {offsets = [0, 24], sizes = [4, 1], strides = [1, 1]} : vector<4x36xf32> to vector<4x1xf32>
    %150 = vector.extract_strided_slice %3 {offsets = [24, 0], sizes = [1, 1024], strides = [1, 1]} : vector<36x1024xf32> to vector<1x1024xf32>
    %151 = vector.broadcast %149 : vector<4x1xf32> to vector<4x1024xf32>
    %152 = vector.broadcast %150 : vector<1x1024xf32> to vector<4x1024xf32>
    %153 = arith.mulf %151, %152 : vector<4x1024xf32>
    %154 = arith.addf %148, %153 : vector<4x1024xf32>
    %155 = vector.extract_strided_slice %1 {offsets = [0, 25], sizes = [4, 1], strides = [1, 1]} : vector<4x36xf32> to vector<4x1xf32>
    %156 = vector.extract_strided_slice %3 {offsets = [25, 0], sizes = [1, 1024], strides = [1, 1]} : vector<36x1024xf32> to vector<1x1024xf32>
    %157 = vector.broadcast %155 : vector<4x1xf32> to vector<4x1024xf32>
    %158 = vector.broadcast %156 : vector<1x1024xf32> to vector<4x1024xf32>
    %159 = arith.mulf %157, %158 : vector<4x1024xf32>
    %160 = arith.addf %154, %159 : vector<4x1024xf32>
    %161 = vector.extract_strided_slice %1 {offsets = [0, 26], sizes = [4, 1], strides = [1, 1]} : vector<4x36xf32> to vector<4x1xf32>
    %162 = vector.extract_strided_slice %3 {offsets = [26, 0], sizes = [1, 1024], strides = [1, 1]} : vector<36x1024xf32> to vector<1x1024xf32>
    %163 = vector.broadcast %161 : vector<4x1xf32> to vector<4x1024xf32>
    %164 = vector.broadcast %162 : vector<1x1024xf32> to vector<4x1024xf32>
    %165 = arith.mulf %163, %164 : vector<4x1024xf32>
    %166 = arith.addf %160, %165 : vector<4x1024xf32>
    %167 = vector.extract_strided_slice %1 {offsets = [0, 27], sizes = [4, 1], strides = [1, 1]} : vector<4x36xf32> to vector<4x1xf32>
    %168 = vector.extract_strided_slice %3 {offsets = [27, 0], sizes = [1, 1024], strides = [1, 1]} : vector<36x1024xf32> to vector<1x1024xf32>
    %169 = vector.broadcast %167 : vector<4x1xf32> to vector<4x1024xf32>
    %170 = vector.broadcast %168 : vector<1x1024xf32> to vector<4x1024xf32>
    %171 = arith.mulf %169, %170 : vector<4x1024xf32>
    %172 = arith.addf %166, %171 : vector<4x1024xf32>
    %173 = vector.extract_strided_slice %1 {offsets = [0, 28], sizes = [4, 1], strides = [1, 1]} : vector<4x36xf32> to vector<4x1xf32>
    %174 = vector.extract_strided_slice %3 {offsets = [28, 0], sizes = [1, 1024], strides = [1, 1]} : vector<36x1024xf32> to vector<1x1024xf32>
    %175 = vector.broadcast %173 : vector<4x1xf32> to vector<4x1024xf32>
    %176 = vector.broadcast %174 : vector<1x1024xf32> to vector<4x1024xf32>
    %177 = arith.mulf %175, %176 : vector<4x1024xf32>
    %178 = arith.addf %172, %177 : vector<4x1024xf32>
    %179 = vector.extract_strided_slice %1 {offsets = [0, 29], sizes = [4, 1], strides = [1, 1]} : vector<4x36xf32> to vector<4x1xf32>
    %180 = vector.extract_strided_slice %3 {offsets = [29, 0], sizes = [1, 1024], strides = [1, 1]} : vector<36x1024xf32> to vector<1x1024xf32>
    %181 = vector.broadcast %179 : vector<4x1xf32> to vector<4x1024xf32>
    %182 = vector.broadcast %180 : vector<1x1024xf32> to vector<4x1024xf32>
    %183 = arith.mulf %181, %182 : vector<4x1024xf32>
    %184 = arith.addf %178, %183 : vector<4x1024xf32>
    %185 = vector.extract_strided_slice %1 {offsets = [0, 30], sizes = [4, 1], strides = [1, 1]} : vector<4x36xf32> to vector<4x1xf32>
    %186 = vector.extract_strided_slice %3 {offsets = [30, 0], sizes = [1, 1024], strides = [1, 1]} : vector<36x1024xf32> to vector<1x1024xf32>
    %187 = vector.broadcast %185 : vector<4x1xf32> to vector<4x1024xf32>
    %188 = vector.broadcast %186 : vector<1x1024xf32> to vector<4x1024xf32>
    %189 = arith.mulf %187, %188 : vector<4x1024xf32>
    %190 = arith.addf %184, %189 : vector<4x1024xf32>
    %191 = vector.extract_strided_slice %1 {offsets = [0, 31], sizes = [4, 1], strides = [1, 1]} : vector<4x36xf32> to vector<4x1xf32>
    %192 = vector.extract_strided_slice %3 {offsets = [31, 0], sizes = [1, 1024], strides = [1, 1]} : vector<36x1024xf32> to vector<1x1024xf32>
    %193 = vector.broadcast %191 : vector<4x1xf32> to vector<4x1024xf32>
    %194 = vector.broadcast %192 : vector<1x1024xf32> to vector<4x1024xf32>
    %195 = arith.mulf %193, %194 : vector<4x1024xf32>
    %196 = arith.addf %190, %195 : vector<4x1024xf32>
    %197 = vector.extract_strided_slice %1 {offsets = [0, 32], sizes = [4, 1], strides = [1, 1]} : vector<4x36xf32> to vector<4x1xf32>
    %198 = vector.extract_strided_slice %3 {offsets = [32, 0], sizes = [1, 1024], strides = [1, 1]} : vector<36x1024xf32> to vector<1x1024xf32>
    %199 = vector.broadcast %197 : vector<4x1xf32> to vector<4x1024xf32>
    %200 = vector.broadcast %198 : vector<1x1024xf32> to vector<4x1024xf32>
    %201 = arith.mulf %199, %200 : vector<4x1024xf32>
    %202 = arith.addf %196, %201 : vector<4x1024xf32>
    %203 = vector.extract_strided_slice %1 {offsets = [0, 33], sizes = [4, 1], strides = [1, 1]} : vector<4x36xf32> to vector<4x1xf32>
    %204 = vector.extract_strided_slice %3 {offsets = [33, 0], sizes = [1, 1024], strides = [1, 1]} : vector<36x1024xf32> to vector<1x1024xf32>
    %205 = vector.broadcast %203 : vector<4x1xf32> to vector<4x1024xf32>
    %206 = vector.broadcast %204 : vector<1x1024xf32> to vector<4x1024xf32>
    %207 = arith.mulf %205, %206 : vector<4x1024xf32>
    %208 = arith.addf %202, %207 : vector<4x1024xf32>
    %209 = vector.extract_strided_slice %1 {offsets = [0, 34], sizes = [4, 1], strides = [1, 1]} : vector<4x36xf32> to vector<4x1xf32>
    %210 = vector.extract_strided_slice %3 {offsets = [34, 0], sizes = [1, 1024], strides = [1, 1]} : vector<36x1024xf32> to vector<1x1024xf32>
    %211 = vector.broadcast %209 : vector<4x1xf32> to vector<4x1024xf32>
    %212 = vector.broadcast %210 : vector<1x1024xf32> to vector<4x1024xf32>
    %213 = arith.mulf %211, %212 : vector<4x1024xf32>
    %214 = arith.addf %208, %213 : vector<4x1024xf32>
    %215 = vector.extract_strided_slice %1 {offsets = [0, 35], sizes = [4, 1], strides = [1, 1]} : vector<4x36xf32> to vector<4x1xf32>
    %216 = vector.extract_strided_slice %3 {offsets = [35, 0], sizes = [1, 1024], strides = [1, 1]} : vector<36x1024xf32> to vector<1x1024xf32>
    %217 = vector.broadcast %215 : vector<4x1xf32> to vector<4x1024xf32>
    %218 = vector.broadcast %216 : vector<1x1024xf32> to vector<4x1024xf32>
    %219 = arith.mulf %217, %218 : vector<4x1024xf32>
    %220 = arith.addf %214, %219 : vector<4x1024xf32>
    %c0_3 = arith.constant 0 : index
    %c0_4 = arith.constant 0 : index
    %221 = vector.load %arg2[%c0_3, %c0_4] : memref<4x1xf32, #tpu.memory_space<vmem>>, vector<4x1xf32>
    %222 = vector.broadcast %221 : vector<4x1xf32> to vector<4x1024xf32>
    %223 = arith.addf %220, %222 : vector<4x1024xf32>
    %cst_5 = arith.constant 0.000000e+00 : f32
    %224 = vector.broadcast %cst_5 : f32 to vector<4x1024xf32>
    %225 = arith.maximumf %223, %224 : vector<4x1024xf32>
    %226 = arith.truncf %225 : vector<4x1024xf32> to vector<4x1024xbf16>
    %c0_6 = arith.constant 0 : index
    %c0_7 = arith.constant 0 : index
    %227 = vector.load %arg4[%c0_6, %c0_7] : memref<4x1024xbf16, #tpu.memory_space<vmem>>, vector<4x1024xbf16>
    tpu.vector_store %arg4[%c0_6, %c0_7], %226 {strides = array<i32>} : memref<4x1024xbf16, #tpu.memory_space<vmem>>, vector<4x1024xbf16>,
    return
  }
  func.func @transform_0(%arg0: i32) -> (i32, i32) {
    %c0_i32 = arith.constant 0 : i32
    %c0_i32_0 = arith.constant 0 : i32
    %c0_i32_1 = arith.constant 0 : i32
    return %c0_i32, %c0_i32_0 : i32, i32
  }
  func.func @transform_1(%arg0: i32) -> (i32, i32) {
    %c0_i32 = arith.constant 0 : i32
    %c0_i32_0 = arith.constant 0 : i32
    %c0_i32_1 = arith.constant 0 : i32
    return %c0_i32, %c0_i32_0 : i32, i32
  }
  func.func @transform_2(%arg0: i32) -> (i32, i32) {
    %c0_i32 = arith.constant 0 : i32
    %c0_i32_0 = arith.constant 0 : i32
    return %c0_i32, %arg0 : i32, i32
  }
  func.func @transform_3(%arg0: i32) -> (i32, i32) {
    %c0_i32 = arith.constant 0 : i32
    %c0_i32_0 = arith.constant 0 : i32
    return %c0_i32, %arg0 : i32, i32
  }
}

module attributes {stable_mosaic.version = 11 : i64} {
  func.func @_gemm_t_kernel(%arg0: i32, %arg1: memref<8x36xbf16, #tpu.memory_space<vmem>>, %arg2: memref<8x1xf32, #tpu.memory_space<vmem>>, %arg3: memref<36x512xbf16, #tpu.memory_space<vmem>>, %arg4: memref<8x512xbf16, #tpu.memory_space<vmem>>) attributes {dimension_semantics = [#tpu.dimension_semantics<parallel>], iteration_bounds = array<i64: 2>, scalar_prefetch = 0 : i64, scratch_operands = 0 : i64, tpu.core_type = #tpu.core_type<tc>, window_params = [{pipeline_mode = #tpu.pipeline_mode<synchronous>, transform_indices = @transform_0, window_bounds = array<i64: 8, 36>}, {pipeline_mode = #tpu.pipeline_mode<synchronous>, transform_indices = @transform_1, window_bounds = array<i64: 8, 1>}, {transform_indices = @transform_2, window_bounds = array<i64: 36, 512>}, {transform_indices = @transform_3, window_bounds = array<i64: 8, 512>}]} {
    %c0 = arith.constant 0 : index
    %c0_0 = arith.constant 0 : index
    %0 = vector.load %arg1[%c0, %c0_0] : memref<8x36xbf16, #tpu.memory_space<vmem>>, vector<8x36xbf16>
    %1 = arith.extf %0 : vector<8x36xbf16> to vector<8x36xf32>
    %c0_1 = arith.constant 0 : index
    %c0_2 = arith.constant 0 : index
    %2 = vector.load %arg3[%c0_1, %c0_2] : memref<36x512xbf16, #tpu.memory_space<vmem>>, vector<36x512xbf16>
    %3 = arith.extf %2 : vector<36x512xbf16> to vector<36x512xf32>
    %cst = arith.constant 0.000000e+00 : f32
    %4 = vector.broadcast %cst : f32 to vector<8x512xf32>
    %5 = vector.extract_strided_slice %1 {offsets = [0, 0], sizes = [8, 1], strides = [1, 1]} : vector<8x36xf32> to vector<8x1xf32>
    %6 = vector.extract_strided_slice %3 {offsets = [0, 0], sizes = [1, 512], strides = [1, 1]} : vector<36x512xf32> to vector<1x512xf32>
    %7 = vector.broadcast %5 : vector<8x1xf32> to vector<8x512xf32>
    %8 = vector.broadcast %6 : vector<1x512xf32> to vector<8x512xf32>
    %9 = arith.mulf %7, %8 : vector<8x512xf32>
    %10 = arith.addf %4, %9 : vector<8x512xf32>
    %11 = vector.extract_strided_slice %1 {offsets = [0, 1], sizes = [8, 1], strides = [1, 1]} : vector<8x36xf32> to vector<8x1xf32>
    %12 = vector.extract_strided_slice %3 {offsets = [1, 0], sizes = [1, 512], strides = [1, 1]} : vector<36x512xf32> to vector<1x512xf32>
    %13 = vector.broadcast %11 : vector<8x1xf32> to vector<8x512xf32>
    %14 = vector.broadcast %12 : vector<1x512xf32> to vector<8x512xf32>
    %15 = arith.mulf %13, %14 : vector<8x512xf32>
    %16 = arith.addf %10, %15 : vector<8x512xf32>
    %17 = vector.extract_strided_slice %1 {offsets = [0, 2], sizes = [8, 1], strides = [1, 1]} : vector<8x36xf32> to vector<8x1xf32>
    %18 = vector.extract_strided_slice %3 {offsets = [2, 0], sizes = [1, 512], strides = [1, 1]} : vector<36x512xf32> to vector<1x512xf32>
    %19 = vector.broadcast %17 : vector<8x1xf32> to vector<8x512xf32>
    %20 = vector.broadcast %18 : vector<1x512xf32> to vector<8x512xf32>
    %21 = arith.mulf %19, %20 : vector<8x512xf32>
    %22 = arith.addf %16, %21 : vector<8x512xf32>
    %23 = vector.extract_strided_slice %1 {offsets = [0, 3], sizes = [8, 1], strides = [1, 1]} : vector<8x36xf32> to vector<8x1xf32>
    %24 = vector.extract_strided_slice %3 {offsets = [3, 0], sizes = [1, 512], strides = [1, 1]} : vector<36x512xf32> to vector<1x512xf32>
    %25 = vector.broadcast %23 : vector<8x1xf32> to vector<8x512xf32>
    %26 = vector.broadcast %24 : vector<1x512xf32> to vector<8x512xf32>
    %27 = arith.mulf %25, %26 : vector<8x512xf32>
    %28 = arith.addf %22, %27 : vector<8x512xf32>
    %29 = vector.extract_strided_slice %1 {offsets = [0, 4], sizes = [8, 1], strides = [1, 1]} : vector<8x36xf32> to vector<8x1xf32>
    %30 = vector.extract_strided_slice %3 {offsets = [4, 0], sizes = [1, 512], strides = [1, 1]} : vector<36x512xf32> to vector<1x512xf32>
    %31 = vector.broadcast %29 : vector<8x1xf32> to vector<8x512xf32>
    %32 = vector.broadcast %30 : vector<1x512xf32> to vector<8x512xf32>
    %33 = arith.mulf %31, %32 : vector<8x512xf32>
    %34 = arith.addf %28, %33 : vector<8x512xf32>
    %35 = vector.extract_strided_slice %1 {offsets = [0, 5], sizes = [8, 1], strides = [1, 1]} : vector<8x36xf32> to vector<8x1xf32>
    %36 = vector.extract_strided_slice %3 {offsets = [5, 0], sizes = [1, 512], strides = [1, 1]} : vector<36x512xf32> to vector<1x512xf32>
    %37 = vector.broadcast %35 : vector<8x1xf32> to vector<8x512xf32>
    %38 = vector.broadcast %36 : vector<1x512xf32> to vector<8x512xf32>
    %39 = arith.mulf %37, %38 : vector<8x512xf32>
    %40 = arith.addf %34, %39 : vector<8x512xf32>
    %41 = vector.extract_strided_slice %1 {offsets = [0, 6], sizes = [8, 1], strides = [1, 1]} : vector<8x36xf32> to vector<8x1xf32>
    %42 = vector.extract_strided_slice %3 {offsets = [6, 0], sizes = [1, 512], strides = [1, 1]} : vector<36x512xf32> to vector<1x512xf32>
    %43 = vector.broadcast %41 : vector<8x1xf32> to vector<8x512xf32>
    %44 = vector.broadcast %42 : vector<1x512xf32> to vector<8x512xf32>
    %45 = arith.mulf %43, %44 : vector<8x512xf32>
    %46 = arith.addf %40, %45 : vector<8x512xf32>
    %47 = vector.extract_strided_slice %1 {offsets = [0, 7], sizes = [8, 1], strides = [1, 1]} : vector<8x36xf32> to vector<8x1xf32>
    %48 = vector.extract_strided_slice %3 {offsets = [7, 0], sizes = [1, 512], strides = [1, 1]} : vector<36x512xf32> to vector<1x512xf32>
    %49 = vector.broadcast %47 : vector<8x1xf32> to vector<8x512xf32>
    %50 = vector.broadcast %48 : vector<1x512xf32> to vector<8x512xf32>
    %51 = arith.mulf %49, %50 : vector<8x512xf32>
    %52 = arith.addf %46, %51 : vector<8x512xf32>
    %53 = vector.extract_strided_slice %1 {offsets = [0, 8], sizes = [8, 1], strides = [1, 1]} : vector<8x36xf32> to vector<8x1xf32>
    %54 = vector.extract_strided_slice %3 {offsets = [8, 0], sizes = [1, 512], strides = [1, 1]} : vector<36x512xf32> to vector<1x512xf32>
    %55 = vector.broadcast %53 : vector<8x1xf32> to vector<8x512xf32>
    %56 = vector.broadcast %54 : vector<1x512xf32> to vector<8x512xf32>
    %57 = arith.mulf %55, %56 : vector<8x512xf32>
    %58 = arith.addf %52, %57 : vector<8x512xf32>
    %59 = vector.extract_strided_slice %1 {offsets = [0, 9], sizes = [8, 1], strides = [1, 1]} : vector<8x36xf32> to vector<8x1xf32>
    %60 = vector.extract_strided_slice %3 {offsets = [9, 0], sizes = [1, 512], strides = [1, 1]} : vector<36x512xf32> to vector<1x512xf32>
    %61 = vector.broadcast %59 : vector<8x1xf32> to vector<8x512xf32>
    %62 = vector.broadcast %60 : vector<1x512xf32> to vector<8x512xf32>
    %63 = arith.mulf %61, %62 : vector<8x512xf32>
    %64 = arith.addf %58, %63 : vector<8x512xf32>
    %65 = vector.extract_strided_slice %1 {offsets = [0, 10], sizes = [8, 1], strides = [1, 1]} : vector<8x36xf32> to vector<8x1xf32>
    %66 = vector.extract_strided_slice %3 {offsets = [10, 0], sizes = [1, 512], strides = [1, 1]} : vector<36x512xf32> to vector<1x512xf32>
    %67 = vector.broadcast %65 : vector<8x1xf32> to vector<8x512xf32>
    %68 = vector.broadcast %66 : vector<1x512xf32> to vector<8x512xf32>
    %69 = arith.mulf %67, %68 : vector<8x512xf32>
    %70 = arith.addf %64, %69 : vector<8x512xf32>
    %71 = vector.extract_strided_slice %1 {offsets = [0, 11], sizes = [8, 1], strides = [1, 1]} : vector<8x36xf32> to vector<8x1xf32>
    %72 = vector.extract_strided_slice %3 {offsets = [11, 0], sizes = [1, 512], strides = [1, 1]} : vector<36x512xf32> to vector<1x512xf32>
    %73 = vector.broadcast %71 : vector<8x1xf32> to vector<8x512xf32>
    %74 = vector.broadcast %72 : vector<1x512xf32> to vector<8x512xf32>
    %75 = arith.mulf %73, %74 : vector<8x512xf32>
    %76 = arith.addf %70, %75 : vector<8x512xf32>
    %77 = vector.extract_strided_slice %1 {offsets = [0, 12], sizes = [8, 1], strides = [1, 1]} : vector<8x36xf32> to vector<8x1xf32>
    %78 = vector.extract_strided_slice %3 {offsets = [12, 0], sizes = [1, 512], strides = [1, 1]} : vector<36x512xf32> to vector<1x512xf32>
    %79 = vector.broadcast %77 : vector<8x1xf32> to vector<8x512xf32>
    %80 = vector.broadcast %78 : vector<1x512xf32> to vector<8x512xf32>
    %81 = arith.mulf %79, %80 : vector<8x512xf32>
    %82 = arith.addf %76, %81 : vector<8x512xf32>
    %83 = vector.extract_strided_slice %1 {offsets = [0, 13], sizes = [8, 1], strides = [1, 1]} : vector<8x36xf32> to vector<8x1xf32>
    %84 = vector.extract_strided_slice %3 {offsets = [13, 0], sizes = [1, 512], strides = [1, 1]} : vector<36x512xf32> to vector<1x512xf32>
    %85 = vector.broadcast %83 : vector<8x1xf32> to vector<8x512xf32>
    %86 = vector.broadcast %84 : vector<1x512xf32> to vector<8x512xf32>
    %87 = arith.mulf %85, %86 : vector<8x512xf32>
    %88 = arith.addf %82, %87 : vector<8x512xf32>
    %89 = vector.extract_strided_slice %1 {offsets = [0, 14], sizes = [8, 1], strides = [1, 1]} : vector<8x36xf32> to vector<8x1xf32>
    %90 = vector.extract_strided_slice %3 {offsets = [14, 0], sizes = [1, 512], strides = [1, 1]} : vector<36x512xf32> to vector<1x512xf32>
    %91 = vector.broadcast %89 : vector<8x1xf32> to vector<8x512xf32>
    %92 = vector.broadcast %90 : vector<1x512xf32> to vector<8x512xf32>
    %93 = arith.mulf %91, %92 : vector<8x512xf32>
    %94 = arith.addf %88, %93 : vector<8x512xf32>
    %95 = vector.extract_strided_slice %1 {offsets = [0, 15], sizes = [8, 1], strides = [1, 1]} : vector<8x36xf32> to vector<8x1xf32>
    %96 = vector.extract_strided_slice %3 {offsets = [15, 0], sizes = [1, 512], strides = [1, 1]} : vector<36x512xf32> to vector<1x512xf32>
    %97 = vector.broadcast %95 : vector<8x1xf32> to vector<8x512xf32>
    %98 = vector.broadcast %96 : vector<1x512xf32> to vector<8x512xf32>
    %99 = arith.mulf %97, %98 : vector<8x512xf32>
    %100 = arith.addf %94, %99 : vector<8x512xf32>
    %101 = vector.extract_strided_slice %1 {offsets = [0, 16], sizes = [8, 1], strides = [1, 1]} : vector<8x36xf32> to vector<8x1xf32>
    %102 = vector.extract_strided_slice %3 {offsets = [16, 0], sizes = [1, 512], strides = [1, 1]} : vector<36x512xf32> to vector<1x512xf32>
    %103 = vector.broadcast %101 : vector<8x1xf32> to vector<8x512xf32>
    %104 = vector.broadcast %102 : vector<1x512xf32> to vector<8x512xf32>
    %105 = arith.mulf %103, %104 : vector<8x512xf32>
    %106 = arith.addf %100, %105 : vector<8x512xf32>
    %107 = vector.extract_strided_slice %1 {offsets = [0, 17], sizes = [8, 1], strides = [1, 1]} : vector<8x36xf32> to vector<8x1xf32>
    %108 = vector.extract_strided_slice %3 {offsets = [17, 0], sizes = [1, 512], strides = [1, 1]} : vector<36x512xf32> to vector<1x512xf32>
    %109 = vector.broadcast %107 : vector<8x1xf32> to vector<8x512xf32>
    %110 = vector.broadcast %108 : vector<1x512xf32> to vector<8x512xf32>
    %111 = arith.mulf %109, %110 : vector<8x512xf32>
    %112 = arith.addf %106, %111 : vector<8x512xf32>
    %113 = vector.extract_strided_slice %1 {offsets = [0, 18], sizes = [8, 1], strides = [1, 1]} : vector<8x36xf32> to vector<8x1xf32>
    %114 = vector.extract_strided_slice %3 {offsets = [18, 0], sizes = [1, 512], strides = [1, 1]} : vector<36x512xf32> to vector<1x512xf32>
    %115 = vector.broadcast %113 : vector<8x1xf32> to vector<8x512xf32>
    %116 = vector.broadcast %114 : vector<1x512xf32> to vector<8x512xf32>
    %117 = arith.mulf %115, %116 : vector<8x512xf32>
    %118 = arith.addf %112, %117 : vector<8x512xf32>
    %119 = vector.extract_strided_slice %1 {offsets = [0, 19], sizes = [8, 1], strides = [1, 1]} : vector<8x36xf32> to vector<8x1xf32>
    %120 = vector.extract_strided_slice %3 {offsets = [19, 0], sizes = [1, 512], strides = [1, 1]} : vector<36x512xf32> to vector<1x512xf32>
    %121 = vector.broadcast %119 : vector<8x1xf32> to vector<8x512xf32>
    %122 = vector.broadcast %120 : vector<1x512xf32> to vector<8x512xf32>
    %123 = arith.mulf %121, %122 : vector<8x512xf32>
    %124 = arith.addf %118, %123 : vector<8x512xf32>
    %125 = vector.extract_strided_slice %1 {offsets = [0, 20], sizes = [8, 1], strides = [1, 1]} : vector<8x36xf32> to vector<8x1xf32>
    %126 = vector.extract_strided_slice %3 {offsets = [20, 0], sizes = [1, 512], strides = [1, 1]} : vector<36x512xf32> to vector<1x512xf32>
    %127 = vector.broadcast %125 : vector<8x1xf32> to vector<8x512xf32>
    %128 = vector.broadcast %126 : vector<1x512xf32> to vector<8x512xf32>
    %129 = arith.mulf %127, %128 : vector<8x512xf32>
    %130 = arith.addf %124, %129 : vector<8x512xf32>
    %131 = vector.extract_strided_slice %1 {offsets = [0, 21], sizes = [8, 1], strides = [1, 1]} : vector<8x36xf32> to vector<8x1xf32>
    %132 = vector.extract_strided_slice %3 {offsets = [21, 0], sizes = [1, 512], strides = [1, 1]} : vector<36x512xf32> to vector<1x512xf32>
    %133 = vector.broadcast %131 : vector<8x1xf32> to vector<8x512xf32>
    %134 = vector.broadcast %132 : vector<1x512xf32> to vector<8x512xf32>
    %135 = arith.mulf %133, %134 : vector<8x512xf32>
    %136 = arith.addf %130, %135 : vector<8x512xf32>
    %137 = vector.extract_strided_slice %1 {offsets = [0, 22], sizes = [8, 1], strides = [1, 1]} : vector<8x36xf32> to vector<8x1xf32>
    %138 = vector.extract_strided_slice %3 {offsets = [22, 0], sizes = [1, 512], strides = [1, 1]} : vector<36x512xf32> to vector<1x512xf32>
    %139 = vector.broadcast %137 : vector<8x1xf32> to vector<8x512xf32>
    %140 = vector.broadcast %138 : vector<1x512xf32> to vector<8x512xf32>
    %141 = arith.mulf %139, %140 : vector<8x512xf32>
    %142 = arith.addf %136, %141 : vector<8x512xf32>
    %143 = vector.extract_strided_slice %1 {offsets = [0, 23], sizes = [8, 1], strides = [1, 1]} : vector<8x36xf32> to vector<8x1xf32>
    %144 = vector.extract_strided_slice %3 {offsets = [23, 0], sizes = [1, 512], strides = [1, 1]} : vector<36x512xf32> to vector<1x512xf32>
    %145 = vector.broadcast %143 : vector<8x1xf32> to vector<8x512xf32>
    %146 = vector.broadcast %144 : vector<1x512xf32> to vector<8x512xf32>
    %147 = arith.mulf %145, %146 : vector<8x512xf32>
    %148 = arith.addf %142, %147 : vector<8x512xf32>
    %149 = vector.extract_strided_slice %1 {offsets = [0, 24], sizes = [8, 1], strides = [1, 1]} : vector<8x36xf32> to vector<8x1xf32>
    %150 = vector.extract_strided_slice %3 {offsets = [24, 0], sizes = [1, 512], strides = [1, 1]} : vector<36x512xf32> to vector<1x512xf32>
    %151 = vector.broadcast %149 : vector<8x1xf32> to vector<8x512xf32>
    %152 = vector.broadcast %150 : vector<1x512xf32> to vector<8x512xf32>
    %153 = arith.mulf %151, %152 : vector<8x512xf32>
    %154 = arith.addf %148, %153 : vector<8x512xf32>
    %155 = vector.extract_strided_slice %1 {offsets = [0, 25], sizes = [8, 1], strides = [1, 1]} : vector<8x36xf32> to vector<8x1xf32>
    %156 = vector.extract_strided_slice %3 {offsets = [25, 0], sizes = [1, 512], strides = [1, 1]} : vector<36x512xf32> to vector<1x512xf32>
    %157 = vector.broadcast %155 : vector<8x1xf32> to vector<8x512xf32>
    %158 = vector.broadcast %156 : vector<1x512xf32> to vector<8x512xf32>
    %159 = arith.mulf %157, %158 : vector<8x512xf32>
    %160 = arith.addf %154, %159 : vector<8x512xf32>
    %161 = vector.extract_strided_slice %1 {offsets = [0, 26], sizes = [8, 1], strides = [1, 1]} : vector<8x36xf32> to vector<8x1xf32>
    %162 = vector.extract_strided_slice %3 {offsets = [26, 0], sizes = [1, 512], strides = [1, 1]} : vector<36x512xf32> to vector<1x512xf32>
    %163 = vector.broadcast %161 : vector<8x1xf32> to vector<8x512xf32>
    %164 = vector.broadcast %162 : vector<1x512xf32> to vector<8x512xf32>
    %165 = arith.mulf %163, %164 : vector<8x512xf32>
    %166 = arith.addf %160, %165 : vector<8x512xf32>
    %167 = vector.extract_strided_slice %1 {offsets = [0, 27], sizes = [8, 1], strides = [1, 1]} : vector<8x36xf32> to vector<8x1xf32>
    %168 = vector.extract_strided_slice %3 {offsets = [27, 0], sizes = [1, 512], strides = [1, 1]} : vector<36x512xf32> to vector<1x512xf32>
    %169 = vector.broadcast %167 : vector<8x1xf32> to vector<8x512xf32>
    %170 = vector.broadcast %168 : vector<1x512xf32> to vector<8x512xf32>
    %171 = arith.mulf %169, %170 : vector<8x512xf32>
    %172 = arith.addf %166, %171 : vector<8x512xf32>
    %173 = vector.extract_strided_slice %1 {offsets = [0, 28], sizes = [8, 1], strides = [1, 1]} : vector<8x36xf32> to vector<8x1xf32>
    %174 = vector.extract_strided_slice %3 {offsets = [28, 0], sizes = [1, 512], strides = [1, 1]} : vector<36x512xf32> to vector<1x512xf32>
    %175 = vector.broadcast %173 : vector<8x1xf32> to vector<8x512xf32>
    %176 = vector.broadcast %174 : vector<1x512xf32> to vector<8x512xf32>
    %177 = arith.mulf %175, %176 : vector<8x512xf32>
    %178 = arith.addf %172, %177 : vector<8x512xf32>
    %179 = vector.extract_strided_slice %1 {offsets = [0, 29], sizes = [8, 1], strides = [1, 1]} : vector<8x36xf32> to vector<8x1xf32>
    %180 = vector.extract_strided_slice %3 {offsets = [29, 0], sizes = [1, 512], strides = [1, 1]} : vector<36x512xf32> to vector<1x512xf32>
    %181 = vector.broadcast %179 : vector<8x1xf32> to vector<8x512xf32>
    %182 = vector.broadcast %180 : vector<1x512xf32> to vector<8x512xf32>
    %183 = arith.mulf %181, %182 : vector<8x512xf32>
    %184 = arith.addf %178, %183 : vector<8x512xf32>
    %185 = vector.extract_strided_slice %1 {offsets = [0, 30], sizes = [8, 1], strides = [1, 1]} : vector<8x36xf32> to vector<8x1xf32>
    %186 = vector.extract_strided_slice %3 {offsets = [30, 0], sizes = [1, 512], strides = [1, 1]} : vector<36x512xf32> to vector<1x512xf32>
    %187 = vector.broadcast %185 : vector<8x1xf32> to vector<8x512xf32>
    %188 = vector.broadcast %186 : vector<1x512xf32> to vector<8x512xf32>
    %189 = arith.mulf %187, %188 : vector<8x512xf32>
    %190 = arith.addf %184, %189 : vector<8x512xf32>
    %191 = vector.extract_strided_slice %1 {offsets = [0, 31], sizes = [8, 1], strides = [1, 1]} : vector<8x36xf32> to vector<8x1xf32>
    %192 = vector.extract_strided_slice %3 {offsets = [31, 0], sizes = [1, 512], strides = [1, 1]} : vector<36x512xf32> to vector<1x512xf32>
    %193 = vector.broadcast %191 : vector<8x1xf32> to vector<8x512xf32>
    %194 = vector.broadcast %192 : vector<1x512xf32> to vector<8x512xf32>
    %195 = arith.mulf %193, %194 : vector<8x512xf32>
    %196 = arith.addf %190, %195 : vector<8x512xf32>
    %197 = vector.extract_strided_slice %1 {offsets = [0, 32], sizes = [8, 1], strides = [1, 1]} : vector<8x36xf32> to vector<8x1xf32>
    %198 = vector.extract_strided_slice %3 {offsets = [32, 0], sizes = [1, 512], strides = [1, 1]} : vector<36x512xf32> to vector<1x512xf32>
    %199 = vector.broadcast %197 : vector<8x1xf32> to vector<8x512xf32>
    %200 = vector.broadcast %198 : vector<1x512xf32> to vector<8x512xf32>
    %201 = arith.mulf %199, %200 : vector<8x512xf32>
    %202 = arith.addf %196, %201 : vector<8x512xf32>
    %203 = vector.extract_strided_slice %1 {offsets = [0, 33], sizes = [8, 1], strides = [1, 1]} : vector<8x36xf32> to vector<8x1xf32>
    %204 = vector.extract_strided_slice %3 {offsets = [33, 0], sizes = [1, 512], strides = [1, 1]} : vector<36x512xf32> to vector<1x512xf32>
    %205 = vector.broadcast %203 : vector<8x1xf32> to vector<8x512xf32>
    %206 = vector.broadcast %204 : vector<1x512xf32> to vector<8x512xf32>
    %207 = arith.mulf %205, %206 : vector<8x512xf32>
    %208 = arith.addf %202, %207 : vector<8x512xf32>
    %209 = vector.extract_strided_slice %1 {offsets = [0, 34], sizes = [8, 1], strides = [1, 1]} : vector<8x36xf32> to vector<8x1xf32>
    %210 = vector.extract_strided_slice %3 {offsets = [34, 0], sizes = [1, 512], strides = [1, 1]} : vector<36x512xf32> to vector<1x512xf32>
    %211 = vector.broadcast %209 : vector<8x1xf32> to vector<8x512xf32>
    %212 = vector.broadcast %210 : vector<1x512xf32> to vector<8x512xf32>
    %213 = arith.mulf %211, %212 : vector<8x512xf32>
    %214 = arith.addf %208, %213 : vector<8x512xf32>
    %215 = vector.extract_strided_slice %1 {offsets = [0, 35], sizes = [8, 1], strides = [1, 1]} : vector<8x36xf32> to vector<8x1xf32>
    %216 = vector.extract_strided_slice %3 {offsets = [35, 0], sizes = [1, 512], strides = [1, 1]} : vector<36x512xf32> to vector<1x512xf32>
    %217 = vector.broadcast %215 : vector<8x1xf32> to vector<8x512xf32>
    %218 = vector.broadcast %216 : vector<1x512xf32> to vector<8x512xf32>
    %219 = arith.mulf %217, %218 : vector<8x512xf32>
    %220 = arith.addf %214, %219 : vector<8x512xf32>
    %c0_3 = arith.constant 0 : index
    %c0_4 = arith.constant 0 : index
    %221 = vector.load %arg2[%c0_3, %c0_4] : memref<8x1xf32, #tpu.memory_space<vmem>>, vector<8x1xf32>
    %222 = vector.broadcast %221 : vector<8x1xf32> to vector<8x512xf32>
    %223 = arith.addf %220, %222 : vector<8x512xf32>
    %cst_5 = arith.constant 0.000000e+00 : f32
    %224 = vector.broadcast %cst_5 : f32 to vector<8x512xf32>
    %225 = arith.maximumf %223, %224 : vector<8x512xf32>
    %226 = arith.truncf %225 : vector<8x512xf32> to vector<8x512xbf16>
    %c0_6 = arith.constant 0 : index
    %c0_7 = arith.constant 0 : index
    %227 = vector.load %arg4[%c0_6, %c0_7] : memref<8x512xbf16, #tpu.memory_space<vmem>>, vector<8x512xbf16>
    tpu.vector_store %arg4[%c0_6, %c0_7], %226 {strides = array<i32>} : memref<8x512xbf16, #tpu.memory_space<vmem>>, vector<8x512xbf16>,
    return
  }
  func.func @transform_0(%arg0: i32) -> (i32, i32) {
    %c0_i32 = arith.constant 0 : i32
    %c0_i32_0 = arith.constant 0 : i32
    %c0_i32_1 = arith.constant 0 : i32
    return %c0_i32, %c0_i32_0 : i32, i32
  }
  func.func @transform_1(%arg0: i32) -> (i32, i32) {
    %c0_i32 = arith.constant 0 : i32
    %c0_i32_0 = arith.constant 0 : i32
    %c0_i32_1 = arith.constant 0 : i32
    return %c0_i32, %c0_i32_0 : i32, i32
  }
  func.func @transform_2(%arg0: i32) -> (i32, i32) {
    %c0_i32 = arith.constant 0 : i32
    %c0_i32_0 = arith.constant 0 : i32
    return %c0_i32, %arg0 : i32, i32
  }
  func.func @transform_3(%arg0: i32) -> (i32, i32) {
    %c0_i32 = arith.constant 0 : i32
    %c0_i32_0 = arith.constant 0 : i32
    return %c0_i32, %arg0 : i32, i32
  }
}

module attributes {stable_mosaic.version = 11 : i64} {
  func.func @_gemm_t_kernel(%arg0: i32, %arg1: memref<16x72xbf16, #tpu.memory_space<vmem>>, %arg2: memref<16x1xf32, #tpu.memory_space<vmem>>, %arg3: memref<72x128xbf16, #tpu.memory_space<vmem>>, %arg4: memref<16x128xbf16, #tpu.memory_space<vmem>>) attributes {dimension_semantics = [#tpu.dimension_semantics<parallel>], iteration_bounds = array<i64: 2>, scalar_prefetch = 0 : i64, scratch_operands = 0 : i64, tpu.core_type = #tpu.core_type<tc>, window_params = [{pipeline_mode = #tpu.pipeline_mode<synchronous>, transform_indices = @transform_0, window_bounds = array<i64: 16, 72>}, {pipeline_mode = #tpu.pipeline_mode<synchronous>, transform_indices = @transform_1, window_bounds = array<i64: 16, 1>}, {transform_indices = @transform_2, window_bounds = array<i64: 72, 128>}, {transform_indices = @transform_3, window_bounds = array<i64: 16, 128>}]} {
    %c0 = arith.constant 0 : index
    %c0_0 = arith.constant 0 : index
    %0 = vector.load %arg1[%c0, %c0_0] : memref<16x72xbf16, #tpu.memory_space<vmem>>, vector<16x72xbf16>
    %c0_1 = arith.constant 0 : index
    %c0_2 = arith.constant 0 : index
    %1 = vector.load %arg3[%c0_1, %c0_2] : memref<72x128xbf16, #tpu.memory_space<vmem>>, vector<72x128xbf16>
    %cst = arith.constant dense<0.000000e+00> : vector<16x128xf32>
    %2 = tpu.matmul %0, %1, %cst {dimension_numbers = #tpu.dot_dimension_numbers<[1], [0], [0], [1], [0, 0, 1, 1], [], []>} : vector<16x72xbf16>, vector<72x128xbf16>, vector<16x128xf32> -> vector<16x128xf32>
    %c0_3 = arith.constant 0 : index
    %c0_4 = arith.constant 0 : index
    %3 = vector.load %arg2[%c0_3, %c0_4] : memref<16x1xf32, #tpu.memory_space<vmem>>, vector<16x1xf32>
    %4 = vector.broadcast %3 : vector<16x1xf32> to vector<16x128xf32>
    %5 = arith.addf %2, %4 : vector<16x128xf32>
    %cst_5 = arith.constant 0.000000e+00 : f32
    %6 = vector.broadcast %cst_5 : f32 to vector<16x128xf32>
    %7 = arith.maximumf %5, %6 : vector<16x128xf32>
    %8 = arith.truncf %7 : vector<16x128xf32> to vector<16x128xbf16>
    %c0_6 = arith.constant 0 : index
    %c0_7 = arith.constant 0 : index
    %9 = vector.load %arg4[%c0_6, %c0_7] : memref<16x128xbf16, #tpu.memory_space<vmem>>, vector<16x128xbf16>
    tpu.vector_store %arg4[%c0_6, %c0_7], %8 {strides = array<i32>} : memref<16x128xbf16, #tpu.memory_space<vmem>>, vector<16x128xbf16>,
    return
  }
  func.func @transform_0(%arg0: i32) -> (i32, i32) {
    %c0_i32 = arith.constant 0 : i32
    %c0_i32_0 = arith.constant 0 : i32
    %c0_i32_1 = arith.constant 0 : i32
    return %c0_i32, %c0_i32_0 : i32, i32
  }
  func.func @transform_1(%arg0: i32) -> (i32, i32) {
    %c0_i32 = arith.constant 0 : i32
    %c0_i32_0 = arith.constant 0 : i32
    %c0_i32_1 = arith.constant 0 : i32
    return %c0_i32, %c0_i32_0 : i32, i32
  }
  func.func @transform_2(%arg0: i32) -> (i32, i32) {
    %c0_i32 = arith.constant 0 : i32
    %c0_i32_0 = arith.constant 0 : i32
    return %c0_i32, %arg0 : i32, i32
  }
  func.func @transform_3(%arg0: i32) -> (i32, i32) {
    %c0_i32 = arith.constant 0 : i32
    %c0_i32_0 = arith.constant 0 : i32
    return %c0_i32, %arg0 : i32, i32
  }
}

module attributes {stable_mosaic.version = 11 : i64} {
  func.func @_gemm_t_kernel(%arg0: i32, %arg1: memref<32x144xbf16, #tpu.memory_space<vmem>>, %arg2: memref<32x1xf32, #tpu.memory_space<vmem>>, %arg3: memref<144x128xbf16, #tpu.memory_space<vmem>>, %arg4: memref<32x128xbf16, #tpu.memory_space<vmem>>) attributes {dimension_semantics = [#tpu.dimension_semantics<parallel>], iteration_bounds = array<i64: 1>, scalar_prefetch = 0 : i64, scratch_operands = 0 : i64, tpu.core_type = #tpu.core_type<tc>, window_params = [{pipeline_mode = #tpu.pipeline_mode<synchronous>, transform_indices = @transform_0, window_bounds = array<i64: 32, 144>}, {pipeline_mode = #tpu.pipeline_mode<synchronous>, transform_indices = @transform_1, window_bounds = array<i64: 32, 1>}, {transform_indices = @transform_2, window_bounds = array<i64: 144, 128>}, {transform_indices = @transform_3, window_bounds = array<i64: 32, 128>}]} {
    %c0 = arith.constant 0 : index
    %c0_0 = arith.constant 0 : index
    %0 = vector.load %arg1[%c0, %c0_0] : memref<32x144xbf16, #tpu.memory_space<vmem>>, vector<32x144xbf16>
    %c0_1 = arith.constant 0 : index
    %c0_2 = arith.constant 0 : index
    %1 = vector.load %arg3[%c0_1, %c0_2] : memref<144x128xbf16, #tpu.memory_space<vmem>>, vector<144x128xbf16>
    %cst = arith.constant dense<0.000000e+00> : vector<32x128xf32>
    %2 = tpu.matmul %0, %1, %cst {dimension_numbers = #tpu.dot_dimension_numbers<[1], [0], [0], [1], [0, 0, 1, 1], [], []>} : vector<32x144xbf16>, vector<144x128xbf16>, vector<32x128xf32> -> vector<32x128xf32>
    %c0_3 = arith.constant 0 : index
    %c0_4 = arith.constant 0 : index
    %3 = vector.load %arg2[%c0_3, %c0_4] : memref<32x1xf32, #tpu.memory_space<vmem>>, vector<32x1xf32>
    %4 = vector.broadcast %3 : vector<32x1xf32> to vector<32x128xf32>
    %5 = arith.addf %2, %4 : vector<32x128xf32>
    %cst_5 = arith.constant 0.000000e+00 : f32
    %6 = vector.broadcast %cst_5 : f32 to vector<32x128xf32>
    %7 = arith.maximumf %5, %6 : vector<32x128xf32>
    %8 = arith.truncf %7 : vector<32x128xf32> to vector<32x128xbf16>
    %c0_6 = arith.constant 0 : index
    %c0_7 = arith.constant 0 : index
    %9 = vector.load %arg4[%c0_6, %c0_7] : memref<32x128xbf16, #tpu.memory_space<vmem>>, vector<32x128xbf16>
    tpu.vector_store %arg4[%c0_6, %c0_7], %8 {strides = array<i32>} : memref<32x128xbf16, #tpu.memory_space<vmem>>, vector<32x128xbf16>,
    return
  }
  func.func @transform_0(%arg0: i32) -> (i32, i32) {
    %c0_i32 = arith.constant 0 : i32
    %c0_i32_0 = arith.constant 0 : i32
    %c0_i32_1 = arith.constant 0 : i32
    return %c0_i32, %c0_i32_0 : i32, i32
  }
  func.func @transform_1(%arg0: i32) -> (i32, i32) {
    %c0_i32 = arith.constant 0 : i32
    %c0_i32_0 = arith.constant 0 : i32
    %c0_i32_1 = arith.constant 0 : i32
    return %c0_i32, %c0_i32_0 : i32, i32
  }
  func.func @transform_2(%arg0: i32) -> (i32, i32) {
    %c0_i32 = arith.constant 0 : i32
    %c0_i32_0 = arith.constant 0 : i32
    return %c0_i32, %arg0 : i32, i32
  }
  func.func @transform_3(%arg0: i32) -> (i32, i32) {
    %c0_i32 = arith.constant 0 : i32
    %c0_i32_0 = arith.constant 0 : i32
    return %c0_i32, %arg0 : i32, i32
  }
}

module attributes {stable_mosaic.version = 11 : i64} {
  func.func @_gemm_t_kernel(%arg0: i32, %arg1: memref<64x288xbf16, #tpu.memory_space<vmem>>, %arg2: memref<64x1xf32, #tpu.memory_space<vmem>>, %arg3: memref<288x128xbf16, #tpu.memory_space<vmem>>, %arg4: memref<64x128xbf16, #tpu.memory_space<vmem>>) attributes {dimension_semantics = [#tpu.dimension_semantics<parallel>], iteration_bounds = array<i64: 1>, scalar_prefetch = 0 : i64, scratch_operands = 0 : i64, tpu.core_type = #tpu.core_type<tc>, window_params = [{pipeline_mode = #tpu.pipeline_mode<synchronous>, transform_indices = @transform_0, window_bounds = array<i64: 64, 288>}, {pipeline_mode = #tpu.pipeline_mode<synchronous>, transform_indices = @transform_1, window_bounds = array<i64: 64, 1>}, {transform_indices = @transform_2, window_bounds = array<i64: 288, 128>}, {transform_indices = @transform_3, window_bounds = array<i64: 64, 128>}]} {
    %c0 = arith.constant 0 : index
    %c0_0 = arith.constant 0 : index
    %0 = vector.load %arg1[%c0, %c0_0] : memref<64x288xbf16, #tpu.memory_space<vmem>>, vector<64x288xbf16>
    %c0_1 = arith.constant 0 : index
    %c0_2 = arith.constant 0 : index
    %1 = vector.load %arg3[%c0_1, %c0_2] : memref<288x128xbf16, #tpu.memory_space<vmem>>, vector<288x128xbf16>
    %cst = arith.constant dense<0.000000e+00> : vector<64x128xf32>
    %2 = tpu.matmul %0, %1, %cst {dimension_numbers = #tpu.dot_dimension_numbers<[1], [0], [0], [1], [0, 0, 1, 1], [], []>} : vector<64x288xbf16>, vector<288x128xbf16>, vector<64x128xf32> -> vector<64x128xf32>
    %c0_3 = arith.constant 0 : index
    %c0_4 = arith.constant 0 : index
    %3 = vector.load %arg2[%c0_3, %c0_4] : memref<64x1xf32, #tpu.memory_space<vmem>>, vector<64x1xf32>
    %4 = vector.broadcast %3 : vector<64x1xf32> to vector<64x128xf32>
    %5 = arith.addf %2, %4 : vector<64x128xf32>
    %cst_5 = arith.constant 0.000000e+00 : f32
    %6 = vector.broadcast %cst_5 : f32 to vector<64x128xf32>
    %7 = arith.maximumf %5, %6 : vector<64x128xf32>
    %8 = arith.truncf %7 : vector<64x128xf32> to vector<64x128xbf16>
    %c0_6 = arith.constant 0 : index
    %c0_7 = arith.constant 0 : index
    %9 = vector.load %arg4[%c0_6, %c0_7] : memref<64x128xbf16, #tpu.memory_space<vmem>>, vector<64x128xbf16>
    tpu.vector_store %arg4[%c0_6, %c0_7], %8 {strides = array<i32>} : memref<64x128xbf16, #tpu.memory_space<vmem>>, vector<64x128xbf16>,
    return
  }
  func.func @transform_0(%arg0: i32) -> (i32, i32) {
    %c0_i32 = arith.constant 0 : i32
    %c0_i32_0 = arith.constant 0 : i32
    %c0_i32_1 = arith.constant 0 : i32
    return %c0_i32, %c0_i32_0 : i32, i32
  }
  func.func @transform_1(%arg0: i32) -> (i32, i32) {
    %c0_i32 = arith.constant 0 : i32
    %c0_i32_0 = arith.constant 0 : i32
    %c0_i32_1 = arith.constant 0 : i32
    return %c0_i32, %c0_i32_0 : i32, i32
  }
  func.func @transform_2(%arg0: i32) -> (i32, i32) {
    %c0_i32 = arith.constant 0 : i32
    %c0_i32_0 = arith.constant 0 : i32
    return %c0_i32, %arg0 : i32, i32
  }
  func.func @transform_3(%arg0: i32) -> (i32, i32) {
    %c0_i32 = arith.constant 0 : i32
    %c0_i32_0 = arith.constant 0 : i32
    return %c0_i32, %arg0 : i32, i32
  }
}

module attributes {stable_mosaic.version = 11 : i64} {
  func.func @_linear_head_kernel(%arg0: i32, %arg1: memref<8x576xbf16, #tpu.memory_space<vmem>>, %arg2: memref<576x128xbf16, #tpu.memory_space<vmem>>, %arg3: memref<1x128xf32, #tpu.memory_space<vmem>>, %arg4: memref<128x64xbf16, #tpu.memory_space<vmem>>, %arg5: memref<1x64xf32, #tpu.memory_space<vmem>>, %arg6: memref<64x128xbf16, #tpu.memory_space<vmem>>, %arg7: memref<1x128xf32, #tpu.memory_space<vmem>>, %arg8: memref<128x576xbf16, #tpu.memory_space<vmem>>, %arg9: memref<1x576xf32, #tpu.memory_space<vmem>>, %arg10: memref<8x576xbf16, #tpu.memory_space<vmem>>) attributes {dimension_semantics = [#tpu.dimension_semantics<parallel>], iteration_bounds = array<i64: 2>, scalar_prefetch = 0 : i64, scratch_operands = 0 : i64, tpu.core_type = #tpu.core_type<tc>, window_params = [{transform_indices = @transform_0, window_bounds = array<i64: 8, 576>}, {pipeline_mode = #tpu.pipeline_mode<synchronous>, transform_indices = @transform_1, window_bounds = array<i64: 576, 128>}, {pipeline_mode = #tpu.pipeline_mode<synchronous>, transform_indices = @transform_2, window_bounds = array<i64: 1, 128>}, {pipeline_mode = #tpu.pipeline_mode<synchronous>, transform_indices = @transform_3, window_bounds = array<i64: 128, 64>}, {pipeline_mode = #tpu.pipeline_mode<synchronous>, transform_indices = @transform_4, window_bounds = array<i64: 1, 64>}, {pipeline_mode = #tpu.pipeline_mode<synchronous>, transform_indices = @transform_5, window_bounds = array<i64: 64, 128>}, {pipeline_mode = #tpu.pipeline_mode<synchronous>, transform_indices = @transform_6, window_bounds = array<i64: 1, 128>}, {pipeline_mode = #tpu.pipeline_mode<synchronous>, transform_indices = @transform_7, window_bounds = array<i64: 128, 576>}, {pipeline_mode = #tpu.pipeline_mode<synchronous>, transform_indices = @transform_8, window_bounds = array<i64: 1, 576>}, {transform_indices = @transform_9, window_bounds = array<i64: 8, 576>}]} {
    %c0 = arith.constant 0 : index
    %c0_0 = arith.constant 0 : index
    %0 = vector.load %arg1[%c0, %c0_0] : memref<8x576xbf16, #tpu.memory_space<vmem>>, vector<8x576xbf16>
    %c0_1 = arith.constant 0 : index
    %c0_2 = arith.constant 0 : index
    %1 = vector.load %arg2[%c0_1, %c0_2] : memref<576x128xbf16, #tpu.memory_space<vmem>>, vector<576x128xbf16>
    %cst = arith.constant dense<0.000000e+00> : vector<8x128xf32>
    %2 = tpu.matmul %0, %1, %cst {dimension_numbers = #tpu.dot_dimension_numbers<[1], [0], [0], [1], [0, 0, 1, 1], [], []>} : vector<8x576xbf16>, vector<576x128xbf16>, vector<8x128xf32> -> vector<8x128xf32>
    %c0_3 = arith.constant 0 : index
    %c0_4 = arith.constant 0 : index
    %3 = vector.load %arg3[%c0_3, %c0_4] : memref<1x128xf32, #tpu.memory_space<vmem>>, vector<1x128xf32>
    %4 = vector.broadcast %3 : vector<1x128xf32> to vector<8x128xf32>
    %5 = arith.addf %2, %4 : vector<8x128xf32>
    %cst_5 = arith.constant 0.000000e+00 : f32
    %6 = vector.broadcast %cst_5 : f32 to vector<8x128xf32>
    %7 = arith.maximumf %5, %6 : vector<8x128xf32>
    %8 = arith.truncf %7 : vector<8x128xf32> to vector<8x128xbf16>
    %c0_6 = arith.constant 0 : index
    %c0_7 = arith.constant 0 : index
    %9 = vector.load %arg4[%c0_6, %c0_7] : memref<128x64xbf16, #tpu.memory_space<vmem>>, vector<128x64xbf16>
    %cst_8 = arith.constant dense<0.000000e+00> : vector<8x64xf32>
    %10 = tpu.matmul %8, %9, %cst_8 {dimension_numbers = #tpu.dot_dimension_numbers<[1], [0], [0], [1], [0, 0, 1, 1], [], []>} : vector<8x128xbf16>, vector<128x64xbf16>, vector<8x64xf32> -> vector<8x64xf32>
    %c0_9 = arith.constant 0 : index
    %c0_10 = arith.constant 0 : index
    %11 = vector.load %arg5[%c0_9, %c0_10] : memref<1x64xf32, #tpu.memory_space<vmem>>, vector<1x64xf32>
    %12 = vector.broadcast %11 : vector<1x64xf32> to vector<8x64xf32>
    %13 = arith.addf %10, %12 : vector<8x64xf32>
    %cst_11 = arith.constant 0.000000e+00 : f32
    %14 = vector.broadcast %cst_11 : f32 to vector<8x64xf32>
    %15 = arith.maximumf %13, %14 : vector<8x64xf32>
    %16 = arith.truncf %15 : vector<8x64xf32> to vector<8x64xbf16>
    %c0_12 = arith.constant 0 : index
    %c0_13 = arith.constant 0 : index
    %17 = vector.load %arg6[%c0_12, %c0_13] : memref<64x128xbf16, #tpu.memory_space<vmem>>, vector<64x128xbf16>
    %cst_14 = arith.constant dense<0.000000e+00> : vector<8x128xf32>
    %18 = tpu.matmul %16, %17, %cst_14 {dimension_numbers = #tpu.dot_dimension_numbers<[1], [0], [0], [1], [0, 0, 1, 1], [], []>} : vector<8x64xbf16>, vector<64x128xbf16>, vector<8x128xf32> -> vector<8x128xf32>
    %c0_15 = arith.constant 0 : index
    %c0_16 = arith.constant 0 : index
    %19 = vector.load %arg7[%c0_15, %c0_16] : memref<1x128xf32, #tpu.memory_space<vmem>>, vector<1x128xf32>
    %20 = vector.broadcast %19 : vector<1x128xf32> to vector<8x128xf32>
    %21 = arith.addf %18, %20 : vector<8x128xf32>
    %cst_17 = arith.constant 0.000000e+00 : f32
    %22 = vector.broadcast %cst_17 : f32 to vector<8x128xf32>
    %23 = arith.maximumf %21, %22 : vector<8x128xf32>
    %24 = arith.truncf %23 : vector<8x128xf32> to vector<8x128xbf16>
    %c0_18 = arith.constant 0 : index
    %c0_19 = arith.constant 0 : index
    %25 = vector.load %arg8[%c0_18, %c0_19] : memref<128x576xbf16, #tpu.memory_space<vmem>>, vector<128x576xbf16>
    %cst_20 = arith.constant dense<0.000000e+00> : vector<8x576xf32>
    %26 = tpu.matmul %24, %25, %cst_20 {dimension_numbers = #tpu.dot_dimension_numbers<[1], [0], [0], [1], [0, 0, 1, 1], [], []>} : vector<8x128xbf16>, vector<128x576xbf16>, vector<8x576xf32> -> vector<8x576xf32>
    %c0_21 = arith.constant 0 : index
    %c0_22 = arith.constant 0 : index
    %27 = vector.load %arg9[%c0_21, %c0_22] : memref<1x576xf32, #tpu.memory_space<vmem>>, vector<1x576xf32>
    %28 = vector.broadcast %27 : vector<1x576xf32> to vector<8x576xf32>
    %29 = arith.addf %26, %28 : vector<8x576xf32>
    %30 = arith.truncf %29 : vector<8x576xf32> to vector<8x576xbf16>
    %c0_23 = arith.constant 0 : index
    %c0_24 = arith.constant 0 : index
    %31 = vector.load %arg10[%c0_23, %c0_24] : memref<8x576xbf16, #tpu.memory_space<vmem>>, vector<8x576xbf16>
    tpu.vector_store %arg10[%c0_23, %c0_24], %30 {strides = array<i32>} : memref<8x576xbf16, #tpu.memory_space<vmem>>, vector<8x576xbf16>,
    return
  }
  func.func @transform_0(%arg0: i32) -> (i32, i32) {
    %c0_i32 = arith.constant 0 : i32
    %c0_i32_0 = arith.constant 0 : i32
    return %arg0, %c0_i32 : i32, i32
  }
  func.func @transform_1(%arg0: i32) -> (i32, i32) {
    %c0_i32 = arith.constant 0 : i32
    %c0_i32_0 = arith.constant 0 : i32
    %c0_i32_1 = arith.constant 0 : i32
    return %c0_i32, %c0_i32_0 : i32, i32
  }
  func.func @transform_2(%arg0: i32) -> (i32, i32) {
    %c0_i32 = arith.constant 0 : i32
    %c0_i32_0 = arith.constant 0 : i32
    %c0_i32_1 = arith.constant 0 : i32
    return %c0_i32, %c0_i32_0 : i32, i32
  }
  func.func @transform_3(%arg0: i32) -> (i32, i32) {
    %c0_i32 = arith.constant 0 : i32
    %c0_i32_0 = arith.constant 0 : i32
    %c0_i32_1 = arith.constant 0 : i32
    return %c0_i32, %c0_i32_0 : i32, i32
  }
  func.func @transform_4(%arg0: i32) -> (i32, i32) {
    %c0_i32 = arith.constant 0 : i32
    %c0_i32_0 = arith.constant 0 : i32
    %c0_i32_1 = arith.constant 0 : i32
    return %c0_i32, %c0_i32_0 : i32, i32
  }
  func.func @transform_5(%arg0: i32) -> (i32, i32) {
    %c0_i32 = arith.constant 0 : i32
    %c0_i32_0 = arith.constant 0 : i32
    %c0_i32_1 = arith.constant 0 : i32
    return %c0_i32, %c0_i32_0 : i32, i32
  }
  func.func @transform_6(%arg0: i32) -> (i32, i32) {
    %c0_i32 = arith.constant 0 : i32
    %c0_i32_0 = arith.constant 0 : i32
    %c0_i32_1 = arith.constant 0 : i32
    return %c0_i32, %c0_i32_0 : i32, i32
  }
  func.func @transform_7(%arg0: i32) -> (i32, i32) {
    %c0_i32 = arith.constant 0 : i32
    %c0_i32_0 = arith.constant 0 : i32
    %c0_i32_1 = arith.constant 0 : i32
    return %c0_i32, %c0_i32_0 : i32, i32
  }
  func.func @transform_8(%arg0: i32) -> (i32, i32) {
    %c0_i32 = arith.constant 0 : i32
    %c0_i32_0 = arith.constant 0 : i32
    %c0_i32_1 = arith.constant 0 : i32
    return %c0_i32, %c0_i32_0 : i32, i32
  }
  func.func @transform_9(%arg0: i32) -> (i32, i32) {
    %c0_i32 = arith.constant 0 : i32
    %c0_i32_0 = arith.constant 0 : i32
    return %arg0, %c0_i32 : i32, i32
  }
}

module attributes {stable_mosaic.version = 11 : i64} {
  func.func @_gemm_t_kernel(%arg0: i32, %arg1: memref<32x576xbf16, #tpu.memory_space<vmem>>, %arg2: memref<32x1xf32, #tpu.memory_space<vmem>>, %arg3: memref<576x128xbf16, #tpu.memory_space<vmem>>, %arg4: memref<32x128xbf16, #tpu.memory_space<vmem>>) attributes {dimension_semantics = [#tpu.dimension_semantics<parallel>], iteration_bounds = array<i64: 1>, scalar_prefetch = 0 : i64, scratch_operands = 0 : i64, tpu.core_type = #tpu.core_type<tc>, window_params = [{pipeline_mode = #tpu.pipeline_mode<synchronous>, transform_indices = @transform_0, window_bounds = array<i64: 32, 576>}, {pipeline_mode = #tpu.pipeline_mode<synchronous>, transform_indices = @transform_1, window_bounds = array<i64: 32, 1>}, {transform_indices = @transform_2, window_bounds = array<i64: 576, 128>}, {transform_indices = @transform_3, window_bounds = array<i64: 32, 128>}]} {
    %c0 = arith.constant 0 : index
    %c0_0 = arith.constant 0 : index
    %0 = vector.load %arg1[%c0, %c0_0] : memref<32x576xbf16, #tpu.memory_space<vmem>>, vector<32x576xbf16>
    %c0_1 = arith.constant 0 : index
    %c0_2 = arith.constant 0 : index
    %1 = vector.load %arg3[%c0_1, %c0_2] : memref<576x128xbf16, #tpu.memory_space<vmem>>, vector<576x128xbf16>
    %cst = arith.constant dense<0.000000e+00> : vector<32x128xf32>
    %2 = tpu.matmul %0, %1, %cst {dimension_numbers = #tpu.dot_dimension_numbers<[1], [0], [0], [1], [0, 0, 1, 1], [], []>} : vector<32x576xbf16>, vector<576x128xbf16>, vector<32x128xf32> -> vector<32x128xf32>
    %c0_3 = arith.constant 0 : index
    %c0_4 = arith.constant 0 : index
    %3 = vector.load %arg2[%c0_3, %c0_4] : memref<32x1xf32, #tpu.memory_space<vmem>>, vector<32x1xf32>
    %4 = vector.broadcast %3 : vector<32x1xf32> to vector<32x128xf32>
    %5 = arith.addf %2, %4 : vector<32x128xf32>
    %cst_5 = arith.constant 0.000000e+00 : f32
    %6 = vector.broadcast %cst_5 : f32 to vector<32x128xf32>
    %7 = arith.maximumf %5, %6 : vector<32x128xf32>
    %8 = arith.truncf %7 : vector<32x128xf32> to vector<32x128xbf16>
    %c0_6 = arith.constant 0 : index
    %c0_7 = arith.constant 0 : index
    %9 = vector.load %arg4[%c0_6, %c0_7] : memref<32x128xbf16, #tpu.memory_space<vmem>>, vector<32x128xbf16>
    tpu.vector_store %arg4[%c0_6, %c0_7], %8 {strides = array<i32>} : memref<32x128xbf16, #tpu.memory_space<vmem>>, vector<32x128xbf16>,
    return
  }
  func.func @transform_0(%arg0: i32) -> (i32, i32) {
    %c0_i32 = arith.constant 0 : i32
    %c0_i32_0 = arith.constant 0 : i32
    %c0_i32_1 = arith.constant 0 : i32
    return %c0_i32, %c0_i32_0 : i32, i32
  }
  func.func @transform_1(%arg0: i32) -> (i32, i32) {
    %c0_i32 = arith.constant 0 : i32
    %c0_i32_0 = arith.constant 0 : i32
    %c0_i32_1 = arith.constant 0 : i32
    return %c0_i32, %c0_i32_0 : i32, i32
  }
  func.func @transform_2(%arg0: i32) -> (i32, i32) {
    %c0_i32 = arith.constant 0 : i32
    %c0_i32_0 = arith.constant 0 : i32
    return %c0_i32, %arg0 : i32, i32
  }
  func.func @transform_3(%arg0: i32) -> (i32, i32) {
    %c0_i32 = arith.constant 0 : i32
    %c0_i32_0 = arith.constant 0 : i32
    return %c0_i32, %arg0 : i32, i32
  }
}

module attributes {stable_mosaic.version = 11 : i64} {
  func.func @_gemm_t_kernel(%arg0: i32, %arg1: memref<16x288xbf16, #tpu.memory_space<vmem>>, %arg2: memref<16x1xf32, #tpu.memory_space<vmem>>, %arg3: memref<288x128xbf16, #tpu.memory_space<vmem>>, %arg4: memref<16x128xbf16, #tpu.memory_space<vmem>>) attributes {dimension_semantics = [#tpu.dimension_semantics<parallel>], iteration_bounds = array<i64: 2>, scalar_prefetch = 0 : i64, scratch_operands = 0 : i64, tpu.core_type = #tpu.core_type<tc>, window_params = [{pipeline_mode = #tpu.pipeline_mode<synchronous>, transform_indices = @transform_0, window_bounds = array<i64: 16, 288>}, {pipeline_mode = #tpu.pipeline_mode<synchronous>, transform_indices = @transform_1, window_bounds = array<i64: 16, 1>}, {transform_indices = @transform_2, window_bounds = array<i64: 288, 128>}, {transform_indices = @transform_3, window_bounds = array<i64: 16, 128>}]} {
    %c0 = arith.constant 0 : index
    %c0_0 = arith.constant 0 : index
    %0 = vector.load %arg1[%c0, %c0_0] : memref<16x288xbf16, #tpu.memory_space<vmem>>, vector<16x288xbf16>
    %c0_1 = arith.constant 0 : index
    %c0_2 = arith.constant 0 : index
    %1 = vector.load %arg3[%c0_1, %c0_2] : memref<288x128xbf16, #tpu.memory_space<vmem>>, vector<288x128xbf16>
    %cst = arith.constant dense<0.000000e+00> : vector<16x128xf32>
    %2 = tpu.matmul %0, %1, %cst {dimension_numbers = #tpu.dot_dimension_numbers<[1], [0], [0], [1], [0, 0, 1, 1], [], []>} : vector<16x288xbf16>, vector<288x128xbf16>, vector<16x128xf32> -> vector<16x128xf32>
    %c0_3 = arith.constant 0 : index
    %c0_4 = arith.constant 0 : index
    %3 = vector.load %arg2[%c0_3, %c0_4] : memref<16x1xf32, #tpu.memory_space<vmem>>, vector<16x1xf32>
    %4 = vector.broadcast %3 : vector<16x1xf32> to vector<16x128xf32>
    %5 = arith.addf %2, %4 : vector<16x128xf32>
    %cst_5 = arith.constant 0.000000e+00 : f32
    %6 = vector.broadcast %cst_5 : f32 to vector<16x128xf32>
    %7 = arith.maximumf %5, %6 : vector<16x128xf32>
    %8 = arith.truncf %7 : vector<16x128xf32> to vector<16x128xbf16>
    %c0_6 = arith.constant 0 : index
    %c0_7 = arith.constant 0 : index
    %9 = vector.load %arg4[%c0_6, %c0_7] : memref<16x128xbf16, #tpu.memory_space<vmem>>, vector<16x128xbf16>
    tpu.vector_store %arg4[%c0_6, %c0_7], %8 {strides = array<i32>} : memref<16x128xbf16, #tpu.memory_space<vmem>>, vector<16x128xbf16>,
    return
  }
  func.func @transform_0(%arg0: i32) -> (i32, i32) {
    %c0_i32 = arith.constant 0 : i32
    %c0_i32_0 = arith.constant 0 : i32
    %c0_i32_1 = arith.constant 0 : i32
    return %c0_i32, %c0_i32_0 : i32, i32
  }
  func.func @transform_1(%arg0: i32) -> (i32, i32) {
    %c0_i32 = arith.constant 0 : i32
    %c0_i32_0 = arith.constant 0 : i32
    %c0_i32_1 = arith.constant 0 : i32
    return %c0_i32, %c0_i32_0 : i32, i32
  }
  func.func @transform_2(%arg0: i32) -> (i32, i32) {
    %c0_i32 = arith.constant 0 : i32
    %c0_i32_0 = arith.constant 0 : i32
    return %c0_i32, %arg0 : i32, i32
  }
  func.func @transform_3(%arg0: i32) -> (i32, i32) {
    %c0_i32 = arith.constant 0 : i32
    %c0_i32_0 = arith.constant 0 : i32
    return %c0_i32, %arg0 : i32, i32
  }
}

module attributes {stable_mosaic.version = 11 : i64} {
  func.func @_gemm_t_kernel(%arg0: i32, %arg1: memref<8x144xbf16, #tpu.memory_space<vmem>>, %arg2: memref<8x1xf32, #tpu.memory_space<vmem>>, %arg3: memref<144x384xbf16, #tpu.memory_space<vmem>>, %arg4: memref<8x384xbf16, #tpu.memory_space<vmem>>) attributes {dimension_semantics = [#tpu.dimension_semantics<parallel>], iteration_bounds = array<i64: 2>, scalar_prefetch = 0 : i64, scratch_operands = 0 : i64, tpu.core_type = #tpu.core_type<tc>, window_params = [{pipeline_mode = #tpu.pipeline_mode<synchronous>, transform_indices = @transform_0, window_bounds = array<i64: 8, 144>}, {pipeline_mode = #tpu.pipeline_mode<synchronous>, transform_indices = @transform_1, window_bounds = array<i64: 8, 1>}, {transform_indices = @transform_2, window_bounds = array<i64: 144, 384>}, {transform_indices = @transform_3, window_bounds = array<i64: 8, 384>}]} {
    %c0 = arith.constant 0 : index
    %c0_0 = arith.constant 0 : index
    %0 = vector.load %arg1[%c0, %c0_0] : memref<8x144xbf16, #tpu.memory_space<vmem>>, vector<8x144xbf16>
    %c0_1 = arith.constant 0 : index
    %c0_2 = arith.constant 0 : index
    %1 = vector.load %arg3[%c0_1, %c0_2] : memref<144x384xbf16, #tpu.memory_space<vmem>>, vector<144x384xbf16>
    %cst = arith.constant dense<0.000000e+00> : vector<8x384xf32>
    %2 = tpu.matmul %0, %1, %cst {dimension_numbers = #tpu.dot_dimension_numbers<[1], [0], [0], [1], [0, 0, 1, 1], [], []>} : vector<8x144xbf16>, vector<144x384xbf16>, vector<8x384xf32> -> vector<8x384xf32>
    %c0_3 = arith.constant 0 : index
    %c0_4 = arith.constant 0 : index
    %3 = vector.load %arg2[%c0_3, %c0_4] : memref<8x1xf32, #tpu.memory_space<vmem>>, vector<8x1xf32>
    %4 = vector.broadcast %3 : vector<8x1xf32> to vector<8x384xf32>
    %5 = arith.addf %2, %4 : vector<8x384xf32>
    %cst_5 = arith.constant 0.000000e+00 : f32
    %6 = vector.broadcast %cst_5 : f32 to vector<8x384xf32>
    %7 = arith.maximumf %5, %6 : vector<8x384xf32>
    %8 = arith.truncf %7 : vector<8x384xf32> to vector<8x384xbf16>
    %c0_6 = arith.constant 0 : index
    %c0_7 = arith.constant 0 : index
    %9 = vector.load %arg4[%c0_6, %c0_7] : memref<8x384xbf16, #tpu.memory_space<vmem>>, vector<8x384xbf16>
    tpu.vector_store %arg4[%c0_6, %c0_7], %8 {strides = array<i32>} : memref<8x384xbf16, #tpu.memory_space<vmem>>, vector<8x384xbf16>,
    return
  }
  func.func @transform_0(%arg0: i32) -> (i32, i32) {
    %c0_i32 = arith.constant 0 : i32
    %c0_i32_0 = arith.constant 0 : i32
    %c0_i32_1 = arith.constant 0 : i32
    return %c0_i32, %c0_i32_0 : i32, i32
  }
  func.func @transform_1(%arg0: i32) -> (i32, i32) {
    %c0_i32 = arith.constant 0 : i32
    %c0_i32_0 = arith.constant 0 : i32
    %c0_i32_1 = arith.constant 0 : i32
    return %c0_i32, %c0_i32_0 : i32, i32
  }
  func.func @transform_2(%arg0: i32) -> (i32, i32) {
    %c0_i32 = arith.constant 0 : i32
    %c0_i32_0 = arith.constant 0 : i32
    return %c0_i32, %arg0 : i32, i32
  }
  func.func @transform_3(%arg0: i32) -> (i32, i32) {
    %c0_i32 = arith.constant 0 : i32
    %c0_i32_0 = arith.constant 0 : i32
    return %c0_i32, %arg0 : i32, i32
  }
}

module attributes {stable_mosaic.version = 11 : i64} {
  func.func @_gemm_t_kernel(%arg0: i32, %arg1: memref<4x72xbf16, #tpu.memory_space<vmem>>, %arg2: memref<4x1xf32, #tpu.memory_space<vmem>>, %arg3: memref<72x1024xbf16, #tpu.memory_space<vmem>>, %arg4: memref<4x1024xbf16, #tpu.memory_space<vmem>>) attributes {dimension_semantics = [#tpu.dimension_semantics<parallel>], iteration_bounds = array<i64: 3>, scalar_prefetch = 0 : i64, scratch_operands = 0 : i64, tpu.core_type = #tpu.core_type<tc>, window_params = [{pipeline_mode = #tpu.pipeline_mode<synchronous>, transform_indices = @transform_0, window_bounds = array<i64: 4, 72>}, {pipeline_mode = #tpu.pipeline_mode<synchronous>, transform_indices = @transform_1, window_bounds = array<i64: 4, 1>}, {transform_indices = @transform_2, window_bounds = array<i64: 72, 1024>}, {transform_indices = @transform_3, window_bounds = array<i64: 4, 1024>}]} {
    %c0 = arith.constant 0 : index
    %c0_0 = arith.constant 0 : index
    %0 = vector.load %arg1[%c0, %c0_0] : memref<4x72xbf16, #tpu.memory_space<vmem>>, vector<4x72xbf16>
    %c0_1 = arith.constant 0 : index
    %c0_2 = arith.constant 0 : index
    %1 = vector.load %arg3[%c0_1, %c0_2] : memref<72x1024xbf16, #tpu.memory_space<vmem>>, vector<72x1024xbf16>
    %cst = arith.constant dense<0.000000e+00> : vector<4x1024xf32>
    %2 = tpu.matmul %0, %1, %cst {dimension_numbers = #tpu.dot_dimension_numbers<[1], [0], [0], [1], [0, 0, 1, 1], [], []>} : vector<4x72xbf16>, vector<72x1024xbf16>, vector<4x1024xf32> -> vector<4x1024xf32>
    %c0_3 = arith.constant 0 : index
    %c0_4 = arith.constant 0 : index
    %3 = vector.load %arg2[%c0_3, %c0_4] : memref<4x1xf32, #tpu.memory_space<vmem>>, vector<4x1xf32>
    %4 = vector.broadcast %3 : vector<4x1xf32> to vector<4x1024xf32>
    %5 = arith.addf %2, %4 : vector<4x1024xf32>
    %cst_5 = arith.constant 0.000000e+00 : f32
    %6 = vector.broadcast %cst_5 : f32 to vector<4x1024xf32>
    %7 = arith.maximumf %5, %6 : vector<4x1024xf32>
    %8 = arith.truncf %7 : vector<4x1024xf32> to vector<4x1024xbf16>
    %c0_6 = arith.constant 0 : index
    %c0_7 = arith.constant 0 : index
    %9 = vector.load %arg4[%c0_6, %c0_7] : memref<4x1024xbf16, #tpu.memory_space<vmem>>, vector<4x1024xbf16>
    tpu.vector_store %arg4[%c0_6, %c0_7], %8 {strides = array<i32>} : memref<4x1024xbf16, #tpu.memory_space<vmem>>, vector<4x1024xbf16>,
    return
  }
  func.func @transform_0(%arg0: i32) -> (i32, i32) {
    %c0_i32 = arith.constant 0 : i32
    %c0_i32_0 = arith.constant 0 : i32
    %c0_i32_1 = arith.constant 0 : i32
    return %c0_i32, %c0_i32_0 : i32, i32
  }
  func.func @transform_1(%arg0: i32) -> (i32, i32) {
    %c0_i32 = arith.constant 0 : i32
    %c0_i32_0 = arith.constant 0 : i32
    %c0_i32_1 = arith.constant 0 : i32
    return %c0_i32, %c0_i32_0 : i32, i32
  }
  func.func @transform_2(%arg0: i32) -> (i32, i32) {
    %c0_i32 = arith.constant 0 : i32
    %c0_i32_0 = arith.constant 0 : i32
    return %c0_i32, %arg0 : i32, i32
  }
  func.func @transform_3(%arg0: i32) -> (i32, i32) {
    %c0_i32 = arith.constant 0 : i32
    %c0_i32_0 = arith.constant 0 : i32
    return %c0_i32, %arg0 : i32, i32
  }
}

module attributes {stable_mosaic.version = 11 : i64} {
  func.func @_gemm_t_kernel(%arg0: i32, %arg1: memref<4x64xbf16, #tpu.memory_space<vmem>>, %arg2: memref<4x1xf32, #tpu.memory_space<vmem>>, %arg3: memref<64x1024xbf16, #tpu.memory_space<vmem>>, %arg4: memref<4x1024xbf16, #tpu.memory_space<vmem>>) attributes {dimension_semantics = [#tpu.dimension_semantics<parallel>], iteration_bounds = array<i64: 3>, scalar_prefetch = 0 : i64, scratch_operands = 0 : i64, tpu.core_type = #tpu.core_type<tc>, window_params = [{pipeline_mode = #tpu.pipeline_mode<synchronous>, transform_indices = @transform_0, window_bounds = array<i64: 4, 64>}, {pipeline_mode = #tpu.pipeline_mode<synchronous>, transform_indices = @transform_1, window_bounds = array<i64: 4, 1>}, {transform_indices = @transform_2, window_bounds = array<i64: 64, 1024>}, {transform_indices = @transform_3, window_bounds = array<i64: 4, 1024>}]} {
    %c0 = arith.constant 0 : index
    %c0_0 = arith.constant 0 : index
    %0 = vector.load %arg1[%c0, %c0_0] : memref<4x64xbf16, #tpu.memory_space<vmem>>, vector<4x64xbf16>
    %c0_1 = arith.constant 0 : index
    %c0_2 = arith.constant 0 : index
    %1 = vector.load %arg3[%c0_1, %c0_2] : memref<64x1024xbf16, #tpu.memory_space<vmem>>, vector<64x1024xbf16>
    %cst = arith.constant dense<0.000000e+00> : vector<4x1024xf32>
    %2 = tpu.matmul %0, %1, %cst {dimension_numbers = #tpu.dot_dimension_numbers<[1], [0], [0], [1], [0, 0, 1, 1], [], []>} : vector<4x64xbf16>, vector<64x1024xbf16>, vector<4x1024xf32> -> vector<4x1024xf32>
    %c0_3 = arith.constant 0 : index
    %c0_4 = arith.constant 0 : index
    %3 = vector.load %arg2[%c0_3, %c0_4] : memref<4x1xf32, #tpu.memory_space<vmem>>, vector<4x1xf32>
    %4 = vector.broadcast %3 : vector<4x1xf32> to vector<4x1024xf32>
    %5 = arith.addf %2, %4 : vector<4x1024xf32>
    %cst_5 = arith.constant 0.000000e+00 : f32
    %6 = vector.broadcast %cst_5 : f32 to vector<4x1024xf32>
    %7 = arith.maximumf %5, %6 : vector<4x1024xf32>
    %8 = arith.truncf %7 : vector<4x1024xf32> to vector<4x1024xbf16>
    %c0_6 = arith.constant 0 : index
    %c0_7 = arith.constant 0 : index
    %9 = vector.load %arg4[%c0_6, %c0_7] : memref<4x1024xbf16, #tpu.memory_space<vmem>>, vector<4x1024xbf16>
    tpu.vector_store %arg4[%c0_6, %c0_7], %8 {strides = array<i32>} : memref<4x1024xbf16, #tpu.memory_space<vmem>>, vector<4x1024xbf16>,
    return
  }
  func.func @transform_0(%arg0: i32) -> (i32, i32) {
    %c0_i32 = arith.constant 0 : i32
    %c0_i32_0 = arith.constant 0 : i32
    %c0_i32_1 = arith.constant 0 : i32
    return %c0_i32, %c0_i32_0 : i32, i32
  }
  func.func @transform_1(%arg0: i32) -> (i32, i32) {
    %c0_i32 = arith.constant 0 : i32
    %c0_i32_0 = arith.constant 0 : i32
    %c0_i32_1 = arith.constant 0 : i32
    return %c0_i32, %c0_i32_0 : i32, i32
  }
  func.func @transform_2(%arg0: i32) -> (i32, i32) {
    %c0_i32 = arith.constant 0 : i32
    %c0_i32_0 = arith.constant 0 : i32
    return %c0_i32, %arg0 : i32, i32
  }
  func.func @transform_3(%arg0: i32) -> (i32, i32) {
    %c0_i32 = arith.constant 0 : i32
    %c0_i32_0 = arith.constant 0 : i32
    return %c0_i32, %arg0 : i32, i32
  }
}

module attributes {stable_mosaic.version = 11 : i64} {
  func.func @_gemm_t_kernel(%arg0: i32, %arg1: memref<1x100xbf16, #tpu.memory_space<vmem>>, %arg2: memref<1x1xf32, #tpu.memory_space<vmem>>, %arg3: memref<100x1024xbf16, #tpu.memory_space<vmem>>, %arg4: memref<1x1024xf32, #tpu.memory_space<vmem>>) attributes {dimension_semantics = [#tpu.dimension_semantics<parallel>], iteration_bounds = array<i64: 3>, scalar_prefetch = 0 : i64, scratch_operands = 0 : i64, tpu.core_type = #tpu.core_type<tc>, window_params = [{pipeline_mode = #tpu.pipeline_mode<synchronous>, transform_indices = @transform_0, window_bounds = array<i64: 1, 100>}, {pipeline_mode = #tpu.pipeline_mode<synchronous>, transform_indices = @transform_1, window_bounds = array<i64: 1, 1>}, {transform_indices = @transform_2, window_bounds = array<i64: 100, 1024>}, {transform_indices = @transform_3, window_bounds = array<i64: 1, 1024>}]} {
    %c0 = arith.constant 0 : index
    %c0_0 = arith.constant 0 : index
    %0 = vector.load %arg1[%c0, %c0_0] : memref<1x100xbf16, #tpu.memory_space<vmem>>, vector<1x100xbf16>
    %c0_1 = arith.constant 0 : index
    %c0_2 = arith.constant 0 : index
    %1 = vector.load %arg3[%c0_1, %c0_2] : memref<100x1024xbf16, #tpu.memory_space<vmem>>, vector<100x1024xbf16>
    %cst = arith.constant dense<0.000000e+00> : vector<1x1024xf32>
    %2 = tpu.matmul %0, %1, %cst {dimension_numbers = #tpu.dot_dimension_numbers<[1], [0], [0], [1], [0, 0, 1, 1], [], []>} : vector<1x100xbf16>, vector<100x1024xbf16>, vector<1x1024xf32> -> vector<1x1024xf32>
    %c0_3 = arith.constant 0 : index
    %c0_4 = arith.constant 0 : index
    %3 = vector.load %arg2[%c0_3, %c0_4] : memref<1x1xf32, #tpu.memory_space<vmem>>, vector<1x1xf32>
    %4 = vector.broadcast %3 : vector<1x1xf32> to vector<1x1024xf32>
    %5 = arith.addf %2, %4 : vector<1x1024xf32>
    %6 = arith.negf %5 : vector<1x1024xf32>
    %7 = math.exp %6 : vector<1x1024xf32>
    %cst_5 = arith.constant 1.000000e+00 : f32
    %8 = vector.broadcast %cst_5 : f32 to vector<1x1024xf32>
    %9 = arith.addf %8, %7 : vector<1x1024xf32>
    %10 = arith.divf %8, %9 : vector<1x1024xf32>
    %c0_6 = arith.constant 0 : index
    %c0_7 = arith.constant 0 : index
    %11 = vector.load %arg4[%c0_6, %c0_7] : memref<1x1024xf32, #tpu.memory_space<vmem>>, vector<1x1024xf32>
    tpu.vector_store %arg4[%c0_6, %c0_7], %10 {strides = array<i32>} : memref<1x1024xf32, #tpu.memory_space<vmem>>, vector<1x1024xf32>,
    return
  }
  func.func @transform_0(%arg0: i32) -> (i32, i32) {
    %c0_i32 = arith.constant 0 : i32
    %c0_i32_0 = arith.constant 0 : i32
    %c0_i32_1 = arith.constant 0 : i32
    return %c0_i32, %c0_i32_0 : i32, i32
  }
  func.func @transform_1(%arg0: i32) -> (i32, i32) {
    %c0_i32 = arith.constant 0 : i32
    %c0_i32_0 = arith.constant 0 : i32
    %c0_i32_1 = arith.constant 0 : i32
    return %c0_i32, %c0_i32_0 : i32, i32
  }
  func.func @transform_2(%arg0: i32) -> (i32, i32) {
    %c0_i32 = arith.constant 0 : i32
    %c0_i32_0 = arith.constant 0 : i32
    return %c0_i32, %arg0 : i32, i32
  }
  func.func @transform_3(%arg0: i32) -> (i32, i32) {
    %c0_i32 = arith.constant 0 : i32
    %c0_i32_0 = arith.constant 0 : i32
    return %c0_i32, %arg0 : i32, i32
  }
}

</mosaic_0001>

<bundles_post_ra>
// kernel: conv_autoencoder_forward.13
= control target key start
LH: loop header
LB: loop body
LE: loop exit
PB: predicated region body
PF: predicated region fallthrough
CT: control target
= control target key end

     0   :  { %8 = vsyncpa [#allocation3], 0  ;;  %s960_s12 = smov 0   ;;  %s962_s13 = smov 0   ;;  %s1278_s0 = inlined_call_operand.hbm [shape: bf16[4,9], index: 0, kind: input, shape index: {}]   ;;  %s1279_s1 = inlined_call_operand.vmem [shape: f32[4,1], index: 1, kind: input, shape index: {}]   ;;  %s1280_s2 = inlined_call_operand.vmem [shape: bf16[9,3072], index: 2, kind: input, shape index: {}]   ;;  %s1281_s3 = inlined_call_operand.vmem [shape: bf16[4,3072], index: 3, kind: output, shape index: {}]  }
   0x1   :  { %s964_s14 = smov 0  }
   0x2 LB: > { %s799_s15 = sadd.s32 4294967295, %s927_s14   ;;  %s977_s16 = sadd.s32 1, %s927_s14   ;;  %s927_s14 = sphi %s964_s14, %s1287_s14   ;;  %s923_s13 = sphi %s962_s13, %s1286_s13   ;;  %s919_s12 = sphi %s960_s12, %s1285_s12  }
   0x3   : > { %s60_s17 = ssub.s32 %s927_s14, %s977_s16  ;;  %s63_s18 = sadd.s32 1, %s923_s13 }
   0x4   : > { %p61_p0 = scmp.eq.s32.totalorder %s60_s17, 0  ;;  %p70_p1 = scmp.ne.s32.totalorder %s923_s13, %s919_s12 }
   0x5   : > { %p71_p2 = scmp.eq.s32.totalorder %s927_s14, 0  ;;  %p801_p3 = scmp.ge.s32.totalorder %s927_s14, 1 }
   0x6   : > { %s987_s19 = scalar_select %p61_p0, %s923_s13, %s63_s18  }
   0x7   : > { %p989_p4 = por %p71_p2, %p70_p1  ;;  %p113_p5 = scmp.lt.s32.totalorder %s927_s14, 4 }
   0x8   : > { %p996_p6 = scmp.eq.s32.totalorder %s799_s15, 0  ;;  %s125_s25 = sshll.u32 %s1278_s0, 4  ;;  %s126_s25 = int_to_ptr.hbm [resolvable:$true] %s125_s25 }
   0x9   : > { %p1000_p7 = pnand %p801_p3, %p113_p5  ;;  %s929_s26 = smov [#allocation2]  }
   0xa   : > { %s127_s27 = sshll.u32 %s929_s26, 4  ;;  %p803_p10 = scmp.ge.s32.totalorder %s927_s14, 3  ;;  %s128_s27 = int_to_ptr.vmem [resolvable:$true] %s127_s27 }
   0xb   : > { %p819_p8 = pneg %p1000_p7 }
   0xc   : > { %137 = sbr.rel (%p803_p10) target bundleno = 29 (0x1d), region = 24 }
   0xd   : > { %p820_p9 = pnand %p996_p6, %p819_p8 }
   0xf   : > { %822 = dma.hbm_to_vmem [thread:$0]  (!%p820_p9), %s126_s25, 32, %s128_s27, [#allocation3]  }
  0x11   : > { %140 = sbr.rel (!%p989_p4) target bundleno = 29 (0x1d), region = 28  ;;  %s142_s28 = sand.u32 (%p989_p4), 1, %s923_s13  }
  0x12   : > { %s814_s29 = sshll.u32 (%p989_p4), %s927_s14, 5  ;;  %s804_s30 = sshll.u32 (%p989_p4), %s142_s28, 6 }
  0x13   : > { %s147_s6 = scalar_lea.vmem (%p989_p4), %s1280_s2, %s814_s29  ;;  %s144_s7 = scalar_lea.vmem (%p989_p4), [#allocation4], %s804_s30 }
  0x14   : > { %v160_v0 = vld [vmem:[%s147_s6] sm:$0xff] (%p989_p4)  ;;  %v162_v1 = vld [vmem:[%s147_s6 + $0x8] sm:$0xff] (%p989_p4)  ;;  %v164_v2 = vld [vmem:[%s147_s6 + $0x10] sm:$0xff] (%p989_p4) }
  0x15   : > { %161 = vst [vmem:[%s144_s7] sm:$0xff] (%p989_p4), %v160_v0  ;;  %v166_v3 = vld [vmem:[%s147_s6 + $0x18] sm:$0xff] (%p989_p4)  ;;  %v168_v4 = vld [vmem:[%s147_s6 + $0x60] sm:$0xff] (%p989_p4)  ;;  %v170_v5 = vld [vmem:[%s147_s6 + $0x68] sm:$0xff] (%p989_p4) }
  0x16   : > { %163 = vst [vmem:[%s144_s7 + $0x8] sm:$0xff] %v162_v1  ;;  %v172_v6 = vld [vmem:[%s147_s6 + $0x70] sm:$0xff]  ;;  %v174_v7 = vld [vmem:[%s147_s6 + $0x78] sm:$0xff] }
  0x17   : > { %165 = vst [vmem:[%s144_s7 + $0x10] sm:$0xff] %v164_v2 }
  0x18   : > { %167 = vst [vmem:[%s144_s7 + $0x18] sm:$0xff] %v166_v3 }
  0x19   : > { %169 = vst [vmem:[%s144_s7 + $0x20] sm:$0xff] %v168_v4 }
  0x1a   : > { %171 = vst [vmem:[%s144_s7 + $0x28] sm:$0xff] %v170_v5 }
  0x1b   : > { %173 = vst [vmem:[%s144_s7 + $0x30] sm:$0xff] %v172_v6 }
  0x1c   : > { %175 = vst [vmem:[%s144_s7 + $0x38] sm:$0xff] %v174_v7 }
  0x1d PF: > { %184 = sbr.rel (%p1000_p7) target bundleno = 205 (0xcd), region = 51 }
  0x22   : > { %914 = dma.done.wait (%p996_p6), [#allocation3], 32  }
  0x23   : > { %916 = vsyncadd (%p996_p6), [#allocation3], 4294967264  ;;  %v930_v8 = vmov 2   ;;  %v931_v9 = vmov 0   ;;  %v932_v10 = vmov 4   ;;  %v933_v13 = vmov 3  }
  0x24   : > { %862 = vset.pattern.permute.xlu1 %v930_v8  ;;  %860 = vset.pattern.permute.xlu0 %v931_v9  ;;  %v222_v11 = vld [vmem:[#allocation2] sm:$0x3]  ;;  %v934_v14 = vmov 1   ;;  %v935_v15 = vmov 5   ;;  %v936_v16 = vmov 6   ;;  %v937_v17 = vmov 8  }
  0x25   : > { %864 = vset.pattern.permute.xlu2 %v932_v10  ;;  %v223_v12 = vunpack.c.l.bf16 %v222_v11  ;;  %v938_v18 = vmov 7   ;;  %v646_v19 = vld [vmem:[%s1279_s1] sm:$0xf]  ;;  %s192_s10 = sand.u32 1, %s919_s12   ;;  %v939_v34 = vmov 839922192  }
  0x26   : > { %s809_s11 = sshll.u32 %s192_s10, 6  ;;  %v254_v35 = vunpack.c.l.s4 %v939_v34  ;;  %vm277_vm0 = vcmask 1043456   ;;  %s810_s12 = sshll.u32 %s799_s15, 3  ;;  %vm705_vm1 = vcmask 1041408   ;;  %vm709_vm2 = vcmask 1045508  }
  0x27   : > { %339 = vperm.xlu1 %862, %v223_v12   ;;  %250 = vperm.xlu0 %860, %v223_v12   ;;  %s1029_s17 = scalar_lea.vmem [#allocation4], %s809_s11  ;;  %p217_p11 = scmp.lt.s32.totalorder %s810_s12, 23 }
  0x28   : > { %427 = vperm.xlu2 %864, %v223_v12   ;;  %v224_v20 = vld [vmem:[%s1029_s17] sm:$0xff]  ;;  %v225_v21 = vld [vmem:[%s1029_s17 + $0x8] sm:$0xff]  ;;  %v226_v22 = vld [vmem:[%s1029_s17 + $0x10] sm:$0xff]  ;;  %v1058_v44 = vunpack.c.0.s8 %v254_v35 }
  0x29   : > { %v1034_v23 = vunpack.c.h.bf16 %v224_v20  ;;  %v227_v24 = vld [vmem:[%s1029_s17 + $0x18] sm:$0xff]  ;;  %v1037_v25 = vunpack.c.h.bf16 %v225_v21  ;;  %v1039_v26 = vunpack.c.h.bf16 %v226_v22  ;;  %v1041_v27 = vunpack.c.l.bf16 %v224_v20  ;;  %s1289_s12 = smov (!%p217_p11, %s810_s12), 23 }
  0x2a   : > { %v1043_v28 = vunpack.c.h.bf16 %v227_v24  ;;  %v1046_v30 = vunpack.c.l.bf16 %v225_v21  ;;  %v1048_v31 = vunpack.c.l.bf16 %v226_v22  ;;  %v1052_v36 = vunpack.c.l.bf16 %v227_v24  ;;  %s811_s18 = sshll.u32 %s1289_s12, 1 }
  0x2b   : > { %v347_v29 = vperm.slane %v1034_v23, 2  ;;  %v349_v32 = vperm.slane %v1037_v25, 2  ;;  %v351_v33 = vperm.slane %v1039_v26, 2  ;;  %v346_v37 = vperm.slane %v1041_v27, 2  ;;  %s220_s20 = scalar_lea.vmem %s1281_s3, %s811_s18 }
  0x2c   : > { %v353_v38 = vperm.slane %v1043_v28, 2  ;;  %v348_v40 = vperm.slane %v1046_v30, 2  ;;  %v350_v41 = vperm.slane %v1048_v31, 2  ;;  %v258_v45 = vperm.slane %v1034_v23, 0 }
  0x2d   : > { %v362_v39 = vrot.slane %v347_v29, 4  ;;  %v363_v42 = vrot.slane %v349_v32, 4  ;;  %v364_v43 = vrot.slane %v351_v33, 4  ;;  %v260_v46 = vperm.slane %v1037_v25, 0 }
  0x2e   : > { %v262_v47 = vperm.slane %v1039_v26, 0  ;;  %v352_v48 = vperm.slane %v1052_v36, 2  ;;  %v365_v49 = vrot.slane %v353_v38, 4  ;;  %v264_v51 = vperm.slane %v1043_v28, 0 }
  0x2f   : > { %863 = vset.pattern.permute.xlu1 %v933_v13  ;;  %861 = vset.pattern.permute.xlu0 %v934_v14  ;;  %v1065_v50 = vsel %vm277_vm0, %v346_v37, %v362_v39  ;;  %v1069_v52 = vsel %vm277_vm0, %v348_v40, %v363_v42  ;;  %v1072_v53 = vsel %vm277_vm0, %v350_v41, %v364_v43  ;;  %v257_v54 = vperm.slane %v1041_v27, 0 }
  0x30   : > { %383 = vperm.xlu1 %863, %v223_v12   ;;  %295 = vperm.xlu0 %861, %v223_v12   ;;  %v435_v55 = vperm.slane %v1034_v23, 4  ;;  %v259_v56 = vperm.slane %v1046_v30, 0  ;;  %v437_v57 = vperm.slane %v1037_v25, 4  ;;  %v439_v58 = vperm.slane %v1039_v26, 4 }
  0x31   : > { %865 = vset.pattern.permute.xlu2 %v935_v15  ;;  %v441_v59 = vperm.slane %v1043_v28, 4  ;;  %v261_v60 = vperm.slane %v1048_v31, 0  ;;  %v273_v61 = vrot.slane %v258_v45, 4  ;;  %v274_v62 = vrot.slane %v260_v46, 4 }
  0x32   : > { %471 = vperm.xlu2 %865, %v223_v12   ;;  %v275_v63 = vrot.slane %v262_v47, 4  ;;  %v263_v0 = vperm.slane %v1052_v36, 0  ;;  %v276_v1 = vrot.slane %v264_v51, 4  ;;  %v434_v2 = vperm.slane %v1041_v27, 4 }
  0x33   : > { %v391_v3 = vperm.slane %v1034_v23, 3  ;;  %v436_v4 = vperm.slane %v1046_v30, 4  ;;  %v438_v5 = vperm.slane %v1048_v31, 4  ;;  %v450_v6 = vrot.slane %v435_v55, 4 }
  0x34   : > { %v393_v7 = vperm.slane %v1037_v25, 3  ;;  %v440_v8 = vperm.slane %v1052_v36, 4  ;;  %v452_v10 = vrot.slane %v439_v58, 4  ;;  %v453_v11 = vrot.slane %v441_v59, 4 }
  0x35   : > { %v1092_v13 = vsel %vm277_vm0, %v257_v54, %v273_v61  ;;  %v1095_v14 = vsel %vm277_vm0, %v259_v56, %v274_v62  ;;  %v1098_v15 = vsel %vm277_vm0, %v261_v60, %v275_v63  ;;  %v406_v20 = vrot.slane %v391_v3, 4 }
  0x36   : > { %v1104_v21 = vsel %vm277_vm0, %v263_v0, %v276_v1  ;;  %v454_v22 = vsel %vm277_vm0, %v434_v2, %v450_v6  ;;  %v392_v24 = vperm.slane %v1046_v30, 3  ;;  %v407_v29 = vrot.slane %v393_v7, 4 }
  0x37   : > { %v456_v33 = vsel %vm277_vm0, %v438_v5, %v452_v10  ;;  %v457_v34 = vsel %vm277_vm0, %v440_v8, %v453_v11  ;;  %v394_v37 = vperm.slane %v1048_v31, 3  ;;  %v396_v38 = vperm.slane %v1052_v36, 3 }
  0x38   : > { %866 = vset.pattern.permute.xlu1 %v936_v16  ;;  %868 = vset.pattern.permute.xlu0 %v937_v17  ;;  %v390_v17 = vperm.slane %v1041_v27, 3  ;;  %v303_v39 = vperm.slane %v1034_v23, 1  ;;  %v305_v40 = vperm.slane %v1037_v25, 1  ;;  %v302_v45 = vperm.slane %v1041_v27, 1 }
  0x39   : > { %515 = vperm.xlu1 %866, %v223_v12   ;;  %603 = vperm.xlu0 %868, %v223_v12   ;;  %v1121_v46 = vsel %vm277_vm0, %v392_v24, %v407_v29  ;;  %v304_v47 = vperm.slane %v1046_v30, 1  ;;  %v306_v54 = vperm.slane %v1048_v31, 1  ;;  %v479_v55 = vperm.slane %v1034_v23, 5 }
  0x3a   : > { %867 = vset.pattern.permute.xlu2 %v938_v18  ;;  %v395_v18 = vperm.slane %v1039_v26, 3  ;;  %v1117_v43 = vsel %vm277_vm0, %v390_v17, %v406_v20  ;;  %v481_v56 = vperm.slane %v1037_v25, 5  ;;  %v483_v59 = vperm.slane %v1039_v26, 5 }
  0x3b   : > { %559 = vperm.xlu2 %867, %v223_v12   ;;  %v1089_v12 = vsel %vm277_vm0, %v352_v48, %v365_v49  ;;  %v307_v48 = vperm.slane %v1039_v26, 1  ;;  %v309_v49 = vperm.slane %v1043_v28, 1  ;;  %v485_v60 = vperm.slane %v1043_v28, 5 }
  0x3c   : > { %v408_v41 = vrot.slane %v395_v18, 4  ;;  %v318_v63 = vrot.slane %v303_v39, 4  ;;  %v319_v0 = vrot.slane %v305_v40, 4  ;;  %v308_v2 = vperm.slane %v1052_v36, 1 }
  0x3d   : > { %v320_v3 = vrot.slane %v307_v48, 4  ;;  %v478_v6 = vperm.slane %v1041_v27, 5  ;;  %v480_v7 = vperm.slane %v1046_v30, 5  ;;  %v494_v8 = vrot.slane %v479_v55, 4 }
  0x3e   : > { %v1140_v62 = vsel %vm277_vm0, %v394_v37, %v408_v41  ;;  %v482_v10 = vperm.slane %v1048_v31, 5  ;;  %v484_v11 = vperm.slane %v1052_v36, 5  ;;  %v497_v17 = vrot.slane %v485_v60, 4 }
  0x3f   : > { %v1151_v18 = vsel %vm277_vm0, %v302_v45, %v318_v63  ;;  %v523_v20 = vperm.slane %v1034_v23, 6  ;;  %v1159_v24 = vsel %vm277_vm0, %v306_v54, %v320_v3  ;;  %v524_v37 = vperm.slane %v1046_v30, 6 }
  0x40   : > { %v501_v40 = vsel %vm277_vm0, %v484_v11, %v497_v17  ;;  %v527_v41 = vperm.slane %v1039_v26, 6  ;;  %v526_v45 = vperm.slane %v1048_v31, 6  ;;  %v528_v3 = vperm.slane %v1052_v36, 6  ;;  %v230_v11 = vld [vmem:[%s1029_s17 + $0x30] sm:$0x11] }
  0x41   : > { %869 = vset.pattern.permute.xlu1 %v931_v9  ;;  %870 = vset.pattern.permute.xlu0 %v931_v9  ;;  %v451_v9 = vrot.slane %v437_v57, 4  ;;  %v538_v48 = vrot.slane %v523_v20, 4 }
  0x42   : > { %649 = vperm.xlu1 %869, %v646_v19   ;;  %v397_v19 = vperm.slane %v1043_v28, 3 }
  0x43   : > { %v455_v32 = vsel %vm277_vm0, %v436_v4, %v451_v9  ;;  %v321_v4 = vrot.slane %v309_v49, 4  ;;  %v495_v9 = vrot.slane %v481_v56, 4  ;;  %v573_v56 = vperm.slane %v1043_v28, 7 }
  0x44   : > { %v409_v42 = vrot.slane %v397_v19, 4  ;;  %v1154_v19 = vsel %vm277_vm0, %v304_v47, %v319_v0  ;;  %v529_v47 = vperm.slane %v1043_v28, 6  ;;  %v566_v0 = vperm.slane %v1041_v27, 7  ;;  %v228_v28 = vld [vmem:[%s1029_s17 + $0x20] sm:$0x11] }
  0x45   : > { %v1162_v29 = vsel %vm277_vm0, %v308_v2, %v321_v4  ;;  %v540_v4 = vrot.slane %v527_v41, 4  ;;  %v585_v20 = vrot.slane %v573_v56, 4 }
  0x46   : > { %v1143_v1 = vsel %vm277_vm0, %v396_v38, %v409_v42  ;;  %v567_v38 = vperm.slane %v1034_v23, 7  ;;  %v569_v42 = vperm.slane %v1037_v25, 7  ;;  %v571_v23 = vperm.slane %v1039_v26, 7 }
  0x47   : > { %v1206_v41 = vsel %vm277_vm0, %v526_v45, %v540_v4 }
  0x48   : > { %v582_v2 = vrot.slane %v567_v38, 4  ;;  %v583_v26 = vrot.slane %v569_v42, 4  ;;  %v584_v17 = vrot.slane %v571_v23, 4 }
  0x82   : > { %v428_v16 = vpop.permute.xlu2 %427 }
  0x83   : > { %v433_v35 = vperm.slane %v428_v16, %v1058_v44  ;;  %v496_v16 = vrot.slane %v483_v59, 4 }
  0x85   : > { %v1126_v51 = vmul.f32 %v454_v22, %v433_v35  ;;  %v1131_v57 = vmul.f32 %v455_v32, %v433_v35  ;;  %v1133_v58 = vmul.f32 %v456_v33, %v433_v35  ;;  %v1137_v61 = vmul.f32 %v457_v34, %v433_v35 }
  0x86   : > { %v525_v22 = vperm.slane %v1037_v25, 6  ;;  %v522_v33 = vperm.slane %v1041_v27, 6  ;;  %v498_v34 = vsel %vm277_vm0, %v478_v6, %v494_v8  ;;  %v499_v35 = vsel %vm277_vm0, %v480_v7, %v495_v9  ;;  %v229_v27 = vld [vmem:[%s1029_s17 + $0x28] sm:$0x11] }
  0x87   : > { %v500_v39 = vsel %vm277_vm0, %v482_v10, %v496_v16  ;;  %v541_v7 = vrot.slane %v529_v47, 4  ;;  %v570_v10 = vperm.slane %v1048_v31, 7  ;;  %v572_v16 = vperm.slane %v1052_v36, 7 }
  0x88   : > { %v539_v49 = vrot.slane %v525_v22, 4  ;;  %v1191_v8 = vsel %vm277_vm0, %v522_v33, %v538_v48  ;;  %v231_v22 = vld [vmem:[%s1029_s17 + $0x38] sm:$0x11]  ;;  %v242_v33 = vunpack.c.l.bf16 %v229_v27 }
  0x89   : > { %v246_v36 = vunpack.c.l.bf16 %v231_v22  ;;  %v247_v42 = vunpack.c.h.bf16 %v231_v22  ;;  %v1210_v48 = vsel %vm277_vm0, %v528_v3, %v541_v7  ;;  %v589_v23 = vsel %vm277_vm0, %v572_v16, %v585_v20 }
  0x8a   : > { %v1194_v9 = vsel %vm277_vm0, %v524_v37, %v539_v49  ;;  %v243_v37 = vunpack.c.h.bf16 %v229_v27  ;;  %v588_v49 = vsel %vm277_vm0, %v570_v10, %v584_v17  ;;  %v612_v4 = vperm.slane %v242_v33, 0 }
  0x8b   : > { %v616_v7 = vperm.slane %v246_v36, 0  ;;  %v617_v10 = vperm.slane %v247_v42, 0 }
  0x8c   : > { %v472_v5 = vpop.permute.xlu2 %471 }
  0x8d   : > { %v477_v32 = vperm.slane %v472_v5, %v1058_v44  ;;  %v568_v5 = vperm.slane %v1046_v30, 7  ;;  %v240_v30 = vunpack.c.l.bf16 %v228_v28 }
  0x8f   : > { %v1176_v54 = vmul.f32 %v498_v34, %v477_v32  ;;  %v1178_v55 = vmul.f32 %v499_v35, %v477_v32  ;;  %v1182_v25 = vmul.f32 %v500_v39, %v477_v32  ;;  %v1184_v63 = vmul.f32 %v501_v40, %v477_v32 }
  0x90   : > { %v586_v32 = vsel %vm277_vm0, %v566_v0, %v582_v2  ;;  %v241_v35 = vunpack.c.h.bf16 %v228_v28  ;;  %v587_v38 = vsel %vm277_vm0, %v568_v5, %v583_v26  ;;  %v244_v39 = vunpack.c.l.bf16 %v230_v11 }
  0x91   : > { %v245_v40 = vunpack.c.h.bf16 %v230_v11  ;;  %v610_v2 = vperm.slane %v240_v30, 0  ;;  %v613_v26 = vperm.slane %v243_v37, 0 }
  0x93   : > { %v615_v28 = vperm.slane %v245_v40, 0 }
  0x95   : > { %v560_v6 = vpop.permute.xlu2 %559 }
  0x96   : > { %v565_v34 = vperm.slane %v560_v6, %v1058_v44  ;;  %v614_v6 = vperm.slane %v244_v39, 0 }
  0x98   : > { %v1214_v56 = vmul.f32 %v586_v32, %v565_v34  ;;  %v1216_v0 = vmul.f32 %v587_v38, %v565_v34  ;;  %v628_v38 = vrot.slane %v615_v28, 4 }
  0x99   : > { %v340_v59 = vpop.permute.xlu1 %339  ;;  %v251_v60 = vpop.permute.xlu0 %250 }
  0x9a   : > { %v345_v31 = vperm.slane %v340_v59, %v1058_v44  ;;  %v256_v47 = vperm.slane %v251_v60, %v1058_v44  ;;  %v611_v59 = vperm.slane %v241_v35, 0 }
  0x9c   : > { %v374_v60 = vmul.f32 %v1065_v50, %v345_v31  ;;  %v375_v27 = vmul.f32 %v1069_v52, %v345_v31  ;;  %v376_v11 = vmul.f32 %v1072_v53, %v345_v31  ;;  %v377_v16 = vmul.f32 %v1089_v12, %v345_v31 }
  0x9d   : > { %v286_v17 = vmul.f32 %v1092_v13, %v256_v47  ;;  %v287_v20 = vmul.f32 %v1095_v14, %v256_v47  ;;  %v288_v22 = vmul.f32 %v1098_v15, %v256_v47  ;;  %v289_v30 = vmul.f32 %v1104_v21, %v256_v47 }
  0x9e   : > { %v626_v33 = vrot.slane %v611_v59, 4  ;;  %v627_v12 = vrot.slane %v613_v26, 4  ;;  %v629_v13 = vrot.slane %v617_v10, 4  ;;  %v596_v47 = vmul.f32 %v588_v49, %v565_v34 }
  0x9f   : > { %v597_v59 = vmul.f32 %v589_v23, %v565_v34 }
  0xa2   : > { %v384_v5 = vpop.permute.xlu1 %383  ;;  %v296_v45 = vpop.permute.xlu0 %295 }
  0xa3   : > { %v301_v3 = vperm.slane %v296_v45, %v1058_v44  ;;  %v389_v50 = vperm.slane %v384_v5, %v1058_v44  ;;  %v630_v5 = vsel %vm277_vm0, %v610_v2, %v626_v33  ;;  %v631_v45 = vsel %vm277_vm0, %v612_v4, %v627_v12 }
  0xa5   : > { %v330_v32 = vmul.f32 %v1151_v18, %v301_v3  ;;  %v331_v35 = vmul.f32 %v1154_v19, %v301_v3  ;;  %v332_v52 = vmul.f32 %v1159_v24, %v301_v3  ;;  %v333_v53 = vmul.f32 %v1162_v29, %v301_v3 }
  0xa6   : > { %v418_v21 = vmul.f32 %v1117_v43, %v389_v50  ;;  %v419_v40 = vmul.f32 %v1121_v46, %v389_v50  ;;  %v420_v18 = vmul.f32 %v1140_v62, %v389_v50  ;;  %v421_v19 = vmul.f32 %v1143_v1, %v389_v50 }
  0xa7   : > { %v334_v37 = vadd.f32 %v330_v32, %v286_v17  ;;  %v335_v14 = vadd.f32 %v331_v35, %v287_v20  ;;  %v336_v39 = vadd.f32 %v332_v52, %v288_v22  ;;  %v337_v15 = vadd.f32 %v333_v53, %v289_v30 }
  0xa8   : > { %v632_v1 = vsel %vm277_vm0, %v614_v6, %v628_v38 }
  0xa9   : > { %v378_v31 = vadd.f32 %v374_v60, %v334_v37  ;;  %v379_v24 = vadd.f32 %v375_v27, %v335_v14  ;;  %v380_v36 = vadd.f32 %v376_v11, %v336_v39  ;;  %v381_v29 = vadd.f32 %v377_v16, %v337_v15 }
  0xaa   : > { %v633_v60 = vsel %vm277_vm0, %v616_v7, %v629_v13 }
  0xab   : > { %v516_v42 = vpop.permute.xlu1 %515  ;;  %v604_v26 = vpop.permute.xlu0 %603  ;;  %v422_v28 = vadd.f32 %v418_v21, %v378_v31  ;;  %v423_v43 = vadd.f32 %v419_v40, %v379_v24  ;;  %v424_v3 = vadd.f32 %v420_v18, %v380_v36  ;;  %v425_v46 = vadd.f32 %v421_v19, %v381_v29 }
  0xac   : > { %v521_v62 = vperm.slane %v516_v42, %v1058_v44  ;;  %v609_v10 = vperm.slane %v604_v26, %v1058_v44 }
  0xad   : > { %v466_v49 = vadd.f32 %v1126_v51, %v422_v28  ;;  %v467_v34 = vadd.f32 %v1131_v57, %v423_v43  ;;  %v468_v23 = vadd.f32 %v1133_v58, %v424_v3  ;;  %v469_v2 = vadd.f32 %v1137_v61, %v425_v46 }
  0xae   : > { %v550_v4 = vmul.f32 %v1191_v8, %v521_v62  ;;  %v551_v27 = vmul.f32 %v1194_v9, %v521_v62  ;;  %v552_v11 = vmul.f32 %v1206_v41, %v521_v62  ;;  %v553_v6 = vmul.f32 %v1210_v48, %v521_v62 }
  0xaf   : > { %v510_v7 = vadd.f32 %v1176_v54, %v466_v49  ;;  %v511_v16 = vadd.f32 %v1178_v55, %v467_v34  ;;  %v512_v51 = vadd.f32 %v1182_v25, %v468_v23  ;;  %v513_v57 = vadd.f32 %v1184_v63, %v469_v2 }
  0xb0   : > { %v638_v17 = vmul.f32 %v630_v5, %v609_v10  ;;  %v639_v58 = vmul.f32 %v631_v45, %v609_v10  ;;  %v640_v20 = vmul.f32 %v632_v1, %v609_v10  ;;  %v641_v61 = vmul.f32 %v633_v60, %v609_v10 }
  0xb1   : > { %v554_v8 = vadd.f32 %v550_v4, %v510_v7  ;;  %v555_v22 = vadd.f32 %v551_v27, %v511_v16  ;;  %v556_v9 = vadd.f32 %v552_v11, %v512_v51  ;;  %v557_v30 = vadd.f32 %v553_v6, %v513_v57 }
  0xb3   : > { %v598_v41 = vadd.f32 %v1214_v56, %v554_v8  ;;  %v599_v48 = vadd.f32 %v1216_v0, %v555_v22  ;;  %v600_v54 = vadd.f32 %v596_v47, %v556_v9  ;;  %v601_v50 = vadd.f32 %v597_v59, %v557_v30 }
  0xb4   : > { %v650_v55 = vpop.permute.xlu1 %649 }
  0xb5   : > { %v654_v25 = vperm.slane %v650_v55, %v1058_v44  ;;  %v642_v32 = vadd.f32 %v638_v17, %v598_v41  ;;  %v643_v63 = vadd.f32 %v639_v58, %v599_v48  ;;  %v644_v35 = vadd.f32 %v640_v20, %v600_v54 }
  0xb6   : > { %v645_v52 = vadd.f32 %v641_v61, %v601_v50 }
  0xb7   : > { %v656_v53 = vadd.f32 %v654_v25, %v642_v32  ;;  %v657_v33 = vadd.f32 %v654_v25, %v643_v63  ;;  %v658_v12 = vadd.f32 %v654_v25, %v644_v35 }
  0xb8   : > { %v659_v38 = vadd.f32 %v654_v25, %v645_v52 }
  0xb9   : > { %v660_v13 = vmax.f32 %v656_v53, 0.0  ;;  %v661_v56 = vmax.f32 %v657_v33, 0.0  ;;  %v662_v37 = vmax.f32 %v658_v12, 0.0 }
  0xba   : > { %v663_v0 = vmax.f32 %v659_v38, 0.0 }
  0xbb   : > { %668 = vst [vmem:[#allocation1] ss:$2 sm:$0xff] %v660_v13 }
  0xbc   : > { %670 = vst [vmem:[#allocation1 + $0x10] ss:$2 sm:$0xff] %v661_v56 }
  0xbd   : > { %672 = vst [vmem:[#allocation1 + $0x20] ss:$2 sm:$0xff] %v662_v37 }
  0xbe   : > { %674 = vst [vmem:[#allocation1 + $0x30] ss:$2 sm:$0xff] %v663_v0 }
  0xc2   : > { %v675_v44 = vld.sshfl [vmem:[#allocation1] sm:$0xff pattern:$0x75316420]  ;;  %v676_v14 = vld.sshfl [vmem:[#allocation1 + $0x8] sm:$0xff pattern:$0x75316420] }
  0xc3   : > { %v677_v39 = vld.sshfl [vmem:[#allocation1 + $0x10] sm:$0xff pattern:$0x75316420]  ;;  %v678_v15 = vld.sshfl [vmem:[#allocation1 + $0x18] sm:$0xff pattern:$0x75316420]  ;;  %v691_v21 = vpack.c.bf16 %v676_v14, %v675_v44 }
  0xc4   : > { %v679_v40 = vld.sshfl [vmem:[#allocation1 + $0x20] sm:$0xff pattern:$0x75316420]  ;;  %v680_v18 = vld.sshfl [vmem:[#allocation1 + $0x28] sm:$0xff pattern:$0x75316420]  ;;  %v692_v19 = vpack.c.bf16 %v678_v15, %v677_v39 }
  0xc5   : > { %v681_v31 = vld.sshfl [vmem:[#allocation1 + $0x30] sm:$0xff pattern:$0x75316420]  ;;  %v682_v24 = vld.sshfl [vmem:[#allocation1 + $0x38] sm:$0xff pattern:$0x75316420]  ;;  %v693_v36 = vpack.c.bf16 %v680_v18, %v679_v40 }
  0xc6   : > { %v694_v29 = vpack.c.bf16 %v682_v24, %v681_v31  ;;  %v699_v42 = vrot.slane %v691_v21, 2  ;;  %v700_v47 = vrot.slane %v692_v19, 4  ;;  %v701_v59 = vrot.slane %v692_v19, 6 }
  0xc7   : > { %v702_v5 = vrot.slane %v693_v36, 2 }
  0xc8   : > { %v703_v45 = vrot.slane %v694_v29, 4  ;;  %v704_v26 = vrot.slane %v694_v29, 6  ;;  %v708_v28 = vsel %vm705_vm1, %v691_v21, %v699_v42  ;;  %v712_v43 = vsel %vm709_vm2, %v700_v47, %v701_v59 }
  0xc9   : > { %v713_v3 = vsel %vm277_vm0, %v708_v28, %v712_v43  ;;  %v716_v46 = vsel %vm705_vm1, %v693_v36, %v702_v5 }
  0xca   : > { %v719_v62 = vsel %vm709_vm2, %v703_v45, %v704_v26  ;;  %723 = vst [vmem:[%s220_s20] sm:$0xff] %v713_v3 }
  0xcb   : > { %v720_v1 = vsel %vm277_vm0, %v716_v46, %v719_v62 }
  0xcc   : > { %724 = vst [vmem:[%s220_s20 + $0x8] sm:$0xff] %v720_v1 }
  0xcd PF: > { %p11_p12 = scmp.ge.s32.totalorder %s977_s16, 5   ;;  %s1285_s12 = smov %s923_s13 }
  0xce   : > { %s1286_s13 = smov %s987_s19  ;;  %s1287_s14 = smov %s977_s16 }
  0xcf   :  { %13 = sbr.rel (!%p11_p12) target bundleno = 2 (0x2), region = 98 }
  0xd4   :  { %747 = vsyncpa [#allocation3], 1 }
  0xd5   :  { %749 = vsyncpa [#allocation3 + $0x1], 1 }

// kernel: conv_autoencoder_forward.14
= control target key start
LH: loop header
LB: loop body
LE: loop exit
PB: predicated region body
PF: predicated region fallthrough
CT: control target
= control target key end

     0   :  { %s2214_s12 = smov 0   ;;  %s2216_s13 = smov 0   ;;  %s3046_s0 = inlined_call_operand.vmem [shape: bf16[4,36], index: 0, kind: input, shape index: {}]   ;;  %s3047_s1 = inlined_call_operand.vmem [shape: f32[4,1], index: 1, kind: input, shape index: {}]   ;;  %s3048_s2 = inlined_call_operand.vmem [shape: bf16[36,3072], index: 2, kind: input, shape index: {}]   ;;  %s3049_s3 = inlined_call_operand.vmem [shape: bf16[4,3072], index: 3, kind: output, shape index: {}]  }
   0x1   :  { %s2218_s14 = smov 0  }
   0x2 LB: > { %s2020_s15 = sadd.s32 4294967295, %s2155_s14   ;;  %s2231_s16 = sadd.s32 1, %s2155_s14   ;;  %s2155_s14 = sphi %s2218_s14, %s3058_s14   ;;  %s2151_s13 = sphi %s2216_s13, %s3057_s13   ;;  %s2147_s12 = sphi %s2214_s12, %s3056_s12  }
   0x3   : > { %s59_s17 = ssub.s32 %s2155_s14, %s2231_s16  ;;  %s62_s18 = sadd.s32 1, %s2151_s13 }
   0x4   : > { %p60_p0 = scmp.eq.s32.totalorder %s59_s17, 0  ;;  %p69_p1 = scmp.ne.s32.totalorder %s2151_s13, %s2147_s12 }
   0x5   : > { %p70_p2 = scmp.eq.s32.totalorder %s2155_s14, 0  ;;  %p2023_p4 = scmp.ge.s32.totalorder %s2155_s14, 3 }
   0x6   : > { %s2240_s19 = scalar_select %p60_p0, %s2151_s13, %s62_s18  }
   0x7   : > { %p71_p3 = por %p70_p2, %p69_p1  ;;  %127 = sbr.rel (%p2023_p4) target bundleno = 36 (0x24), region = 24 }
   0xc   : > { %130 = sbr.rel (!%p71_p3) target bundleno = 36 (0x24), region = 28  ;;  %s132_s20 = sand.u32 (%p71_p3), 1, %s2151_s13  }
   0xd   : > { %s2031_s21 = sshll.u32 (%p71_p3), %s2155_s14, 5  ;;  %s2032_s22 = smul.u32 (%p71_p3), 160, %s132_s20 }
   0xe   : > { %s2248_s25 = scalar_lea.vmem (%p71_p3), %s3048_s2, %s2031_s21 }
   0xf   : > { %v150_v0 = vld [vmem:[%s2248_s25] sm:$0xff] (%p71_p3)  ;;  %v152_v1 = vld [vmem:[%s2248_s25 + $0x8] sm:$0xff] (%p71_p3)  ;;  %v154_v2 = vld [vmem:[%s2248_s25 + $0x10] sm:$0xff] (%p71_p3)  ;;  %s2253_s26 = scalar_lea.vmem (%p71_p3), [#allocation2], %s2032_s22 }
  0x10   : > { %151 = vst [vmem:[%s2253_s26] sm:$0xff] (%p71_p3), %v150_v0  ;;  %v156_v3 = vld [vmem:[%s2248_s25 + $0x18] sm:$0xff] (%p71_p3)  ;;  %v158_v4 = vld [vmem:[%s2248_s25 + $0x60] sm:$0xff] (%p71_p3)  ;;  %v160_v5 = vld [vmem:[%s2248_s25 + $0x68] sm:$0xff] (%p71_p3) }
  0x11   : > { %153 = vst [vmem:[%s2253_s26 + $0x8] sm:$0xff] %v152_v1  ;;  %v162_v6 = vld [vmem:[%s2248_s25 + $0x70] sm:$0xff]  ;;  %v164_v7 = vld [vmem:[%s2248_s25 + $0x78] sm:$0xff]  ;;  %v166_v8 = vld [vmem:[%s2248_s25 + $0xc0] sm:$0xff] }
  0x12   : > { %155 = vst [vmem:[%s2253_s26 + $0x10] sm:$0xff] %v154_v2  ;;  %v168_v9 = vld [vmem:[%s2248_s25 + $0xc8] sm:$0xff]  ;;  %v170_v10 = vld [vmem:[%s2248_s25 + $0xd0] sm:$0xff]  ;;  %v172_v11 = vld [vmem:[%s2248_s25 + $0xd8] sm:$0xff] }
  0x13   : > { %157 = vst [vmem:[%s2253_s26 + $0x18] sm:$0xff] %v156_v3  ;;  %v174_v12 = vld [vmem:[%s2248_s25 + $0x120] sm:$0xff]  ;;  %v176_v13 = vld [vmem:[%s2248_s25 + $0x128] sm:$0xff]  ;;  %v178_v14 = vld [vmem:[%s2248_s25 + $0x130] sm:$0xff] }
  0x14   : > { %159 = vst [vmem:[%s2253_s26 + $0x20] sm:$0xff] %v158_v4  ;;  %v180_v15 = vld [vmem:[%s2248_s25 + $0x138] sm:$0xff]  ;;  %v182_v16 = vld [vmem:[%s2248_s25 + $0x180] sm:$0xff]  ;;  %v184_v17 = vld [vmem:[%s2248_s25 + $0x188] sm:$0xff] }
  0x15   : > { %161 = vst [vmem:[%s2253_s26 + $0x28] sm:$0xff] %v160_v5  ;;  %v186_v18 = vld [vmem:[%s2248_s25 + $0x190] sm:$0xff]  ;;  %v188_v19 = vld [vmem:[%s2248_s25 + $0x198] sm:$0xff] }
  0x16   : > { %163 = vst [vmem:[%s2253_s26 + $0x30] sm:$0xff] %v162_v6 }
  0x17   : > { %165 = vst [vmem:[%s2253_s26 + $0x38] sm:$0xff] %v164_v7 }
  0x18   : > { %167 = vst [vmem:[%s2253_s26 + $0x40] sm:$0xff] %v166_v8 }
  0x19   : > { %169 = vst [vmem:[%s2253_s26 + $0x48] sm:$0xff] %v168_v9 }
  0x1a   : > { %171 = vst [vmem:[%s2253_s26 + $0x50] sm:$0xff] %v170_v10 }
  0x1b   : > { %173 = vst [vmem:[%s2253_s26 + $0x58] sm:$0xff] %v172_v11 }
  0x1c   : > { %175 = vst [vmem:[%s2253_s26 + $0x60] sm:$0xff] %v174_v12 }
  0x1d   : > { %177 = vst [vmem:[%s2253_s26 + $0x68] sm:$0xff] %v176_v13 }
  0x1e   : > { %179 = vst [vmem:[%s2253_s26 + $0x70] sm:$0xff] %v178_v14 }
  0x1f   : > { %181 = vst [vmem:[%s2253_s26 + $0x78] sm:$0xff] %v180_v15 }
  0x20   : > { %183 = vst [vmem:[%s2253_s26 + $0x80] sm:$0xff] %v182_v16 }
  0x21   : > { %185 = vst [vmem:[%s2253_s26 + $0x88] sm:$0xff] %v184_v17 }
  0x22   : > { %187 = vst [vmem:[%s2253_s26 + $0x90] sm:$0xff] %v186_v18 }
  0x23   : > { %189 = vst [vmem:[%s2253_s26 + $0x98] sm:$0xff] %v188_v19 }
  0x24 PF: > { %p2026_p5 = scmp.ge.s32.totalorder %s2155_s14, 1  ;;  %p194_p6 = scmp.lt.s32.totalorder %s2155_s14, 4 }
  0x26   : > { %p195_p7 = pnand %p2026_p5, %p194_p6 }
  0x28   : > { %198 = sbr.rel (%p195_p7) target bundleno = 386 (0x182), region = 51 }
  0x2d   : > { %v231_v20 = vld [vmem:[%s3046_s0] sm:$0x3]  ;;  %v2157_v21 = vmov 2   ;;  %v2158_v22 = vmov 0   ;;  %v2159_v24 = vmov 4   ;;  %v2160_v25 = vmov 3  }
  0x2e   : > { %2097 = vset.pattern.permute.xlu1 %v2157_v21  ;;  %2095 = vset.pattern.permute.xlu0 %v2158_v22  ;;  %v2298_v23 = vunpack.c.l.bf16 %v231_v20  ;;  %v2161_v26 = vmov 1   ;;  %v2162_v27 = vmov 5   ;;  %v2163_v28 = vmov 6   ;;  %s201_s29 = sand.u32 1, %s2147_s12   ;;  %s2027_s7 = sshll.u32 %s2020_s15, 3 }
  0x2f   : > { %2099 = vset.pattern.permute.xlu2 %v2159_v24  ;;  %v2164_v29 = vmov 8   ;;  %v2165_v30 = vmov 7   ;;  %v2166_v31 = vmov 9   ;;  %v2167_v32 = vmov 13   ;;  %s2033_s30 = smul.u32 160, %s201_s29  ;;  %p226_p8 = scmp.lt.s32.totalorder %s2027_s7, 23 }
  0x30   : > { %3051 = vst [vmem:[#allocation3_spill] sm:$0xff] %v2298_v23  ;;  %384 = vperm.xlu1 %2097, %v2298_v23   ;;  %295 = vperm.xlu0 %2095, %v2298_v23   ;;  %v2168_v33 = vmov 10   ;;  %v2169_v34 = vmov 11   ;;  %v2170_v35 = vmov 18   ;;  %v2171_v36 = vmov 12  }
  0x31   : > { %472 = vperm.xlu2 %2099, %v2298_v23   ;;  %v2172_v37 = vmov 14   ;;  %v2173_v38 = vmov 23   ;;  %v2174_v39 = vmov 15   ;;  %v2175_v40 = vmov 16   ;;  %s2326_s4 = scalar_lea.vmem [#allocation2], %s2033_s30  ;;  %s3060_s7 = smov (!%p226_p8, %s2027_s7), 23 }
  0x32   : > { %v2176_v41 = vmov 17   ;;  %v2177_v42 = vmov 28   ;;  %v2178_v43 = vmov 19   ;;  %v2179_v44 = vmov 20   ;;  %v233_v48 = vld [vmem:[%s2326_s4] sm:$0xff]  ;;  %v234_v49 = vld [vmem:[%s2326_s4 + $0x8] sm:$0xff] }
  0x33   : > { %v2180_v45 = vmov 21   ;;  %v2181_v46 = vmov 22   ;;  %v2182_v47 = vmov 33   ;;  %v235_v50 = vld [vmem:[%s2326_s4 + $0x10] sm:$0xff]  ;;  %v236_v51 = vld [vmem:[%s2326_s4 + $0x18] sm:$0xff]  ;;  %v2333_v52 = vunpack.c.h.bf16 %v233_v48  ;;  %s2028_s8 = sshll.u32 %s3060_s7, 1 }
  0x34   : > { %v2335_v53 = vunpack.c.h.bf16 %v234_v49  ;;  %v2337_v54 = vunpack.c.h.bf16 %v235_v50  ;;  %v2183_v55 = vmov 839922192   ;;  %vm322_vm0 = vcmask 1043456   ;;  %s229_s11 = scalar_lea.vmem %s3049_s3, %s2028_s8 }
  0x35   : > { %v299_v56 = vunpack.c.l.s4 %v2183_v55  ;;  %v2339_v57 = vunpack.c.h.bf16 %v236_v51  ;;  %v2184_v58 = vmov 24   ;;  %v2341_v59 = vunpack.c.l.bf16 %v233_v48 }
  0x36   : > { %v2343_v60 = vunpack.c.l.bf16 %v234_v49  ;;  %v2345_v61 = vunpack.c.l.bf16 %v235_v50  ;;  %v2347_v62 = vunpack.c.l.bf16 %v236_v51  ;;  %v392_v63 = vperm.slane %v2333_v52, 2 }
  0x37   : > { %v394_v0 = vperm.slane %v2335_v53, 2  ;;  %v396_v1 = vperm.slane %v2337_v54, 2  ;;  %v398_v2 = vperm.slane %v2339_v57, 2  ;;  %v2185_v3 = vmov 25  }
  0x38   : > { %2098 = vset.pattern.permute.xlu1 %v2160_v25  ;;  %2096 = vset.pattern.permute.xlu0 %v2161_v26  ;;  %v391_v4 = vperm.slane %v2341_v59, 2  ;;  %v393_v5 = vperm.slane %v2343_v60, 2  ;;  %v395_v6 = vperm.slane %v2345_v61, 2  ;;  %v397_v7 = vperm.slane %v2347_v62, 2 }
  0x39   : > { %428 = vperm.xlu1 %2098, %v2298_v23   ;;  %340 = vperm.xlu0 %2096, %v2298_v23   ;;  %v407_v8 = vrot.slane %v392_v63, 4  ;;  %v408_v9 = vrot.slane %v394_v0, 4  ;;  %v409_v10 = vrot.slane %v396_v1, 4  ;;  %v410_v11 = vrot.slane %v398_v2, 4 }
  0x3a   : > { %2100 = vset.pattern.permute.xlu2 %v2162_v27  ;;  %v2359_v12 = vunpack.c.0.s8 %v299_v56  ;;  %v302_v17 = vperm.slane %v2341_v59, 0  ;;  %v303_v18 = vperm.slane %v2333_v52, 0  ;;  %v304_v19 = vperm.slane %v2343_v60, 0 }
  0x3b   : > { %516 = vperm.xlu2 %2100, %v2298_v23   ;;  %v2362_v13 = vsel %vm322_vm0, %v391_v4, %v407_v8  ;;  %v2365_v14 = vsel %vm322_vm0, %v393_v5, %v408_v9  ;;  %v2368_v15 = vsel %vm322_vm0, %v395_v6, %v409_v10  ;;  %v2371_v16 = vsel %vm322_vm0, %v397_v7, %v410_v11 }
  0x3c   : > { %v305_v20 = vperm.slane %v2335_v53, 0  ;;  %v306_v21 = vperm.slane %v2345_v61, 0  ;;  %v307_v24 = vperm.slane %v2337_v54, 0  ;;  %v308_v25 = vperm.slane %v2347_v62, 0 }
  0x3d   : > { %v309_v26 = vperm.slane %v2339_v57, 0  ;;  %v318_v27 = vrot.slane %v303_v18, 4  ;;  %v435_v51 = vperm.slane %v2341_v59, 3  ;;  %v436_v55 = vperm.slane %v2333_v52, 3 }
  0x3e   : > { %v437_v56 = vperm.slane %v2343_v60, 3  ;;  %v438_v1 = vperm.slane %v2335_v53, 3  ;;  %v439_v7 = vperm.slane %v2345_v61, 3  ;;  %v440_v8 = vperm.slane %v2337_v54, 3 }
  0x3f   : > { %v441_v9 = vperm.slane %v2347_v62, 3  ;;  %v442_v10 = vperm.slane %v2339_v57, 3  ;;  %v451_v11 = vrot.slane %v436_v55, 4  ;;  %v347_v18 = vperm.slane %v2341_v59, 1 }
  0x40   : > { %vm1938_vm1 = vcmask 1041408   ;;  %vm1942_vm2 = vcmask 1045508  }
  0x41   : > { %2101 = vset.pattern.permute.xlu1 %v2163_v28  ;;  %2103 = vset.pattern.permute.xlu0 %v2164_v29  ;;  %v319_v28 = vrot.slane %v305_v20, 4  ;;  %v479_v29 = vperm.slane %v2341_v59, 4  ;;  %v453_v20 = vrot.slane %v440_v8, 4  ;;  %v567_v8 = vperm.slane %v2341_v59, 6 }
  0x42   : > { %560 = vperm.xlu1 %2101, %v2298_v23   ;;  %648 = vperm.xlu0 %2103, %v2298_v23  }
  0x43   : > { %2102 = vset.pattern.permute.xlu2 %v2165_v30  ;;  %v480_v30 = vperm.slane %v2333_v52, 4 }
  0x44   : > { %604 = vperm.xlu2 %2102, %v2298_v23  }
  0x4a   : > { %2104 = vset.pattern.permute.xlu1 %v2166_v31  ;;  %2108 = vset.pattern.permute.xlu0 %v2167_v32  ;;  %v2186_v31 = vmov 26   ;;  %v320_v32 = vrot.slane %v307_v24, 4  ;;  %v349_v24 = vperm.slane %v2343_v60, 1 }
  0x4b   : > { %692 = vperm.xlu1 %2104, %v2298_v23   ;;  %868 = vperm.xlu0 %2108, %v2298_v23  }
  0x4c   : > { %2105 = vset.pattern.permute.xlu2 %v2168_v33  ;;  %v321_v33 = vrot.slane %v309_v26, 4  ;;  %v454_v26 = vrot.slane %v442_v10, 4  ;;  %v569_v10 = vperm.slane %v2343_v60, 6 }
  0x4d   : > { %736 = vperm.xlu2 %2105, %v2298_v23  }
  0x53   : > { %2106 = vset.pattern.permute.xlu1 %v2169_v34  ;;  %2113 = vset.pattern.permute.xlu0 %v2170_v35  ;;  %v481_v34 = vperm.slane %v2343_v60, 4  ;;  %v482_v35 = vperm.slane %v2335_v53, 4 }
  0x54   : > { %780 = vperm.xlu1 %2106, %v2298_v23   ;;  %1088 = vperm.xlu0 %2113, %v2298_v23  }
  0x55   : > { %2107 = vset.pattern.permute.xlu2 %v2171_v36  ;;  %v2388_v36 = vsel %vm322_vm0, %v302_v17, %v318_v27  ;;  %v496_v48 = vrot.slane %v482_v35, 4  ;;  %v452_v17 = vrot.slane %v438_v1, 4  ;;  %v2431_v27 = vsel %vm322_vm0, %v435_v51, %v451_v11 }
  0x56   : > { %824 = vperm.xlu2 %2107, %v2298_v23   ;;  %v530_v1 = vperm.slane %v2339_v57, 5  ;;  %v2190_v11 = vmov 31  }
  0x57   : > { %v500_v63 = vsel %vm322_vm0, %v481_v34, %v496_v48  ;;  %v2444_v34 = vsel %vm322_vm0, %v441_v9, %v454_v26  ;;  %v568_v9 = vperm.slane %v2333_v52, 6  ;;  %v572_v26 = vperm.slane %v2337_v54, 6 }
  0x5c   : > { %2109 = vset.pattern.permute.xlu1 %v2172_v37  ;;  %2118 = vset.pattern.permute.xlu0 %v2173_v38  ;;  %v2391_v37 = vsel %vm322_vm0, %v304_v19, %v319_v28  ;;  %v483_v38 = vperm.slane %v2345_v61, 4  ;;  %v2188_v19 = vmov 29   ;;  %v2434_v28 = vsel %vm322_vm0, %v437_v56, %v452_v17 }
  0x5d   : > { %912 = vperm.xlu1 %2109, %v2298_v23   ;;  %1308 = vperm.xlu0 %2118, %v2298_v23   ;;  %v526_v56 = vperm.slane %v2335_v53, 5 }
  0x5e   : > { %2110 = vset.pattern.permute.xlu2 %v2174_v39  ;;  %v484_v39 = vperm.slane %v2337_v54, 4 }
  0x5f   : > { %956 = vperm.xlu2 %2110, %v2298_v23  }
  0x60   : > { %v497_v49 = vrot.slane %v484_v39, 4 }
  0x62   : > { %v501_v0 = vsel %vm322_vm0, %v483_v38, %v497_v49  ;;  %v524_v49 = vperm.slane %v2333_v52, 5 }
  0x65   : > { %2111 = vset.pattern.permute.xlu1 %v2175_v40  ;;  %2123 = vset.pattern.permute.xlu0 %v2177_v42  ;;  %v2187_v40 = vmov 27   ;;  %v2399_v42 = vsel %vm322_vm0, %v308_v25, %v321_v33  ;;  %v350_v25 = vperm.slane %v2335_v53, 1  ;;  %v354_v33 = vperm.slane %v2339_v57, 1 }
  0x66   : > { %1000 = vperm.xlu1 %2111, %v2298_v23   ;;  %1528 = vperm.xlu0 %2123, %v2298_v23  }
  0x67   : > { %2112 = vset.pattern.permute.xlu2 %v2176_v41  ;;  %v2396_v41 = vsel %vm322_vm0, %v306_v21, %v320_v32  ;;  %v348_v21 = vperm.slane %v2333_v52, 1  ;;  %v353_v32 = vperm.slane %v2347_v62, 1  ;;  %v364_v38 = vrot.slane %v350_v25, 4 }
  0x68   : > { %1044 = vperm.xlu2 %2112, %v2298_v23   ;;  %v571_v25 = vperm.slane %v2345_v61, 6 }
  0x69   : > { %v363_v35 = vrot.slane %v348_v21, 4  ;;  %v2452_v48 = vsel %vm322_vm0, %v349_v24, %v364_v38 }
  0x6e   : > { %2114 = vset.pattern.permute.xlu1 %v2178_v43  ;;  %2128 = vset.pattern.permute.xlu0 %v2182_v47  ;;  %v495_v47 = vrot.slane %v480_v30, 4  ;;  %v2438_v30 = vsel %vm322_vm0, %v439_v7, %v453_v20  ;;  %v540_v7 = vrot.slane %v526_v56, 4  ;;  %v570_v20 = vperm.slane %v2335_v53, 6 }
  0x6f   : > { %1132 = vperm.xlu1 %2114, %v2298_v23   ;;  %1748 = vperm.xlu0 %2128, %v2298_v23  }
  0x70   : > { %2115 = vset.pattern.permute.xlu2 %v2179_v44  ;;  %v485_v44 = vperm.slane %v2347_v62, 4 }
  0x71   : > { %1176 = vperm.xlu2 %2115, %v2298_v23  }
  0x77   : > { %2116 = vset.pattern.permute.xlu1 %v2180_v45  ;;  %2132 = vset.pattern.permute.xlu0 %v2158_v22  ;;  %v486_v45 = vperm.slane %v2339_v57, 4 }
  0x78   : > { %1220 = vperm.xlu1 %2116, %v2298_v23  }
  0x79   : > { %2117 = vset.pattern.permute.xlu2 %v2181_v46  ;;  %v498_v50 = vrot.slane %v486_v45, 4 }
  0x7a   : > { %1264 = vperm.xlu2 %2117, %v2298_v23  }
  0x7b   : > { %v502_v2 = vsel %vm322_vm0, %v485_v44, %v498_v50  ;;  %v2189_v44 = vmov 30   ;;  %v525_v50 = vperm.slane %v2343_v60, 5 }
  0x7d   : > { %v544_v21 = vsel %vm322_vm0, %v525_v50, %v540_v7  ;;  %v614_v7 = vperm.slane %v2335_v53, 7  ;;  %v2192_v53 = vmov 34  }
  0x80   : > { %2119 = vset.pattern.permute.xlu1 %v2184_v58  ;;  %v499_v58 = vsel %vm322_vm0, %v479_v29, %v495_v47  ;;  %v351_v29 = vperm.slane %v2345_v61, 1  ;;  %v2449_v47 = vsel %vm322_vm0, %v347_v18, %v363_v35  ;;  %v542_v18 = vrot.slane %v530_v1, 4 }
  0x81   : > { %1352 = vperm.xlu1 %2119, %v2298_v23  }
  0x82   : > { %2120 = vset.pattern.permute.xlu2 %v2185_v3 }
  0x83   : > { %1396 = vperm.xlu2 %2120, %v2298_v23  }
  0x89   : > { %2121 = vset.pattern.permute.xlu1 %v2186_v31  ;;  %v352_v31 = vperm.slane %v2337_v54, 1 }
  0x8a   : > { %1440 = vperm.xlu1 %2121, %v2298_v23  }
  0x8b   : > { %2122 = vset.pattern.permute.xlu2 %v2187_v40  ;;  %v473_v43 = vpop.permute.xlu2 %472  ;;  %v365_v40 = vrot.slane %v352_v31, 4 }
  0x8c   : > { %1484 = vperm.xlu2 %2122, %v2298_v23   ;;  %v478_v46 = vperm.slane %v473_v43, %v2359_v12  ;;  %v366_v43 = vrot.slane %v354_v33, 4  ;;  %v573_v33 = vperm.slane %v2347_v62, 6 }
  0x8d   : > { %v2458_v51 = vsel %vm322_vm0, %v351_v29, %v365_v40  ;;  %v583_v40 = vrot.slane %v568_v9, 4 }
  0x8e   : > { %v2413_v3 = vmul.f32 %v499_v58, %v478_v46  ;;  %v2415_v4 = vmul.f32 %v500_v63, %v478_v46  ;;  %v2417_v5 = vmul.f32 %v501_v0, %v478_v46  ;;  %v2419_v6 = vmul.f32 %v502_v2, %v478_v46 }
  0x8f   : > { %v523_v46 = vperm.slane %v2341_v59, 5  ;;  %v2461_v55 = vsel %vm322_vm0, %v353_v32, %v366_v43  ;;  %v527_v58 = vperm.slane %v2345_v61, 5  ;;  %v528_v63 = vperm.slane %v2337_v54, 5 }
  0x90   : > { %v529_v0 = vperm.slane %v2347_v62, 5  ;;  %v539_v2 = vrot.slane %v524_v49, 4  ;;  %v2491_v56 = vsel %vm322_vm0, %v567_v8, %v583_v40  ;;  %v237_v8 = vld [vmem:[%s2326_s4 + $0x20] sm:$0xff]  ;;  %v238_v40 = vld [vmem:[%s2326_s4 + $0x28] sm:$0xff] }
  0x91   : > { %v541_v17 = vrot.slane %v528_v63, 4  ;;  %v611_v63 = vperm.slane %v2341_v59, 7  ;;  %v616_v59 = vperm.slane %v2337_v54, 7 }
  0x92   : > { %2124 = vset.pattern.permute.xlu1 %v2188_v19  ;;  %v543_v19 = vsel %vm322_vm0, %v523_v46, %v539_v2  ;;  %v546_v31 = vsel %vm322_vm0, %v529_v0, %v542_v18  ;;  %v585_v46 = vrot.slane %v572_v26, 4  ;;  %v613_v2 = vperm.slane %v2343_v60, 7 }
  0x93   : > { %1572 = vperm.xlu1 %2124, %v2298_v23   ;;  %v545_v29 = vsel %vm322_vm0, %v527_v58, %v541_v17  ;;  %v2191_v58 = vmov 32   ;;  %v618_v60 = vperm.slane %v2339_v57, 7  ;;  %v2514_v26 = vunpack.c.l.bf16 %v237_v8 }
  0x94   : > { %2125 = vset.pattern.permute.xlu2 %v2189_v44  ;;  %v584_v44 = vrot.slane %v570_v20, 4  ;;  %v2499_v1 = vsel %vm322_vm0, %v571_v25, %v585_v46  ;;  %v629_v25 = vrot.slane %v616_v59, 4  ;;  %v240_v46 = vld [vmem:[%s2326_s4 + $0x38] sm:$0xff] }
  0x95   : > { %v517_v39 = vpop.permute.xlu2 %516  ;;  %1616 = vperm.xlu2 %2125, %v2298_v23   ;;  %v1879_v59 = vld [vmem:[%s3047_s1] sm:$0xf] }
  0x96   : > { %v522_v45 = vperm.slane %v517_v39, %v2359_v12  ;;  %v574_v39 = vperm.slane %v2339_v57, 6  ;;  %v2496_v0 = vsel %vm322_vm0, %v569_v10, %v584_v44  ;;  %v617_v10 = vperm.slane %v2347_v62, 7 }
  0x98   : > { %v2475_v24 = vmul.f32 %v543_v19, %v522_v45  ;;  %v2481_v32 = vmul.f32 %v544_v21, %v522_v45  ;;  %v2484_v35 = vmul.f32 %v545_v29, %v522_v45  ;;  %v2486_v38 = vmul.f32 %v546_v31, %v522_v45 }
  0x99   : > { %v586_v50 = vrot.slane %v574_v39, 4  ;;  %v612_v45 = vperm.slane %v2333_v52, 7  ;;  %v615_v52 = vperm.slane %v2345_v61, 7  ;;  %v628_v21 = vrot.slane %v614_v7, 4 }
  0x9a   : > { %v2516_v61 = vunpack.c.h.bf16 %v237_v8  ;;  %v2558_v7 = vunpack.c.l.bf16 %v240_v46  ;;  %v2560_v8 = vunpack.c.h.bf16 %v240_v46 }
  0x9b   : > { %2126 = vset.pattern.permute.xlu1 %v2190_v11  ;;  %v2506_v17 = vsel %vm322_vm0, %v573_v33, %v586_v50  ;;  %v627_v20 = vrot.slane %v612_v45, 4 }
  0x9c   : > { %1660 = vperm.xlu1 %2126, %v2298_v23  }
  0x9d   : > { %2127 = vset.pattern.permute.xlu2 %v2191_v58  ;;  %v631_v44 = vsel %vm322_vm0, %v611_v63, %v627_v20 }
  0x9e   : > { %v605_v43 = vpop.permute.xlu2 %604  ;;  %1704 = vperm.xlu2 %2127, %v2298_v23  }
  0x9f   : > { %v610_v49 = vperm.slane %v605_v43, %v2359_v12  ;;  %v239_v43 = vld [vmem:[%s2326_s4 + $0x30] sm:$0xff] }
  0xa0   : > { %v2552_v45 = vunpack.c.l.bf16 %v239_v43  ;;  %v2554_v63 = vunpack.c.h.bf16 %v239_v43 }
  0xa1   : > { %v2541_v50 = vmul.f32 %v631_v44, %v610_v49 }
  0xa2   : > { %v385_v9 = vpop.permute.xlu1 %384  ;;  %v296_v11 = vpop.permute.xlu0 %295 }
  0xa3   : > { %v390_v18 = vperm.slane %v385_v9, %v2359_v12  ;;  %v301_v19 = vperm.slane %v296_v11, %v2359_v12  ;;  %v655_v9 = vperm.slane %v2514_v26, 0 }
  0xa4   : > { %2129 = vset.pattern.permute.xlu1 %v2192_v53  ;;  %v660_v53 = vperm.slane %v2554_v63, 0 }
  0xa5   : > { %v2519_v54 = vmul.f32 %v2362_v13, %v390_v18  ;;  %v2522_v62 = vmul.f32 %v2365_v14, %v390_v18  ;;  %v2525_v57 = vmul.f32 %v2368_v15, %v390_v18  ;;  %v2528_v29 = vmul.f32 %v2371_v16, %v390_v18  ;;  %1792 = vperm.xlu1 %2129, %v2298_v23  }
  0xa6   : > { %v331_v31 = vmul.f32 %v2388_v36, %v301_v19  ;;  %v332_v33 = vmul.f32 %v2391_v37, %v301_v19  ;;  %v333_v39 = vmul.f32 %v2396_v41, %v301_v19  ;;  %v334_v13 = vmul.f32 %v2399_v42, %v301_v19 }
  0xa7   : > { %v630_v14 = vrot.slane %v618_v60, 4  ;;  %v632_v15 = vsel %vm322_vm0, %v613_v2, %v628_v21  ;;  %v633_v16 = vsel %vm322_vm0, %v615_v52, %v629_v25  ;;  %v2547_v37 = vunpack.c.l.bf16 %v238_v40 }
  0xa8   : > { %v2543_v58 = vmul.f32 %v632_v15, %v610_v49  ;;  %v2545_v36 = vmul.f32 %v633_v16, %v610_v49  ;;  %v2550_v42 = vunpack.c.h.bf16 %v238_v40  ;;  %v661_v21 = vperm.slane %v2558_v7, 0 }
  0xa9   : > { %v634_v41 = vsel %vm322_vm0, %v617_v10, %v630_v14  ;;  %v656_v10 = vperm.slane %v2516_v61, 0  ;;  %v657_v18 = vperm.slane %v2547_v37, 0  ;;  %v662_v25 = vperm.slane %v2560_v8, 0 }
  0xaa   : > { %v2556_v2 = vmul.f32 %v634_v41, %v610_v49  ;;  %v658_v19 = vperm.slane %v2550_v42, 0  ;;  %v659_v49 = vperm.slane %v2552_v45, 0 }
  0xab   : > { %v429_v11 = vpop.permute.xlu1 %428  ;;  %v341_v52 = vpop.permute.xlu0 %340  ;;  %v671_v40 = vrot.slane %v656_v10, 4  ;;  %v673_v10 = vrot.slane %v660_v53, 4 }
  0xac   : > { %3052 = vst [vmem:[#allocation4_spill] sm:$0xff] %v2556_v2  ;;  %v434_v60 = vperm.slane %v429_v11, %v2359_v12  ;;  %v346_v20 = vperm.slane %v341_v52, %v2359_v12  ;;  %v672_v43 = vrot.slane %v658_v19, 4  ;;  %v674_v19 = vrot.slane %v662_v25, 4 }
  0xad   : > { %2131 = vset.pattern.permute.xlu1 %v2158_v22  ;;  %v675_v14 = vsel %vm322_vm0, %v655_v9, %v671_v40 }
  0xae   : > { %v463_v44 = vmul.f32 %v2431_v27, %v434_v60  ;;  %v464_v15 = vmul.f32 %v2434_v28, %v434_v60  ;;  %v465_v16 = vmul.f32 %v2438_v30, %v434_v60  ;;  %v466_v46 = vmul.f32 %v2444_v34, %v434_v60  ;;  %1882 = vperm.xlu1 %2131, %v1879_v59  }
  0xaf   : > { %v375_v41 = vmul.f32 %v2449_v47, %v346_v20  ;;  %v376_v11 = vmul.f32 %v2452_v48, %v346_v20  ;;  %v377_v22 = vmul.f32 %v2458_v51, %v346_v20  ;;  %v378_v52 = vmul.f32 %v2461_v55, %v346_v20 }
  0xb0   : > { %v676_v27 = vsel %vm322_vm0, %v657_v18, %v672_v43  ;;  %v677_v34 = vsel %vm322_vm0, %v659_v49, %v673_v10  ;;  %v678_v47 = vsel %vm322_vm0, %v661_v21, %v674_v19  ;;  %v700_v48 = vperm.slane %v2516_v61, 1 }
  0xb1   : > { %v379_v28 = vadd.f32 %v375_v41, %v331_v31  ;;  %v380_v23 = vadd.f32 %v376_v11, %v332_v33  ;;  %v381_v30 = vadd.f32 %v377_v22, %v333_v39  ;;  %v382_v2 = vadd.f32 %v378_v52, %v334_v13 }
  0xb2   : > { %v701_v51 = vperm.slane %v2547_v37, 1  ;;  %v702_v39 = vperm.slane %v2550_v42, 1  ;;  %v703_v13 = vperm.slane %v2552_v45, 1  ;;  %v704_v49 = vperm.slane %v2554_v63, 1 }
  0xb3   : > { %v423_v55 = vadd.f32 %v2519_v54, %v379_v28  ;;  %v424_v59 = vadd.f32 %v2522_v62, %v380_v23  ;;  %v425_v9 = vadd.f32 %v2525_v57, %v381_v30  ;;  %v426_v18 = vadd.f32 %v2528_v29, %v382_v2 }
  0xb4   : > { %v561_v31 = vpop.permute.xlu1 %560  ;;  %v649_v33 = vpop.permute.xlu0 %648  ;;  %v705_v60 = vperm.slane %v2558_v7, 1  ;;  %v706_v57 = vperm.slane %v2560_v8, 1  ;;  %v715_v29 = vrot.slane %v700_v48, 4  ;;  %v716_v28 = vrot.slane %v702_v39, 4 }
  0xb5   : > { %v467_v20 = vadd.f32 %v463_v44, %v423_v55  ;;  %v468_v53 = vadd.f32 %v464_v15, %v424_v59  ;;  %v469_v21 = vadd.f32 %v465_v16, %v425_v9  ;;  %v470_v54 = vadd.f32 %v466_v46, %v426_v18  ;;  %v737_v9 = vpop.permute.xlu2 %736 }
  0xb6   : > { %v566_v23 = vperm.slane %v561_v31, %v2359_v12  ;;  %v654_v62 = vperm.slane %v649_v33, %v2359_v12  ;;  %v718_v30 = vrot.slane %v706_v57, 4  ;;  %v720_v48 = vsel %vm322_vm0, %v701_v51, %v716_v28 }
  0xb7   : > { %v511_v2 = vadd.f32 %v2413_v3, %v467_v20  ;;  %v512_v25 = vadd.f32 %v2415_v4, %v468_v53  ;;  %v513_v40 = vadd.f32 %v2417_v5, %v469_v21  ;;  %v514_v43 = vadd.f32 %v2419_v6, %v470_v54 }
  0xb8   : > { %v595_v44 = vmul.f32 %v2491_v56, %v566_v23  ;;  %v596_v15 = vmul.f32 %v2496_v0, %v566_v23  ;;  %v597_v16 = vmul.f32 %v2499_v1, %v566_v23  ;;  %v598_v46 = vmul.f32 %v2506_v17, %v566_v23 }
  0xb9   : > { %v555_v41 = vadd.f32 %v2475_v24, %v511_v2  ;;  %v556_v11 = vadd.f32 %v2481_v32, %v512_v25  ;;  %v557_v3 = vadd.f32 %v2484_v35, %v513_v40  ;;  %v558_v4 = vadd.f32 %v2486_v38, %v514_v43 }
  0xba   : > { %v683_v22 = vmul.f32 %v675_v14, %v654_v62  ;;  %v684_v5 = vmul.f32 %v676_v27, %v654_v62  ;;  %v685_v52 = vmul.f32 %v677_v34, %v654_v62  ;;  %v686_v6 = vmul.f32 %v678_v47, %v654_v62  ;;  %v3054_v14 = vld [vmem:[#allocation4_spill] sm:$0xff] }
  0xbb   : > { %v599_v10 = vadd.f32 %v595_v44, %v555_v41  ;;  %v600_v56 = vadd.f32 %v596_v15, %v556_v11  ;;  %v601_v19 = vadd.f32 %v597_v16, %v557_v3  ;;  %v602_v0 = vadd.f32 %v598_v46, %v558_v4 }
  0xbc   : > { %v717_v1 = vrot.slane %v704_v49, 4  ;;  %v3053_v17 = vperm.slane %v2514_v26, 1  ;;  %v722_v59 = vsel %vm322_vm0, %v705_v60, %v718_v30  ;;  %v742_v20 = vperm.slane %v737_v9, %v2359_v12  ;;  %v3055_v60 = vld [vmem:[#allocation3_spill] sm:$0xff] }
  0xbd   : > { %v643_v32 = vadd.f32 %v2541_v50, %v599_v10  ;;  %v644_v35 = vadd.f32 %v2543_v58, %v600_v56  ;;  %v645_v38 = vadd.f32 %v2545_v36, %v601_v19  ;;  %v646_v27 = vadd.f32 %v3054_v14, %v602_v0  ;;  %v693_v34 = vpop.permute.xlu1 %692 }
  0xbe   : > { %v719_v24 = vsel %vm322_vm0, %v3053_v17, %v715_v29  ;;  %v698_v47 = vperm.slane %v693_v34, %v2359_v12  ;;  %v721_v55 = vsel %vm322_vm0, %v703_v13, %v717_v1  ;;  %v744_v53 = vperm.slane %v2516_v61, 2 }
  0xbf   : > { %v687_v18 = vadd.f32 %v683_v22, %v643_v32  ;;  %v688_v31 = vadd.f32 %v684_v5, %v644_v35  ;;  %v689_v33 = vadd.f32 %v685_v52, %v645_v38  ;;  %v690_v36 = vadd.f32 %v686_v6, %v646_v27 }
  0xc0   : > { %v727_v50 = vmul.f32 %v719_v24, %v698_v47  ;;  %v728_v39 = vmul.f32 %v720_v48, %v698_v47  ;;  %v729_v58 = vmul.f32 %v721_v55, %v698_v47  ;;  %v730_v49 = vmul.f32 %v722_v59, %v698_v47  ;;  %v825_v55 = vpop.permute.xlu2 %824 }
  0xc1   : > { %v2193_v23 = vmov 35   ;;  %v743_v13 = vperm.slane %v2514_v26, 2  ;;  %v745_v62 = vperm.slane %v2547_v37, 2  ;;  %v746_v57 = vperm.slane %v2550_v42, 2 }
  0xc2   : > { %v731_v21 = vadd.f32 %v727_v50, %v687_v18  ;;  %v732_v54 = vadd.f32 %v728_v39, %v688_v31  ;;  %v733_v51 = vadd.f32 %v729_v58, %v689_v33  ;;  %2130 = vset.pattern.permute.xlu2 %v2193_v23  ;;  %v747_v29 = vperm.slane %v2552_v45, 2 }
  0xc3   : > { %1836 = vperm.xlu2 %2130, %v3055_v60   ;;  %v748_v2 = vperm.slane %v2554_v63, 2  ;;  %v734_v25 = vadd.f32 %v730_v49, %v690_v36  ;;  %v749_v40 = vperm.slane %v2558_v7, 2  ;;  %v750_v43 = vperm.slane %v2560_v8, 2 }
  0xc4   : > { %v759_v44 = vrot.slane %v744_v53, 4  ;;  %v760_v15 = vrot.slane %v746_v57, 4  ;;  %v787_v46 = vperm.slane %v2514_v26, 3  ;;  %v788_v41 = vperm.slane %v2516_v61, 3 }
  0xc5   : > { %v761_v16 = vrot.slane %v748_v2, 4  ;;  %v762_v11 = vrot.slane %v750_v43, 4  ;;  %v789_v22 = vperm.slane %v2547_v37, 3  ;;  %v790_v5 = vperm.slane %v2550_v42, 3 }
  0xc6   : > { %v763_v3 = vsel %vm322_vm0, %v743_v13, %v759_v44  ;;  %v781_v4 = vpop.permute.xlu1 %780  ;;  %v764_v52 = vsel %vm322_vm0, %v745_v62, %v760_v15  ;;  %v791_v56 = vperm.slane %v2552_v45, 3  ;;  %v792_v1 = vperm.slane %v2554_v63, 3 }
  0xc7   : > { %v765_v6 = vsel %vm322_vm0, %v747_v29, %v761_v16  ;;  %v771_v10 = vmul.f32 %v763_v3, %v742_v20  ;;  %v766_v19 = vsel %vm322_vm0, %v749_v40, %v762_v11  ;;  %v772_v0 = vmul.f32 %v764_v52, %v742_v20  ;;  %v869_v3 = vpop.permute.xlu0 %868 }
  0xc8   : > { %v773_v28 = vmul.f32 %v765_v6, %v742_v20  ;;  %v774_v30 = vmul.f32 %v766_v19, %v742_v20  ;;  %v786_v17 = vperm.slane %v781_v4, %v2359_v12  ;;  %v793_v24 = vperm.slane %v2558_v7, 3 }
  0xc9   : > { %v794_v32 = vperm.slane %v2560_v8, 3  ;;  %v775_v35 = vadd.f32 %v771_v10, %v731_v21  ;;  %v803_v38 = vrot.slane %v788_v41, 4  ;;  %v804_v14 = vrot.slane %v790_v5, 4 }
  0xca   : > { %v776_v27 = vadd.f32 %v772_v0, %v732_v54  ;;  %v777_v34 = vadd.f32 %v773_v28, %v733_v51  ;;  %v805_v47 = vrot.slane %v792_v1, 4  ;;  %v778_v59 = vadd.f32 %v774_v30, %v734_v25 }
  0xcb   : > { %v806_v48 = vrot.slane %v794_v32, 4  ;;  %v807_v9 = vsel %vm322_vm0, %v787_v46, %v803_v38  ;;  %v808_v18 = vsel %vm322_vm0, %v789_v22, %v804_v14  ;;  %v832_v31 = vperm.slane %v2516_v61, 4 }
  0xcc   : > { %v809_v33 = vsel %vm322_vm0, %v791_v56, %v805_v47  ;;  %v815_v39 = vmul.f32 %v807_v9, %v786_v17  ;;  %v816_v58 = vmul.f32 %v808_v18, %v786_v17  ;;  %v830_v20 = vperm.slane %v825_v55, %v2359_v12 }
  0xcd   : > { %v810_v50 = vsel %vm322_vm0, %v793_v24, %v806_v48  ;;  %v817_v49 = vmul.f32 %v809_v33, %v786_v17  ;;  %v834_v53 = vperm.slane %v2550_v42, 4  ;;  %v831_v21 = vperm.slane %v2514_v26, 4 }
  0xce   : > { %v818_v36 = vmul.f32 %v810_v50, %v786_v17  ;;  %v833_v54 = vperm.slane %v2547_v37, 4  ;;  %v835_v51 = vperm.slane %v2552_v45, 4  ;;  %v836_v23 = vperm.slane %v2554_v63, 4 }
  0xcf   : > { %v819_v13 = vadd.f32 %v815_v39, %v775_v35  ;;  %v820_v60 = vadd.f32 %v816_v58, %v776_v27  ;;  %v837_v62 = vperm.slane %v2558_v7, 4  ;;  %v838_v57 = vperm.slane %v2560_v8, 4  ;;  %v913_v9 = vpop.permute.xlu1 %912 }
  0xd0   : > { %v821_v29 = vadd.f32 %v817_v49, %v777_v34  ;;  %v847_v2 = vrot.slane %v832_v31, 4  ;;  %v848_v25 = vrot.slane %v834_v53, 4  ;;  %v849_v40 = vrot.slane %v836_v23, 4  ;;  %v957_v53 = vpop.permute.xlu2 %956 }
  0xd1   : > { %v822_v43 = vadd.f32 %v818_v36, %v778_v59  ;;  %v850_v44 = vrot.slane %v838_v57, 4  ;;  %v875_v15 = vperm.slane %v2514_v26, 5  ;;  %v876_v16 = vperm.slane %v2516_v61, 5 }
  0xd2   : > { %v851_v46 = vsel %vm322_vm0, %v831_v21, %v847_v2  ;;  %v852_v41 = vsel %vm322_vm0, %v833_v54, %v848_v25  ;;  %v853_v11 = vsel %vm322_vm0, %v835_v51, %v849_v40  ;;  %v878_v4 = vperm.slane %v2550_v42, 5 }
  0xd3   : > { %v854_v22 = vsel %vm322_vm0, %v837_v62, %v850_v44  ;;  %v859_v5 = vmul.f32 %v851_v46, %v830_v20  ;;  %v860_v52 = vmul.f32 %v852_v41, %v830_v20  ;;  %v861_v6 = vmul.f32 %v853_v11, %v830_v20 }
  0xd4   : > { %v862_v10 = vmul.f32 %v854_v22, %v830_v20  ;;  %v877_v56 = vperm.slane %v2547_v37, 5  ;;  %v879_v19 = vperm.slane %v2552_v45, 5  ;;  %v880_v0 = vperm.slane %v2554_v63, 5 }
  0xd5   : > { %v863_v28 = vadd.f32 %v859_v5, %v819_v13  ;;  %v874_v1 = vperm.slane %v869_v3, %v2359_v12  ;;  %v881_v30 = vperm.slane %v2558_v7, 5  ;;  %v882_v17 = vperm.slane %v2560_v8, 5 }
  0xd6   : > { %v864_v24 = vadd.f32 %v860_v52, %v820_v60  ;;  %v891_v32 = vrot.slane %v876_v16, 4  ;;  %v892_v35 = vrot.slane %v878_v4, 4  ;;  %v893_v38 = vrot.slane %v880_v0, 4 }
  0xd7   : > { %v865_v14 = vadd.f32 %v861_v6, %v821_v29  ;;  %v866_v27 = vadd.f32 %v862_v10, %v822_v43  ;;  %v894_v34 = vrot.slane %v882_v17, 4  ;;  %v919_v47 = vperm.slane %v2514_v26, 6  ;;  %v241_v6 = vld [vmem:[%s2326_s4 + $0x40] sm:$0xff] }
  0xd8   : > { %v895_v48 = vsel %vm322_vm0, %v875_v15, %v891_v32  ;;  %v896_v55 = vsel %vm322_vm0, %v877_v56, %v892_v35  ;;  %v897_v59 = vsel %vm322_vm0, %v879_v19, %v893_v38  ;;  %v920_v18 = vperm.slane %v2516_v61, 6 }
  0xd9   : > { %v898_v31 = vsel %vm322_vm0, %v881_v30, %v894_v34  ;;  %v903_v33 = vmul.f32 %v895_v48, %v874_v1  ;;  %v904_v50 = vmul.f32 %v896_v55, %v874_v1  ;;  %v905_v39 = vmul.f32 %v897_v59, %v874_v1  ;;  %v242_v30 = vld [vmem:[%s2326_s4 + $0x48] sm:$0xff]  ;;  %v244_v34 = vld [vmem:[%s2326_s4 + $0x58] sm:$0xff] }
  0xda   : > { %v906_v58 = vmul.f32 %v898_v31, %v874_v1  ;;  %v921_v49 = vperm.slane %v2547_v37, 6  ;;  %v922_v36 = vperm.slane %v2550_v42, 6  ;;  %v924_v20 = vperm.slane %v2554_v63, 6 }
  0xdb   : > { %v907_v21 = vadd.f32 %v903_v33, %v863_v28  ;;  %v908_v54 = vadd.f32 %v904_v50, %v864_v24  ;;  %v918_v51 = vperm.slane %v913_v9, %v2359_v12  ;;  %v923_v23 = vperm.slane %v2552_v45, 6  ;;  %v243_v24 = vld [vmem:[%s2326_s4 + $0x50] sm:$0xff] }
  0xdc   : > { %v925_v13 = vperm.slane %v2558_v7, 6  ;;  %v926_v60 = vperm.slane %v2560_v8, 6  ;;  %v935_v62 = vrot.slane %v920_v18, 4  ;;  %v936_v57 = vrot.slane %v922_v36, 4 }
  0xdd   : > { %v909_v29 = vadd.f32 %v905_v39, %v865_v14  ;;  %v910_v2 = vadd.f32 %v906_v58, %v866_v27  ;;  %v937_v25 = vrot.slane %v924_v20, 4  ;;  %v962_v40 = vperm.slane %v957_v53, %v2359_v12  ;;  %v1001_v27 = vpop.permute.xlu1 %1000  ;;  %v1045_v20 = vpop.permute.xlu2 %1044 }
  0xde   : > { %v938_v43 = vrot.slane %v926_v60, 4  ;;  %v939_v44 = vsel %vm322_vm0, %v919_v47, %v935_v62  ;;  %v940_v15 = vsel %vm322_vm0, %v921_v49, %v936_v57  ;;  %v964_v16 = vperm.slane %v2516_v61, 7 }
  0xdf   : > { %v941_v46 = vsel %vm322_vm0, %v923_v23, %v937_v25  ;;  %v947_v41 = vmul.f32 %v939_v44, %v918_v51  ;;  %v948_v11 = vmul.f32 %v940_v15, %v918_v51  ;;  %v966_v3 = vperm.slane %v2550_v42, 7 }
  0xe0   : > { %v942_v4 = vsel %vm322_vm0, %v925_v13, %v938_v43  ;;  %v963_v22 = vperm.slane %v2514_v26, 7  ;;  %v965_v5 = vperm.slane %v2547_v37, 7  ;;  %v968_v52 = vperm.slane %v2554_v63, 7 }
  0xe1   : > { %v949_v10 = vmul.f32 %v941_v46, %v918_v51  ;;  %v950_v56 = vmul.f32 %v942_v4, %v918_v51  ;;  %v951_v61 = vadd.f32 %v947_v41, %v907_v21  ;;  %v967_v19 = vperm.slane %v2552_v45, 7 }
  0xe2   : > { %v969_v0 = vperm.slane %v2558_v7, 7  ;;  %v970_v28 = vperm.slane %v2560_v8, 7  ;;  %v979_v42 = vrot.slane %v964_v16, 4  ;;  %v980_v1 = vrot.slane %v966_v3, 4 }
  0xe3   : > { %v952_v17 = vadd.f32 %v948_v11, %v908_v54  ;;  %v981_v26 = vrot.slane %v968_v52, 4  ;;  %v2703_v37 = vunpack.c.l.bf16 %v241_v6  ;;  %v2705_v63 = vunpack.c.h.bf16 %v241_v6 }
  0xe4   : > { %v982_v32 = vrot.slane %v970_v28, 4  ;;  %v983_v35 = vsel %vm322_vm0, %v963_v22, %v979_v42  ;;  %v984_v45 = vsel %vm322_vm0, %v965_v5, %v980_v1  ;;  %v2709_v38 = vunpack.c.l.bf16 %v242_v30 }
  0xe5   : > { %v985_v7 = vsel %vm322_vm0, %v967_v19, %v981_v26  ;;  %v991_v8 = vmul.f32 %v983_v35, %v962_v40  ;;  %v992_v14 = vmul.f32 %v984_v45, %v962_v40  ;;  %v2713_v47 = vunpack.c.h.bf16 %v242_v30  ;;  %v1089_v26 = vpop.permute.xlu0 %1088 }
  0xe6   : > { %v953_v48 = vadd.f32 %v949_v10, %v909_v29  ;;  %v986_v55 = vsel %vm322_vm0, %v969_v0, %v982_v32  ;;  %v2716_v59 = vunpack.c.l.bf16 %v243_v24  ;;  %v2718_v9 = vunpack.c.h.bf16 %v243_v24 }
  0xe7   : > { %v954_v18 = vadd.f32 %v950_v56, %v910_v2  ;;  %v993_v31 = vmul.f32 %v985_v7, %v962_v40  ;;  %v994_v33 = vmul.f32 %v986_v55, %v962_v40  ;;  %v2720_v50 = vunpack.c.l.bf16 %v244_v34 }
  0xe8   : > { %v995_v39 = vadd.f32 %v991_v8, %v951_v61  ;;  %v996_v58 = vadd.f32 %v992_v14, %v952_v17  ;;  %v2722_v49 = vunpack.c.h.bf16 %v244_v34  ;;  %v1006_v36 = vperm.slane %v1001_v27, %v2359_v12 }
  0xe9   : > { %v1007_v53 = vperm.slane %v2703_v37, 0  ;;  %v1008_v21 = vperm.slane %v2705_v63, 0  ;;  %v1009_v54 = vperm.slane %v2709_v38, 0  ;;  %v1010_v51 = vperm.slane %v2713_v47, 0 }
  0xea   : > { %v1011_v23 = vperm.slane %v2716_v59, 0  ;;  %v1012_v13 = vperm.slane %v2718_v9, 0  ;;  %v1013_v60 = vperm.slane %v2720_v50, 0  ;;  %v1014_v62 = vperm.slane %v2722_v49, 0 }
  0xeb   : > { %v997_v57 = vadd.f32 %v993_v31, %v953_v48  ;;  %v1023_v29 = vrot.slane %v1008_v21, 4  ;;  %v1024_v2 = vrot.slane %v1010_v51, 4  ;;  %v1050_v25 = vperm.slane %v1045_v20, %v2359_v12 }
  0xec   : > { %v1025_v40 = vrot.slane %v1012_v13, 4  ;;  %v1026_v43 = vrot.slane %v1014_v62, 4  ;;  %v1051_v44 = vperm.slane %v2703_v37, 1  ;;  %v1052_v15 = vperm.slane %v2705_v63, 1 }
  0xed   : > { %v1027_v16 = vsel %vm322_vm0, %v1007_v53, %v1023_v29  ;;  %v1028_v46 = vsel %vm322_vm0, %v1009_v54, %v1024_v2  ;;  %v1053_v41 = vperm.slane %v2709_v38, 1  ;;  %v1054_v11 = vperm.slane %v2713_v47, 1 }
  0xee   : > { %v1029_v3 = vsel %vm322_vm0, %v1011_v23, %v1025_v40  ;;  %v1030_v4 = vsel %vm322_vm0, %v1013_v60, %v1026_v43  ;;  %v1035_v22 = vmul.f32 %v1027_v16, %v1006_v36  ;;  %v1036_v5 = vmul.f32 %v1028_v46, %v1006_v36  ;;  %v1133_v43 = vpop.permute.xlu1 %1132 }
  0xef   : > { %v1037_v52 = vmul.f32 %v1029_v3, %v1006_v36  ;;  %v1038_v6 = vmul.f32 %v1030_v4, %v1006_v36  ;;  %v1055_v10 = vperm.slane %v2716_v59, 1  ;;  %v1056_v56 = vperm.slane %v2718_v9, 1 }
  0xf0   : > { %v998_v61 = vadd.f32 %v994_v33, %v954_v18  ;;  %v1057_v19 = vperm.slane %v2720_v50, 1  ;;  %v1058_v0 = vperm.slane %v2722_v49, 1  ;;  %v1067_v28 = vrot.slane %v1052_v15, 4 }
  0xf1   : > { %v1039_v42 = vadd.f32 %v1035_v22, %v995_v39  ;;  %v1040_v1 = vadd.f32 %v1036_v5, %v996_v58  ;;  %v1068_v30 = vrot.slane %v1054_v11, 4  ;;  %v1069_v17 = vrot.slane %v1056_v56, 4 }
  0xf2   : > { %v1041_v24 = vadd.f32 %v1037_v52, %v997_v57  ;;  %v1042_v32 = vadd.f32 %v1038_v6, %v998_v61  ;;  %v1070_v35 = vrot.slane %v1058_v0, 4  ;;  %v1071_v45 = vsel %vm322_vm0, %v1051_v44, %v1067_v28  ;;  %v1177_v28 = vpop.permute.xlu2 %1176 }
  0xf3   : > { %v1072_v7 = vsel %vm322_vm0, %v1053_v41, %v1068_v30  ;;  %v1073_v8 = vsel %vm322_vm0, %v1055_v10, %v1069_v17  ;;  %v1079_v14 = vmul.f32 %v1071_v45, %v1050_v25  ;;  %v1096_v27 = vperm.slane %v2705_v63, 2 }
  0xf4   : > { %v1074_v34 = vsel %vm322_vm0, %v1057_v19, %v1070_v35  ;;  %v1080_v48 = vmul.f32 %v1072_v7, %v1050_v25  ;;  %v1081_v55 = vmul.f32 %v1073_v8, %v1050_v25  ;;  %v1094_v18 = vperm.slane %v1089_v26, %v2359_v12 }
  0xf5   : > { %v1082_v31 = vmul.f32 %v1074_v34, %v1050_v25  ;;  %v1095_v33 = vperm.slane %v2703_v37, 2  ;;  %v1097_v39 = vperm.slane %v2709_v38, 2  ;;  %v1098_v58 = vperm.slane %v2713_v47, 2 }
  0xf6   : > { %v1083_v36 = vadd.f32 %v1079_v14, %v1039_v42  ;;  %v1084_v20 = vadd.f32 %v1080_v48, %v1040_v1  ;;  %v1099_v53 = vperm.slane %v2716_v59, 2  ;;  %v1100_v21 = vperm.slane %v2718_v9, 2 }
  0xf7   : > { %v1101_v54 = vperm.slane %v2720_v50, 2  ;;  %v1102_v51 = vperm.slane %v2722_v49, 2  ;;  %v1111_v23 = vrot.slane %v1096_v27, 4  ;;  %v1112_v13 = vrot.slane %v1098_v58, 4 }
  0xf8   : > { %v1085_v60 = vadd.f32 %v1081_v55, %v1041_v24  ;;  %v1086_v62 = vadd.f32 %v1082_v31, %v1042_v32  ;;  %v1113_v57 = vrot.slane %v1100_v21, 4  ;;  %v1139_v29 = vperm.slane %v2703_v37, 3 }
  0xf9   : > { %v1114_v2 = vrot.slane %v1102_v51, 4  ;;  %v1115_v25 = vsel %vm322_vm0, %v1095_v33, %v1111_v23  ;;  %v1116_v40 = vsel %vm322_vm0, %v1097_v39, %v1112_v13  ;;  %v1140_v44 = vperm.slane %v2705_v63, 3 }
  0xfa   : > { %v1117_v15 = vsel %vm322_vm0, %v1099_v53, %v1113_v57  ;;  %v1123_v16 = vmul.f32 %v1115_v25, %v1094_v18  ;;  %v1124_v46 = vmul.f32 %v1116_v40, %v1094_v18  ;;  %v1142_v41 = vperm.slane %v2713_v47, 3  ;;  %v1221_v40 = vpop.permute.xlu1 %1220 }
  0xfb   : > { %v1118_v11 = vsel %vm322_vm0, %v1101_v54, %v1114_v2  ;;  %v1125_v3 = vmul.f32 %v1117_v15, %v1094_v18  ;;  %v1141_v4 = vperm.slane %v2709_v38, 3  ;;  %v1144_v22 = vperm.slane %v2718_v9, 3 }
  0xfc   : > { %v1126_v5 = vmul.f32 %v1118_v11, %v1094_v18  ;;  %v1127_v52 = vadd.f32 %v1123_v16, %v1083_v36  ;;  %v1138_v6 = vperm.slane %v1133_v43, %v2359_v12  ;;  %v1143_v10 = vperm.slane %v2716_v59, 3 }
  0xfd   : > { %v1145_v56 = vperm.slane %v2720_v50, 3  ;;  %v1146_v61 = vperm.slane %v2722_v49, 3  ;;  %v1155_v19 = vrot.slane %v1140_v44, 4  ;;  %v1156_v0 = vrot.slane %v1142_v41, 4 }
  0xfe   : > { %v1128_v42 = vadd.f32 %v1124_v46, %v1084_v20  ;;  %v1129_v1 = vadd.f32 %v1125_v3, %v1085_v60  ;;  %v1130_v30 = vadd.f32 %v1126_v5, %v1086_v62  ;;  %v1157_v17 = vrot.slane %v1144_v22, 4 }
  0xff   : > { %v1158_v26 = vrot.slane %v1146_v61, 4  ;;  %v1159_v24 = vsel %vm322_vm0, %v1139_v29, %v1155_v19  ;;  %v1160_v32 = vsel %vm322_vm0, %v1141_v4, %v1156_v0  ;;  %v1184_v35 = vperm.slane %v2705_v63, 4 }
 0x100   : > { %v1161_v45 = vsel %vm322_vm0, %v1143_v10, %v1157_v17  ;;  %v1167_v7 = vmul.f32 %v1159_v24, %v1138_v6  ;;  %v1168_v8 = vmul.f32 %v1160_v32, %v1138_v6  ;;  %v1182_v14 = vperm.slane %v1177_v28, %v2359_v12  ;;  %v1265_v24 = vpop.permute.xlu2 %1264 }
 0x101   : > { %v1162_v27 = vsel %vm322_vm0, %v1145_v56, %v1158_v26  ;;  %v1169_v34 = vmul.f32 %v1161_v45, %v1138_v6  ;;  %v1183_v48 = vperm.slane %v2703_v37, 4  ;;  %v1186_v55 = vperm.slane %v2713_v47, 4 }
 0x102   : > { %v1170_v18 = vmul.f32 %v1162_v27, %v1138_v6  ;;  %v1185_v31 = vperm.slane %v2709_v38, 4  ;;  %v1187_v33 = vperm.slane %v2716_v59, 4  ;;  %v1188_v39 = vperm.slane %v2718_v9, 4 }
 0x103   : > { %v1171_v58 = vadd.f32 %v1167_v7, %v1127_v52  ;;  %v1189_v36 = vperm.slane %v2720_v50, 4  ;;  %v1190_v20 = vperm.slane %v2722_v49, 4  ;;  %v1199_v53 = vrot.slane %v1184_v35, 4 }
 0x104   : > { %v1172_v21 = vadd.f32 %v1168_v8, %v1128_v42  ;;  %v1173_v54 = vadd.f32 %v1169_v34, %v1129_v1  ;;  %v1200_v51 = vrot.slane %v1186_v55, 4  ;;  %v1201_v23 = vrot.slane %v1188_v39, 4  ;;  %v1309_v55 = vpop.permute.xlu0 %1308 }
 0x105   : > { %v1174_v13 = vadd.f32 %v1170_v18, %v1130_v30  ;;  %v1202_v60 = vrot.slane %v1190_v20, 4  ;;  %v1203_v62 = vsel %vm322_vm0, %v1183_v48, %v1199_v53  ;;  %v1227_v57 = vperm.slane %v2703_v37, 5 }
 0x106   : > { %v1204_v29 = vsel %vm322_vm0, %v1185_v31, %v1200_v51  ;;  %v1205_v2 = vsel %vm322_vm0, %v1187_v33, %v1201_v23  ;;  %v1211_v25 = vmul.f32 %v1203_v62, %v1182_v14  ;;  %v1228_v43 = vperm.slane %v2705_v63, 5 }
 0x107   : > { %v1206_v44 = vsel %vm322_vm0, %v1189_v36, %v1202_v60  ;;  %v1212_v15 = vmul.f32 %v1204_v29, %v1182_v14  ;;  %v1213_v16 = vmul.f32 %v1205_v2, %v1182_v14  ;;  %v1230_v46 = vperm.slane %v2713_v47, 5 }
 0x108   : > { %v1214_v41 = vmul.f32 %v1206_v44, %v1182_v14  ;;  %v1229_v11 = vperm.slane %v2709_v38, 5  ;;  %v1231_v3 = vperm.slane %v2716_v59, 5  ;;  %v1232_v4 = vperm.slane %v2718_v9, 5 }
 0x109   : > { %v1215_v22 = vadd.f32 %v1211_v25, %v1171_v58  ;;  %v1226_v5 = vperm.slane %v1221_v40, %v2359_v12  ;;  %v1233_v52 = vperm.slane %v2720_v50, 5  ;;  %v1234_v6 = vperm.slane %v2722_v49, 5 }
 0x10a   : > { %v1216_v10 = vadd.f32 %v1212_v15, %v1172_v21  ;;  %v1243_v56 = vrot.slane %v1228_v43, 4  ;;  %v1244_v61 = vrot.slane %v1230_v46, 4  ;;  %v1245_v19 = vrot.slane %v1232_v4, 4  ;;  %v245_v46 = vld [vmem:[%s2326_s4 + $0x60] sm:$0xff] }
 0x10b   : > { %v1217_v0 = vadd.f32 %v1213_v16, %v1173_v54  ;;  %v1218_v28 = vadd.f32 %v1214_v41, %v1174_v13  ;;  %v1246_v42 = vrot.slane %v1234_v6, 4  ;;  %v1271_v1 = vperm.slane %v2703_v37, 6 }
 0x10c   : > { %v1247_v30 = vsel %vm322_vm0, %v1227_v57, %v1243_v56  ;;  %v1248_v17 = vsel %vm322_vm0, %v1229_v11, %v1244_v61  ;;  %v1249_v26 = vsel %vm322_vm0, %v1231_v3, %v1245_v19  ;;  %v1272_v32 = vperm.slane %v2705_v63, 6 }
 0x10d   : > { %v1250_v35 = vsel %vm322_vm0, %v1233_v52, %v1246_v42  ;;  %v1255_v45 = vmul.f32 %v1247_v30, %v1226_v5  ;;  %v1256_v7 = vmul.f32 %v1248_v17, %v1226_v5  ;;  %v1257_v8 = vmul.f32 %v1249_v26, %v1226_v5  ;;  %v246_v52 = vld [vmem:[%s2326_s4 + $0x68] sm:$0xff]  ;;  %v248_v42 = vld [vmem:[%s2326_s4 + $0x78] sm:$0xff] }
 0x10e   : > { %v1258_v14 = vmul.f32 %v1250_v35, %v1226_v5  ;;  %v1273_v27 = vperm.slane %v2709_v38, 6  ;;  %v1274_v34 = vperm.slane %v2713_v47, 6  ;;  %v1276_v48 = vperm.slane %v2718_v9, 6 }
 0x10f   : > { %v1259_v18 = vadd.f32 %v1255_v45, %v1215_v22  ;;  %v1260_v31 = vadd.f32 %v1256_v7, %v1216_v10  ;;  %v1270_v33 = vperm.slane %v1265_v24, %v2359_v12  ;;  %v1275_v39 = vperm.slane %v2716_v59, 6  ;;  %v247_v10 = vld [vmem:[%s2326_s4 + $0x70] sm:$0xff] }
 0x110   : > { %v1277_v58 = vperm.slane %v2720_v50, 6  ;;  %v1278_v36 = vperm.slane %v2722_v49, 6  ;;  %v1287_v20 = vrot.slane %v1272_v32, 4  ;;  %v1288_v53 = vrot.slane %v1274_v34, 4 }
 0x111   : > { %v1261_v21 = vadd.f32 %v1257_v8, %v1217_v0  ;;  %v1262_v54 = vadd.f32 %v1258_v14, %v1218_v28  ;;  %v1289_v51 = vrot.slane %v1276_v48, 4  ;;  %v1314_v23 = vperm.slane %v1309_v55, %v2359_v12  ;;  %v1353_v28 = vpop.permute.xlu1 %1352  ;;  %v1397_v48 = vpop.permute.xlu2 %1396 }
 0x112   : > { %v1290_v13 = vrot.slane %v1278_v36, 4  ;;  %v1291_v60 = vsel %vm322_vm0, %v1271_v1, %v1287_v20  ;;  %v1292_v62 = vsel %vm322_vm0, %v1273_v27, %v1288_v53  ;;  %v1316_v57 = vperm.slane %v2705_v63, 7 }
 0x113   : > { %v1293_v29 = vsel %vm322_vm0, %v1275_v39, %v1289_v51  ;;  %v1299_v2 = vmul.f32 %v1291_v60, %v1270_v33  ;;  %v1300_v25 = vmul.f32 %v1292_v62, %v1270_v33  ;;  %v1318_v40 = vperm.slane %v2713_v47, 7 }
 0x114   : > { %v1294_v43 = vsel %vm322_vm0, %v1277_v58, %v1290_v13  ;;  %v1315_v44 = vperm.slane %v2703_v37, 7  ;;  %v1317_v15 = vperm.slane %v2709_v38, 7  ;;  %v1320_v16 = vperm.slane %v2718_v9, 7 }
 0x115   : > { %v1301_v41 = vmul.f32 %v1293_v29, %v1270_v33  ;;  %v1302_v11 = vmul.f32 %v1294_v43, %v1270_v33  ;;  %v1303_v63 = vadd.f32 %v1299_v2, %v1259_v18  ;;  %v1319_v3 = vperm.slane %v2716_v59, 7 }
 0x116   : > { %v1321_v4 = vperm.slane %v2720_v50, 7  ;;  %v1322_v22 = vperm.slane %v2722_v49, 7  ;;  %v1331_v47 = vrot.slane %v1316_v57, 4  ;;  %v1332_v5 = vrot.slane %v1318_v40, 4 }
 0x117   : > { %v1304_v6 = vadd.f32 %v1300_v25, %v1260_v31  ;;  %v1333_v37 = vrot.slane %v1320_v16, 4  ;;  %v2827_v38 = vunpack.c.l.bf16 %v245_v46  ;;  %v2829_v9 = vunpack.c.h.bf16 %v245_v46 }
 0x118   : > { %v1334_v56 = vrot.slane %v1322_v22, 4  ;;  %v1335_v61 = vsel %vm322_vm0, %v1315_v44, %v1331_v47  ;;  %v1336_v59 = vsel %vm322_vm0, %v1317_v15, %v1332_v5  ;;  %v2833_v19 = vunpack.c.l.bf16 %v246_v52 }
 0x119   : > { %v1337_v50 = vsel %vm322_vm0, %v1319_v3, %v1333_v37  ;;  %v1343_v49 = vmul.f32 %v1335_v61, %v1314_v23  ;;  %v1344_v0 = vmul.f32 %v1336_v59, %v1314_v23  ;;  %v2837_v1 = vunpack.c.h.bf16 %v246_v52  ;;  %v1441_v37 = vpop.permute.xlu1 %1440 }
 0x11a   : > { %v1305_v30 = vadd.f32 %v1301_v41, %v1261_v21  ;;  %v1338_v17 = vsel %vm322_vm0, %v1321_v4, %v1334_v56  ;;  %v2840_v26 = vunpack.c.l.bf16 %v247_v10  ;;  %v2842_v24 = vunpack.c.h.bf16 %v247_v10 }
 0x11b   : > { %v1306_v32 = vadd.f32 %v1302_v11, %v1262_v54  ;;  %v1345_v35 = vmul.f32 %v1337_v50, %v1314_v23  ;;  %v1346_v45 = vmul.f32 %v1338_v17, %v1314_v23  ;;  %v2844_v7 = vunpack.c.l.bf16 %v248_v42 }
 0x11c   : > { %v1347_v8 = vadd.f32 %v1343_v49, %v1303_v63  ;;  %v1348_v14 = vadd.f32 %v1344_v0, %v1304_v6  ;;  %v2846_v27 = vunpack.c.h.bf16 %v248_v42  ;;  %v1358_v34 = vperm.slane %v1353_v28, %v2359_v12 }
 0x11d   : > { %v1359_v55 = vperm.slane %v2827_v38, 0  ;;  %v1360_v18 = vperm.slane %v2829_v9, 0  ;;  %v1361_v31 = vperm.slane %v2833_v19, 0  ;;  %v1362_v33 = vperm.slane %v2837_v1, 0 }
 0x11e   : > { %v1363_v39 = vperm.slane %v2840_v26, 0  ;;  %v1364_v58 = vperm.slane %v2842_v24, 0  ;;  %v1365_v36 = vperm.slane %v2844_v7, 0  ;;  %v1366_v20 = vperm.slane %v2846_v27, 0 }
 0x11f   : > { %v1349_v53 = vadd.f32 %v1345_v35, %v1305_v30  ;;  %v1375_v21 = vrot.slane %v1360_v18, 4  ;;  %v1376_v54 = vrot.slane %v1362_v33, 4  ;;  %v1402_v51 = vperm.slane %v1397_v48, %v2359_v12 }
 0x120   : > { %v1377_v23 = vrot.slane %v1364_v58, 4  ;;  %v1378_v13 = vrot.slane %v1366_v20, 4  ;;  %v1403_v60 = vperm.slane %v2827_v38, 1  ;;  %v1404_v62 = vperm.slane %v2829_v9, 1 }
 0x121   : > { %v1379_v57 = vsel %vm322_vm0, %v1359_v55, %v1375_v21  ;;  %v1380_v29 = vsel %vm322_vm0, %v1361_v31, %v1376_v54  ;;  %v1405_v2 = vperm.slane %v2833_v19, 1  ;;  %v1406_v25 = vperm.slane %v2837_v1, 1 }
 0x122   : > { %v1381_v40 = vsel %vm322_vm0, %v1363_v39, %v1377_v23  ;;  %v1382_v43 = vsel %vm322_vm0, %v1365_v36, %v1378_v13  ;;  %v1387_v44 = vmul.f32 %v1379_v57, %v1358_v34  ;;  %v1388_v15 = vmul.f32 %v1380_v29, %v1358_v34  ;;  %v1485_v13 = vpop.permute.xlu2 %1484 }
 0x123   : > { %v1389_v16 = vmul.f32 %v1381_v40, %v1358_v34  ;;  %v1390_v46 = vmul.f32 %v1382_v43, %v1358_v34  ;;  %v1407_v41 = vperm.slane %v2840_v26, 1  ;;  %v1408_v11 = vperm.slane %v2842_v24, 1 }
 0x124   : > { %v1350_v63 = vadd.f32 %v1346_v45, %v1306_v32  ;;  %v1409_v3 = vperm.slane %v2844_v7, 1  ;;  %v1410_v4 = vperm.slane %v2846_v27, 1  ;;  %v1419_v22 = vrot.slane %v1404_v62, 4 }
 0x125   : > { %v1391_v47 = vadd.f32 %v1387_v44, %v1347_v8  ;;  %v1392_v5 = vadd.f32 %v1388_v15, %v1348_v14  ;;  %v1420_v52 = vrot.slane %v1406_v25, 4  ;;  %v1421_v6 = vrot.slane %v1408_v11, 4 }
 0x126   : > { %v1393_v10 = vadd.f32 %v1389_v16, %v1349_v53  ;;  %v1394_v56 = vadd.f32 %v1390_v46, %v1350_v63  ;;  %v1422_v61 = vrot.slane %v1410_v4, 4  ;;  %v1423_v59 = vsel %vm322_vm0, %v1403_v60, %v1419_v22  ;;  %v1529_v22 = vpop.permute.xlu0 %1528 }
 0x127   : > { %v1424_v50 = vsel %vm322_vm0, %v1405_v2, %v1420_v52  ;;  %v1425_v49 = vsel %vm322_vm0, %v1407_v41, %v1421_v6  ;;  %v1431_v0 = vmul.f32 %v1423_v59, %v1402_v51  ;;  %v1448_v28 = vperm.slane %v2829_v9, 2 }
 0x128   : > { %v1426_v42 = vsel %vm322_vm0, %v1409_v3, %v1422_v61  ;;  %v1432_v30 = vmul.f32 %v1424_v50, %v1402_v51  ;;  %v1433_v17 = vmul.f32 %v1425_v49, %v1402_v51  ;;  %v1446_v32 = vperm.slane %v1441_v37, %v2359_v12 }
 0x129   : > { %v1434_v35 = vmul.f32 %v1426_v42, %v1402_v51  ;;  %v1447_v45 = vperm.slane %v2827_v38, 2  ;;  %v1449_v8 = vperm.slane %v2833_v19, 2  ;;  %v1450_v14 = vperm.slane %v2837_v1, 2 }
 0x12a   : > { %v1435_v34 = vadd.f32 %v1431_v0, %v1391_v47  ;;  %v1436_v48 = vadd.f32 %v1432_v30, %v1392_v5  ;;  %v1451_v55 = vperm.slane %v2840_v26, 2  ;;  %v1452_v18 = vperm.slane %v2842_v24, 2 }
 0x12b   : > { %v1453_v31 = vperm.slane %v2844_v7, 2  ;;  %v1454_v33 = vperm.slane %v2846_v27, 2  ;;  %v1463_v39 = vrot.slane %v1448_v28, 4  ;;  %v1464_v58 = vrot.slane %v1450_v14, 4 }
 0x12c   : > { %v1437_v36 = vadd.f32 %v1433_v17, %v1393_v10  ;;  %v1438_v20 = vadd.f32 %v1434_v35, %v1394_v56  ;;  %v1465_v53 = vrot.slane %v1452_v18, 4  ;;  %v1491_v21 = vperm.slane %v2827_v38, 3 }
 0x12d   : > { %v1466_v54 = vrot.slane %v1454_v33, 4  ;;  %v1467_v51 = vsel %vm322_vm0, %v1447_v45, %v1463_v39  ;;  %v1468_v23 = vsel %vm322_vm0, %v1449_v8, %v1464_v58  ;;  %v1492_v60 = vperm.slane %v2829_v9, 3  ;;  %v1573_v58 = vpop.permute.xlu1 %1572 }
 0x12e   : > { %v1469_v62 = vsel %vm322_vm0, %v1451_v55, %v1465_v53  ;;  %v1475_v57 = vmul.f32 %v1467_v51, %v1446_v32  ;;  %v1476_v29 = vmul.f32 %v1468_v23, %v1446_v32  ;;  %v1494_v2 = vperm.slane %v2837_v1, 3 }
 0x12f   : > { %v1470_v25 = vsel %vm322_vm0, %v1453_v31, %v1466_v54  ;;  %v1477_v40 = vmul.f32 %v1469_v62, %v1446_v32  ;;  %v1493_v43 = vperm.slane %v2833_v19, 3  ;;  %v1496_v44 = vperm.slane %v2842_v24, 3 }
 0x130   : > { %v1478_v15 = vmul.f32 %v1470_v25, %v1446_v32  ;;  %v1479_v16 = vadd.f32 %v1475_v57, %v1435_v34  ;;  %v1490_v46 = vperm.slane %v1485_v13, %v2359_v12  ;;  %v1495_v41 = vperm.slane %v2840_v26, 3 }
 0x131   : > { %v1497_v11 = vperm.slane %v2844_v7, 3  ;;  %v1498_v63 = vperm.slane %v2846_v27, 3  ;;  %v1507_v3 = vrot.slane %v1492_v60, 4  ;;  %v1508_v4 = vrot.slane %v1494_v2, 4 }
 0x132   : > { %v1480_v47 = vadd.f32 %v1476_v29, %v1436_v48  ;;  %v1481_v5 = vadd.f32 %v1477_v40, %v1437_v36  ;;  %v1482_v52 = vadd.f32 %v1478_v15, %v1438_v20  ;;  %v1509_v6 = vrot.slane %v1496_v44, 4 }
 0x133   : > { %v1510_v37 = vrot.slane %v1498_v63, 4  ;;  %v1511_v10 = vsel %vm322_vm0, %v1491_v21, %v1507_v3  ;;  %v1512_v56 = vsel %vm322_vm0, %v1493_v43, %v1508_v4  ;;  %v1536_v61 = vperm.slane %v2829_v9, 4 }
 0x134   : > { %v1513_v59 = vsel %vm322_vm0, %v1495_v41, %v1509_v6  ;;  %v1519_v50 = vmul.f32 %v1511_v10, %v1490_v46  ;;  %v1520_v49 = vmul.f32 %v1512_v56, %v1490_v46  ;;  %v1534_v0 = vperm.slane %v1529_v22, %v2359_v12  ;;  %v1617_v10 = vpop.permute.xlu2 %1616 }
 0x135   : > { %v1514_v28 = vsel %vm322_vm0, %v1497_v11, %v1510_v37  ;;  %v1521_v42 = vmul.f32 %v1513_v59, %v1490_v46  ;;  %v1535_v30 = vperm.slane %v2827_v38, 4  ;;  %v1538_v17 = vperm.slane %v2837_v1, 4 }
 0x136   : > { %v1522_v32 = vmul.f32 %v1514_v28, %v1490_v46  ;;  %v1537_v35 = vperm.slane %v2833_v19, 4  ;;  %v1539_v45 = vperm.slane %v2840_v26, 4  ;;  %v1540_v8 = vperm.slane %v2842_v24, 4 }
 0x137   : > { %v1523_v14 = vadd.f32 %v1519_v50, %v1479_v16  ;;  %v1541_v34 = vperm.slane %v2844_v7, 4  ;;  %v1542_v48 = vperm.slane %v2846_v27, 4  ;;  %v1551_v55 = vrot.slane %v1536_v61, 4 }
 0x138   : > { %v1524_v18 = vadd.f32 %v1520_v49, %v1480_v47  ;;  %v1525_v31 = vadd.f32 %v1521_v42, %v1481_v5  ;;  %v1552_v33 = vrot.slane %v1538_v17, 4  ;;  %v1553_v39 = vrot.slane %v1540_v8, 4  ;;  %v1661_v17 = vpop.permute.xlu1 %1660 }
 0x139   : > { %v1526_v36 = vadd.f32 %v1522_v32, %v1482_v52  ;;  %v1554_v20 = vrot.slane %v1542_v48, 4  ;;  %v1555_v53 = vsel %vm322_vm0, %v1535_v30, %v1551_v55  ;;  %v1579_v21 = vperm.slane %v2827_v38, 5 }
 0x13a   : > { %v1556_v54 = vsel %vm322_vm0, %v1537_v35, %v1552_v33  ;;  %v1557_v51 = vsel %vm322_vm0, %v1539_v45, %v1553_v39  ;;  %v1563_v23 = vmul.f32 %v1555_v53, %v1534_v0  ;;  %v1580_v13 = vperm.slane %v2829_v9, 5 }
 0x13b   : > { %v1558_v60 = vsel %vm322_vm0, %v1541_v34, %v1554_v20  ;;  %v1564_v62 = vmul.f32 %v1556_v54, %v1534_v0  ;;  %v1565_v57 = vmul.f32 %v1557_v51, %v1534_v0  ;;  %v1582_v29 = vperm.slane %v2837_v1, 5 }
 0x13c   : > { %v1566_v2 = vmul.f32 %v1558_v60, %v1534_v0  ;;  %v1581_v25 = vperm.slane %v2833_v19, 5  ;;  %v1583_v40 = vperm.slane %v2840_v26, 5  ;;  %v1584_v43 = vperm.slane %v2842_v24, 5 }
 0x13d   : > { %v1567_v44 = vadd.f32 %v1563_v23, %v1523_v14  ;;  %v1578_v15 = vperm.slane %v1573_v58, %v2359_v12  ;;  %v1585_v16 = vperm.slane %v2844_v7, 5  ;;  %v1586_v46 = vperm.slane %v2846_v27, 5 }
 0x13e   : > { %v1568_v41 = vadd.f32 %v1564_v62, %v1524_v18  ;;  %v1595_v11 = vrot.slane %v1580_v13, 4  ;;  %v1596_v63 = vrot.slane %v1582_v29, 4  ;;  %v1597_v3 = vrot.slane %v1584_v43, 4  ;;  %v249_v29 = vld [vmem:[%s2326_s4 + $0x80] sm:$0x33] }
 0x13f   : > { %v1569_v4 = vadd.f32 %v1565_v57, %v1525_v31  ;;  %v1570_v22 = vadd.f32 %v1566_v2, %v1526_v36  ;;  %v1598_v47 = vrot.slane %v1586_v46, 4  ;;  %v1623_v5 = vperm.slane %v2827_v38, 6 }
 0x140   : > { %v1599_v52 = vsel %vm322_vm0, %v1579_v21, %v1595_v11  ;;  %v1600_v6 = vsel %vm322_vm0, %v1581_v25, %v1596_v63  ;;  %v1601_v37 = vsel %vm322_vm0, %v1583_v40, %v1597_v3  ;;  %v1624_v56 = vperm.slane %v2829_v9, 6 }
 0x141   : > { %v1602_v61 = vsel %vm322_vm0, %v1585_v16, %v1598_v47  ;;  %v1607_v59 = vmul.f32 %v1599_v52, %v1578_v15  ;;  %v1608_v50 = vmul.f32 %v1600_v6, %v1578_v15  ;;  %v1609_v49 = vmul.f32 %v1601_v37, %v1578_v15  ;;  %v250_v16 = vld [vmem:[%s2326_s4 + $0x88] sm:$0x33]  ;;  %v252_v47 = vld [vmem:[%s2326_s4 + $0x98] sm:$0x33] }
 0x142   : > { %v1610_v0 = vmul.f32 %v1602_v61, %v1578_v15  ;;  %v1625_v28 = vperm.slane %v2833_v19, 6  ;;  %v1626_v42 = vperm.slane %v2837_v1, 6  ;;  %v1628_v30 = vperm.slane %v2842_v24, 6 }
 0x143   : > { %v1611_v32 = vadd.f32 %v1607_v59, %v1567_v44  ;;  %v1612_v35 = vadd.f32 %v1608_v50, %v1568_v41  ;;  %v1622_v45 = vperm.slane %v1617_v10, %v2359_v12  ;;  %v1627_v8 = vperm.slane %v2840_v26, 6  ;;  %v251_v41 = vld [vmem:[%s2326_s4 + $0x90] sm:$0x33] }
 0x144   : > { %v1629_v14 = vperm.slane %v2844_v7, 6  ;;  %v1630_v34 = vperm.slane %v2846_v27, 6  ;;  %v1639_v48 = vrot.slane %v1624_v56, 4  ;;  %v1640_v55 = vrot.slane %v1626_v42, 4 }
 0x145   : > { %v1613_v18 = vadd.f32 %v1609_v49, %v1569_v4  ;;  %v1614_v31 = vadd.f32 %v1610_v0, %v1570_v22  ;;  %v1641_v33 = vrot.slane %v1628_v30, 4  ;;  %v1666_v39 = vperm.slane %v1661_v17, %v2359_v12  ;;  %v1705_v22 = vpop.permute.xlu2 %1704 }
 0x146   : > { %v1642_v58 = vrot.slane %v1630_v34, 4  ;;  %v1643_v36 = vsel %vm322_vm0, %v1623_v5, %v1639_v48  ;;  %v1644_v20 = vsel %vm322_vm0, %v1625_v28, %v1640_v55  ;;  %v1668_v53 = vperm.slane %v2829_v9, 7 }
 0x147   : > { %v1645_v21 = vsel %vm322_vm0, %v1627_v8, %v1641_v33  ;;  %v1651_v54 = vmul.f32 %v1643_v36, %v1622_v45  ;;  %v1652_v51 = vmul.f32 %v1644_v20, %v1622_v45  ;;  %v1670_v23 = vperm.slane %v2837_v1, 7 }
 0x148   : > { %v1646_v13 = vsel %vm322_vm0, %v1629_v14, %v1642_v58  ;;  %v1667_v60 = vperm.slane %v2827_v38, 7  ;;  %v1669_v62 = vperm.slane %v2833_v19, 7  ;;  %v1672_v57 = vperm.slane %v2842_v24, 7 }
 0x149   : > { %v1653_v2 = vmul.f32 %v1645_v21, %v1622_v45  ;;  %v1654_v25 = vmul.f32 %v1646_v13, %v1622_v45  ;;  %v1655_v9 = vadd.f32 %v1651_v54, %v1611_v32  ;;  %v1671_v40 = vperm.slane %v2840_v26, 7  ;;  %v1749_v45 = vpop.permute.xlu0 %1748 }
 0x14a   : > { %v1673_v43 = vperm.slane %v2844_v7, 7  ;;  %v1674_v44 = vperm.slane %v2846_v27, 7  ;;  %v1683_v1 = vrot.slane %v1668_v53, 4  ;;  %v1684_v15 = vrot.slane %v1670_v23, 4 }
 0x14b   : > { %v1656_v46 = vadd.f32 %v1652_v51, %v1612_v35  ;;  %v1685_v38 = vrot.slane %v1672_v57, 4  ;;  %v2951_v19 = vunpack.c.l.bf16 %v249_v29  ;;  %v2953_v24 = vunpack.c.h.bf16 %v249_v29 }
 0x14c   : > { %v1686_v11 = vrot.slane %v1674_v44, 4  ;;  %v1687_v63 = vsel %vm322_vm0, %v1667_v60, %v1683_v1  ;;  %v1688_v26 = vsel %vm322_vm0, %v1669_v62, %v1684_v15  ;;  %v2957_v3 = vunpack.c.l.bf16 %v250_v16 }
 0x14d   : > { %v1689_v7 = vsel %vm322_vm0, %v1671_v40, %v1685_v38  ;;  %v1695_v27 = vmul.f32 %v1687_v63, %v1666_v39  ;;  %v1696_v4 = vmul.f32 %v1688_v26, %v1666_v39  ;;  %v2961_v5 = vunpack.c.h.bf16 %v250_v16  ;;  %v1793_v63 = vpop.permute.xlu1 %1792 }
 0x14e   : > { %v1657_v52 = vadd.f32 %v1653_v2, %v1613_v18  ;;  %v1690_v6 = vsel %vm322_vm0, %v1673_v43, %v1686_v11  ;;  %v2964_v37 = vunpack.c.l.bf16 %v251_v41  ;;  %v2966_v10 = vunpack.c.h.bf16 %v251_v41 }
 0x14f   : > { %v1658_v56 = vadd.f32 %v1654_v25, %v1614_v31  ;;  %v1697_v61 = vmul.f32 %v1689_v7, %v1666_v39  ;;  %v1698_v59 = vmul.f32 %v1690_v6, %v1666_v39  ;;  %v2968_v50 = vunpack.c.l.bf16 %v252_v47 }
 0x150   : > { %v1699_v49 = vadd.f32 %v1695_v27, %v1655_v9  ;;  %v1700_v0 = vadd.f32 %v1696_v4, %v1656_v46  ;;  %v2970_v28 = vunpack.c.h.bf16 %v252_v47  ;;  %v1710_v42 = vperm.slane %v1705_v22, %v2359_v12 }
 0x151   : > { %v1711_v30 = vperm.slane %v2951_v19, 0  ;;  %v1712_v17 = vperm.slane %v2953_v24, 0  ;;  %v1713_v32 = vperm.slane %v2957_v3, 0  ;;  %v1714_v35 = vperm.slane %v2961_v5, 0 }
 0x152   : > { %v1715_v8 = vperm.slane %v2964_v37, 0  ;;  %v1716_v14 = vperm.slane %v2966_v10, 0  ;;  %v1717_v34 = vperm.slane %v2968_v50, 0  ;;  %v1718_v48 = vperm.slane %v2970_v28, 0 }
 0x153   : > { %v1701_v55 = vadd.f32 %v1697_v61, %v1657_v52  ;;  %v1702_v18 = vadd.f32 %v1698_v59, %v1658_v56  ;;  %v1727_v31 = vrot.slane %v1712_v17, 4  ;;  %v1728_v33 = vrot.slane %v1714_v35, 4 }
 0x154   : > { %v1729_v39 = vrot.slane %v1716_v14, 4  ;;  %v1730_v58 = vrot.slane %v1718_v48, 4  ;;  %v1754_v36 = vperm.slane %v1749_v45, %v2359_v12  ;;  %v1756_v20 = vperm.slane %v2953_v24, 1 }
 0x155   : > { %v1731_v53 = vsel %vm322_vm0, %v1711_v30, %v1727_v31  ;;  %v1732_v21 = vsel %vm322_vm0, %v1713_v32, %v1728_v33  ;;  %v1755_v54 = vperm.slane %v2951_v19, 1  ;;  %v1758_v51 = vperm.slane %v2961_v5, 1 }
 0x156   : > { %v1733_v23 = vsel %vm322_vm0, %v1715_v8, %v1729_v39  ;;  %v1734_v13 = vsel %vm322_vm0, %v1717_v34, %v1730_v58  ;;  %v1739_v60 = vmul.f32 %v1731_v53, %v1710_v42  ;;  %v1740_v62 = vmul.f32 %v1732_v21, %v1710_v42  ;;  %v1837_v39 = vpop.permute.xlu2 %1836 }
 0x157   : > { %v1741_v57 = vmul.f32 %v1733_v23, %v1710_v42  ;;  %v1757_v29 = vperm.slane %v2957_v3, 1  ;;  %v1759_v2 = vperm.slane %v2964_v37, 1  ;;  %v1760_v25 = vperm.slane %v2966_v10, 1 }
 0x158   : > { %v1742_v9 = vmul.f32 %v1734_v13, %v1710_v42  ;;  %v1761_v40 = vperm.slane %v2968_v50, 1  ;;  %v1762_v43 = vperm.slane %v2970_v28, 1  ;;  %v1771_v44 = vrot.slane %v1756_v20, 4 }
 0x159   : > { %v1743_v1 = vadd.f32 %v1739_v60, %v1699_v49  ;;  %v1772_v15 = vrot.slane %v1758_v51, 4  ;;  %v1773_v16 = vrot.slane %v1760_v25, 4  ;;  %v1744_v46 = vadd.f32 %v1740_v62, %v1700_v0 }
 0x15a   : > { %v1745_v38 = vadd.f32 %v1741_v57, %v1701_v55  ;;  %v1774_v41 = vrot.slane %v1762_v43, 4  ;;  %v1775_v11 = vsel %vm322_vm0, %v1755_v54, %v1771_v44  ;;  %v1800_v4 = vperm.slane %v2953_v24, 2 }
 0x15b   : > { %v1776_v26 = vsel %vm322_vm0, %v1757_v29, %v1772_v15  ;;  %v1777_v7 = vsel %vm322_vm0, %v1759_v2, %v1773_v16  ;;  %v1783_v27 = vmul.f32 %v1775_v11, %v1754_v36  ;;  %v1746_v22 = vadd.f32 %v1742_v9, %v1702_v18 }
 0x15c   : > { %v1778_v47 = vsel %vm322_vm0, %v1761_v40, %v1774_v41  ;;  %v1784_v52 = vmul.f32 %v1776_v26, %v1754_v36  ;;  %v1785_v6 = vmul.f32 %v1777_v7, %v1754_v36  ;;  %v1798_v56 = vperm.slane %v1793_v63, %v2359_v12 }
 0x15d   : > { %v1799_v61 = vperm.slane %v2951_v19, 2  ;;  %v1801_v59 = vperm.slane %v2957_v3, 2  ;;  %v1802_v49 = vperm.slane %v2961_v5, 2  ;;  %v1786_v0 = vmul.f32 %v1778_v47, %v1754_v36 }
 0x15e   : > { %v1787_v42 = vadd.f32 %v1783_v27, %v1743_v1  ;;  %v1803_v30 = vperm.slane %v2964_v37, 2  ;;  %v1804_v17 = vperm.slane %v2966_v10, 2  ;;  %v1805_v32 = vperm.slane %v2968_v50, 2 }
 0x15f   : > { %v1806_v35 = vperm.slane %v2970_v28, 2  ;;  %v1815_v45 = vrot.slane %v1800_v4, 4  ;;  %v1816_v8 = vrot.slane %v1802_v49, 4  ;;  %v1788_v14 = vadd.f32 %v1784_v52, %v1744_v46 }
 0x160   : > { %v1789_v34 = vadd.f32 %v1785_v6, %v1745_v38  ;;  %v1817_v48 = vrot.slane %v1804_v17, 4  ;;  %v1843_v55 = vperm.slane %v2951_v19, 3  ;;  %v1844_v58 = vperm.slane %v2953_v24, 3 }
 0x161   : > { %v1818_v18 = vrot.slane %v1806_v35, 4  ;;  %v1819_v31 = vsel %vm322_vm0, %v1799_v61, %v1815_v45  ;;  %v1820_v33 = vsel %vm322_vm0, %v1801_v59, %v1816_v8  ;;  %v1846_v21 = vperm.slane %v2961_v5, 3  ;;  %v1883_v5 = vpop.permute.xlu1 %1882 }
 0x162   : > { %v1821_v36 = vsel %vm322_vm0, %v1803_v30, %v1817_v48  ;;  %v1827_v20 = vmul.f32 %v1819_v31, %v1798_v56  ;;  %v1828_v53 = vmul.f32 %v1820_v33, %v1798_v56  ;;  %v1845_v23 = vperm.slane %v2957_v3, 3 }
 0x163   : > { %v1822_v54 = vsel %vm322_vm0, %v1805_v32, %v1818_v18  ;;  %v1829_v51 = vmul.f32 %v1821_v36, %v1798_v56  ;;  %v1848_v19 = vperm.slane %v2966_v10, 3  ;;  %v1790_v13 = vadd.f32 %v1786_v0, %v1746_v22 }
 0x164   : > { %v1830_v60 = vmul.f32 %v1822_v54, %v1798_v56  ;;  %v1842_v62 = vperm.slane %v1837_v39, %v2359_v12  ;;  %v1847_v57 = vperm.slane %v2964_v37, 3  ;;  %v1849_v24 = vperm.slane %v2968_v50, 3 }
 0x165   : > { %v1850_v29 = vperm.slane %v2970_v28, 3  ;;  %v1859_v2 = vrot.slane %v1844_v58, 4  ;;  %v1860_v25 = vrot.slane %v1846_v21, 4  ;;  %v1831_v9 = vadd.f32 %v1827_v20, %v1787_v42 }
 0x166   : > { %v1832_v40 = vadd.f32 %v1828_v53, %v1788_v14  ;;  %v1833_v43 = vadd.f32 %v1829_v51, %v1789_v34  ;;  %v1861_v3 = vrot.slane %v1848_v19, 4  ;;  %v1834_v44 = vadd.f32 %v1830_v60, %v1790_v13 }
 0x167   : > { %v1862_v10 = vrot.slane %v1850_v29, 4  ;;  %v1863_v1 = vsel %vm322_vm0, %v1843_v55, %v1859_v2  ;;  %v1864_v15 = vsel %vm322_vm0, %v1845_v23, %v1860_v25  ;;  %v1887_v28 = vperm.slane %v1883_v5, %v2359_v12 }
 0x168   : > { %v1865_v37 = vsel %vm322_vm0, %v1847_v57, %v1861_v3  ;;  %v1871_v16 = vmul.f32 %v1863_v1, %v1842_v62  ;;  %v1872_v50 = vmul.f32 %v1864_v15, %v1842_v62 }
 0x169   : > { %v1866_v46 = vsel %vm322_vm0, %v1849_v24, %v1862_v10  ;;  %v1873_v38 = vmul.f32 %v1865_v37, %v1842_v62 }
 0x16a   : > { %v1874_v41 = vmul.f32 %v1866_v46, %v1842_v62  ;;  %v1875_v11 = vadd.f32 %v1871_v16, %v1831_v9  ;;  %v1876_v63 = vadd.f32 %v1872_v50, %v1832_v40 }
 0x16b   : > { %v1877_v26 = vadd.f32 %v1873_v38, %v1833_v43 }
 0x16c   : > { %v1878_v7 = vadd.f32 %v1874_v41, %v1834_v44  ;;  %v1889_v27 = vadd.f32 %v1887_v28, %v1875_v11  ;;  %v1890_v4 = vadd.f32 %v1887_v28, %v1876_v63 }
 0x16d   : > { %v1891_v22 = vadd.f32 %v1887_v28, %v1877_v26 }
 0x16e   : > { %v1892_v47 = vadd.f32 %v1887_v28, %v1878_v7  ;;  %v1893_v52 = vmax.f32 %v1889_v27, 0.0  ;;  %v1894_v6 = vmax.f32 %v1890_v4, 0.0 }
 0x16f   : > { %v1895_v56 = vmax.f32 %v1891_v22, 0.0 }
 0x170   : > { %v1896_v61 = vmax.f32 %v1892_v47, 0.0  ;;  %1901 = vst [vmem:[#allocation1] ss:$2 sm:$0xff] %v1893_v52 }
 0x171   : > { %1903 = vst [vmem:[#allocation1 + $0x10] ss:$2 sm:$0xff] %v1894_v6 }
 0x172   : > { %1905 = vst [vmem:[#allocation1 + $0x20] ss:$2 sm:$0xff] %v1895_v56 }
 0x173   : > { %1907 = vst [vmem:[#allocation1 + $0x30] ss:$2 sm:$0xff] %v1896_v61 }
 0x177   : > { %v1908_v12 = vld.sshfl [vmem:[#allocation1] sm:$0xff pattern:$0x75316420]  ;;  %v1909_v59 = vld.sshfl [vmem:[#allocation1 + $0x8] sm:$0xff pattern:$0x75316420] }
 0x178   : > { %v1910_v49 = vld.sshfl [vmem:[#allocation1 + $0x10] sm:$0xff pattern:$0x75316420]  ;;  %v1911_v0 = vld.sshfl [vmem:[#allocation1 + $0x18] sm:$0xff pattern:$0x75316420]  ;;  %v1924_v42 = vpack.c.bf16 %v1909_v59, %v1908_v12 }
 0x179   : > { %v1912_v30 = vld.sshfl [vmem:[#allocation1 + $0x20] sm:$0xff pattern:$0x75316420]  ;;  %v1913_v17 = vld.sshfl [vmem:[#allocation1 + $0x28] sm:$0xff pattern:$0x75316420]  ;;  %v1925_v32 = vpack.c.bf16 %v1911_v0, %v1910_v49 }
 0x17a   : > { %v1914_v35 = vld.sshfl [vmem:[#allocation1 + $0x30] sm:$0xff pattern:$0x75316420]  ;;  %v1915_v45 = vld.sshfl [vmem:[#allocation1 + $0x38] sm:$0xff pattern:$0x75316420]  ;;  %v1926_v8 = vpack.c.bf16 %v1913_v17, %v1912_v30 }
 0x17b   : > { %v1927_v14 = vpack.c.bf16 %v1915_v45, %v1914_v35  ;;  %v1932_v34 = vrot.slane %v1924_v42, 2  ;;  %v1933_v48 = vrot.slane %v1925_v32, 4  ;;  %v1934_v55 = vrot.slane %v1925_v32, 6 }
 0x17c   : > { %v1935_v18 = vrot.slane %v1926_v8, 2 }
 0x17d   : > { %v1936_v31 = vrot.slane %v1927_v14, 4  ;;  %v1937_v33 = vrot.slane %v1927_v14, 6  ;;  %v1941_v39 = vsel %vm1938_vm1, %v1924_v42, %v1932_v34  ;;  %v1945_v58 = vsel %vm1942_vm2, %v1933_v48, %v1934_v55 }
 0x17e   : > { %v1946_v36 = vsel %vm322_vm0, %v1941_v39, %v1945_v58  ;;  %v1949_v20 = vsel %vm1938_vm1, %v1926_v8, %v1935_v18 }
 0x17f   : > { %v1952_v53 = vsel %vm1942_vm2, %v1936_v31, %v1937_v33  ;;  %1956 = vst [vmem:[%s229_s11] sm:$0xff] %v1946_v36 }
 0x180   : > { %v1953_v21 = vsel %vm322_vm0, %v1949_v20, %v1952_v53 }
 0x181   : > { %1957 = vst [vmem:[%s229_s11 + $0x8] sm:$0xff] %v1953_v21 }
 0x182 PF: > { %p10_p9 = scmp.ge.s32.totalorder %s2231_s16, 5   ;;  %s3056_s12 = smov %s2151_s13 }
 0x183   : > { %s3057_s13 = smov %s2240_s19  ;;  %s3058_s14 = smov %s2231_s16 }
 0x184   :  { %12 = sbr.rel (!%p10_p9) target bundleno = 2 (0x2), region = 93 }

// kernel: conv_autoencoder_forward.15
= control target key start
LH: loop header
LB: loop body
LE: loop exit
PB: predicated region body
PF: predicated region fallthrough
CT: control target
= control target key end

     0   :  { %s1092_s12 = smov 0   ;;  %s1094_s13 = smov 0   ;;  %s1423_s0 = inlined_call_operand.vmem [shape: bf16[8,36], index: 0, kind: input, shape index: {}]   ;;  %s1424_s1 = inlined_call_operand.vmem [shape: f32[8,1], index: 1, kind: input, shape index: {}]   ;;  %s1425_s2 = inlined_call_operand.vmem [shape: bf16[36,1024], index: 2, kind: input, shape index: {}]   ;;  %s1426_s3 = inlined_call_operand.vmem [shape: bf16[8,1024], index: 3, kind: output, shape index: {}]  }
   0x1   :  { %s1096_s14 = smov 0  }
   0x2 LB: > { %s900_s15 = sadd.s32 4294967295, %s1034_s14   ;;  %s1109_s16 = sadd.s32 1, %s1034_s14   ;;  %s1034_s14 = sphi %s1096_s14, %s1429_s14   ;;  %s1030_s13 = sphi %s1094_s13, %s1428_s13   ;;  %s1026_s12 = sphi %s1092_s12, %s1427_s12  }
   0x3   : > { %s59_s17 = ssub.s32 %s1034_s14, %s1109_s16  ;;  %s62_s18 = sadd.s32 1, %s1030_s13 }
   0x4   : > { %p60_p0 = scmp.eq.s32.totalorder %s59_s17, 0  ;;  %p69_p1 = scmp.ne.s32.totalorder %s1030_s13, %s1026_s12 }
   0x5   : > { %p70_p2 = scmp.eq.s32.totalorder %s1034_s14, 0  ;;  %p903_p4 = scmp.ge.s32.totalorder %s1034_s14, 2 }
   0x6   : > { %s1118_s19 = scalar_select %p60_p0, %s1030_s13, %s62_s18  }
   0x7   : > { %p71_p3 = por %p70_p2, %p69_p1  ;;  %127 = sbr.rel (%p903_p4) target bundleno = 26 (0x1a), region = 24 }
   0xc   : > { %130 = sbr.rel (!%p71_p3) target bundleno = 26 (0x1a), region = 28  ;;  %s132_s20 = sand.u32 (%p71_p3), 1, %s1030_s13  }
   0xd   : > { %s911_s21 = sshll.u32 (%p71_p3), %s1034_s14, 4  ;;  %s912_s22 = smul.u32 (%p71_p3), 80, %s132_s20 }
   0xe   : > { %s137_s25 = scalar_lea.vmem (%p71_p3), %s1425_s2, %s911_s21 }
   0xf   : > { %v150_v0 = vld [vmem:[%s137_s25] sm:$0xff] (%p71_p3)  ;;  %v152_v1 = vld [vmem:[%s137_s25 + $0x8] sm:$0xff] (%p71_p3)  ;;  %s134_s26 = scalar_lea.vmem (%p71_p3), [#allocation2], %s912_s22 }
  0x10   : > { %v154_v2 = vld [vmem:[%s137_s25 + $0x20] sm:$0xff] (%p71_p3)  ;;  %151 = vst [vmem:[%s134_s26] sm:$0xff] (%p71_p3), %v150_v0  ;;  %v156_v3 = vld [vmem:[%s137_s25 + $0x28] sm:$0xff] (%p71_p3) }
  0x11   : > { %153 = vst [vmem:[%s134_s26 + $0x8] sm:$0xff] %v152_v1  ;;  %v158_v4 = vld [vmem:[%s137_s25 + $0x40] sm:$0xff]  ;;  %v160_v5 = vld [vmem:[%s137_s25 + $0x48] sm:$0xff] }
  0x12   : > { %155 = vst [vmem:[%s134_s26 + $0x10] sm:$0xff] %v154_v2  ;;  %v162_v6 = vld [vmem:[%s137_s25 + $0x60] sm:$0xff]  ;;  %v164_v7 = vld [vmem:[%s137_s25 + $0x68] sm:$0xff] }
  0x13   : > { %157 = vst [vmem:[%s134_s26 + $0x18] sm:$0xff] %v156_v3  ;;  %v166_v8 = vld [vmem:[%s137_s25 + $0x80] sm:$0xff]  ;;  %v168_v9 = vld [vmem:[%s137_s25 + $0x88] sm:$0xff] }
  0x14   : > { %159 = vst [vmem:[%s134_s26 + $0x20] sm:$0xff] %v158_v4 }
  0x15   : > { %161 = vst [vmem:[%s134_s26 + $0x28] sm:$0xff] %v160_v5 }
  0x16   : > { %163 = vst [vmem:[%s134_s26 + $0x30] sm:$0xff] %v162_v6 }
  0x17   : > { %165 = vst [vmem:[%s134_s26 + $0x38] sm:$0xff] %v164_v7 }
  0x18   : > { %167 = vst [vmem:[%s134_s26 + $0x40] sm:$0xff] %v166_v8 }
  0x19   : > { %169 = vst [vmem:[%s134_s26 + $0x48] sm:$0xff] %v168_v9 }
  0x1a PF: > { %p906_p5 = scmp.ge.s32.totalorder %s1034_s14, 1  ;;  %p174_p6 = scmp.lt.s32.totalorder %s1034_s14, 3 }
  0x1c   : > { %p175_p7 = pnand %p906_p5, %p174_p6 }
  0x1d   : > { %s181_s29 = sand.u32 (!%p175_p7), 1, %s1026_s12   ;;  %s907_s7 = sshll.u32 (!%p175_p7), %s900_s15, 2 }
  0x1e   : > { %178 = sbr.rel (%p175_p7) target bundleno = 287 (0x11f), region = 51  ;;  %p206_p8 = scmp.lt.s32.totalorder (!%p175_p7), %s907_s7, 7 }
  0x1f   : > { %s913_s30 = smul.u32 (!%p175_p7), 80, %s181_s29 }
  0x21   : > { %s1174_s4 = scalar_lea.vmem (!%p175_p7), [#allocation2], %s913_s30 }
  0x23   : > { %v211_v10 = vld [vmem:[%s1423_s0] sm:$0xf]  ;;  %v1036_v11 = vmov 2   ;;  %v1037_v12 = vmov 0   ;;  %v1038_v14 = vmov 4   ;;  %v1039_v15 = vmov 3  }
  0x24   : > { %976 = vset.pattern.permute.xlu1 %v1036_v11  ;;  %974 = vset.pattern.permute.xlu0 %v1037_v12  ;;  %v1132_v13 = vunpack.c.l.bf16 %v211_v10  ;;  %v1040_v16 = vmov 1   ;;  %v1041_v17 = vmov 5   ;;  %v1042_v18 = vmov 6   ;;  %v213_v49 = vld [vmem:[%s1174_s4] sm:$0xff]  ;;  %v214_v50 = vld [vmem:[%s1174_s4 + $0x8] sm:$0xff]  ;;  %s1431_s7 = smov (!%p206_p8, %s907_s7), 7 }
  0x25   : > { %978 = vset.pattern.permute.xlu2 %v1038_v14  ;;  %v1043_v19 = vmov 8   ;;  %v1044_v20 = vmov 7   ;;  %v1045_v21 = vmov 9   ;;  %v1046_v22 = vmov 13   ;;  %v820_v14 = vld [vmem:[%s1424_s1] sm:$0xff]  ;;  %s908_s8 = sshll.u32 %s1431_s7, 2 }
  0x26   : > { %277 = vperm.xlu1 %976, %v1132_v13   ;;  %245 = vperm.xlu0 %974, %v1132_v13   ;;  %v1047_v23 = vmov 10   ;;  %v1048_v24 = vmov 11   ;;  %v1049_v25 = vmov 18   ;;  %v1050_v26 = vmov 12   ;;  %s209_s11 = scalar_lea.vmem %s1426_s3, %s908_s8 }
  0x27   : > { %309 = vperm.xlu2 %978, %v1132_v13   ;;  %v1051_v27 = vmov 14   ;;  %v1052_v28 = vmov 23   ;;  %v1053_v29 = vmov 15   ;;  %v1054_v30 = vmov 16  }
  0x28   : > { %v1055_v31 = vmov 17   ;;  %v1056_v32 = vmov 28   ;;  %v1057_v33 = vmov 19   ;;  %v1058_v34 = vmov 20  }
  0x29   : > { %v1059_v35 = vmov 21   ;;  %v1060_v36 = vmov 22   ;;  %v1061_v37 = vmov 33   ;;  %v1062_v38 = vmov 24  }
  0x2a   : > { %v1063_v39 = vmov 25   ;;  %v1064_v40 = vmov 26   ;;  %v1065_v41 = vmov 27   ;;  %v1066_v42 = vmov 29  }
  0x2b   : > { %v1067_v43 = vmov 30   ;;  %v1068_v45 = vmov 31   ;;  %v1069_v46 = vmov 32   ;;  %v1070_v52 = vmov 34  }
  0x2c   : > { %v1178_v53 = vunpack.c.l.bf16 %v213_v49  ;;  %v1180_v54 = vunpack.c.h.bf16 %v213_v49  ;;  %v1182_v55 = vunpack.c.l.bf16 %v214_v50  ;;  %v1184_v56 = vunpack.c.h.bf16 %v214_v50 }
  0x2d   : > { %v1071_v57 = vmov 35  }
  0x2e   : > { %977 = vset.pattern.permute.xlu1 %v1039_v15  ;;  %975 = vset.pattern.permute.xlu0 %v1040_v16  ;;  %v248_v58 = vperm.slane %v1178_v53, 0  ;;  %v249_v59 = vperm.slane %v1180_v54, 0  ;;  %v250_v60 = vperm.slane %v1182_v55, 0  ;;  %v251_v61 = vperm.slane %v1184_v56, 0 }
  0x2f   : > { %293 = vperm.xlu1 %977, %v1132_v13   ;;  %261 = vperm.xlu0 %975, %v1132_v13   ;;  %v264_v62 = vperm.slane %v1178_v53, 1  ;;  %v265_v63 = vperm.slane %v1180_v54, 1  ;;  %v266_v0 = vperm.slane %v1182_v55, 1  ;;  %v267_v1 = vperm.slane %v1184_v56, 1 }
  0x30   : > { %979 = vset.pattern.permute.xlu2 %v1041_v17  ;;  %v280_v3 = vperm.slane %v1178_v53, 2  ;;  %v281_v4 = vperm.slane %v1180_v54, 2  ;;  %v282_v5 = vperm.slane %v1182_v55, 2  ;;  %v283_v6 = vperm.slane %v1184_v56, 2 }
  0x31   : > { %325 = vperm.xlu2 %979, %v1132_v13   ;;  %v296_v15 = vperm.slane %v1178_v53, 3  ;;  %v297_v16 = vperm.slane %v1180_v54, 3  ;;  %v298_v17 = vperm.slane %v1182_v55, 3 }
  0x37   : > { %980 = vset.pattern.permute.xlu1 %v1042_v18  ;;  %982 = vset.pattern.permute.xlu0 %v1043_v19  ;;  %v299_v18 = vperm.slane %v1184_v56, 3 }
  0x38   : > { %341 = vperm.xlu1 %980, %v1132_v13   ;;  %373 = vperm.xlu0 %982, %v1132_v13  }
  0x39   : > { %981 = vset.pattern.permute.xlu2 %v1044_v20 }
  0x3a   : > { %357 = vperm.xlu2 %981, %v1132_v13  }
  0x40   : > { %983 = vset.pattern.permute.xlu1 %v1045_v21  ;;  %987 = vset.pattern.permute.xlu0 %v1046_v22 }
  0x41   : > { %389 = vperm.xlu1 %983, %v1132_v13   ;;  %453 = vperm.xlu0 %987, %v1132_v13  }
  0x42   : > { %984 = vset.pattern.permute.xlu2 %v1047_v23 }
  0x43   : > { %405 = vperm.xlu2 %984, %v1132_v13  }
  0x49   : > { %985 = vset.pattern.permute.xlu1 %v1048_v24  ;;  %992 = vset.pattern.permute.xlu0 %v1049_v25 }
  0x4a   : > { %421 = vperm.xlu1 %985, %v1132_v13   ;;  %533 = vperm.xlu0 %992, %v1132_v13  }
  0x4b   : > { %986 = vset.pattern.permute.xlu2 %v1050_v26 }
  0x4c   : > { %437 = vperm.xlu2 %986, %v1132_v13  }
  0x52   : > { %988 = vset.pattern.permute.xlu1 %v1051_v27  ;;  %997 = vset.pattern.permute.xlu0 %v1052_v28 }
  0x53   : > { %469 = vperm.xlu1 %988, %v1132_v13   ;;  %613 = vperm.xlu0 %997, %v1132_v13  }
  0x54   : > { %989 = vset.pattern.permute.xlu2 %v1053_v29 }
  0x55   : > { %485 = vperm.xlu2 %989, %v1132_v13  }
  0x5b   : > { %990 = vset.pattern.permute.xlu1 %v1054_v30  ;;  %1002 = vset.pattern.permute.xlu0 %v1056_v32  ;;  %v313_v32 = vperm.slane %v1180_v54, 4 }
  0x5c   : > { %501 = vperm.xlu1 %990, %v1132_v13   ;;  %693 = vperm.xlu0 %1002, %v1132_v13  }
  0x5d   : > { %991 = vset.pattern.permute.xlu2 %v1055_v31  ;;  %v312_v31 = vperm.slane %v1178_v53, 4 }
  0x5e   : > { %517 = vperm.xlu2 %991, %v1132_v13  }
  0x64   : > { %993 = vset.pattern.permute.xlu1 %v1057_v33  ;;  %1007 = vset.pattern.permute.xlu0 %v1061_v37  ;;  %v314_v33 = vperm.slane %v1182_v55, 4 }
  0x65   : > { %549 = vperm.xlu1 %993, %v1132_v13   ;;  %773 = vperm.xlu0 %1007, %v1132_v13  }
  0x66   : > { %994 = vset.pattern.permute.xlu2 %v1058_v34  ;;  %v315_v34 = vperm.slane %v1184_v56, 4 }
  0x67   : > { %565 = vperm.xlu2 %994, %v1132_v13  }
  0x6d   : > { %995 = vset.pattern.permute.xlu1 %v1059_v35  ;;  %1011 = vset.pattern.permute.xlu0 %v1037_v12 }
  0x6e   : > { %581 = vperm.xlu1 %995, %v1132_v13  }
  0x6f   : > { %996 = vset.pattern.permute.xlu2 %v1060_v36 }
  0x70   : > { %597 = vperm.xlu2 %996, %v1132_v13  }
  0x76   : > { %998 = vset.pattern.permute.xlu1 %v1062_v38 }
  0x77   : > { %629 = vperm.xlu1 %998, %v1132_v13  }
  0x78   : > { %999 = vset.pattern.permute.xlu2 %v1063_v39 }
  0x79   : > { %645 = vperm.xlu2 %999, %v1132_v13  }
  0x7f   : > { %1000 = vset.pattern.permute.xlu1 %v1064_v40 }
  0x80   : > { %661 = vperm.xlu1 %1000, %v1132_v13  }
  0x81   : > { %1001 = vset.pattern.permute.xlu2 %v1065_v41  ;;  %v1166_v44 = vpop.permute.xlu2 %309 }
  0x82   : > { %677 = vperm.xlu2 %1001, %v1132_v13  }
  0x88   : > { %1003 = vset.pattern.permute.xlu1 %v1066_v42  ;;  %v328_v42 = vperm.slane %v1178_v53, 5 }
  0x89   : > { %709 = vperm.xlu1 %1003, %v1132_v13  }
  0x8a   : > { %1004 = vset.pattern.permute.xlu2 %v1067_v43  ;;  %v329_v43 = vperm.slane %v1180_v54, 5 }
  0x8b   : > { %725 = vperm.xlu2 %1004, %v1132_v13   ;;  %v1172_v47 = vpop.permute.xlu2 %325 }
  0x91   : > { %1005 = vset.pattern.permute.xlu1 %v1068_v45  ;;  %v330_v45 = vperm.slane %v1182_v55, 5 }
  0x92   : > { %741 = vperm.xlu1 %1005, %v1132_v13  }
  0x93   : > { %1006 = vset.pattern.permute.xlu2 %v1069_v46  ;;  %v331_v46 = vperm.slane %v1184_v56, 5 }
  0x94   : > { %757 = vperm.xlu2 %1006, %v1132_v13   ;;  %v1196_v2 = vpop.permute.xlu2 %357 }
  0x98   : > { %v278_v48 = vpop.permute.xlu1 %277  ;;  %v246_v51 = vpop.permute.xlu0 %245 }
  0x99   : > { %v252_v7 = vmul.f32 %v248_v58, %v246_v51  ;;  %v253_v8 = vmul.f32 %v249_v59, %v246_v51  ;;  %v254_v9 = vmul.f32 %v250_v60, %v246_v51  ;;  %v255_v10 = vmul.f32 %v251_v61, %v246_v51 }
  0x9a   : > { %1008 = vset.pattern.permute.xlu1 %v1070_v52  ;;  %v284_v23 = vmul.f32 %v280_v3, %v278_v48  ;;  %v285_v24 = vmul.f32 %v281_v4, %v278_v48  ;;  %v286_v25 = vmul.f32 %v282_v5, %v278_v48  ;;  %v287_v26 = vmul.f32 %v283_v6, %v278_v48 }
  0x9b   : > { %789 = vperm.xlu1 %1008, %v1132_v13   ;;  %v316_v58 = vmul.f32 %v312_v31, %v1166_v44  ;;  %v317_v59 = vmul.f32 %v313_v32, %v1166_v44  ;;  %v318_v60 = vmul.f32 %v314_v33, %v1166_v44  ;;  %v319_v61 = vmul.f32 %v315_v34, %v1166_v44 }
  0x9c   : > { %1009 = vset.pattern.permute.xlu2 %v1071_v57  ;;  %v332_v3 = vmul.f32 %v328_v42, %v1172_v47  ;;  %v333_v4 = vmul.f32 %v329_v43, %v1172_v47  ;;  %v334_v5 = vmul.f32 %v330_v45, %v1172_v47  ;;  %v335_v6 = vmul.f32 %v331_v46, %v1172_v47 }
  0x9d   : > { %805 = vperm.xlu2 %1009, %v1132_v13   ;;  %v1218_v48 = vpop.permute.xlu2 %405 }
  0xa1   : > { %v294_v11 = vpop.permute.xlu1 %293  ;;  %v262_v13 = vpop.permute.xlu0 %261 }
  0xa2   : > { %v268_v19 = vmul.f32 %v264_v62, %v262_v13  ;;  %v269_v20 = vmul.f32 %v265_v63, %v262_v13  ;;  %v270_v21 = vmul.f32 %v266_v0, %v262_v13  ;;  %v271_v22 = vmul.f32 %v267_v1, %v262_v13 }
  0xa3   : > { %1010 = vset.pattern.permute.xlu1 %v1037_v12  ;;  %v300_v38 = vmul.f32 %v296_v15, %v294_v11  ;;  %v301_v39 = vmul.f32 %v297_v16, %v294_v11  ;;  %v302_v40 = vmul.f32 %v298_v17, %v294_v11  ;;  %v303_v41 = vmul.f32 %v299_v18, %v294_v11 }
  0xa4   : > { %823 = vperm.xlu1 %1010, %v820_v14   ;;  %v272_v27 = vadd.f32 %v268_v19, %v252_v7  ;;  %v273_v28 = vadd.f32 %v269_v20, %v253_v8  ;;  %v274_v29 = vadd.f32 %v270_v21, %v254_v9  ;;  %v275_v30 = vadd.f32 %v271_v22, %v255_v10  ;;  %v215_v7 = vld [vmem:[%s1174_s4 + $0x10] sm:$0xff]  ;;  %v216_v8 = vld [vmem:[%s1174_s4 + $0x18] sm:$0xff] }
  0xa5   : > { %v344_v62 = vperm.slane %v1178_v53, 6  ;;  %v345_v63 = vperm.slane %v1180_v54, 6  ;;  %v346_v0 = vperm.slane %v1182_v55, 6  ;;  %v347_v1 = vperm.slane %v1184_v56, 6 }
  0xa6   : > { %v288_v35 = vadd.f32 %v284_v23, %v272_v27  ;;  %v289_v36 = vadd.f32 %v285_v24, %v273_v28  ;;  %v290_v12 = vadd.f32 %v286_v25, %v274_v29  ;;  %v291_v37 = vadd.f32 %v287_v26, %v275_v30 }
  0xa7   : > { %v360_v13 = vperm.slane %v1178_v53, 7  ;;  %v361_v14 = vperm.slane %v1180_v54, 7  ;;  %v362_v15 = vperm.slane %v1182_v55, 7  ;;  %v363_v16 = vperm.slane %v1184_v56, 7  ;;  %v1246_v55 = vpop.permute.xlu2 %437 }
  0xa8   : > { %v304_v49 = vadd.f32 %v300_v38, %v288_v35  ;;  %v305_v50 = vadd.f32 %v301_v39, %v289_v36  ;;  %v306_v51 = vadd.f32 %v302_v40, %v290_v12  ;;  %v307_v52 = vadd.f32 %v303_v41, %v291_v37 }
  0xa9   : > { %v1238_v17 = vunpack.c.l.bf16 %v215_v7  ;;  %v1240_v18 = vunpack.c.h.bf16 %v215_v7  ;;  %v1242_v19 = vunpack.c.l.bf16 %v216_v8  ;;  %v1244_v47 = vunpack.c.h.bf16 %v216_v8 }
  0xaa   : > { %v342_v57 = vpop.permute.xlu1 %341  ;;  %v320_v9 = vadd.f32 %v316_v58, %v304_v49  ;;  %v321_v44 = vadd.f32 %v317_v59, %v305_v50  ;;  %v322_v10 = vadd.f32 %v318_v60, %v306_v51  ;;  %v323_v11 = vadd.f32 %v319_v61, %v307_v52  ;;  %v374_v37 = vpop.permute.xlu0 %373 }
  0xab   : > { %v348_v20 = vmul.f32 %v344_v62, %v342_v57  ;;  %v349_v21 = vmul.f32 %v345_v63, %v342_v57  ;;  %v350_v22 = vmul.f32 %v346_v0, %v342_v57  ;;  %v351_v23 = vmul.f32 %v347_v1, %v342_v57 }
  0xac   : > { %v336_v24 = vadd.f32 %v332_v3, %v320_v9  ;;  %v337_v53 = vadd.f32 %v333_v4, %v321_v44  ;;  %v338_v25 = vadd.f32 %v334_v5, %v322_v10  ;;  %v339_v54 = vadd.f32 %v335_v6, %v323_v11 }
  0xad   : > { %v376_v56 = vperm.slane %v1238_v17, 0  ;;  %v377_v27 = vperm.slane %v1240_v18, 0  ;;  %v378_v28 = vperm.slane %v1242_v19, 0  ;;  %v379_v29 = vperm.slane %v1244_v47, 0 }
  0xae   : > { %v364_v30 = vmul.f32 %v360_v13, %v1196_v2  ;;  %v365_v31 = vmul.f32 %v361_v14, %v1196_v2  ;;  %v366_v32 = vmul.f32 %v362_v15, %v1196_v2  ;;  %v367_v33 = vmul.f32 %v363_v16, %v1196_v2 }
  0xaf   : > { %v352_v34 = vadd.f32 %v348_v20, %v336_v24  ;;  %v353_v35 = vadd.f32 %v349_v21, %v337_v53  ;;  %v354_v36 = vadd.f32 %v350_v22, %v338_v25  ;;  %v355_v12 = vadd.f32 %v351_v23, %v339_v54  ;;  %v1268_v6 = vpop.permute.xlu2 %485 }
  0xb0   : > { %v392_v38 = vperm.slane %v1238_v17, 1  ;;  %v393_v39 = vperm.slane %v1240_v18, 1  ;;  %v394_v40 = vperm.slane %v1242_v19, 1  ;;  %v395_v41 = vperm.slane %v1244_v47, 1 }
  0xb1   : > { %v380_v42 = vmul.f32 %v376_v56, %v374_v37  ;;  %v381_v43 = vmul.f32 %v377_v27, %v374_v37  ;;  %v382_v45 = vmul.f32 %v378_v28, %v374_v37  ;;  %v383_v46 = vmul.f32 %v379_v29, %v374_v37 }
  0xb2   : > { %v368_v49 = vadd.f32 %v364_v30, %v352_v34  ;;  %v369_v50 = vadd.f32 %v365_v31, %v353_v35  ;;  %v370_v2 = vadd.f32 %v366_v32, %v354_v36  ;;  %v371_v51 = vadd.f32 %v367_v33, %v355_v12 }
  0xb3   : > { %v390_v26 = vpop.permute.xlu1 %389  ;;  %v408_v52 = vperm.slane %v1238_v17, 2  ;;  %v409_v57 = vperm.slane %v1240_v18, 2  ;;  %v410_v58 = vperm.slane %v1242_v19, 2  ;;  %v411_v59 = vperm.slane %v1244_v47, 2 }
  0xb4   : > { %v396_v60 = vmul.f32 %v392_v38, %v390_v26  ;;  %v397_v61 = vmul.f32 %v393_v39, %v390_v26  ;;  %v398_v62 = vmul.f32 %v394_v40, %v390_v26  ;;  %v399_v63 = vmul.f32 %v395_v41, %v390_v26  ;;  %v217_v38 = vld [vmem:[%s1174_s4 + $0x20] sm:$0xff]  ;;  %v218_v39 = vld [vmem:[%s1174_s4 + $0x28] sm:$0xff] }
  0xb5   : > { %v424_v1 = vperm.slane %v1238_v17, 3  ;;  %v425_v3 = vperm.slane %v1240_v18, 3  ;;  %v426_v4 = vperm.slane %v1242_v19, 3  ;;  %v427_v5 = vperm.slane %v1244_v47, 3 }
  0xb6   : > { %v384_v7 = vadd.f32 %v380_v42, %v368_v49  ;;  %v385_v8 = vadd.f32 %v381_v43, %v369_v50  ;;  %v386_v9 = vadd.f32 %v382_v45, %v370_v2  ;;  %v387_v44 = vadd.f32 %v383_v46, %v371_v51  ;;  %v454_v45 = vpop.permute.xlu0 %453 }
  0xb7   : > { %v412_v10 = vmul.f32 %v408_v52, %v1218_v48  ;;  %v413_v11 = vmul.f32 %v409_v57, %v1218_v48  ;;  %v414_v13 = vmul.f32 %v410_v58, %v1218_v48  ;;  %v415_v14 = vmul.f32 %v411_v59, %v1218_v48 }
  0xb8   : > { %v400_v15 = vadd.f32 %v396_v60, %v384_v7  ;;  %v401_v16 = vadd.f32 %v397_v61, %v385_v8  ;;  %v402_v20 = vadd.f32 %v398_v62, %v386_v9  ;;  %v403_v21 = vadd.f32 %v399_v63, %v387_v44  ;;  %v518_v51 = vpop.permute.xlu2 %517 }
  0xb9   : > { %v440_v22 = vperm.slane %v1238_v17, 4  ;;  %v441_v23 = vperm.slane %v1240_v18, 4  ;;  %v442_v24 = vperm.slane %v1242_v19, 4  ;;  %v443_v53 = vperm.slane %v1244_v47, 4 }
  0xba   : > { %v456_v48 = vperm.slane %v1238_v17, 5  ;;  %v457_v27 = vperm.slane %v1240_v18, 5  ;;  %v458_v28 = vperm.slane %v1242_v19, 5  ;;  %v459_v29 = vperm.slane %v1244_v47, 5 }
  0xbb   : > { %v416_v30 = vadd.f32 %v412_v10, %v400_v15  ;;  %v417_v31 = vadd.f32 %v413_v11, %v401_v16  ;;  %v418_v32 = vadd.f32 %v414_v13, %v402_v20  ;;  %v419_v33 = vadd.f32 %v415_v14, %v403_v21 }
  0xbc   : > { %v422_v0 = vpop.permute.xlu1 %421  ;;  %v444_v34 = vmul.f32 %v440_v22, %v1246_v55  ;;  %v445_v35 = vmul.f32 %v441_v23, %v1246_v55  ;;  %v446_v36 = vmul.f32 %v442_v24, %v1246_v55  ;;  %v447_v12 = vmul.f32 %v443_v53, %v1246_v55 }
  0xbd   : > { %v428_v25 = vmul.f32 %v424_v1, %v422_v0  ;;  %v429_v54 = vmul.f32 %v425_v3, %v422_v0  ;;  %v430_v26 = vmul.f32 %v426_v4, %v422_v0  ;;  %v431_v56 = vmul.f32 %v427_v5, %v422_v0 }
  0xbe   : > { %v472_v46 = vperm.slane %v1238_v17, 6  ;;  %v473_v49 = vperm.slane %v1240_v18, 6  ;;  %v474_v50 = vperm.slane %v1242_v19, 6  ;;  %v475_v2 = vperm.slane %v1244_v47, 6 }
  0xbf   : > { %v432_v40 = vadd.f32 %v428_v25, %v416_v30  ;;  %v433_v41 = vadd.f32 %v429_v54, %v417_v31  ;;  %v434_v42 = vadd.f32 %v430_v26, %v418_v32  ;;  %v435_v43 = vadd.f32 %v431_v56, %v419_v33 }
  0xc0   : > { %v1292_v52 = vunpack.c.l.bf16 %v217_v38  ;;  %v1294_v55 = vunpack.c.h.bf16 %v217_v38  ;;  %v1296_v57 = vunpack.c.l.bf16 %v218_v39  ;;  %v1298_v58 = vunpack.c.h.bf16 %v218_v39 }
  0xc1   : > { %v460_v59 = vmul.f32 %v456_v48, %v454_v45  ;;  %v461_v60 = vmul.f32 %v457_v27, %v454_v45  ;;  %v462_v61 = vmul.f32 %v458_v28, %v454_v45  ;;  %v463_v62 = vmul.f32 %v459_v29, %v454_v45  ;;  %v566_v29 = vpop.permute.xlu2 %565 }
  0xc2   : > { %v448_v63 = vadd.f32 %v444_v34, %v432_v40  ;;  %v449_v0 = vadd.f32 %v445_v35, %v433_v41  ;;  %v450_v1 = vadd.f32 %v446_v36, %v434_v42  ;;  %v451_v3 = vadd.f32 %v447_v12, %v435_v43 }
  0xc3   : > { %v488_v4 = vperm.slane %v1238_v17, 7  ;;  %v489_v5 = vperm.slane %v1240_v18, 7  ;;  %v490_v7 = vperm.slane %v1242_v19, 7  ;;  %v491_v8 = vperm.slane %v1244_v47, 7 }
  0xc4   : > { %v504_v13 = vperm.slane %v1292_v52, 0  ;;  %v505_v14 = vperm.slane %v1294_v55, 0  ;;  %v506_v15 = vperm.slane %v1296_v57, 0  ;;  %v507_v16 = vperm.slane %v1298_v58, 0 }
  0xc5   : > { %v470_v37 = vpop.permute.xlu1 %469  ;;  %v464_v20 = vadd.f32 %v460_v59, %v448_v63  ;;  %v465_v17 = vadd.f32 %v461_v60, %v449_v0  ;;  %v466_v21 = vadd.f32 %v462_v61, %v450_v1  ;;  %v467_v18 = vadd.f32 %v463_v62, %v451_v3 }
  0xc6   : > { %v476_v9 = vmul.f32 %v472_v46, %v470_v37  ;;  %v477_v44 = vmul.f32 %v473_v49, %v470_v37  ;;  %v478_v10 = vmul.f32 %v474_v50, %v470_v37  ;;  %v479_v11 = vmul.f32 %v475_v2, %v470_v37  ;;  %v534_v2 = vpop.permute.xlu0 %533 }
  0xc7   : > { %v492_v19 = vmul.f32 %v488_v4, %v1268_v6  ;;  %v493_v47 = vmul.f32 %v489_v5, %v1268_v6  ;;  %v494_v23 = vmul.f32 %v490_v7, %v1268_v6  ;;  %v495_v24 = vmul.f32 %v491_v8, %v1268_v6 }
  0xc8   : > { %v480_v53 = vadd.f32 %v476_v9, %v464_v20  ;;  %v481_v25 = vadd.f32 %v477_v44, %v465_v17  ;;  %v482_v54 = vadd.f32 %v478_v10, %v466_v21  ;;  %v483_v26 = vadd.f32 %v479_v11, %v467_v18 }
  0xc9   : > { %v520_v56 = vperm.slane %v1292_v52, 1  ;;  %v521_v48 = vperm.slane %v1294_v55, 1  ;;  %v522_v27 = vperm.slane %v1296_v57, 1  ;;  %v523_v28 = vperm.slane %v1298_v58, 1 }
  0xca   : > { %v536_v34 = vperm.slane %v1292_v52, 2  ;;  %v537_v6 = vperm.slane %v1294_v55, 2  ;;  %v538_v35 = vperm.slane %v1296_v57, 2  ;;  %v539_v36 = vperm.slane %v1298_v58, 2  ;;  %v598_v20 = vpop.permute.xlu2 %597 }
  0xcb   : > { %v496_v12 = vadd.f32 %v492_v19, %v480_v53  ;;  %v497_v37 = vadd.f32 %v493_v47, %v481_v25  ;;  %v498_v38 = vadd.f32 %v494_v23, %v482_v54  ;;  %v499_v39 = vadd.f32 %v495_v24, %v483_v26 }
  0xcc   : > { %v524_v40 = vmul.f32 %v520_v56, %v518_v51  ;;  %v525_v41 = vmul.f32 %v521_v48, %v518_v51  ;;  %v526_v42 = vmul.f32 %v522_v27, %v518_v51  ;;  %v527_v43 = vmul.f32 %v523_v28, %v518_v51 }
  0xcd   : > { %v568_v60 = vperm.slane %v1292_v52, 4  ;;  %v569_v61 = vperm.slane %v1294_v55, 4  ;;  %v570_v62 = vperm.slane %v1296_v57, 4  ;;  %v571_v63 = vperm.slane %v1298_v58, 4 }
  0xce   : > { %v502_v22 = vpop.permute.xlu1 %501  ;;  %v552_v0 = vperm.slane %v1292_v52, 3  ;;  %v553_v1 = vperm.slane %v1294_v55, 3  ;;  %v554_v51 = vperm.slane %v1296_v57, 3  ;;  %v555_v3 = vperm.slane %v1298_v58, 3 }
  0xcf   : > { %v508_v30 = vmul.f32 %v504_v13, %v502_v22  ;;  %v509_v31 = vmul.f32 %v505_v14, %v502_v22  ;;  %v510_v32 = vmul.f32 %v506_v15, %v502_v22  ;;  %v511_v33 = vmul.f32 %v507_v16, %v502_v22 }
  0xd0   : > { %v540_v4 = vmul.f32 %v536_v34, %v534_v2  ;;  %v541_v5 = vmul.f32 %v537_v6, %v534_v2  ;;  %v542_v7 = vmul.f32 %v538_v35, %v534_v2  ;;  %v543_v8 = vmul.f32 %v539_v36, %v534_v2  ;;  %v219_v34 = vld [vmem:[%s1174_s4 + $0x30] sm:$0xff]  ;;  %v220_v6 = vld [vmem:[%s1174_s4 + $0x38] sm:$0xff] }
  0xd1   : > { %v512_v45 = vadd.f32 %v508_v30, %v496_v12  ;;  %v513_v46 = vadd.f32 %v509_v31, %v497_v37  ;;  %v514_v49 = vadd.f32 %v510_v32, %v498_v38  ;;  %v515_v50 = vadd.f32 %v511_v33, %v499_v39 }
  0xd2   : > { %v572_v13 = vmul.f32 %v568_v60, %v566_v29  ;;  %v573_v14 = vmul.f32 %v569_v61, %v566_v29  ;;  %v574_v15 = vmul.f32 %v570_v62, %v566_v29  ;;  %v575_v16 = vmul.f32 %v571_v63, %v566_v29 }
  0xd3   : > { %v528_v9 = vadd.f32 %v524_v40, %v512_v45  ;;  %v529_v44 = vadd.f32 %v525_v41, %v513_v46  ;;  %v530_v10 = vadd.f32 %v526_v42, %v514_v49  ;;  %v531_v11 = vadd.f32 %v527_v43, %v515_v50  ;;  %v646_v60 = vpop.permute.xlu2 %645 }
  0xd4   : > { %v584_v19 = vperm.slane %v1292_v52, 5  ;;  %v585_v47 = vperm.slane %v1294_v55, 5  ;;  %v586_v23 = vperm.slane %v1296_v57, 5  ;;  %v587_v24 = vperm.slane %v1298_v58, 5 }
  0xd5   : > { %v544_v53 = vadd.f32 %v540_v4, %v528_v9  ;;  %v545_v25 = vadd.f32 %v541_v5, %v529_v44  ;;  %v546_v54 = vadd.f32 %v542_v7, %v530_v10  ;;  %v547_v26 = vadd.f32 %v543_v8, %v531_v11 }
  0xd6   : > { %v600_v56 = vperm.slane %v1292_v52, 6  ;;  %v601_v48 = vperm.slane %v1294_v55, 6  ;;  %v602_v27 = vperm.slane %v1296_v57, 6  ;;  %v603_v28 = vperm.slane %v1298_v58, 6 }
  0xd7   : > { %v550_v59 = vpop.permute.xlu1 %549  ;;  %v616_v35 = vperm.slane %v1292_v52, 7  ;;  %v617_v36 = vperm.slane %v1294_v55, 7  ;;  %v618_v12 = vperm.slane %v1296_v57, 7  ;;  %v619_v37 = vperm.slane %v1298_v58, 7 }
  0xd8   : > { %v556_v17 = vmul.f32 %v552_v0, %v550_v59  ;;  %v557_v21 = vmul.f32 %v553_v1, %v550_v59  ;;  %v558_v18 = vmul.f32 %v554_v51, %v550_v59  ;;  %v559_v22 = vmul.f32 %v555_v3, %v550_v59  ;;  %v614_v1 = vpop.permute.xlu0 %613 }
  0xd9   : > { %v1342_v42 = vunpack.c.l.bf16 %v219_v34  ;;  %v1344_v43 = vunpack.c.h.bf16 %v219_v34  ;;  %v1346_v45 = vunpack.c.l.bf16 %v220_v6  ;;  %v1348_v46 = vunpack.c.h.bf16 %v220_v6 }
  0xda   : > { %v560_v29 = vadd.f32 %v556_v17, %v544_v53  ;;  %v561_v30 = vadd.f32 %v557_v21, %v545_v25  ;;  %v562_v31 = vadd.f32 %v558_v18, %v546_v54  ;;  %v563_v32 = vadd.f32 %v559_v22, %v547_v26 }
  0xdb   : > { %v604_v2 = vmul.f32 %v600_v56, %v598_v20  ;;  %v605_v57 = vmul.f32 %v601_v48, %v598_v20  ;;  %v606_v59 = vmul.f32 %v602_v27, %v598_v20  ;;  %v607_v58 = vmul.f32 %v603_v28, %v598_v20 }
  0xdc   : > { %v576_v49 = vadd.f32 %v572_v13, %v560_v29  ;;  %v577_v52 = vadd.f32 %v573_v14, %v561_v30  ;;  %v578_v50 = vadd.f32 %v574_v15, %v562_v31  ;;  %v579_v55 = vadd.f32 %v575_v16, %v563_v32  ;;  %v678_v31 = vpop.permute.xlu2 %677 }
  0xdd   : > { %v632_v51 = vperm.slane %v1342_v42, 0  ;;  %v633_v3 = vperm.slane %v1344_v43, 0  ;;  %v634_v4 = vperm.slane %v1346_v45, 0  ;;  %v635_v5 = vperm.slane %v1348_v46, 0 }
  0xde   : > { %v620_v7 = vmul.f32 %v616_v35, %v614_v1  ;;  %v621_v8 = vmul.f32 %v617_v36, %v614_v1  ;;  %v622_v9 = vmul.f32 %v618_v12, %v614_v1  ;;  %v623_v44 = vmul.f32 %v619_v37, %v614_v1 }
  0xdf   : > { %v648_v16 = vperm.slane %v1342_v42, 1  ;;  %v649_v20 = vperm.slane %v1344_v43, 1  ;;  %v650_v17 = vperm.slane %v1346_v45, 1  ;;  %v651_v21 = vperm.slane %v1348_v46, 1 }
  0xe0   : > { %v582_v33 = vpop.permute.xlu1 %581  ;;  %v666_v53 = vperm.slane %v1346_v45, 2  ;;  %v667_v25 = vperm.slane %v1348_v46, 2  ;;  %v680_v35 = vperm.slane %v1342_v42, 3  ;;  %v681_v36 = vperm.slane %v1344_v43, 3 }
  0xe1   : > { %v588_v38 = vmul.f32 %v584_v19, %v582_v33  ;;  %v589_v39 = vmul.f32 %v585_v47, %v582_v33  ;;  %v590_v40 = vmul.f32 %v586_v23, %v582_v33  ;;  %v591_v41 = vmul.f32 %v587_v24, %v582_v33 }
  0xe2   : > { %v664_v23 = vperm.slane %v1342_v42, 2  ;;  %v665_v24 = vperm.slane %v1344_v43, 2  ;;  %v652_v27 = vmul.f32 %v648_v16, %v646_v60  ;;  %v653_v28 = vmul.f32 %v649_v20, %v646_v60 }
  0xe3   : > { %v592_v61 = vadd.f32 %v588_v38, %v576_v49  ;;  %v593_v62 = vadd.f32 %v589_v39, %v577_v52  ;;  %v594_v63 = vadd.f32 %v590_v40, %v578_v50  ;;  %v595_v0 = vadd.f32 %v591_v41, %v579_v55 }
  0xe4   : > { %v654_v29 = vmul.f32 %v650_v17, %v646_v60  ;;  %v655_v30 = vmul.f32 %v651_v21, %v646_v60  ;;  %v682_v12 = vperm.slane %v1346_v45, 3  ;;  %v683_v37 = vperm.slane %v1348_v46, 3 }
  0xe5   : > { %v608_v11 = vadd.f32 %v604_v2, %v592_v61  ;;  %v609_v13 = vadd.f32 %v605_v57, %v593_v62  ;;  %v610_v14 = vadd.f32 %v606_v59, %v594_v63  ;;  %v611_v15 = vadd.f32 %v607_v58, %v595_v0 }
  0xe6   : > { %v696_v39 = vperm.slane %v1342_v42, 4  ;;  %v697_v40 = vperm.slane %v1344_v43, 4  ;;  %v698_v41 = vperm.slane %v1346_v45, 4  ;;  %v699_v49 = vperm.slane %v1348_v46, 4 }
  0xe7   : > { %v624_v54 = vadd.f32 %v620_v7, %v608_v11  ;;  %v625_v26 = vadd.f32 %v621_v8, %v609_v13  ;;  %v626_v56 = vadd.f32 %v622_v9, %v610_v14  ;;  %v627_v48 = vadd.f32 %v623_v44, %v611_v15  ;;  %v726_v15 = vpop.permute.xlu2 %725 }
  0xe8   : > { %v684_v61 = vmul.f32 %v680_v35, %v678_v31  ;;  %v685_v62 = vmul.f32 %v681_v36, %v678_v31  ;;  %v686_v63 = vmul.f32 %v682_v12, %v678_v31  ;;  %v687_v0 = vmul.f32 %v683_v37, %v678_v31 }
  0xe9   : > { %v630_v10 = vpop.permute.xlu1 %629  ;;  %v712_v7 = vperm.slane %v1342_v42, 5  ;;  %v713_v8 = vperm.slane %v1344_v43, 5  ;;  %v714_v9 = vperm.slane %v1346_v45, 5  ;;  %v715_v44 = vperm.slane %v1348_v46, 5 }
  0xea   : > { %v636_v18 = vmul.f32 %v632_v51, %v630_v10  ;;  %v637_v22 = vmul.f32 %v633_v3, %v630_v10  ;;  %v638_v19 = vmul.f32 %v634_v4, %v630_v10  ;;  %v639_v47 = vmul.f32 %v635_v5, %v630_v10  ;;  %v694_v5 = vpop.permute.xlu0 %693 }
  0xeb   : > { %v700_v10 = vmul.f32 %v696_v39, %v694_v5  ;;  %v701_v11 = vmul.f32 %v697_v40, %v694_v5  ;;  %v702_v13 = vmul.f32 %v698_v41, %v694_v5  ;;  %v703_v14 = vmul.f32 %v699_v49, %v694_v5 }
  0xec   : > { %v640_v32 = vadd.f32 %v636_v18, %v624_v54  ;;  %v641_v33 = vadd.f32 %v637_v22, %v625_v26  ;;  %v642_v34 = vadd.f32 %v638_v19, %v626_v56  ;;  %v643_v6 = vadd.f32 %v639_v47, %v627_v48  ;;  %v221_v18 = vld [vmem:[%s1174_s4 + $0x40] sm:$0x33]  ;;  %v222_v22 = vld [vmem:[%s1174_s4 + $0x48] sm:$0x33] }
  0xed   : > { %v728_v47 = vperm.slane %v1342_v42, 6  ;;  %v1380_v48 = vunpack.c.l.bf16 %v221_v18  ;;  %v744_v40 = vperm.slane %v1342_v42, 7  ;;  %v745_v41 = vperm.slane %v1344_v43, 7 }
  0xee   : > { %v656_v57 = vadd.f32 %v652_v27, %v640_v32  ;;  %v657_v59 = vadd.f32 %v653_v28, %v641_v33  ;;  %v658_v58 = vadd.f32 %v654_v29, %v642_v34  ;;  %v659_v60 = vadd.f32 %v655_v30, %v643_v6 }
  0xef   : > { %v1382_v27 = vunpack.c.h.bf16 %v221_v18  ;;  %v1384_v28 = vunpack.c.l.bf16 %v222_v22  ;;  %v1386_v29 = vunpack.c.h.bf16 %v222_v22  ;;  %v732_v34 = vmul.f32 %v728_v47, %v726_v15 }
  0xf0   : > { %v746_v49 = vperm.slane %v1346_v45, 7 }
  0xf1   : > { %v778_v42 = vperm.slane %v1384_v28, 1  ;;  %v794_v18 = vperm.slane %v1384_v28, 2  ;;  %v795_v22 = vperm.slane %v1386_v29, 2 }
  0xf2   : > { %v662_v38 = vpop.permute.xlu1 %661 }
  0xf3   : > { %v668_v52 = vmul.f32 %v664_v23, %v662_v38  ;;  %v669_v50 = vmul.f32 %v665_v24, %v662_v38  ;;  %v670_v55 = vmul.f32 %v666_v53, %v662_v38  ;;  %v671_v2 = vmul.f32 %v667_v25, %v662_v38 }
  0xf4   : > { %v729_v23 = vperm.slane %v1344_v43, 6  ;;  %v730_v24 = vperm.slane %v1346_v45, 6  ;;  %v731_v53 = vperm.slane %v1348_v46, 6  ;;  %v779_v43 = vperm.slane %v1386_v29, 1 }
  0xf5   : > { %v672_v1 = vadd.f32 %v668_v52, %v656_v57  ;;  %v673_v51 = vadd.f32 %v669_v50, %v657_v59  ;;  %v674_v3 = vadd.f32 %v670_v55, %v658_v58  ;;  %v675_v4 = vadd.f32 %v671_v2, %v659_v60  ;;  %v758_v59 = vpop.permute.xlu2 %757 }
  0xf6   : > { %v733_v6 = vmul.f32 %v729_v23, %v726_v15  ;;  %v734_v35 = vmul.f32 %v730_v24, %v726_v15  ;;  %v735_v36 = vmul.f32 %v731_v53, %v726_v15  ;;  %v747_v52 = vperm.slane %v1348_v46, 7 }
  0xf7   : > { %v688_v16 = vadd.f32 %v684_v61, %v672_v1  ;;  %v689_v20 = vadd.f32 %v685_v62, %v673_v51  ;;  %v690_v17 = vadd.f32 %v686_v63, %v674_v3  ;;  %v691_v21 = vadd.f32 %v687_v0, %v675_v4 }
  0xf8   : > { %v760_v50 = vperm.slane %v1380_v48, 0  ;;  %v761_v55 = vperm.slane %v1382_v27, 0  ;;  %v762_v2 = vperm.slane %v1384_v28, 0  ;;  %v763_v57 = vperm.slane %v1386_v29, 0 }
  0xf9   : > { %v704_v30 = vadd.f32 %v700_v10, %v688_v16  ;;  %v705_v31 = vadd.f32 %v701_v11, %v689_v20  ;;  %v706_v32 = vadd.f32 %v702_v13, %v690_v17  ;;  %v707_v33 = vadd.f32 %v703_v14, %v691_v21 }
  0xfa   : > { %v776_v58 = vperm.slane %v1380_v48, 1  ;;  %v777_v60 = vperm.slane %v1382_v27, 1  ;;  %v764_v4 = vmul.f32 %v760_v50, %v758_v59  ;;  %v765_v5 = vmul.f32 %v761_v55, %v758_v59 }
  0xfb   : > { %v710_v19 = vpop.permute.xlu1 %709  ;;  %v792_v17 = vperm.slane %v1380_v48, 2  ;;  %v793_v21 = vperm.slane %v1382_v27, 2  ;;  %v808_v53 = vperm.slane %v1380_v48, 3 }
  0xfc   : > { %v716_v25 = vmul.f32 %v712_v7, %v710_v19  ;;  %v717_v54 = vmul.f32 %v713_v8, %v710_v19  ;;  %v718_v26 = vmul.f32 %v714_v9, %v710_v19  ;;  %v719_v56 = vmul.f32 %v715_v44, %v710_v19  ;;  %v774_v9 = vpop.permute.xlu0 %773 }
  0xfd   : > { %v766_v7 = vmul.f32 %v762_v2, %v758_v59  ;;  %v767_v8 = vmul.f32 %v763_v57, %v758_v59  ;;  %v780_v14 = vmul.f32 %v776_v58, %v774_v9  ;;  %v781_v15 = vmul.f32 %v777_v60, %v774_v9 }
  0xfe   : > { %v720_v12 = vadd.f32 %v716_v25, %v704_v30  ;;  %v721_v37 = vadd.f32 %v717_v54, %v705_v31  ;;  %v722_v38 = vadd.f32 %v718_v26, %v706_v32  ;;  %v723_v39 = vadd.f32 %v719_v56, %v707_v33  ;;  %v806_v30 = vpop.permute.xlu2 %805 }
  0xff   : > { %v782_v16 = vmul.f32 %v778_v42, %v774_v9  ;;  %v783_v20 = vmul.f32 %v779_v43, %v774_v9  ;;  %v809_v25 = vperm.slane %v1382_v27, 3  ;;  %v810_v54 = vperm.slane %v1384_v28, 3 }
 0x100   : > { %v736_v45 = vadd.f32 %v732_v34, %v720_v12  ;;  %v737_v61 = vadd.f32 %v733_v6, %v721_v37  ;;  %v738_v46 = vadd.f32 %v734_v35, %v722_v38  ;;  %v739_v62 = vadd.f32 %v735_v36, %v723_v39 }
 0x101   : > { %v811_v26 = vperm.slane %v1386_v29, 3  ;;  %v812_v48 = vmul.f32 %v808_v53, %v806_v30  ;;  %v813_v37 = vmul.f32 %v809_v25, %v806_v30  ;;  %v814_v27 = vmul.f32 %v810_v54, %v806_v30 }
 0x103   : > { %v815_v38 = vmul.f32 %v811_v26, %v806_v30 }
 0x104   : > { %v742_v63 = vpop.permute.xlu1 %741 }
 0x105   : > { %v748_v0 = vmul.f32 %v744_v40, %v742_v63  ;;  %v749_v1 = vmul.f32 %v745_v41, %v742_v63  ;;  %v750_v51 = vmul.f32 %v746_v49, %v742_v63  ;;  %v751_v3 = vmul.f32 %v747_v52, %v742_v63 }
 0x107   : > { %v752_v44 = vadd.f32 %v748_v0, %v736_v45  ;;  %v753_v10 = vadd.f32 %v749_v1, %v737_v61  ;;  %v754_v11 = vadd.f32 %v750_v51, %v738_v46  ;;  %v755_v13 = vadd.f32 %v751_v3, %v739_v62 }
 0x109   : > { %v768_v19 = vadd.f32 %v764_v4, %v752_v44  ;;  %v769_v47 = vadd.f32 %v765_v5, %v753_v10  ;;  %v770_v23 = vadd.f32 %v766_v7, %v754_v11  ;;  %v771_v24 = vadd.f32 %v767_v8, %v755_v13 }
 0x10b   : > { %v784_v6 = vadd.f32 %v780_v14, %v768_v19  ;;  %v785_v35 = vadd.f32 %v781_v15, %v769_v47  ;;  %v786_v36 = vadd.f32 %v782_v16, %v770_v23  ;;  %v787_v12 = vadd.f32 %v783_v20, %v771_v24 }
 0x10d   : > { %v790_v56 = vpop.permute.xlu1 %789 }
 0x10e   : > { %v796_v31 = vmul.f32 %v792_v17, %v790_v56  ;;  %v797_v32 = vmul.f32 %v793_v21, %v790_v56  ;;  %v798_v33 = vmul.f32 %v794_v18, %v790_v56  ;;  %v799_v34 = vmul.f32 %v795_v22, %v790_v56 }
 0x110   : > { %v800_v28 = vadd.f32 %v796_v31, %v784_v6  ;;  %v801_v39 = vadd.f32 %v797_v32, %v785_v35  ;;  %v802_v29 = vadd.f32 %v798_v33, %v786_v36  ;;  %v803_v40 = vadd.f32 %v799_v34, %v787_v12 }
 0x112   : > { %v816_v41 = vadd.f32 %v812_v48, %v800_v28  ;;  %v817_v49 = vadd.f32 %v813_v37, %v801_v39  ;;  %v818_v52 = vadd.f32 %v814_v27, %v802_v29  ;;  %v819_v50 = vadd.f32 %v815_v38, %v803_v40 }
 0x116   : > { %v824_v55 = vpop.permute.xlu1 %823 }
 0x117   : > { %v826_v2 = vadd.f32 %v824_v55, %v816_v41  ;;  %v827_v57 = vadd.f32 %v824_v55, %v817_v49  ;;  %v828_v59 = vadd.f32 %v824_v55, %v818_v52  ;;  %v829_v58 = vadd.f32 %v824_v55, %v819_v50 }
 0x119   : > { %v830_v60 = vmax.f32 %v826_v2, 0.0  ;;  %v831_v42 = vmax.f32 %v827_v57, 0.0  ;;  %v832_v43 = vmax.f32 %v828_v59, 0.0  ;;  %v833_v45 = vmax.f32 %v829_v58, 0.0 }
 0x11b   : > { %v834_v61 = vpack.c.bf16 %v831_v42, %v830_v60  ;;  %v835_v46 = vpack.c.bf16 %v833_v45, %v832_v43 }
 0x11d   : > { %836 = vst [vmem:[%s209_s11] sm:$0xff] %v834_v61 }
 0x11e   : > { %837 = vst [vmem:[%s209_s11 + $0x8] sm:$0xff] %v835_v46 }
 0x11f PF: > { %p10_p9 = scmp.ge.s32.totalorder %s1109_s16, 4   ;;  %s1427_s12 = smov %s1030_s13 }
 0x120   : > { %s1428_s13 = smov %s1118_s19  ;;  %s1429_s14 = smov %s1109_s16 }
 0x121   :  { %12 = sbr.rel (!%p10_p9) target bundleno = 2 (0x2), region = 90 }

// kernel: conv_autoencoder_forward.16
= control target key start
LH: loop header
LB: loop body
LE: loop exit
PB: predicated region body
PF: predicated region fallthrough
CT: control target
= control target key end

     0   :  { %s549_s12 = smov 0   ;;  %s551_s13 = smov 0   ;;  %s622_s0 = inlined_call_operand.vmem [shape: bf16[16,72], index: 0, kind: input, shape index: {}]   ;;  %s623_s1 = inlined_call_operand.vmem [shape: f32[16,1], index: 1, kind: input, shape index: {}]   ;;  %s624_s2 = inlined_call_operand.vmem [shape: bf16[72,256], index: 2, kind: input, shape index: {}]   ;;  %s625_s3 = inlined_call_operand.vmem [shape: bf16[16,256], index: 3, kind: output, shape index: {}]  }
   0x1   :  { %s553_s14 = smov 0  }
   0x2 LB: > { %s434_s15 = sadd.s32 4294967295, %s526_s14   ;;  %s566_s16 = sadd.s32 1, %s526_s14   ;;  %s526_s14 = sphi %s553_s14, %s629_s14   ;;  %s522_s13 = sphi %s551_s13, %s628_s13   ;;  %s518_s12 = sphi %s549_s12, %s627_s12  }
   0x3   : > { %s59_s17 = ssub.s32 %s526_s14, %s566_s16  ;;  %s62_s18 = sadd.s32 1, %s522_s13 }
   0x4   : > { %p60_p0 = scmp.eq.s32.totalorder %s59_s17, 0  ;;  %p69_p1 = scmp.ne.s32.totalorder %s522_s13, %s518_s12 }
   0x5   : > { %p70_p2 = scmp.eq.s32.totalorder %s526_s14, 0  ;;  %p99_p3 = scmp.eq.s32.totalorder %s434_s15, 1 }
   0x6   : > { %s577_s19 = scalar_select %p60_p0, %s522_s13, %s62_s18  }
   0x7   : > { %p71_p4 = por %p70_p2, %p69_p1  ;;  %p579_p5 = por %p99_p3, %p69_p1 }
   0x8   : > { %p437_p6 = scmp.ge.s32.totalorder %s526_s14, 2 }
   0xa   : > { %127 = sbr.rel (%p437_p6) target bundleno = 29 (0x1d), region = 24 }
   0xf   : > { %130 = sbr.rel (!%p71_p4) target bundleno = 29 (0x1d), region = 28  ;;  %s132_s21 = sand.u32 (%p71_p4), 1, %s522_s13  }
  0x10   : > { %s438_s22 = sshll.u32 (%p71_p4), %s526_s14, 2  ;;  %s476_s23 = smul.u32 (%p71_p4), 36, %s132_s21 }
  0x11   : > { %s136_s26 = scalar_lea.vmem (%p71_p4), %s624_s2, %s438_s22 }
  0x12   : > { %v153_v0 = vld [vmem:[%s136_s26] sm:$0xf] (%p71_p4)  ;;  %v155_v1 = vld [vmem:[%s136_s26 + $0x8] sm:$0xf] (%p71_p4)  ;;  %v157_v2 = vld [vmem:[%s136_s26 + $0x10] sm:$0xf] (%p71_p4) }
  0x13   : > { %s134_s27 = scalar_lea.vmem (%p71_p4), [#allocation2], %s476_s23  ;;  %v159_v3 = vld [vmem:[%s136_s26 + $0x18] sm:$0xf] (%p71_p4)  ;;  %v161_v4 = vld [vmem:[%s136_s26 + $0x20] sm:$0xf] (%p71_p4) }
  0x14   : > { %154 = vst [vmem:[%s134_s27] sm:$0xf] %v153_v0  ;;  %v163_v5 = vld [vmem:[%s136_s26 + $0x28] sm:$0xf]  ;;  %v165_v6 = vld [vmem:[%s136_s26 + $0x30] sm:$0xf] }
  0x15   : > { %156 = vst [vmem:[%s134_s27 + $0x4] sm:$0xf] %v155_v1  ;;  %v167_v7 = vld [vmem:[%s136_s26 + $0x38] sm:$0xf]  ;;  %v169_v8 = vld [vmem:[%s136_s26 + $0x40] sm:$0xf] }
  0x16   : > { %158 = vst [vmem:[%s134_s27 + $0x8] sm:$0xf] %v157_v2 }
  0x17   : > { %160 = vst [vmem:[%s134_s27 + $0xc] sm:$0xf] %v159_v3 }
  0x18   : > { %162 = vst [vmem:[%s134_s27 + $0x10] sm:$0xf] %v161_v4 }
  0x19   : > { %164 = vst [vmem:[%s134_s27 + $0x14] sm:$0xf] %v163_v5 }
  0x1a   : > { %166 = vst [vmem:[%s134_s27 + $0x18] sm:$0xf] %v165_v6 }
  0x1b   : > { %168 = vst [vmem:[%s134_s27 + $0x1c] sm:$0xf] %v167_v7 }
  0x1c   : > { %170 = vst [vmem:[%s134_s27 + $0x20] sm:$0xf] %v169_v8 }
  0x1d PF: > { %p439_p7 = scmp.ge.s32.totalorder %s526_s14, 1  ;;  %p211_p8 = scmp.lt.s32.totalorder %s526_s14, 3 }
  0x1f   : > { %p212_p9 = pnand %p439_p7, %p211_p8 }
  0x20   : > { %s218_s28 = sand.u32 (!%p212_p9), 1, %s518_s12  }
  0x21   : > { %215 = sbr.rel (%p212_p9) target bundleno = 214 (0xd6), region = 69  ;;  %s440_s10 = sshll.u32 (!%p212_p9), %s218_s28, 3 }
  0x22   : > { %s477_s4 = smul.u32 (!%p212_p9), 36, %s218_s28  ;;  %s239_s11 = scalar_lea.vmem (!%p212_p9), [#allocation3], %s440_s10 }
  0x24   : > { %s220_s5 = scalar_lea.vmem (!%p212_p9), [#allocation2], %s477_s4 }
  0x26   : > { %v252_v9 = vld [vmem:[%s623_s1] sm:$0xff]  ;;  %v528_v10 = vmov 0   ;;  %vm300_vm0 = vcmask 1043456   ;;  %v253_v14 = vld [vmem:[%s623_s1 + $0x8] sm:$0xff]  ;;  %v469_v17 = vld [vmem:[%s220_s5 + $0x10] sm:$0xff]  ;;  %vm296_vm1 = vcmask 588800  }
  0x27   : > { %503 = vset.pattern.permute.xlu0 %v528_v10  ;;  %v251_v11 = vld [vmem:[%s220_s5 + $0x20] sm:$0xf]  ;;  %v470_v16 = vld [vmem:[%s220_s5 + $0x18] sm:$0xff]  ;;  %v468_v18 = vld [vmem:[%s220_s5 + $0x8] sm:$0xff]  ;;  %s463_s17 = sshll.u32 (%p579_p5), %s434_s15, 2 }
  0x28   : > { %256 = vperm.xlu0 %503, %v252_v9   ;;  %v286_v12 = vunpack.c.l.b16 %v251_v11  ;;  %v467_v19 = vld [vmem:[%s220_s5] sm:$0xff]  ;;  %s332_s22 = scalar_lea.vmem (%p579_p5), %s625_s3, %s463_s17 }
  0x29   : > { %v466_v20 = vld [vmem:[%s622_s0] sm:$0xff] }
  0x2a   : > { %v291_v13 = vpack.c.b16 %v286_v12, %v286_v12 }
  0x2c   : > { %v302_v15 = vsel %vm300_vm0, %v291_v13, 0 }
  0x2d   : > { %307 = vmatpush.bf16.msra.mxu0 %v302_v15 }
  0x30   : > { %261 = vperm.xlu0 %503, %v253_v14  }
  0x31   : > { %308 = vmatpush.bf16.msra.mxu0 %v470_v16 }
  0x35   : > { %309 = vmatpush.bf16.msra.mxu0 %v469_v17 }
  0x39   : > { %310 = vmatpush.bf16.msra.mxu0 %v468_v18 }
  0x3d   : > { %311 = vmatpush.bf16.msra.mxu0 %v467_v19 }
  0x40   : > { %461 = vmatmul.msk.bf16.vlgmr.msra.gmra.mxu0 %vm296_vm1, %v466_v20 }
  0x9a   : > { %v257_v21 = vpop.permute.xlu0 %256 }
  0xa2   : > { %v262_v24 = vpop.permute.xlu0 %261 }
  0xbd   : > { %v313_v22 = vpop.f32.mrf.mxu0 }
  0xbe   : > { %v314_v23 = vadd.f32 %v313_v22, %v257_v21 }
  0xc0   : > { %v318_v27 = vmax.f32 %v314_v23, 0.0 }
  0xc5   : > { %v315_v25 = vpop.f32.mrf.mxu0 }
  0xc6   : > { %v316_v26 = vadd.f32 %v315_v25, %v262_v24 }
  0xc8   : > { %v319_v28 = vmax.f32 %v316_v26, 0.0  ;;  %330 = sbr.rel (!%p579_p5) target bundleno = 214 (0xd6), region = 77 }
  0xca   : > { %v474_v29 = vpack.c.bf16 %v319_v28, %v318_v27 }
  0xcc   : > { %475 = vst [vmem:[%s239_s11] sm:$0xff] %v474_v29  }
  0xd3   : > { %v349_v30 = vld [vmem:[%s239_s11] sm:$0xf]  ;;  %v351_v31 = vld [vmem:[%s239_s11 + $0x4] sm:$0xf] }
  0xd4   : > { %350 = vst [vmem:[%s332_s22] sm:$0xf] %v349_v30 }
  0xd5   : > { %352 = vst [vmem:[%s332_s22 + $0x8] sm:$0xf] %v351_v31 }
  0xd6 PF: > { %p10_p10 = scmp.ge.s32.totalorder %s566_s16, 4   ;;  %s627_s12 = smov %s522_s13 }
  0xd7   : > { %s628_s13 = smov %s577_s19  ;;  %s629_s14 = smov %s566_s16 }
  0xd8   :  { %12 = sbr.rel (!%p10_p10) target bundleno = 2 (0x2), region = 149 }

// kernel: conv_autoencoder_forward.17
= control target key start
LH: loop header
LB: loop body
LE: loop exit
PB: predicated region body
PF: predicated region fallthrough
CT: control target
= control target key end

     0   :  { %v283_v6 = vmov 0   ;;  %vm133_vm0 = vcmask 130048   ;;  %s375_s2 = inlined_call_operand.vmem [shape: bf16[144,128], index: 2, kind: input, shape index: {}]   ;;  %s376_s0 = inlined_call_operand.vmem [shape: bf16[32,144], index: 0, kind: input, shape index: {}]   ;;  %s377_s1 = inlined_call_operand.vmem [shape: f32[32,1], index: 1, kind: input, shape index: {}]   ;;  %s378_s3 = inlined_call_operand.vmem [shape: bf16[32,128], index: 3, kind: output, shape index: {}]  }
   0x1   :  { %v259_v0 = vld [vmem:[%s375_s2 + $0x38] sm:$0xff]  ;;  %v260_v1 = vld [vmem:[%s375_s2 + $0x40] sm:$0xff]  ;;  %v258_v3 = vld [vmem:[%s375_s2 + $0x30] sm:$0xff]  ;;  %282 = vset.pattern.permute.xlu1 %v283_v6  ;;  %281 = vset.pattern.permute.xlu0 %v283_v6 }
   0x2   :  { %v248_v2 = vld [vmem:[%s376_s0 + $0x4] sm:$0xf]  ;;  %140 = vmatpush.bf16.msra.mxu0 %v259_v0  ;;  %272 = vmatpush.bf16.msra.mxu2 %v259_v0  ;;  %v198_v4 = vld [vmem:[%s376_s0 + $0x8] sm:$0xf0]  ;;  %v39_v7 = vld [vmem:[%s377_s1 + $0x10] sm:$0xff] }
   0x3   :  { %166 = vmatpush.bf16.msra.mxu1 %v260_v1  ;;  %v201_v5 = vor.u32 %v248_v2, %v198_v4  ;;  %v257_v8 = vld [vmem:[%s375_s2 + $0x28] sm:$0xff]  ;;  %v37_v9 = vld [vmem:[%s377_s1] sm:$0xff]  ;;  %53 = vperm.xlu1 %282, %v39_v7   ;;  %v40_v11 = vld [vmem:[%s377_s1 + $0x18] sm:$0xff] }
   0x4   :  { %43 = vperm.xlu0 %281, %v37_v9   ;;  %v256_v10 = vld [vmem:[%s375_s2 + $0x20] sm:$0xff]  ;;  %v38_v12 = vld [vmem:[%s377_s1 + $0x8] sm:$0xff]  ;;  %v255_v13 = vld [vmem:[%s375_s2 + $0x18] sm:$0xff] }
   0x5   :  { %v250_v14 = vld [vmem:[%s376_s0 + $0x14] sm:$0xf]  ;;  %v206_v15 = vld [vmem:[%s376_s0 + $0x18] sm:$0xf0]  ;;  %v253_v18 = vld [vmem:[%s375_s2 + $0x8] sm:$0xff] }
   0x6   :  { %141 = vmatpush.bf16.msra.mxu0 %v258_v3  ;;  %273 = vmatpush.bf16.msra.mxu2 %v258_v3  ;;  %v254_v16 = vld [vmem:[%s375_s2 + $0x10] sm:$0xff]  ;;  %v209_v17 = vor.u32 %v250_v14, %v206_v15  ;;  %v252_v19 = vld [vmem:[%s375_s2] sm:$0xff]  ;;  %v249_v21 = vld [vmem:[%s376_s0 + $0x4] sm:$0xf0] }
   0x7   :  { %246 = vmatmul.msk.bf16.vlgmr.msra.gmra.mxu1 %vm133_vm0, %v201_v5  ;;  %v196_v20 = vld [vmem:[%s376_s0] sm:$0xf]  ;;  %v204_v22 = vld [vmem:[%s376_s0 + $0x10] sm:$0xf]  ;;  %v251_v23 = vld [vmem:[%s376_s0 + $0x14] sm:$0xf0] }
   0x8   :  { %v197_v24 = vor.u32 %v249_v21, %v196_v20  ;;  %v205_v25 = vor.u32 %v251_v23, %v204_v22 }
   0xa   :  { %142 = vmatpush.bf16.msra.mxu0 %v257_v8  ;;  %274 = vmatpush.bf16.msra.mxu2 %v257_v8 }
   0xb   :  { %58 = vperm.xlu1 %282, %v40_v11  }
   0xc   :  { %48 = vperm.xlu0 %281, %v38_v12  }
   0xe   :  { %143 = vmatpush.bf16.msra.mxu0 %v256_v10  ;;  %275 = vmatpush.bf16.msra.mxu2 %v256_v10 }
  0x12   :  { %144 = vmatpush.bf16.msra.mxu0 %v255_v13  ;;  %276 = vmatpush.bf16.msra.mxu2 %v255_v13 }
  0x16   :  { %145 = vmatpush.bf16.msra.mxu0 %v254_v16  ;;  %277 = vmatpush.bf16.msra.mxu2 %v254_v16 }
  0x17   :  { %247 = vmatmul.msk.bf16.gmra.mxu1 %vm133_vm0, %v209_v17 }
  0x1a   :  { %146 = vmatpush.bf16.msra.mxu0 %v253_v18  ;;  %278 = vmatpush.bf16.msra.mxu2 %v253_v18 }
  0x1e   :  { %147 = vmatpush.bf16.msra.mxu0 %v252_v19  ;;  %279 = vmatpush.bf16.msra.mxu2 %v252_v19 }
  0x21   :  { %148 = vmatmul.bf16.vlgmr.msra.gmra.mxu0 %v197_v24  ;;  %153 = vmatmul.bf16.vlgmr.msra.gmra.mxu2 %v205_v25 }
  0x75   :  { %v54_v30 = vpop.permute.xlu1 %53 }
  0x76   :  { %v44_v28 = vpop.permute.xlu0 %43 }
  0x7d   :  { %v59_v42 = vpop.permute.xlu1 %58 }
  0x7e   :  { %v49_v34 = vpop.permute.xlu0 %48 }
  0x84   :  { %v168_v26 = vpop.f32.mrf.mxu1 }
  0x8c   :  { %v170_v27 = vpop.f32.mrf.mxu1 }
  0x94   :  { %v173_v32 = vpop.f32.mrf.mxu1 }
  0x9c   :  { %v175_v47 = vpop.f32.mrf.mxu1 }
  0x9e   :  { %v149_v29 = vpop.f32.mrf.mxu0 }
  0x9f   :  { %v150_v31 = vadd.f32 %v149_v29, %v44_v28 }
  0xa1   :  { %v169_v36 = vadd.f32 %v168_v26, %v150_v31 }
  0xa3   :  { %v178_v40 = vmax.f32 %v169_v36, 0.0 }
  0xa4   :  { %v154_v33 = vpop.f32.mrf.mxu2 }
  0xa5   :  { %v155_v38 = vadd.f32 %v154_v33, %v54_v30 }
  0xa6   :  { %v151_v35 = vpop.f32.mrf.mxu0 }
  0xa7   :  { %v152_v37 = vadd.f32 %v151_v35, %v49_v34  ;;  %v174_v44 = vadd.f32 %v173_v32, %v155_v38 }
  0xa9   :  { %v171_v39 = vadd.f32 %v170_v27, %v152_v37  ;;  %v180_v49 = vmax.f32 %v174_v44, 0.0 }
  0xab   :  { %v179_v41 = vmax.f32 %v171_v39, 0.0 }
  0xac   :  { %v156_v43 = vpop.f32.mrf.mxu2 }
  0xad   :  { %v264_v45 = vpack.c.bf16 %v179_v41, %v178_v40  ;;  %v157_v46 = vadd.f32 %v156_v43, %v59_v42 }
  0xaf   :  { %265 = vst [vmem:[%s378_s3] sm:$0xff] %v264_v45   ;;  %v176_v48 = vadd.f32 %v175_v47, %v157_v46 }
  0xb1   :  { %v181_v50 = vmax.f32 %v176_v48, 0.0 }
  0xb3   :  { %v269_v51 = vpack.c.bf16 %v181_v50, %v180_v49 }
  0xb5   :  { %271 = vst [vmem:[%s378_s3 + $0x8] sm:$0xff] %v269_v51  }

// kernel: conv_autoencoder_forward.18
= control target key start
LH: loop header
LB: loop body
LE: loop exit
PB: predicated region body
PF: predicated region fallthrough
CT: control target
= control target key end

     0   :  { %vm283_vm0 = vcmask 261120   ;;  %v608_v15 = vmov 0   ;;  %s815_s2 = inlined_call_operand.vmem [shape: bf16[288,128], index: 2, kind: input, shape index: {}]   ;;  %s816_s0 = inlined_call_operand.vmem [shape: bf16[64,288], index: 0, kind: input, shape index: {}]   ;;  %s817_s1 = inlined_call_operand.vmem [shape: f32[64,1], index: 1, kind: input, shape index: {}]   ;;  %s818_s3 = inlined_call_operand.vmem [shape: bf16[64,128], index: 3, kind: output, shape index: {}]  }
   0x1   :  { %v554_v0 = vld [vmem:[%s815_s2 + $0x38] sm:$0xff]  ;;  %v564_v2 = vld [vmem:[%s815_s2 + $0x88] sm:$0xff]  ;;  %v553_v3 = vld [vmem:[%s815_s2 + $0x30] sm:$0xff]  ;;  %606 = vset.pattern.permute.xlu1 %v608_v15  ;;  %605 = vset.pattern.permute.xlu0 %v608_v15 }
   0x2   :  { %v635_v1 = vld [vmem:[%s815_s2 + $0x78] sm:$0xff]  ;;  %296 = vmatpush.bf16.msra.mxu0 %v554_v0  ;;  %588 = vmatpush.bf16.msra.mxu3 %v554_v0  ;;  %v647_v4 = vld [vmem:[%s815_s2 + $0x70] sm:$0xff]  ;;  %v563_v5 = vld [vmem:[%s815_s2 + $0x80] sm:$0xff] }
   0x3   :  { %596 = vmatpush.bf16.msra.mxu1 %v635_v1  ;;  %360 = vmatpush.bf16.msra.mxu2 %v564_v2  ;;  %v421_v6 = vld [vmem:[%s816_s0 + $0x8] sm:$0xf]  ;;  %v537_v7 = vld [vmem:[%s816_s0 + $0x10] sm:$0xf0]  ;;  %v551_v11 = vld [vmem:[%s815_s2 + $0x20] sm:$0xff] }
   0x4   :  { %v552_v8 = vld [vmem:[%s815_s2 + $0x28] sm:$0xff]  ;;  %v422_v10 = vor.u32 %v537_v7, %v421_v6  ;;  %v675_v12 = vld [vmem:[%s815_s2 + $0x60] sm:$0xff]  ;;  %v550_v13 = vld [vmem:[%s815_s2 + $0x18] sm:$0xff]  ;;  %607 = vset.pattern.permute.xlu2 %v608_v15 }
   0x5   :  { %v665_v9 = vld [vmem:[%s815_s2 + $0x68] sm:$0xff]  ;;  %v684_v14 = vld [vmem:[%s815_s2 + $0x58] sm:$0xff]  ;;  %v549_v16 = vld [vmem:[%s815_s2 + $0x10] sm:$0xff] }
   0x6   :  { %297 = vmatpush.bf16.msra.mxu0 %v553_v3  ;;  %589 = vmatpush.bf16.msra.mxu3 %v553_v3  ;;  %v69_v17 = vld [vmem:[%s817_s1 + $0x10] sm:$0xff]  ;;  %v433_v19 = vld [vmem:[%s816_s0 + $0x20] sm:$0xf]  ;;  %v540_v20 = vld [vmem:[%s816_s0 + $0x28] sm:$0xf0] }
   0x7   :  { %597 = vmatpush.bf16.msra.mxu1 %v647_v4  ;;  %361 = vmatpush.bf16.msra.mxu2 %v563_v5  ;;  %v557_v18 = vld [vmem:[%s815_s2 + $0x50] sm:$0xff]  ;;  %v548_v21 = vld [vmem:[%s815_s2 + $0x8] sm:$0xff]  ;;  %v434_v23 = vor.u32 %v540_v20, %v433_v19  ;;  %v67_v24 = vld [vmem:[%s817_s1] sm:$0xff] }
   0x8   :  { %87 = vperm.xlu1 %606, %v69_v17   ;;  %v556_v22 = vld [vmem:[%s815_s2 + $0x48] sm:$0xff]  ;;  %77 = vperm.xlu0 %605, %v67_v24   ;;  %v547_v25 = vld [vmem:[%s815_s2] sm:$0xff]  ;;  %v425_v26 = vld [vmem:[%s816_s0 + $0x18] sm:$0xf] }
   0x9   :  { %v70_v27 = vld [vmem:[%s817_s1 + $0x18] sm:$0xff]  ;;  %v539_v28 = vld [vmem:[%s816_s0 + $0x20] sm:$0xf0]  ;;  %v413_v29 = vld [vmem:[%s816_s0] sm:$0xf] }
   0xa   :  { %298 = vmatpush.bf16.msra.mxu0 %v552_v8  ;;  %590 = vmatpush.bf16.msra.mxu3 %v552_v8  ;;  %v536_v30 = vld [vmem:[%s816_s0 + $0x8] sm:$0xf0]  ;;  %v555_v31 = vld [vmem:[%s815_s2 + $0x40] sm:$0xff]  ;;  %v538_v32 = vld [vmem:[%s816_s0 + $0x1c] sm:$0xf]  ;;  %v426_v34 = vor.u32 %v539_v28, %v425_v26 }
   0xb   :  { %598 = vmatpush.bf16.msra.mxu1 %v665_v9  ;;  %531 = vmatmul.msk.bf16.vlgmr.msra.gmra.mxu2 %vm283_vm0, %v422_v10  ;;  %v427_v33 = vld [vmem:[%s816_s0 + $0x24] sm:$0xf0]  ;;  %v414_v35 = vor.u32 %v536_v30, %v413_v29  ;;  %v74_v38 = vld [vmem:[%s817_s1 + $0x38] sm:$0xff]  ;;  %v71_v39 = vld [vmem:[%s817_s1 + $0x20] sm:$0xff] }
   0xc   :  { %v430_v36 = vor.u32 %v538_v32, %v427_v33  ;;  %v68_v37 = vld [vmem:[%s817_s1 + $0x8] sm:$0xff]  ;;  %v445_v40 = vld [vmem:[%s816_s0 + $0x38] sm:$0xf]  ;;  %v543_v41 = vld [vmem:[%s816_s0 + $0x40] sm:$0xf0]  ;;  %97 = vperm.xlu2 %607, %v71_v39  }
   0xd   :  { %v446_v42 = vor.u32 %v543_v41, %v445_v40  ;;  %v73_v43 = vld [vmem:[%s817_s1 + $0x30] sm:$0xff]  ;;  %v72_v44 = vld [vmem:[%s817_s1 + $0x28] sm:$0xff]  ;;  %v542_v46 = vld [vmem:[%s816_s0 + $0x38] sm:$0xf0] }
   0xe   :  { %299 = vmatpush.bf16.msra.mxu0 %v551_v11  ;;  %591 = vmatpush.bf16.msra.mxu3 %v551_v11  ;;  %v437_v45 = vld [vmem:[%s816_s0 + $0x30] sm:$0xf]  ;;  %v541_v47 = vld [vmem:[%s816_s0 + $0x34] sm:$0xf]  ;;  %v439_v48 = vld [vmem:[%s816_s0 + $0x3c] sm:$0xf0] }
   0xf   :  { %599 = vmatpush.bf16.msra.mxu1 %v675_v12  ;;  %v438_v49 = vor.u32 %v542_v46, %v437_v45  ;;  %v442_v50 = vor.u32 %v541_v47, %v439_v48  ;;  %v457_v51 = vld [vmem:[%s816_s0 + $0x50] sm:$0xf]  ;;  %v546_v52 = vld [vmem:[%s816_s0 + $0x58] sm:$0xf0]  ;;  %v535_v54 = vld [vmem:[%s816_s0 + $0x4] sm:$0xf] }
  0x10   :  { %92 = vperm.xlu1 %606, %v70_v27   ;;  %82 = vperm.xlu0 %605, %v68_v37   ;;  %v458_v53 = vor.u32 %v546_v52, %v457_v51  ;;  %v415_v55 = vld [vmem:[%s816_s0 + $0xc] sm:$0xf0]  ;;  %v449_v57 = vld [vmem:[%s816_s0 + $0x48] sm:$0xf]  ;;  %v545_v58 = vld [vmem:[%s816_s0 + $0x50] sm:$0xf0] }
  0x11   :  { %v418_v56 = vor.u32 %v535_v54, %v415_v55  ;;  %v544_v59 = vld [vmem:[%s816_s0 + $0x4c] sm:$0xf]  ;;  %v451_v60 = vld [vmem:[%s816_s0 + $0x54] sm:$0xf0]  ;;  %v450_v61 = vor.u32 %v545_v58, %v449_v57 }
  0x12   :  { %300 = vmatpush.bf16.msra.mxu0 %v550_v13  ;;  %592 = vmatpush.bf16.msra.mxu3 %v550_v13  ;;  %v454_v62 = vor.u32 %v544_v59, %v451_v60 }
  0x13   :  { %600 = vmatpush.bf16.msra.mxu1 %v684_v14 }
  0x14   :  { %102 = vperm.xlu2 %607, %v72_v44  }
  0x16   :  { %301 = vmatpush.bf16.msra.mxu0 %v549_v16  ;;  %593 = vmatpush.bf16.msra.mxu3 %v549_v16 }
  0x17   :  { %601 = vmatpush.bf16.msra.mxu1 %v557_v18 }
  0x18   :  { %112 = vperm.xlu1 %606, %v74_v38   ;;  %107 = vperm.xlu0 %605, %v73_v43  }
  0x1a   :  { %302 = vmatpush.bf16.msra.mxu0 %v548_v21  ;;  %594 = vmatpush.bf16.msra.mxu3 %v548_v21 }
  0x1b   :  { %602 = vmatpush.bf16.msra.mxu1 %v556_v22  ;;  %532 = vmatmul.msk.bf16.gmra.mxu2 %vm283_vm0, %v434_v23 }
  0x1e   :  { %303 = vmatpush.bf16.msra.mxu0 %v547_v25  ;;  %595 = vmatpush.bf16.msra.mxu3 %v547_v25 }
  0x1f   :  { %603 = vmatpush.bf16.msra.mxu1 %v555_v31 }
  0x21   :  { %309 = vmatmul.bf16.vlgmr.msra.gmra.mxu3 %v426_v34  ;;  %304 = vmatmul.bf16.vlgmr.msra.gmra.mxu0 %v414_v35 }
  0x22   :  { %325 = vmatpush.bf16.msrb.mxu0 %v635_v1  ;;  %338 = vmatmul.bf16.vlgmr.msra.gmra.mxu1 %v430_v36 }
  0x26   :  { %326 = vmatpush.bf16.msrb.mxu0 %v647_v4 }
  0x2a   :  { %327 = vmatpush.bf16.msrb.mxu0 %v665_v9 }
  0x2b   :  { %533 = vmatmul.msk.bf16.gmra.mxu2 %vm283_vm0, %v446_v42 }
  0x2e   :  { %328 = vmatpush.bf16.msrb.mxu0 %v675_v12 }
  0x31   :  { %314 = vmatmul.bf16.gmra.mxu3 %v438_v49 }
  0x32   :  { %329 = vmatpush.bf16.msrb.mxu0 %v684_v14  ;;  %343 = vmatmul.bf16.gmra.mxu1 %v442_v50 }
  0x36   :  { %330 = vmatpush.bf16.msrb.mxu0 %v557_v18 }
  0x3a   :  { %331 = vmatpush.bf16.msrb.mxu0 %v556_v22 }
  0x3b   :  { %534 = vmatmul.msk.bf16.gmra.mxu2 %vm283_vm0, %v458_v53 }
  0x3e   :  { %332 = vmatpush.bf16.msrb.mxu0 %v555_v31 }
  0x41   :  { %333 = vmatmul.bf16.vlgmr.msrb.gmra.mxu0 %v418_v56  ;;  %319 = vmatmul.bf16.gmra.mxu3 %v450_v61 }
  0x42   :  { %348 = vmatmul.bf16.gmra.mxu1 %v454_v62 }
  0x66   :  { %v98_v16 = vpop.permute.xlu2 %97 }
  0x6e   :  { %v103_v27 = vpop.permute.xlu2 %102 }
  0x7a   :  { %v88_v3 = vpop.permute.xlu1 %87  ;;  %v78_v17 = vpop.permute.xlu0 %77 }
  0x82   :  { %v93_v9 = vpop.permute.xlu1 %92  ;;  %v83_v28 = vpop.permute.xlu0 %82 }
  0x8a   :  { %v108_v48 = vpop.permute.xlu0 %107  ;;  %v113_v56 = vpop.permute.xlu1 %112 }
  0x8e   :  { %v363_v63 = vpop.f32.mrf.mxu2 }
  0x96   :  { %v365_v0 = vpop.f32.mrf.mxu2 }
  0x9e   :  { %v368_v1 = vpop.f32.mrf.mxu2  ;;  %v305_v7 = vpop.f32.mrf.mxu0 }
  0x9f   :  { %v339_v2 = vpop.f32.mrf.mxu1  ;;  %v306_v34 = vadd.f32 %v305_v7, %v78_v17 }
  0xa4   :  { %v310_v4 = vpop.f32.mrf.mxu3 }
  0xa5   :  { %v311_v5 = vadd.f32 %v310_v4, %v88_v3 }
  0xa6   :  { %v370_v8 = vpop.f32.mrf.mxu2  ;;  %v307_v19 = vpop.f32.mrf.mxu0 }
  0xa7   :  { %v341_v6 = vpop.f32.mrf.mxu1  ;;  %v340_v10 = vadd.f32 %v339_v2, %v311_v5  ;;  %v308_v39 = vadd.f32 %v307_v19, %v83_v28 }
  0xa9   :  { %v369_v13 = vadd.f32 %v368_v1, %v340_v10 }
  0xab   :  { %v385_v21 = vmax.f32 %v369_v13, 0.0 }
  0xac   :  { %v312_v11 = vpop.f32.mrf.mxu3 }
  0xad   :  { %v313_v12 = vadd.f32 %v312_v11, %v93_v9 }
  0xae   :  { %v373_v20 = vpop.f32.mrf.mxu2 }
  0xaf   :  { %v342_v14 = vadd.f32 %v341_v6, %v313_v12  ;;  %v344_v15 = vpop.f32.mrf.mxu1 }
  0xb1   :  { %v371_v18 = vadd.f32 %v370_v8, %v342_v14 }
  0xb3   :  { %v386_v22 = vmax.f32 %v371_v18, 0.0 }
  0xb4   :  { %v315_v23 = vpop.f32.mrf.mxu3 }
  0xb5   :  { %v573_v24 = vpack.c.bf16 %v386_v22, %v385_v21  ;;  %v316_v25 = vadd.f32 %v315_v23, %v98_v16 }
  0xb6   :  { %v375_v31 = vpop.f32.mrf.mxu2 }
  0xb7   :  { %585 = vst [vmem:[%s818_s3 + $0x8] sm:$0xff] %v573_v24   ;;  %v346_v26 = vpop.f32.mrf.mxu1  ;;  %v345_v29 = vadd.f32 %v344_v15, %v316_v25 }
  0xb9   :  { %v374_v35 = vadd.f32 %v373_v20, %v345_v29 }
  0xbb   :  { %v387_v40 = vmax.f32 %v374_v35, 0.0 }
  0xbc   :  { %v317_v32 = vpop.f32.mrf.mxu3 }
  0xbd   :  { %v318_v33 = vadd.f32 %v317_v32, %v103_v27 }
  0xbe   :  { %v334_v30 = vpop.f32.mrf.mxu0  ;;  %v378_v49 = vpop.f32.mrf.mxu2 }
  0xbf   :  { %v347_v36 = vadd.f32 %v346_v26, %v318_v33  ;;  %v335_v37 = vadd.f32 %v334_v30, %v306_v34  ;;  %v349_v44 = vpop.f32.mrf.mxu1 }
  0xc1   :  { %v376_v38 = vadd.f32 %v375_v31, %v347_v36  ;;  %v364_v43 = vadd.f32 %v363_v63, %v335_v37 }
  0xc3   :  { %v388_v41 = vmax.f32 %v376_v38, 0.0  ;;  %v383_v52 = vmax.f32 %v364_v43, 0.0 }
  0xc4   :  { %v320_v46 = vpop.f32.mrf.mxu3 }
  0xc5   :  { %v578_v47 = vpack.c.bf16 %v388_v41, %v387_v40  ;;  %v321_v51 = vadd.f32 %v320_v46, %v108_v48 }
  0xc6   :  { %v336_v42 = vpop.f32.mrf.mxu0  ;;  %v380_v62 = vpop.f32.mrf.mxu2 }
  0xc7   :  { %v337_v45 = vadd.f32 %v336_v42, %v308_v39  ;;  %586 = vst [vmem:[%s818_s3 + $0x10] sm:$0xff] %v578_v47   ;;  %v350_v55 = vadd.f32 %v349_v44, %v321_v51  ;;  %v351_v59 = vpop.f32.mrf.mxu1 }
  0xc9   :  { %v366_v50 = vadd.f32 %v365_v0, %v337_v45  ;;  %v379_v60 = vadd.f32 %v378_v49, %v350_v55 }
  0xcb   :  { %v384_v53 = vmax.f32 %v366_v50, 0.0  ;;  %v389_v0 = vmax.f32 %v379_v60, 0.0 }
  0xcc   :  { %v322_v57 = vpop.f32.mrf.mxu3 }
  0xcd   :  { %v568_v54 = vpack.c.bf16 %v384_v53, %v383_v52  ;;  %v323_v58 = vadd.f32 %v322_v57, %v113_v56 }
  0xcf   :  { %569 = vst [vmem:[%s818_s3] sm:$0xff] %v568_v54   ;;  %v352_v61 = vadd.f32 %v351_v59, %v323_v58 }
  0xd1   :  { %v381_v63 = vadd.f32 %v380_v62, %v352_v61 }
  0xd3   :  { %v390_v1 = vmax.f32 %v381_v63, 0.0 }
  0xd5   :  { %v583_v2 = vpack.c.bf16 %v390_v1, %v389_v0 }
  0xd7   :  { %587 = vst [vmem:[%s818_s3 + $0x18] sm:$0xff] %v583_v2  }

// kernel: conv_autoencoder_forward.19
= control target key start
LH: loop header
LB: loop body
LE: loop exit
PB: predicated region body
PF: predicated region fallthrough
CT: control target
= control target key end

     0   :  { %s1770_s30 = smov 0   ;;  %s2201_s0 = inlined_call_operand.vmem [shape: bf16[16,576], index: 0, kind: input, shape index: {}]   ;;  %s2202_s1 = inlined_call_operand.vmem [shape: bf16[576,128], index: 1, kind: input, shape index: {}]   ;;  %s2203_s2 = inlined_call_operand.vmem [shape: f32[1,128], index: 2, kind: input, shape index: {}]   ;;  %s2204_s3 = inlined_call_operand.vmem [shape: bf16[128,64], index: 3, kind: input, shape index: {}]   ;;  %s2205_s4 = inlined_call_operand.vmem [shape: f32[1,64], index: 4, kind: input, shape index: {}]   ;;  %s2206_s5 = inlined_call_operand.vmem [shape: bf16[64,128], index: 5, kind: input, shape index: {}]   ;;  %s2207_s6 = inlined_call_operand.vmem [shape: f32[1,128], index: 6, kind: input, shape index: {}]   ;;  %s2208_s7 = inlined_call_operand.vmem [shape: bf16[128,576], index: 7, kind: input, shape index: {}]   ;;  %s2209_s8 = inlined_call_operand.vmem [shape: f32[1,576], index: 8, kind: input, shape index: {}]   ;;  %s2210_s9 = inlined_call_operand.vmem [shape: bf16[16,576], index: 9, kind: output, shape index: {}]  }
   0x1 LB: > { %s1249_s10 = sadd.s32 4294967295, %s1718_s30   ;;  %p1253_p0 = scmp.ge.s32.totalorder %s1718_s30, 1  ;;  %s1718_s30 = sphi %s1770_s30, %s19_s30  }
   0x2   : > { %p287_p1 = scmp.lt.s32.totalorder %s1718_s30, 3 }
   0x4   : > { %p288_p2 = pnand %p1253_p0, %p287_p1 }
   0x5   : > { %p323_p3 = scmp.lt.s32.totalorder (!%p288_p2), %s1249_s10, 1 }
   0x6   : > { %291 = sbr.rel (%p288_p2) target bundleno = 617 (0x269), region = 56 }
   0xb   : > { %v1619_v0 = vld [vmem:[%s2202_s1 + $0x38] sm:$0xff]  ;;  %v1618_v4 = vld [vmem:[%s2202_s1 + $0x30] sm:$0xff]  ;;  %v1617_v8 = vld [vmem:[%s2202_s1 + $0x28] sm:$0xff]  ;;  %s2212_s10 = smov (!%p323_p3, %s1249_s10), 1  ;;  %vm646_vm0 = vcmask 523264   ;;  %vm1192_vm1 = vcmask 519168  }
   0xc   : > { %v1635_v1 = vld [vmem:[%s2202_s1 + $0xb8] sm:$0xff]  ;;  %650 = vmatpush.bf16.msra.mxu0 %v1619_v0  ;;  %v1634_v5 = vld [vmem:[%s2202_s1 + $0xb0] sm:$0xff]  ;;  %v1633_v9 = vld [vmem:[%s2202_s1 + $0xa8] sm:$0xff]  ;;  %s1700_s13 = smul.u32 20, %s2212_s10 }
   0xd   : > { %v1643_v2 = vld [vmem:[%s2202_s1 + $0xf8] sm:$0xff]  ;;  %676 = vmatpush.bf16.msra.mxu2 %v1635_v1  ;;  %v1642_v6 = vld [vmem:[%s2202_s1 + $0xf0] sm:$0xff]  ;;  %v1641_v10 = vld [vmem:[%s2202_s1 + $0xe8] sm:$0xff] }
   0xe   : > { %v1627_v3 = vld [vmem:[%s2202_s1 + $0x78] sm:$0xff]  ;;  %689 = vmatpush.bf16.msra.mxu3 %v1643_v2  ;;  %v1626_v7 = vld [vmem:[%s2202_s1 + $0x70] sm:$0xff]  ;;  %v1625_v11 = vld [vmem:[%s2202_s1 + $0x68] sm:$0xff]  ;;  %s1862_s24 = scalar_lea.vmem %s2201_s0, %s1700_s13  ;;  %s332_s28 = scalar_lea.vmem %s2210_s9, %s1700_s13 }
   0xf   : > { %663 = vmatpush.bf16.msra.mxu1 %v1627_v3  ;;  %v1616_v12 = vld [vmem:[%s2202_s1 + $0x20] sm:$0xff]  ;;  %v1615_v16 = vld [vmem:[%s2202_s1 + $0x18] sm:$0xff]  ;;  %v1614_v20 = vld [vmem:[%s2202_s1 + $0x10] sm:$0xff] }
  0x10   : > { %651 = vmatpush.bf16.msra.mxu0 %v1618_v4  ;;  %v1632_v13 = vld [vmem:[%s2202_s1 + $0xa0] sm:$0xff]  ;;  %v1631_v17 = vld [vmem:[%s2202_s1 + $0x98] sm:$0xff]  ;;  %v1630_v21 = vld [vmem:[%s2202_s1 + $0x90] sm:$0xff] }
  0x11   : > { %677 = vmatpush.bf16.msra.mxu2 %v1634_v5  ;;  %v1640_v14 = vld [vmem:[%s2202_s1 + $0xe0] sm:$0xff]  ;;  %v1639_v18 = vld [vmem:[%s2202_s1 + $0xd8] sm:$0xff]  ;;  %v1638_v22 = vld [vmem:[%s2202_s1 + $0xd0] sm:$0xff] }
  0x12   : > { %690 = vmatpush.bf16.msra.mxu3 %v1642_v6  ;;  %v1624_v15 = vld [vmem:[%s2202_s1 + $0x60] sm:$0xff]  ;;  %v1623_v19 = vld [vmem:[%s2202_s1 + $0x58] sm:$0xff]  ;;  %v1622_v23 = vld [vmem:[%s2202_s1 + $0x50] sm:$0xff] }
  0x13   : > { %664 = vmatpush.bf16.msra.mxu1 %v1626_v7  ;;  %v1613_v24 = vld [vmem:[%s2202_s1 + $0x8] sm:$0xff]  ;;  %v334_v26 = vld [vmem:[%s1862_s24] sm:$0xff]  ;;  %v1647_v38 = vld [vmem:[%s2202_s1 + $0x118] sm:$0xff] }
  0x14   : > { %652 = vmatpush.bf16.msra.mxu0 %v1617_v8  ;;  %v1629_v25 = vld [vmem:[%s2202_s1 + $0x88] sm:$0xff]  ;;  %v416_v30 = vunpack.c.l.b16 %v334_v26  ;;  %v1612_v32 = vld [vmem:[%s2202_s1] sm:$0xff]  ;;  %v417_v35 = vunpack.c.h.b16 %v334_v26  ;;  %v1655_v39 = vld [vmem:[%s2204_s3 + $0x38] sm:$0xff] }
  0x15   : > { %678 = vmatpush.bf16.msra.mxu2 %v1633_v9  ;;  %v335_v27 = vld [vmem:[%s1862_s24 + $0x8] sm:$0xff]  ;;  %v1628_v33 = vld [vmem:[%s2202_s1 + $0x80] sm:$0xff]  ;;  %v1646_v44 = vld [vmem:[%s2202_s1 + $0x110] sm:$0xff] }
  0x16   : > { %691 = vmatpush.bf16.msra.mxu3 %v1641_v10  ;;  %v1637_v28 = vld [vmem:[%s2202_s1 + $0xc8] sm:$0xff]  ;;  %v418_v31 = vunpack.c.l.b16 %v335_v27  ;;  %v419_v34 = vunpack.c.h.b16 %v335_v27  ;;  %v1636_v36 = vld [vmem:[%s2202_s1 + $0xc0] sm:$0xff]  ;;  %v421_v40 = vpack.c.b16 %v416_v30, %v416_v30  ;;  %v422_v43 = vpack.c.b16 %v417_v35, %v417_v35  ;;  %v1654_v45 = vld [vmem:[%s2204_s3 + $0x30] sm:$0xff] }
  0x17   : > { %665 = vmatpush.bf16.msra.mxu1 %v1625_v11  ;;  %v1621_v29 = vld [vmem:[%s2202_s1 + $0x48] sm:$0xff]  ;;  %v1620_v37 = vld [vmem:[%s2202_s1 + $0x40] sm:$0xff]  ;;  %v336_v47 = vld [vmem:[%s1862_s24 + $0x10] sm:$0xf] }
  0x18   : > { %653 = vmatpush.bf16.msra.mxu0 %v1616_v12  ;;  %v423_v41 = vpack.c.b16 %v418_v31, %v418_v31  ;;  %v424_v42 = vpack.c.b16 %v419_v34, %v419_v34  ;;  %v1645_v46 = vld [vmem:[%s2202_s1 + $0x108] sm:$0xff]  ;;  %v1644_v48 = vld [vmem:[%s2202_s1 + $0x100] sm:$0xff]  ;;  %v420_v49 = vunpack.c.l.b16 %v336_v47  ;;  %v1651_v53 = vld [vmem:[%s2204_s3 + $0x18] sm:$0xff] }
  0x19   : > { %679 = vmatpush.bf16.msra.mxu2 %v1632_v13  ;;  %v1653_v51 = vld [vmem:[%s2204_s3 + $0x28] sm:$0xff]  ;;  %v1652_v52 = vld [vmem:[%s2204_s3 + $0x20] sm:$0xff]  ;;  %v1650_v54 = vld [vmem:[%s2204_s3 + $0x10] sm:$0xff] }
  0x1a   : > { %692 = vmatpush.bf16.msra.mxu3 %v1640_v14  ;;  %v425_v50 = vpack.c.b16 %v420_v49, %v420_v49  ;;  %v1649_v55 = vld [vmem:[%s2204_s3 + $0x8] sm:$0xff]  ;;  %v1648_v56 = vld [vmem:[%s2204_s3] sm:$0xff]  ;;  %v1659_v57 = vld [vmem:[%s2206_s5 + $0x18] sm:$0xff] }
  0x1b   : > { %666 = vmatpush.bf16.msra.mxu1 %v1624_v15  ;;  %v1658_v58 = vld [vmem:[%s2206_s5 + $0x10] sm:$0xff]  ;;  %v1657_v59 = vld [vmem:[%s2206_s5 + $0x8] sm:$0xff]  ;;  %v1709_v61 = vld [vmem:[%s2203_s2] ss:$0 sm:$0xff] }
  0x1c   : > { %654 = vmatpush.bf16.msra.mxu0 %v1615_v16  ;;  %v1656_v14 = vld [vmem:[%s2206_s5] sm:$0xff]  ;;  %v1592_v15 = vld [vmem:[%s2208_s7 + $0x118] sm:$0xf]  ;;  %v1697_v16 = vld [vmem:[%s2208_s7 + $0x128] sm:$0xf0] }
  0x1d   : > { %680 = vmatpush.bf16.msra.mxu2 %v1631_v17  ;;  %v1572_v17 = vld [vmem:[%s2208_s7 + $0xf0] sm:$0xf]  ;;  %v1687_v26 = vld [vmem:[%s2208_s7 + $0xd8] sm:$0xf0]  ;;  %v1602_v30 = vld [vmem:[%s2208_s7 + $0x134] sm:$0xf0] }
  0x1e   : > { %693 = vmatpush.bf16.msra.mxu3 %v1639_v18  ;;  %v1593_v18 = vor.u32 %v1697_v16, %v1592_v15  ;;  %v1580_v35 = vld [vmem:[%s2208_s7 + $0xf8] sm:$0xf]  ;;  %v1688_v47 = vld [vmem:[%s2208_s7 + $0xe0] sm:$0xf0]  ;;  %v1562_v49 = vld [vmem:[%s2208_s7 + $0xe4] sm:$0xf0] }
  0x1f   : > { %667 = vmatpush.bf16.msra.mxu1 %v1623_v19  ;;  %v1692_v19 = vld [vmem:[%s2208_s7 + $0x100] sm:$0xf0]  ;;  %v1494_v16 = vld [vmem:[%s2208_s7 + $0x64] sm:$0xf0] }
  0x20   : > { %655 = vmatpush.bf16.msra.mxu0 %v1614_v20  ;;  %v1552_v20 = vld [vmem:[%s2208_s7 + $0xc8] sm:$0xf] }
  0x21   : > { %681 = vmatpush.bf16.msra.mxu2 %v1630_v21  ;;  %v1695_v21 = vld [vmem:[%s2208_s7 + $0x11c] sm:$0xf] }
  0x22   : > { %694 = vmatpush.bf16.msra.mxu3 %v1638_v22  ;;  %v1573_v22 = vor.u32 %v1692_v19, %v1572_v17  ;;  %v1500_v17 = vld [vmem:[%s2208_s7 + $0x58] sm:$0xf]  ;;  %v1667_v19 = vld [vmem:[%s2208_s7 + $0x38] sm:$0xf0] }
  0x23   : > { %668 = vmatpush.bf16.msra.mxu1 %v1622_v23  ;;  %v1594_v23 = vld [vmem:[%s2208_s7 + $0x12c] sm:$0xf0] }
  0x24   : > { %656 = vmatpush.bf16.msra.mxu0 %v1613_v24  ;;  %v1600_v24 = vld [vmem:[%s2208_s7 + $0x120] sm:$0xf]  ;;  %v1597_v27 = vor.u32 %v1695_v21, %v1594_v23  ;;  %v1502_v21 = vld [vmem:[%s2208_s7 + $0x6c] sm:$0xf0] }
  0x25   : > { %682 = vmatpush.bf16.msra.mxu2 %v1629_v25  ;;  %v1698_v25 = vld [vmem:[%s2208_s7 + $0x130] sm:$0xf0] }
  0x26   : > { %695 = vmatpush.bf16.msra.mxu3 %v1637_v28  ;;  %v1601_v28 = vor.u32 %v1698_v25, %v1600_v24 }
  0x27   : > { %669 = vmatpush.bf16.msra.mxu1 %v1621_v29  ;;  %v1696_v29 = vld [vmem:[%s2208_s7 + $0x124] sm:$0xf] }
  0x28   : > { %657 = vmatpush.bf16.msra.mxu0 %v1612_v32  ;;  %v1605_v31 = vor.u32 %v1696_v29, %v1602_v30  ;;  %v1690_v32 = vld [vmem:[%s2208_s7 + $0xf4] sm:$0xf] }
  0x29   : > { %683 = vmatpush.bf16.msra.mxu2 %v1628_v33  ;;  %v1574_v33 = vld [vmem:[%s2208_s7 + $0x104] sm:$0xf0]  ;;  %v1662_v29 = vld [vmem:[%s2208_s7 + $0x10] sm:$0xf0] }
  0x2a   : > { %696 = vmatpush.bf16.msra.mxu3 %v1636_v36  ;;  %v1577_v34 = vor.u32 %v1690_v32, %v1574_v33  ;;  %v1693_v36 = vld [vmem:[%s2208_s7 + $0x108] sm:$0xf0]  ;;  %v1699_v32 = vld [vmem:[%s2208_s7 + $0x138] sm:$0xf0] }
  0x2b   : > { %670 = vmatpush.bf16.msra.mxu1 %v1620_v37  ;;  %658 = vmatmul.bf16.vlgmr.msra.gmra.mxu0 %v421_v40  ;;  %v1691_v37 = vld [vmem:[%s2208_s7 + $0xfc] sm:$0xf]  ;;  %v1682_v40 = vld [vmem:[%s2208_s7 + $0xb0] sm:$0xf0] }
  0x2c   : > { %706 = vmatpush.bf16.msrb.mxu0 %v1647_v38  ;;  %684 = vmatmul.bf16.vlgmr.msra.gmra.mxu2 %v423_v41  ;;  %v1553_v38 = vor.u32 %v1687_v26, %v1552_v20  ;;  %v1581_v41 = vor.u32 %v1693_v36, %v1580_v35  ;;  %v1671_v20 = vld [vmem:[%s2208_s7 + $0x5c] sm:$0xf] }
  0x2d   : > { %697 = vmatmul.bf16.vlgmr.msra.gmra.mxu3 %v424_v42  ;;  %843 = vmatpush.bf16.msrb.mxu2 %v1659_v57  ;;  %v1582_v42 = vld [vmem:[%s2208_s7 + $0x10c] sm:$0xf0]  ;;  %v1540_v57 = vld [vmem:[%s2208_s7 + $0xa8] sm:$0xf]  ;;  %v1505_v26 = vor.u32 %v1671_v20, %v1502_v21 }
  0x2e   : > { %671 = vmatmul.bf16.vlgmr.msra.gmra.mxu1 %v422_v43  ;;  %1122 = vmatpush.bf16.msrb.mxu3 %v1593_v18  ;;  %v1585_v43 = vor.u32 %v1691_v37, %v1582_v42  ;;  %v1673_v18 = vld [vmem:[%s2208_s7 + $0x68] sm:$0xf0]  ;;  %v1588_v37 = vld [vmem:[%s2208_s7 + $0x100] sm:$0xf] }
  0x2f   : > { %785 = vmatpush.bf16.msrb.mxu1 %v1655_v39  ;;  %v1532_v39 = vld [vmem:[%s2208_s7 + $0xa0] sm:$0xf]  ;;  %v1501_v24 = vor.u32 %v1673_v18, %v1500_v17 }
  0x30   : > { %707 = vmatpush.bf16.msrb.mxu0 %v1646_v44  ;;  %v1685_v44 = vld [vmem:[%s2208_s7 + $0xcc] sm:$0xf]  ;;  %v1474_v42 = vld [vmem:[%s2208_s7 + $0x3c] sm:$0xf0] }
  0x31   : > { %844 = vmatpush.bf16.msrb.mxu2 %v1658_v58  ;;  %v1683_v58 = vld [vmem:[%s2208_s7 + $0xb8] sm:$0xf0] }
  0x32   : > { %1123 = vmatpush.bf16.msrb.mxu3 %v1573_v22  ;;  %v1710_v22 = vld [vmem:[%s2205_s4] ss:$0 sm:$0xff] }
  0x33   : > { %786 = vmatpush.bf16.msrb.mxu1 %v1654_v45  ;;  %v1554_v45 = vld [vmem:[%s2208_s7 + $0xdc] sm:$0xf0] }
  0x34   : > { %708 = vmatpush.bf16.msrb.mxu0 %v1645_v46  ;;  %v1560_v46 = vld [vmem:[%s2208_s7 + $0xd0] sm:$0xf] }
  0x35   : > { %845 = vmatpush.bf16.msrb.mxu2 %v1657_v59  ;;  %v1677_v59 = vld [vmem:[%s2208_s7 + $0x88] sm:$0xf0] }
  0x36   : > { %1124 = vmatpush.bf16.msrb.mxu3 %v1553_v38  ;;  %v1694_v38 = vld [vmem:[%s2208_s7 + $0x110] sm:$0xf0] }
  0x37   : > { %787 = vmatpush.bf16.msrb.mxu1 %v1653_v51  ;;  %v1557_v51 = vor.u32 %v1685_v44, %v1554_v45  ;;  %v1668_v45 = vld [vmem:[%s2208_s7 + $0x40] sm:$0xf0] }
  0x38   : > { %709 = vmatpush.bf16.msrb.mxu0 %v1644_v48  ;;  %v1686_v48 = vld [vmem:[%s2208_s7 + $0xd4] sm:$0xf] }
  0x39   : > { %846 = vmatpush.bf16.msrb.mxu2 %v1656_v14 }
  0x3b   : > { %1400 = vmatmul.msk.bf16.vlgmr.msrb.gmra.mxu0 %vm646_vm0, %v425_v50  ;;  %788 = vmatpush.bf16.msrb.mxu1 %v1652_v52  ;;  %v1512_v50 = vld [vmem:[%s2208_s7 + $0x78] sm:$0xf]  ;;  %v1561_v52 = vor.u32 %v1688_v47, %v1560_v46  ;;  %v1666_v46 = vld [vmem:[%s2208_s7 + $0x34] sm:$0xf]  ;;  %v1482_v47 = vld [vmem:[%s2208_s7 + $0x44] sm:$0xf0] }
  0x3c   : > { %1135 = vmatpush.bf16.msra.mxu0 %v1597_v27 }
  0x3d   : > { %1148 = vmatpush.bf16.msra.mxu2 %v1601_v28  ;;  %v1452_v28 = vld [vmem:[%s2208_s7] sm:$0xf] }
  0x3f   : > { %789 = vmatpush.bf16.msrb.mxu1 %v1651_v53  ;;  %v1680_v53 = vld [vmem:[%s2208_s7 + $0xa4] sm:$0xf] }
  0x40   : > { %1136 = vmatpush.bf16.msra.mxu0 %v1577_v34  ;;  %v1453_v34 = vor.u32 %v1662_v29, %v1452_v28 }
  0x41   : > { %1149 = vmatpush.bf16.msra.mxu2 %v1581_v41  ;;  %v1665_v41 = vld [vmem:[%s2208_s7 + $0x2c] sm:$0xf] }
  0x42   : > { %v1477_v44 = vor.u32 %v1665_v41, %v1474_v42 }
  0x43   : > { %790 = vmatpush.bf16.msrb.mxu1 %v1650_v54  ;;  %v1533_v54 = vor.u32 %v1682_v40, %v1532_v39  ;;  %v1589_v40 = vor.u32 %v1694_v38, %v1588_v37 }
  0x44   : > { %1137 = vmatpush.bf16.msra.mxu0 %v1557_v51  ;;  %v1689_v51 = vld [vmem:[%s2208_s7 + $0xe8] sm:$0xf0] }
  0x45   : > { %1150 = vmatpush.bf16.msra.mxu2 %v1561_v52  ;;  %1125 = vmatpush.bf16.msrb.mxu3 %v1533_v54  ;;  %v1454_v54 = vld [vmem:[%s2208_s7 + $0x14] sm:$0xf0] }
  0x47   : > { %791 = vmatpush.bf16.msrb.mxu1 %v1649_v55  ;;  %v1565_v55 = vor.u32 %v1686_v48, %v1562_v49  ;;  %v1485_v49 = vor.u32 %v1666_v46, %v1482_v47 }
  0x4b   : > { %792 = vmatpush.bf16.msrb.mxu1 %v1648_v56  ;;  %v1534_v56 = vld [vmem:[%s2208_s7 + $0xb4] sm:$0xf0] }
  0x4f   : > { %1161 = vmatpush.bf16.msra.mxu1 %v1605_v31  ;;  %v1608_v31 = vld [vmem:[%s2208_s7 + $0x128] sm:$0xf] }
  0x50   : > { %v1609_v35 = vor.u32 %v1699_v32, %v1608_v31 }
  0x53   : > { %1162 = vmatpush.bf16.msra.mxu1 %v1585_v43  ;;  %v1480_v43 = vld [vmem:[%s2208_s7 + $0x30] sm:$0xf] }
  0x54   : > { %v1481_v48 = vor.u32 %v1668_v45, %v1480_v43 }
  0x57   : > { %1163 = vmatpush.bf16.msra.mxu1 %v1565_v55  ;;  %v1460_v55 = vld [vmem:[%s2208_s7 + $0x8] sm:$0xf] }
  0xa8   : > { %v659_v60 = vpop.f32.mrf.mxu0 }
  0xa9   : > { %v660_v63 = vadd.f32 %v1709_v61, %v659_v60  ;;  %v1681_v60 = vld [vmem:[%s2208_s7 + $0xac] sm:$0xf]  ;;  %v1542_v61 = vld [vmem:[%s2208_s7 + $0xbc] sm:$0xf0] }
  0xab   : > { %v672_v62 = vpop.f32.mrf.mxu1 }
  0xac   : > { %v673_v3 = vadd.f32 %v672_v62, %v660_v63  ;;  %v1492_v62 = vld [vmem:[%s2208_s7 + $0x50] sm:$0xf]  ;;  %v1537_v63 = vor.u32 %v1680_v53, %v1534_v56  ;;  %v1660_v53 = vld [vmem:[%s2208_s7 + $0x4] sm:$0xf] }
  0xad   : > { %v1457_v56 = vor.u32 %v1660_v53, %v1454_v54 }
  0xae   : > { %1138 = vmatpush.bf16.msra.mxu0 %v1537_v63  ;;  %v1684_v63 = vld [vmem:[%s2208_s7 + $0xc0] sm:$0xf0] }
  0xaf   : > { %v685_v0 = vpop.f32.mrf.mxu2 }
  0xb0   : > { %v698_v1 = vpop.f32.mrf.mxu3  ;;  %v661_v2 = vpop.f32.mrf.mxu0  ;;  %v686_v5 = vadd.f32 %v685_v0, %v673_v3  ;;  %v1541_v0 = vor.u32 %v1683_v58, %v1540_v57  ;;  %v1545_v3 = vor.u32 %v1681_v60, %v1542_v61  ;;  %v1663_v57 = vld [vmem:[%s2208_s7 + $0x18] sm:$0xf0]  ;;  %v1661_v58 = vld [vmem:[%s2208_s7 + $0xc] sm:$0xf] }
  0xb1   : > { %v1513_v2 = vor.u32 %v1677_v59, %v1512_v50  ;;  %v1568_v50 = vld [vmem:[%s2208_s7 + $0xd8] sm:$0xf]  ;;  %v1462_v59 = vld [vmem:[%s2208_s7 + $0x1c] sm:$0xf0]  ;;  %v1461_v60 = vor.u32 %v1663_v57, %v1460_v55 }
  0xb2   : > { %v699_v7 = vadd.f32 %v698_v1, %v686_v5  ;;  %v1675_v1 = vld [vmem:[%s2208_s7 + $0x7c] sm:$0xf]  ;;  %v1520_v5 = vld [vmem:[%s2208_s7 + $0x80] sm:$0xf]  ;;  %1151 = vmatpush.bf16.msra.mxu2 %v1541_v0  ;;  %1164 = vmatpush.bf16.msra.mxu1 %v1545_v3  ;;  %v1569_v52 = vor.u32 %v1689_v51, %v1568_v50  ;;  %v1465_v61 = vor.u32 %v1661_v58, %v1462_v59 }
  0xb3   : > { %v674_v4 = vpop.f32.mrf.mxu1  ;;  %1126 = vmatpush.bf16.msrb.mxu3 %v1513_v2  ;;  %v1679_v2 = vld [vmem:[%s2208_s7 + $0x98] sm:$0xf0] }
  0xb4   : > { %v1514_v4 = vld [vmem:[%s2208_s7 + $0x8c] sm:$0xf0] }
  0xb7   : > { %v687_v6 = vpop.f32.mrf.mxu2 }
  0xb8   : > { %v700_v8 = vpop.f32.mrf.mxu3  ;;  %v711_v9 = vpop.f32.mrf.mxu0  ;;  %v1678_v6 = vld [vmem:[%s2208_s7 + $0x90] sm:$0xf0] }
  0xb9   : > { %v712_v10 = vadd.f32 %v711_v9, %v699_v7  ;;  %v1672_v7 = vld [vmem:[%s2208_s7 + $0x60] sm:$0xf0]  ;;  %v1522_v9 = vld [vmem:[%s2208_s7 + $0x94] sm:$0xf0] }
  0xba   : > { %v1676_v8 = vld [vmem:[%s2208_s7 + $0x84] sm:$0xf]  ;;  %v1493_v14 = vor.u32 %v1672_v7, %v1492_v62  ;;  %v1548_v62 = vld [vmem:[%s2208_s7 + $0xb0] sm:$0xf]  ;;  %v1488_v7 = vld [vmem:[%s2208_s7 + $0x38] sm:$0xf] }
  0xbb   : > { %v715_v11 = vmax.f32 %v712_v10, 0.0  ;;  %v1472_v10 = vld [vmem:[%s2208_s7 + $0x28] sm:$0xf]  ;;  %v1525_v15 = vor.u32 %v1676_v8, %v1522_v9  ;;  %v1549_v0 = vor.u32 %v1684_v63, %v1548_v62  ;;  %v1669_v8 = vld [vmem:[%s2208_s7 + $0x48] sm:$0xf0] }
  0xbc   : > { %1127 = vmatpush.bf16.msrb.mxu3 %v1493_v14  ;;  %v1473_v25 = vor.u32 %v1667_v19, %v1472_v10  ;;  %v1489_v9 = vor.u32 %v1669_v8, %v1488_v7  ;;  %v1468_v10 = vld [vmem:[%s2208_s7 + $0x10] sm:$0xf]  ;;  %v902_v19 = vld [vmem:[%s2209_s8] sm:$0x1f] }
  0xbd   : > { %v716_v12 = vpack.c.bf16 %v715_v11, %v715_v11  ;;  %v1517_v11 = vor.u32 %v1675_v1, %v1514_v4  ;;  %1165 = vmatpush.bf16.msra.mxu1 %v1525_v15  ;;  %v1528_v1 = vld [vmem:[%s2208_s7 + $0x88] sm:$0xf]  ;;  %v1508_v4 = vld [vmem:[%s2208_s7 + $0x60] sm:$0xf]  ;;  %v908_v38 = vperm.slane %v902_v19, 4 }
  0xbe   : > { %v1529_v3 = vor.u32 %v1679_v2, %v1528_v1 }
  0xbf   : > { %793 = vmatmul.bf16.vlgmr.msrb.gmra.mxu1 %v716_v12  ;;  %v1521_v12 = vor.u32 %v1678_v6, %v1520_v5  ;;  %1139 = vmatpush.bf16.msra.mxu0 %v1517_v11  ;;  %v1674_v5 = vld [vmem:[%s2208_s7 + $0x70] sm:$0xf0]  ;;  %v1664_v11 = vld [vmem:[%s2208_s7 + $0x20] sm:$0xf0] }
  0xc0   : > { %v713_v13 = vpop.f32.mrf.mxu0  ;;  %1128 = vmatpush.bf16.msrb.mxu3 %v1473_v25  ;;  %v1509_v6 = vor.u32 %v1674_v5, %v1508_v4  ;;  %v906_v25 = vperm.slane %v902_v19, 2 }
  0xc1   : > { %v1670_v13 = vld [vmem:[%s2208_s7 + $0x54] sm:$0xf]  ;;  %1152 = vmatpush.bf16.msra.mxu2 %v1521_v12  ;;  %1166 = vmatpush.bf16.msra.mxu1 %v1505_v26  ;;  %v1469_v12 = vor.u32 %v1664_v11, %v1468_v10 }
  0xc2   : > { %v1497_v23 = vor.u32 %v1670_v13, %v1494_v16  ;;  %v1711_v13 = vld [vmem:[%s2207_s6] ss:$0 sm:$0xff] }
  0xc4   : > { %1140 = vmatpush.bf16.msra.mxu0 %v1497_v23  ;;  %1129 = vmatpush.bf16.msrb.mxu3 %v1453_v34  ;;  %v904_v23 = vperm.slane %v902_v19, 0 }
  0xc5   : > { %1153 = vmatpush.bf16.msra.mxu2 %v1501_v24  ;;  %1167 = vmatpush.bf16.msra.mxu1 %v1485_v49  ;;  %v907_v24 = vperm.slane %v902_v19, 3 }
  0xc8   : > { %1174 = vmatpush.bf16.msra.mxu3 %v1609_v35  ;;  %1141 = vmatpush.bf16.msra.mxu0 %v1477_v44 }
  0xc9   : > { %1154 = vmatpush.bf16.msra.mxu2 %v1481_v48  ;;  %1168 = vmatpush.bf16.msra.mxu1 %v1465_v61 }
  0xcc   : > { %1175 = vmatpush.bf16.msra.mxu3 %v1589_v40  ;;  %1142 = vmatpush.bf16.msra.mxu0 %v1457_v56 }
  0xcd   : > { %1155 = vmatpush.bf16.msra.mxu2 %v1461_v60 }
  0xd0   : > { %1176 = vmatpush.bf16.msra.mxu3 %v1569_v52 }
  0xd4   : > { %1177 = vmatpush.bf16.msra.mxu3 %v1549_v0 }
  0xd8   : > { %1178 = vmatpush.bf16.msra.mxu3 %v1529_v3 }
  0xdc   : > { %1179 = vmatpush.bf16.msra.mxu3 %v1509_v6 }
  0xe0   : > { %1180 = vmatpush.bf16.msra.mxu3 %v1489_v9 }
  0xe4   : > { %1181 = vmatpush.bf16.msra.mxu3 %v1469_v12 }
 0x13c   : > { %v794_v27 = vpop.f32.mrf.mxu1 }
 0x13d   : > { %v795_v30 = vadd.f32 %v1710_v22, %v794_v27  ;;  %v905_v22 = vperm.slane %v902_v19, 1 }
 0x13f   : > { %v798_v33 = vmax.f32 %v795_v30, 0.0 }
 0x141   : > { %v799_v36 = vpack.c.bf16 %v798_v33, %v798_v33 }
 0x143   : > { %1449 = vmatmul.msk.bf16.vlgmr.msrb.gmra.mxu2 %vm646_vm0, %v799_v36 }
 0x144   : > { %v796_v39 = vpop.f32.mrf.mxu1 }
 0x1c6   : > { %v848_v14 = vpop.f32.mrf.mxu2 }
 0x1c7   : > { %v849_v15 = vadd.f32 %v1711_v13, %v848_v14 }
 0x1c9   : > { %v852_v16 = vmax.f32 %v849_v15, 0.0 }
 0x1cb   : > { %v853_v17 = vpack.c.bf16 %v852_v16, %v852_v16 }
 0x1cd   : > { %1130 = vmatmul.bf16.vlgmr.msrb.gmra.mxu3 %v853_v17  ;;  %1143 = vmatmul.bf16.vlgmr.msra.gmra.mxu0 %v853_v17 }
 0x1ce   : > { %1156 = vmatmul.bf16.vlgmr.msra.gmra.mxu2 %v853_v17  ;;  %1169 = vmatmul.bf16.vlgmr.msra.gmra.mxu1 %v853_v17  ;;  %v850_v18 = vpop.f32.mrf.mxu2 }
 0x1dd   : > { %1182 = vmatmul.bf16.vlgmr.msra.gmra.mxu3 %v853_v17 }
 0x24a   : > { %v1144_v20 = vpop.f32.mrf.mxu0 }
 0x24b   : > { %v1170_v21 = vpop.f32.mrf.mxu1  ;;  %v1145_v27 = vadd.f32 %v1144_v20, %v905_v22 }
 0x24c   : > { %v1171_v30 = vadd.f32 %v1170_v21, %v907_v24 }
 0x250   : > { %v1131_v26 = vpop.f32.mrf.mxu3 }
 0x251   : > { %v1132_v28 = vadd.f32 %v1131_v26, %v904_v23  ;;  %v1157_v29 = vpop.f32.mrf.mxu2 }
 0x252   : > { %v1158_v31 = vadd.f32 %v1157_v29, %v906_v25  ;;  %v1146_v32 = vpop.f32.mrf.mxu0 }
 0x253   : > { %v1187_v33 = vpack.c.bf16 %v1145_v27, %v1132_v28  ;;  %v1172_v34 = vpop.f32.mrf.mxu1 }
 0x254   : > { %v1188_v35 = vpack.c.bf16 %v1171_v30, %v1158_v31 }
 0x255   : > { %1190 = vst [vmem:[%s332_s28] sm:$0xff] %v1187_v33 }
 0x256   : > { %1191 = vst [vmem:[%s332_s28 + $0x8] sm:$0xff] %v1188_v35 }
 0x258   : > { %v1133_v36 = vpop.f32.mrf.mxu3 }
 0x259   : > { %v1159_v37 = vpop.f32.mrf.mxu2 }
 0x260   : > { %v1183_v39 = vpop.f32.mrf.mxu3 }
 0x261   : > { %v1184_v40 = vadd.f32 %v1183_v39, %v908_v38 }
 0x263   : > { %v1189_v41 = vpack.c.bf16 %v1184_v40, %v1184_v40 }
 0x265   : > { %1193 = vst.msk [vmem:[%s332_s28 + $0x10] sm:$0xf] %vm1192_vm1, %v1189_v41 }
 0x268   : > { %v1185_v42 = vpop.f32.mrf.mxu3 }
 0x269 PF: > { %s19_s30 = sadd.s32 1, %s1718_s30  }
 0x26a   : > { %p16_p4 = scmp.ge.s32.totalorder %s19_s30, 4  }
 0x26c   :  { %18 = sbr.rel (!%p16_p4) target bundleno = 1 (0x1), region = 86 }

// kernel: conv_autoencoder_forward.20
= control target key start
LH: loop header
LB: loop body
LE: loop exit
PB: predicated region body
PF: predicated region fallthrough
CT: control target
= control target key end

     0   :  { %v757_v8 = vmov 0   ;;  %vm389_vm0 = vcmask 523264   ;;  %s964_s2 = inlined_call_operand.vmem [shape: bf16[576,128], index: 2, kind: input, shape index: {}]   ;;  %s965_s1 = inlined_call_operand.vmem [shape: f32[32,1], index: 1, kind: input, shape index: {}]   ;;  %s966_s0 = inlined_call_operand.vmem [shape: bf16[32,576], index: 0, kind: input, shape index: {}]   ;;  %s967_s3 = inlined_call_operand.vmem [shape: bf16[32,128], index: 3, kind: output, shape index: {}]  }
   0x1   :  { %v710_v0 = vld [vmem:[%s964_s2 + $0x38] sm:$0xff]  ;;  %v709_v4 = vld [vmem:[%s964_s2 + $0x30] sm:$0xff]  ;;  %755 = vset.pattern.permute.xlu0 %v757_v8  ;;  %756 = vset.pattern.permute.xlu1 %v757_v8  ;;  %v708_v9 = vld [vmem:[%s964_s2 + $0x28] sm:$0xff] }
   0x2   :  { %v718_v1 = vld [vmem:[%s964_s2 + $0x78] sm:$0xff]  ;;  %396 = vmatpush.bf16.msra.mxu0 %v710_v0  ;;  %v717_v5 = vld [vmem:[%s964_s2 + $0x70] sm:$0xff]  ;;  %v716_v10 = vld [vmem:[%s964_s2 + $0x68] sm:$0xff] }
   0x3   :  { %v726_v2 = vld [vmem:[%s964_s2 + $0xb8] sm:$0xff]  ;;  %415 = vmatpush.bf16.msra.mxu1 %v718_v1  ;;  %v725_v6 = vld [vmem:[%s964_s2 + $0xb0] sm:$0xff]  ;;  %v724_v11 = vld [vmem:[%s964_s2 + $0xa8] sm:$0xff] }
   0x4   :  { %v734_v3 = vld [vmem:[%s964_s2 + $0xf8] sm:$0xff]  ;;  %434 = vmatpush.bf16.msra.mxu2 %v726_v2  ;;  %v733_v7 = vld [vmem:[%s964_s2 + $0xf0] sm:$0xff]  ;;  %v732_v12 = vld [vmem:[%s964_s2 + $0xe8] sm:$0xff] }
   0x5   :  { %453 = vmatpush.bf16.msra.mxu3 %v734_v3  ;;  %v707_v13 = vld [vmem:[%s964_s2 + $0x20] sm:$0xff]  ;;  %v706_v17 = vld [vmem:[%s964_s2 + $0x18] sm:$0xff]  ;;  %v705_v22 = vld [vmem:[%s964_s2 + $0x10] sm:$0xff] }
   0x6   :  { %397 = vmatpush.bf16.msra.mxu0 %v709_v4  ;;  %v715_v14 = vld [vmem:[%s964_s2 + $0x60] sm:$0xff]  ;;  %v714_v18 = vld [vmem:[%s964_s2 + $0x58] sm:$0xff]  ;;  %v713_v23 = vld [vmem:[%s964_s2 + $0x50] sm:$0xff] }
   0x7   :  { %416 = vmatpush.bf16.msra.mxu1 %v717_v5  ;;  %v723_v15 = vld [vmem:[%s964_s2 + $0xa0] sm:$0xff]  ;;  %v722_v20 = vld [vmem:[%s964_s2 + $0x98] sm:$0xff]  ;;  %v721_v24 = vld [vmem:[%s964_s2 + $0x90] sm:$0xff] }
   0x8   :  { %435 = vmatpush.bf16.msra.mxu2 %v725_v6  ;;  %v731_v16 = vld [vmem:[%s964_s2 + $0xe0] sm:$0xff]  ;;  %v730_v21 = vld [vmem:[%s964_s2 + $0xd8] sm:$0xff]  ;;  %v729_v25 = vld [vmem:[%s964_s2 + $0xd0] sm:$0xff] }
   0x9   :  { %454 = vmatpush.bf16.msra.mxu3 %v733_v7  ;;  %v99_v19 = vld [vmem:[%s965_s1] sm:$0xff]  ;;  %v101_v26 = vld [vmem:[%s965_s1 + $0x10] sm:$0xff]  ;;  %v100_v27 = vld [vmem:[%s965_s1 + $0x8] sm:$0xff] }
   0xa   :  { %398 = vmatpush.bf16.msra.mxu0 %v708_v9  ;;  %105 = vperm.xlu0 %755, %v99_v19   ;;  %v704_v28 = vld [vmem:[%s964_s2 + $0x8] sm:$0xff]  ;;  %v703_v32 = vld [vmem:[%s964_s2] sm:$0xff]  ;;  %v695_v37 = vld [vmem:[%s966_s0 + $0x10] sm:$0xf0] }
   0xb   :  { %417 = vmatpush.bf16.msra.mxu1 %v716_v10  ;;  %115 = vperm.xlu1 %756, %v101_v26   ;;  %v712_v29 = vld [vmem:[%s964_s2 + $0x48] sm:$0xff]  ;;  %v711_v33 = vld [vmem:[%s964_s2 + $0x40] sm:$0xff]  ;;  %v511_v39 = vld [vmem:[%s966_s0 + $0x14] sm:$0xf0] }
   0xc   :  { %436 = vmatpush.bf16.msra.mxu2 %v724_v11  ;;  %v720_v30 = vld [vmem:[%s964_s2 + $0x88] sm:$0xff]  ;;  %v719_v34 = vld [vmem:[%s964_s2 + $0x80] sm:$0xff]  ;;  %v696_v41 = vld [vmem:[%s966_s0 + $0x18] sm:$0xf0] }
   0xd   :  { %455 = vmatpush.bf16.msra.mxu3 %v732_v12  ;;  %v728_v31 = vld [vmem:[%s964_s2 + $0xc8] sm:$0xff]  ;;  %v727_v35 = vld [vmem:[%s964_s2 + $0xc0] sm:$0xff]  ;;  %v738_v44 = vld [vmem:[%s964_s2 + $0x118] sm:$0xff] }
   0xe   :  { %399 = vmatpush.bf16.msra.mxu0 %v707_v13  ;;  %v509_v36 = vld [vmem:[%s966_s0] sm:$0xf]  ;;  %v693_v38 = vld [vmem:[%s966_s0 + $0x4] sm:$0xf]  ;;  %v517_v40 = vld [vmem:[%s966_s0 + $0x8] sm:$0xf] }
   0xf   :  { %418 = vmatpush.bf16.msra.mxu1 %v715_v14  ;;  %v694_v42 = vld [vmem:[%s966_s0 + $0xc] sm:$0xf]  ;;  %v519_v43 = vld [vmem:[%s966_s0 + $0x1c] sm:$0xf0]  ;;  %v510_v45 = vor.u32 %v695_v37, %v509_v36  ;;  %v514_v46 = vor.u32 %v693_v38, %v511_v39  ;;  %v518_v47 = vor.u32 %v696_v41, %v517_v40  ;;  %v737_v49 = vld [vmem:[%s964_s2 + $0x110] sm:$0xff] }
  0x10   :  { %437 = vmatpush.bf16.msra.mxu2 %v723_v15  ;;  %v522_v48 = vor.u32 %v694_v42, %v519_v43  ;;  %v102_v50 = vld [vmem:[%s965_s1 + $0x18] sm:$0xff]  ;;  %v736_v51 = vld [vmem:[%s964_s2 + $0x108] sm:$0xff]  ;;  %v735_v52 = vld [vmem:[%s964_s2 + $0x100] sm:$0xff] }
  0x11   :  { %456 = vmatpush.bf16.msra.mxu3 %v731_v16  ;;  %v529_v53 = vld [vmem:[%s966_s0 + $0x28] sm:$0xf]  ;;  %v700_v54 = vld [vmem:[%s966_s0 + $0x38] sm:$0xf0]  ;;  %v698_v55 = vld [vmem:[%s966_s0 + $0x2c] sm:$0xf] }
  0x12   :  { %400 = vmatpush.bf16.msra.mxu0 %v706_v17  ;;  %110 = vperm.xlu0 %755, %v100_v27   ;;  %v531_v56 = vld [vmem:[%s966_s0 + $0x3c] sm:$0xf0]  ;;  %v537_v57 = vld [vmem:[%s966_s0 + $0x30] sm:$0xf]  ;;  %v701_v58 = vld [vmem:[%s966_s0 + $0x40] sm:$0xf0]  ;;  %v530_v61 = vor.u32 %v700_v54, %v529_v53 }
  0x13   :  { %419 = vmatpush.bf16.msra.mxu1 %v714_v18  ;;  %120 = vperm.xlu1 %756, %v102_v50   ;;  %v699_v59 = vld [vmem:[%s966_s0 + $0x34] sm:$0xf]  ;;  %v539_v60 = vld [vmem:[%s966_s0 + $0x44] sm:$0xf0]  ;;  %v534_v62 = vor.u32 %v698_v55, %v531_v56  ;;  %v538_v63 = vor.u32 %v701_v58, %v537_v57  ;;  %v525_v1 = vld [vmem:[%s966_s0 + $0x10] sm:$0xf] }
  0x14   :  { %438 = vmatpush.bf16.msra.mxu2 %v722_v20  ;;  %v542_v0 = vor.u32 %v699_v59, %v539_v60  ;;  %v697_v2 = vld [vmem:[%s966_s0 + $0x20] sm:$0xf0]  ;;  %v545_v3 = vld [vmem:[%s966_s0 + $0x38] sm:$0xf]  ;;  %v702_v4 = vld [vmem:[%s966_s0 + $0x48] sm:$0xf0] }
  0x15   :  { %457 = vmatpush.bf16.msra.mxu3 %v730_v21  ;;  %v526_v5 = vor.u32 %v697_v2, %v525_v1  ;;  %v546_v6 = vor.u32 %v702_v4, %v545_v3 }
  0x16   :  { %401 = vmatpush.bf16.msra.mxu0 %v705_v22 }
  0x17   :  { %420 = vmatpush.bf16.msra.mxu1 %v713_v23 }
  0x18   :  { %439 = vmatpush.bf16.msra.mxu2 %v721_v24 }
  0x19   :  { %458 = vmatpush.bf16.msra.mxu3 %v729_v25 }
  0x1a   :  { %402 = vmatpush.bf16.msra.mxu0 %v704_v28 }
  0x1b   :  { %421 = vmatpush.bf16.msra.mxu1 %v712_v29 }
  0x1c   :  { %440 = vmatpush.bf16.msra.mxu2 %v720_v30 }
  0x1d   :  { %459 = vmatpush.bf16.msra.mxu3 %v728_v31 }
  0x1e   :  { %403 = vmatpush.bf16.msra.mxu0 %v703_v32 }
  0x1f   :  { %422 = vmatpush.bf16.msra.mxu1 %v711_v33 }
  0x20   :  { %441 = vmatpush.bf16.msra.mxu2 %v719_v34 }
  0x21   :  { %460 = vmatpush.bf16.msra.mxu3 %v727_v35  ;;  %404 = vmatmul.bf16.vlgmr.msra.gmra.mxu0 %v510_v45 }
  0x22   :  { %476 = vmatpush.bf16.msrb.mxu0 %v738_v44  ;;  %423 = vmatmul.bf16.vlgmr.msra.gmra.mxu1 %v514_v46 }
  0x23   :  { %750 = vmatpush.bf16.msrb.mxu1 %v738_v44  ;;  %442 = vmatmul.bf16.vlgmr.msra.gmra.mxu2 %v518_v47 }
  0x24   :  { %461 = vmatmul.bf16.vlgmr.msra.gmra.mxu3 %v522_v48 }
  0x26   :  { %477 = vmatpush.bf16.msrb.mxu0 %v737_v49 }
  0x27   :  { %751 = vmatpush.bf16.msrb.mxu1 %v737_v49 }
  0x2a   :  { %478 = vmatpush.bf16.msrb.mxu0 %v736_v51 }
  0x2b   :  { %752 = vmatpush.bf16.msrb.mxu1 %v736_v51 }
  0x2e   :  { %479 = vmatpush.bf16.msrb.mxu0 %v735_v52 }
  0x2f   :  { %753 = vmatpush.bf16.msrb.mxu1 %v735_v52 }
  0x31   :  { %409 = vmatmul.bf16.gmra.mxu0 %v530_v61 }
  0x32   :  { %428 = vmatmul.bf16.gmra.mxu1 %v534_v62 }
  0x33   :  { %447 = vmatmul.bf16.gmra.mxu2 %v538_v63 }
  0x34   :  { %466 = vmatmul.bf16.gmra.mxu3 %v542_v0 }
  0x41   :  { %691 = vmatmul.msk.bf16.vlgmr.msrb.gmra.mxu0 %vm389_vm0, %v526_v5 }
  0x42   :  { %692 = vmatmul.msk.bf16.vlgmr.msrb.gmra.mxu1 %vm389_vm0, %v546_v6 }
  0x7c   :  { %v106_v13 = vpop.permute.xlu0 %105 }
  0x7d   :  { %v116_v15 = vpop.permute.xlu1 %115 }
  0x84   :  { %v111_v22 = vpop.permute.xlu0 %110 }
  0x85   :  { %v121_v23 = vpop.permute.xlu1 %120 }
  0x9e   :  { %v405_v7 = vpop.f32.mrf.mxu0 }
  0x9f   :  { %v424_v8 = vpop.f32.mrf.mxu1  ;;  %v406_v24 = vadd.f32 %v405_v7, %v106_v13 }
  0xa1   :  { %v425_v29 = vadd.f32 %v424_v8, %v406_v24 }
  0xa6   :  { %v443_v9 = vpop.f32.mrf.mxu2  ;;  %v407_v11 = vpop.f32.mrf.mxu0 }
  0xa7   :  { %v462_v10 = vpop.f32.mrf.mxu3  ;;  %v426_v12 = vpop.f32.mrf.mxu1  ;;  %v408_v27 = vadd.f32 %v407_v11, %v111_v22  ;;  %v444_v34 = vadd.f32 %v443_v9, %v425_v29 }
  0xa9   :  { %v427_v35 = vadd.f32 %v426_v12, %v408_v27  ;;  %v463_v40 = vadd.f32 %v462_v10, %v444_v34 }
  0xae   :  { %v445_v14 = vpop.f32.mrf.mxu2  ;;  %v410_v16 = vpop.f32.mrf.mxu0 }
  0xaf   :  { %v429_v17 = vpop.f32.mrf.mxu1  ;;  %v464_v18 = vpop.f32.mrf.mxu3  ;;  %v411_v25 = vadd.f32 %v410_v16, %v116_v15  ;;  %v446_v38 = vadd.f32 %v445_v14, %v427_v35 }
  0xb1   :  { %v430_v30 = vadd.f32 %v429_v17, %v411_v25  ;;  %v465_v43 = vadd.f32 %v464_v18, %v446_v38 }
  0xb6   :  { %v448_v19 = vpop.f32.mrf.mxu2  ;;  %v412_v20 = vpop.f32.mrf.mxu0 }
  0xb7   :  { %v431_v21 = vpop.f32.mrf.mxu1  ;;  %v467_v26 = vpop.f32.mrf.mxu3  ;;  %v413_v28 = vadd.f32 %v412_v20, %v121_v23  ;;  %v449_v36 = vadd.f32 %v448_v19, %v430_v30 }
  0xb9   :  { %v432_v37 = vadd.f32 %v431_v21, %v413_v28  ;;  %v468_v41 = vadd.f32 %v467_v26, %v449_v36 }
  0xbe   :  { %v450_v31 = vpop.f32.mrf.mxu2  ;;  %v481_v32 = vpop.f32.mrf.mxu0 }
  0xbf   :  { %v486_v33 = vpop.f32.mrf.mxu1  ;;  %v451_v39 = vadd.f32 %v450_v31, %v432_v37  ;;  %v469_v42 = vpop.f32.mrf.mxu3  ;;  %v482_v45 = vadd.f32 %v481_v32, %v463_v40 }
  0xc0   :  { %v487_v46 = vadd.f32 %v486_v33, %v468_v41 }
  0xc1   :  { %v470_v44 = vadd.f32 %v469_v42, %v451_v39  ;;  %v491_v51 = vmax.f32 %v482_v45, 0.0 }
  0xc2   :  { %v493_v52 = vmax.f32 %v487_v46, 0.0 }
  0xc6   :  { %v483_v47 = vpop.f32.mrf.mxu0 }
  0xc7   :  { %v488_v48 = vpop.f32.mrf.mxu1  ;;  %v484_v49 = vadd.f32 %v483_v47, %v465_v43 }
  0xc8   :  { %v489_v50 = vadd.f32 %v488_v48, %v470_v44 }
  0xc9   :  { %v492_v53 = vmax.f32 %v484_v49, 0.0 }
  0xca   :  { %v494_v54 = vmax.f32 %v489_v50, 0.0 }
  0xcb   :  { %v742_v55 = vpack.c.bf16 %v492_v53, %v491_v51 }
  0xcc   :  { %v747_v56 = vpack.c.bf16 %v494_v54, %v493_v52 }
  0xcd   :  { %743 = vst [vmem:[%s967_s3] sm:$0xff] %v742_v55  }
  0xce   :  { %749 = vst [vmem:[%s967_s3 + $0x8] sm:$0xff] %v747_v56  }

// kernel: conv_autoencoder_forward.21
= control target key start
LH: loop header
LB: loop body
LE: loop exit
PB: predicated region body
PF: predicated region fallthrough
CT: control target
= control target key end

     0   :  { %s881_s12 = smov 0   ;;  %s883_s13 = smov 0   ;;  %s1065_s0 = inlined_call_operand.vmem [shape: bf16[16,288], index: 0, kind: input, shape index: {}]   ;;  %s1066_s1 = inlined_call_operand.vmem [shape: f32[16,1], index: 1, kind: input, shape index: {}]   ;;  %s1067_s2 = inlined_call_operand.vmem [shape: bf16[288,256], index: 2, kind: input, shape index: {}]   ;;  %s1068_s3 = inlined_call_operand.vmem [shape: bf16[16,256], index: 3, kind: output, shape index: {}]  }
   0x1   :  { %s885_s14 = smov 0  }
   0x2 LB: > { %s686_s15 = sadd.s32 4294967295, %s858_s14   ;;  %s898_s16 = sadd.s32 1, %s858_s14   ;;  %s858_s14 = sphi %s885_s14, %s1072_s14   ;;  %s854_s13 = sphi %s883_s13, %s1071_s13   ;;  %s850_s12 = sphi %s881_s12, %s1070_s12  }
   0x3   : > { %s59_s17 = ssub.s32 %s858_s14, %s898_s16  ;;  %s62_s18 = sadd.s32 1, %s854_s13 }
   0x4   : > { %p60_p0 = scmp.eq.s32.totalorder %s59_s17, 0  ;;  %p69_p1 = scmp.ne.s32.totalorder %s854_s13, %s850_s12 }
   0x5   : > { %p70_p2 = scmp.eq.s32.totalorder %s858_s14, 0  ;;  %p99_p3 = scmp.eq.s32.totalorder %s686_s15, 1 }
   0x6   : > { %s909_s19 = scalar_select %p60_p0, %s854_s13, %s62_s18  }
   0x7   : > { %p71_p4 = por %p70_p2, %p69_p1  ;;  %p911_p5 = por %p99_p3, %p69_p1 }
   0x8   : > { %p689_p6 = scmp.ge.s32.totalorder %s858_s14, 2 }
   0xa   : > { %127 = sbr.rel (%p689_p6) target bundleno = 56 (0x38), region = 24 }
   0xf   : > { %130 = sbr.rel (!%p71_p4) target bundleno = 56 (0x38), region = 28  ;;  %s132_s21 = sand.u32 (%p71_p4), 1, %s854_s13  }
  0x10   : > { %s690_s22 = sshll.u32 (%p71_p4), %s858_s14, 2  ;;  %s808_s23 = smul.u32 (%p71_p4), 144, %s132_s21 }
  0x11   : > { %s921_s26 = scalar_lea.vmem (%p71_p4), %s1067_s2, %s690_s22 }
  0x12   : > { %v153_v0 = vld [vmem:[%s921_s26] sm:$0xf] (%p71_p4)  ;;  %v155_v1 = vld [vmem:[%s921_s26 + $0x8] sm:$0xf] (%p71_p4)  ;;  %v157_v2 = vld [vmem:[%s921_s26 + $0x10] sm:$0xf] (%p71_p4) }
  0x13   : > { %s926_s27 = scalar_lea.vmem (%p71_p4), [#allocation2], %s808_s23  ;;  %v159_v3 = vld [vmem:[%s921_s26 + $0x18] sm:$0xf] (%p71_p4)  ;;  %v161_v4 = vld [vmem:[%s921_s26 + $0x20] sm:$0xf] (%p71_p4) }
  0x14   : > { %154 = vst [vmem:[%s926_s27] sm:$0xf] %v153_v0  ;;  %v163_v5 = vld [vmem:[%s921_s26 + $0x28] sm:$0xf]  ;;  %v165_v6 = vld [vmem:[%s921_s26 + $0x30] sm:$0xf] }
  0x15   : > { %156 = vst [vmem:[%s926_s27 + $0x4] sm:$0xf] %v155_v1  ;;  %v167_v7 = vld [vmem:[%s921_s26 + $0x38] sm:$0xf]  ;;  %v169_v8 = vld [vmem:[%s921_s26 + $0x40] sm:$0xf] }
  0x16   : > { %158 = vst [vmem:[%s926_s27 + $0x8] sm:$0xf] %v157_v2  ;;  %v171_v9 = vld [vmem:[%s921_s26 + $0x48] sm:$0xf]  ;;  %v173_v10 = vld [vmem:[%s921_s26 + $0x50] sm:$0xf] }
  0x17   : > { %160 = vst [vmem:[%s926_s27 + $0xc] sm:$0xf] %v159_v3  ;;  %v175_v11 = vld [vmem:[%s921_s26 + $0x58] sm:$0xf]  ;;  %v177_v12 = vld [vmem:[%s921_s26 + $0x60] sm:$0xf] }
  0x18   : > { %162 = vst [vmem:[%s926_s27 + $0x10] sm:$0xf] %v161_v4  ;;  %v179_v13 = vld [vmem:[%s921_s26 + $0x68] sm:$0xf]  ;;  %v181_v14 = vld [vmem:[%s921_s26 + $0x70] sm:$0xf] }
  0x19   : > { %164 = vst [vmem:[%s926_s27 + $0x14] sm:$0xf] %v163_v5  ;;  %v183_v15 = vld [vmem:[%s921_s26 + $0x78] sm:$0xf]  ;;  %v185_v16 = vld [vmem:[%s921_s26 + $0x80] sm:$0xf] }
  0x1a   : > { %166 = vst [vmem:[%s926_s27 + $0x18] sm:$0xf] %v165_v6  ;;  %v187_v17 = vld [vmem:[%s921_s26 + $0x88] sm:$0xf]  ;;  %v189_v18 = vld [vmem:[%s921_s26 + $0x90] sm:$0xf] }
  0x1b   : > { %168 = vst [vmem:[%s926_s27 + $0x1c] sm:$0xf] %v167_v7  ;;  %v191_v19 = vld [vmem:[%s921_s26 + $0x98] sm:$0xf]  ;;  %v193_v20 = vld [vmem:[%s921_s26 + $0xa0] sm:$0xf] }
  0x1c   : > { %170 = vst [vmem:[%s926_s27 + $0x20] sm:$0xf] %v169_v8  ;;  %v195_v21 = vld [vmem:[%s921_s26 + $0xa8] sm:$0xf]  ;;  %v197_v22 = vld [vmem:[%s921_s26 + $0xb0] sm:$0xf] }
  0x1d   : > { %172 = vst [vmem:[%s926_s27 + $0x24] sm:$0xf] %v171_v9  ;;  %v199_v23 = vld [vmem:[%s921_s26 + $0xb8] sm:$0xf]  ;;  %v201_v24 = vld [vmem:[%s921_s26 + $0xc0] sm:$0xf] }
  0x1e   : > { %174 = vst [vmem:[%s926_s27 + $0x28] sm:$0xf] %v173_v10  ;;  %v203_v25 = vld [vmem:[%s921_s26 + $0xc8] sm:$0xf]  ;;  %v205_v26 = vld [vmem:[%s921_s26 + $0xd0] sm:$0xf] }
  0x1f   : > { %176 = vst [vmem:[%s926_s27 + $0x2c] sm:$0xf] %v175_v11  ;;  %v207_v27 = vld [vmem:[%s921_s26 + $0xd8] sm:$0xf]  ;;  %v209_v28 = vld [vmem:[%s921_s26 + $0xe0] sm:$0xf] }
  0x20   : > { %178 = vst [vmem:[%s926_s27 + $0x30] sm:$0xf] %v177_v12  ;;  %v211_v29 = vld [vmem:[%s921_s26 + $0xe8] sm:$0xf]  ;;  %v213_v30 = vld [vmem:[%s921_s26 + $0xf0] sm:$0xf] }
  0x21   : > { %180 = vst [vmem:[%s926_s27 + $0x34] sm:$0xf] %v179_v13  ;;  %v215_v31 = vld [vmem:[%s921_s26 + $0xf8] sm:$0xf]  ;;  %v217_v32 = vld [vmem:[%s921_s26 + $0x100] sm:$0xf] }
  0x22   : > { %182 = vst [vmem:[%s926_s27 + $0x38] sm:$0xf] %v181_v14  ;;  %v219_v33 = vld [vmem:[%s921_s26 + $0x108] sm:$0xf]  ;;  %v221_v34 = vld [vmem:[%s921_s26 + $0x110] sm:$0xf] }
  0x23   : > { %184 = vst [vmem:[%s926_s27 + $0x3c] sm:$0xf] %v183_v15  ;;  %v223_v35 = vld [vmem:[%s921_s26 + $0x118] sm:$0xf] }
  0x24   : > { %186 = vst [vmem:[%s926_s27 + $0x40] sm:$0xf] %v185_v16 }
  0x25   : > { %188 = vst [vmem:[%s926_s27 + $0x44] sm:$0xf] %v187_v17 }
  0x26   : > { %190 = vst [vmem:[%s926_s27 + $0x48] sm:$0xf] %v189_v18 }
  0x27   : > { %192 = vst [vmem:[%s926_s27 + $0x4c] sm:$0xf] %v191_v19 }
  0x28   : > { %194 = vst [vmem:[%s926_s27 + $0x50] sm:$0xf] %v193_v20 }
  0x29   : > { %196 = vst [vmem:[%s926_s27 + $0x54] sm:$0xf] %v195_v21 }
  0x2a   : > { %198 = vst [vmem:[%s926_s27 + $0x58] sm:$0xf] %v197_v22 }
  0x2b   : > { %200 = vst [vmem:[%s926_s27 + $0x5c] sm:$0xf] %v199_v23 }
  0x2c   : > { %202 = vst [vmem:[%s926_s27 + $0x60] sm:$0xf] %v201_v24 }
  0x2d   : > { %204 = vst [vmem:[%s926_s27 + $0x64] sm:$0xf] %v203_v25 }
  0x2e   : > { %206 = vst [vmem:[%s926_s27 + $0x68] sm:$0xf] %v205_v26 }
  0x2f   : > { %208 = vst [vmem:[%s926_s27 + $0x6c] sm:$0xf] %v207_v27 }
  0x30   : > { %210 = vst [vmem:[%s926_s27 + $0x70] sm:$0xf] %v209_v28 }
  0x31   : > { %212 = vst [vmem:[%s926_s27 + $0x74] sm:$0xf] %v211_v29 }
  0x32   : > { %214 = vst [vmem:[%s926_s27 + $0x78] sm:$0xf] %v213_v30 }
  0x33   : > { %216 = vst [vmem:[%s926_s27 + $0x7c] sm:$0xf] %v215_v31 }
  0x34   : > { %218 = vst [vmem:[%s926_s27 + $0x80] sm:$0xf] %v217_v32 }
  0x35   : > { %220 = vst [vmem:[%s926_s27 + $0x84] sm:$0xf] %v219_v33 }
  0x36   : > { %222 = vst [vmem:[%s926_s27 + $0x88] sm:$0xf] %v221_v34 }
  0x37   : > { %224 = vst [vmem:[%s926_s27 + $0x8c] sm:$0xf] %v223_v35 }
  0x38 PF: > { %p691_p7 = scmp.ge.s32.totalorder %s858_s14, 1  ;;  %p319_p8 = scmp.lt.s32.totalorder %s858_s14, 3 }
  0x3a   : > { %p320_p9 = pnand %p691_p7, %p319_p8 }
  0x3b   : > { %s326_s28 = sand.u32 (!%p320_p9), 1, %s850_s12  }
  0x3c   : > { %323 = sbr.rel (%p320_p9) target bundleno = 251 (0xfb), region = 69  ;;  %s692_s27 = sshll.u32 (!%p320_p9), %s326_s28, 3 }
  0x3d   : > { %s809_s29 = smul.u32 (!%p320_p9), 144, %s326_s28 }
  0x3f   : > { %s1002_s30 = scalar_lea.vmem (!%p320_p9), [#allocation2], %s809_s29  ;;  %s347_s29 = scalar_lea.vmem (!%p320_p9), [#allocation3], %s692_s27 }
  0x41   : > { %v792_v36 = vld [vmem:[%s1002_s30 + $0x38] sm:$0xff]  ;;  %v791_v38 = vld [vmem:[%s1002_s30 + $0x30] sm:$0xff]  ;;  %v802_v40 = vld [vmem:[%s1002_s30 + $0x88] sm:$0xff]  ;;  %v860_v41 = vmov 0   ;;  %vm524_vm0 = vcmask 261120  }
  0x42   : > { %v800_v37 = vld [vmem:[%s1002_s30 + $0x78] sm:$0xff]  ;;  %528 = vmatpush.bf16.msra.mxu0 %v792_v36  ;;  %v799_v39 = vld [vmem:[%s1002_s30 + $0x70] sm:$0xff]  ;;  %835 = vset.pattern.permute.xlu0 %v860_v41  ;;  %v801_v42 = vld [vmem:[%s1002_s30 + $0x80] sm:$0xff] }
  0x43   : > { %542 = vmatpush.bf16.msra.mxu1 %v800_v37  ;;  %562 = vmatpush.bf16.msra.mxu2 %v802_v40  ;;  %v703_v43 = vld [vmem:[%s1065_s0 + $0x8] sm:$0xf]  ;;  %v784_v44 = vld [vmem:[%s1065_s0 + $0x10] sm:$0xf0]  ;;  %v389_v47 = vld [vmem:[%s1066_s1] sm:$0xff] }
  0x44   : > { %v790_v45 = vld [vmem:[%s1002_s30 + $0x28] sm:$0xff]  ;;  %v704_v48 = vor.u32 %v784_v44, %v703_v43  ;;  %393 = vperm.xlu0 %835, %v389_v47   ;;  %v789_v49 = vld [vmem:[%s1002_s30 + $0x20] sm:$0xff]  ;;  %v788_v52 = vld [vmem:[%s1002_s30 + $0x18] sm:$0xff] }
  0x45   : > { %v798_v46 = vld [vmem:[%s1002_s30 + $0x68] sm:$0xff]  ;;  %v797_v50 = vld [vmem:[%s1002_s30 + $0x60] sm:$0xff]  ;;  %v796_v53 = vld [vmem:[%s1002_s30 + $0x58] sm:$0xff] }
  0x46   : > { %529 = vmatpush.bf16.msra.mxu0 %v791_v38  ;;  %v390_v51 = vld [vmem:[%s1066_s1 + $0x8] sm:$0xff]  ;;  %v787_v54 = vld [vmem:[%s1002_s30 + $0x10] sm:$0xff]  ;;  %v785_v61 = vld [vmem:[%s1002_s30] sm:$0xff] }
  0x47   : > { %543 = vmatpush.bf16.msra.mxu1 %v799_v39  ;;  %563 = vmatpush.bf16.msra.mxu2 %v801_v42  ;;  %v795_v55 = vld [vmem:[%s1002_s30 + $0x50] sm:$0xff]  ;;  %v786_v56 = vld [vmem:[%s1002_s30 + $0x8] sm:$0xff]  ;;  %v793_v62 = vld [vmem:[%s1002_s30 + $0x40] sm:$0xff] }
  0x48   : > { %v794_v57 = vld [vmem:[%s1002_s30 + $0x48] sm:$0xff]  ;;  %v695_v58 = vld [vmem:[%s1065_s0] sm:$0xf]  ;;  %v782_v60 = vld [vmem:[%s1065_s0 + $0x4] sm:$0xf]  ;;  %s779_s30 = sshll.u32 (%p911_p5), %s686_s15, 2 }
  0x49   : > { %v783_v59 = vld [vmem:[%s1065_s0 + $0x8] sm:$0xf0]  ;;  %v697_v63 = vld [vmem:[%s1065_s0 + $0xc] sm:$0xf0]  ;;  %s584_s6 = scalar_lea.vmem (%p911_p5), %s1068_s3, %s779_s30 }
  0x4a   : > { %530 = vmatpush.bf16.msra.mxu0 %v790_v45  ;;  %777 = vmatmul.msk.bf16.vlgmr.msra.gmra.mxu2 %vm524_vm0, %v704_v48  ;;  %v696_v0 = vor.u32 %v783_v59, %v695_v58  ;;  %v700_v1 = vor.u32 %v782_v60, %v697_v63 }
  0x4b   : > { %544 = vmatpush.bf16.msra.mxu1 %v798_v46 }
  0x4c   : > { %398 = vperm.xlu0 %835, %v390_v51  }
  0x4e   : > { %531 = vmatpush.bf16.msra.mxu0 %v789_v49 }
  0x4f   : > { %545 = vmatpush.bf16.msra.mxu1 %v797_v50 }
  0x52   : > { %532 = vmatpush.bf16.msra.mxu0 %v788_v52 }
  0x53   : > { %546 = vmatpush.bf16.msra.mxu1 %v796_v53 }
  0x56   : > { %533 = vmatpush.bf16.msra.mxu0 %v787_v54 }
  0x57   : > { %547 = vmatpush.bf16.msra.mxu1 %v795_v55 }
  0x5a   : > { %534 = vmatpush.bf16.msra.mxu0 %v786_v56 }
  0x5b   : > { %548 = vmatpush.bf16.msra.mxu1 %v794_v57 }
  0x5e   : > { %535 = vmatpush.bf16.msra.mxu0 %v785_v61 }
  0x5f   : > { %549 = vmatpush.bf16.msra.mxu1 %v793_v62 }
  0x61   : > { %536 = vmatmul.bf16.vlgmr.msra.gmra.mxu0 %v696_v0 }
  0x62   : > { %550 = vmatmul.bf16.vlgmr.msra.gmra.mxu1 %v700_v1 }
  0xb6   : > { %v394_v2 = vpop.permute.xlu0 %393 }
  0xbe   : > { %v399_v8 = vpop.permute.xlu0 %398 }
  0xcd   : > { %v565_v5 = vpop.f32.mrf.mxu2 }
  0xd5   : > { %v567_v14 = vpop.f32.mrf.mxu2 }
  0xde   : > { %v537_v3 = vpop.f32.mrf.mxu0 }
  0xdf   : > { %v551_v4 = vpop.f32.mrf.mxu1  ;;  %v538_v6 = vadd.f32 %v537_v3, %v394_v2 }
  0xe1   : > { %v552_v7 = vadd.f32 %v551_v4, %v538_v6 }
  0xe3   : > { %v566_v12 = vadd.f32 %v565_v5, %v552_v7 }
  0xe5   : > { %v570_v16 = vmax.f32 %v566_v12, 0.0 }
  0xe6   : > { %v539_v9 = vpop.f32.mrf.mxu0 }
  0xe7   : > { %v540_v10 = vadd.f32 %v539_v9, %v399_v8  ;;  %v553_v11 = vpop.f32.mrf.mxu1 }
  0xe9   : > { %v554_v13 = vadd.f32 %v553_v11, %v540_v10 }
  0xeb   : > { %v568_v15 = vadd.f32 %v567_v14, %v554_v13 }
  0xed   : > { %v571_v17 = vmax.f32 %v568_v15, 0.0  ;;  %582 = sbr.rel (!%p911_p5) target bundleno = 251 (0xfb), region = 77 }
  0xef   : > { %v806_v18 = vpack.c.bf16 %v571_v17, %v570_v16 }
  0xf1   : > { %807 = vst [vmem:[%s347_s29] sm:$0xff] %v806_v18  }
  0xf8   : > { %v601_v19 = vld [vmem:[%s347_s29] sm:$0xf]  ;;  %v603_v20 = vld [vmem:[%s347_s29 + $0x4] sm:$0xf] }
  0xf9   : > { %602 = vst [vmem:[%s584_s6] sm:$0xf] %v601_v19 }
  0xfa   : > { %604 = vst [vmem:[%s584_s6 + $0x8] sm:$0xf] %v603_v20 }
  0xfb PF: > { %p10_p10 = scmp.ge.s32.totalorder %s898_s16, 4   ;;  %s1070_s12 = smov %s854_s13 }
  0xfc   : > { %s1071_s13 = smov %s909_s19  ;;  %s1072_s14 = smov %s898_s16 }
  0xfd   :  { %12 = sbr.rel (!%p10_p10) target bundleno = 2 (0x2), region = 149 }

// kernel: conv_autoencoder_forward.22
= control target key start
LH: loop header
LB: loop body
LE: loop exit
PB: predicated region body
PF: predicated region fallthrough
CT: control target
= control target key end

     0   :  { %s879_s12 = smov 0   ;;  %s881_s13 = smov 0   ;;  %s1081_s0 = inlined_call_operand.vmem [shape: bf16[8,144], index: 0, kind: input, shape index: {}]   ;;  %s1082_s1 = inlined_call_operand.vmem [shape: f32[8,1], index: 1, kind: input, shape index: {}]   ;;  %s1083_s2 = inlined_call_operand.vmem [shape: bf16[144,768], index: 2, kind: input, shape index: {}]   ;;  %s1084_s3 = inlined_call_operand.vmem [shape: bf16[8,768], index: 3, kind: output, shape index: {}]  }
   0x1   :  { %s883_s14 = smov 0  }
   0x2 LB: > { %s622_s15 = sadd.s32 4294967295, %s856_s14   ;;  %s896_s16 = sadd.s32 1, %s856_s14   ;;  %s856_s14 = sphi %s883_s14, %s1087_s14   ;;  %s852_s13 = sphi %s881_s13, %s1086_s13   ;;  %s848_s12 = sphi %s879_s12, %s1085_s12  }
   0x3   : > { %s59_s17 = ssub.s32 %s856_s14, %s896_s16  ;;  %s62_s18 = sadd.s32 1, %s852_s13 }
   0x4   : > { %p60_p0 = scmp.eq.s32.totalorder %s59_s17, 0  ;;  %p69_p1 = scmp.ne.s32.totalorder %s852_s13, %s848_s12 }
   0x5   : > { %p70_p2 = scmp.eq.s32.totalorder %s856_s14, 0  ;;  %p625_p4 = scmp.ge.s32.totalorder %s856_s14, 2 }
   0x6   : > { %s905_s19 = scalar_select %p60_p0, %s852_s13, %s62_s18  }
   0x7   : > { %p71_p3 = por %p70_p2, %p69_p1  ;;  %127 = sbr.rel (%p625_p4) target bundleno = 53 (0x35), region = 24 }
   0xc   : > { %130 = sbr.rel (!%p71_p3) target bundleno = 53 (0x35), region = 28  ;;  %s132_s20 = sand.u32 (%p71_p3), 1, %s852_s13  }
   0xd   : > { %s778_s21 = smul.u32 (%p71_p3), 12, %s856_s14 }
   0xe   : > { %s806_s22 = smul.u32 (%p71_p3), 216, %s132_s20 }
   0xf   : > { %s913_s25 = scalar_lea.vmem (%p71_p3), %s1083_s2, %s778_s21 }
  0x10   : > { %v152_v0 = vld [vmem:[%s913_s25] sm:$0xff] (%p71_p3)  ;;  %v154_v1 = vld [vmem:[%s913_s25 + $0x18] sm:$0xff] (%p71_p3)  ;;  %v156_v2 = vld [vmem:[%s913_s25 + $0x30] sm:$0xff] (%p71_p3)  ;;  %s918_s26 = scalar_lea.vmem (%p71_p3), [#allocation2], %s806_s22 }
  0x11   : > { %153 = vst [vmem:[%s918_s26] sm:$0xff] %v152_v0  ;;  %v158_v3 = vld [vmem:[%s913_s25 + $0x48] sm:$0xff]  ;;  %v160_v4 = vld [vmem:[%s913_s25 + $0x60] sm:$0xff]  ;;  %v162_v5 = vld [vmem:[%s913_s25 + $0x78] sm:$0xff] }
  0x12   : > { %155 = vst [vmem:[%s918_s26 + $0xc] sm:$0xff] %v154_v1  ;;  %v164_v6 = vld [vmem:[%s913_s25 + $0x90] sm:$0xff]  ;;  %v166_v7 = vld [vmem:[%s913_s25 + $0xa8] sm:$0xff]  ;;  %v168_v8 = vld [vmem:[%s913_s25 + $0xc0] sm:$0xff] }
  0x13   : > { %157 = vst [vmem:[%s918_s26 + $0x18] sm:$0xff] %v156_v2  ;;  %v170_v9 = vld [vmem:[%s913_s25 + $0xd8] sm:$0xff]  ;;  %v172_v10 = vld [vmem:[%s913_s25 + $0xf0] sm:$0xff]  ;;  %v174_v11 = vld [vmem:[%s913_s25 + $0x108] sm:$0xff] }
  0x14   : > { %159 = vst [vmem:[%s918_s26 + $0x24] sm:$0xff] %v158_v3  ;;  %v176_v12 = vld [vmem:[%s913_s25 + $0x120] sm:$0xff]  ;;  %v178_v13 = vld [vmem:[%s913_s25 + $0x138] sm:$0xff]  ;;  %v180_v14 = vld [vmem:[%s913_s25 + $0x150] sm:$0xff] }
  0x15   : > { %161 = vst [vmem:[%s918_s26 + $0x30] sm:$0xff] %v160_v4  ;;  %v182_v15 = vld [vmem:[%s913_s25 + $0x168] sm:$0xff]  ;;  %v184_v16 = vld [vmem:[%s913_s25 + $0x180] sm:$0xff]  ;;  %v186_v17 = vld [vmem:[%s913_s25 + $0x198] sm:$0xff] }
  0x16   : > { %163 = vst [vmem:[%s918_s26 + $0x3c] sm:$0xff] %v162_v5  ;;  %v627_v18 = vld [vmem:[%s913_s25 + $0x8] sm:$0xf]  ;;  %v629_v19 = vld [vmem:[%s913_s25 + $0x20] sm:$0xf] }
  0x17   : > { %165 = vst [vmem:[%s918_s26 + $0x48] sm:$0xff] %v164_v6  ;;  %v631_v20 = vld [vmem:[%s913_s25 + $0x38] sm:$0xf]  ;;  %v633_v21 = vld [vmem:[%s913_s25 + $0x50] sm:$0xf] }
  0x18   : > { %167 = vst [vmem:[%s918_s26 + $0x54] sm:$0xff] %v166_v7  ;;  %v635_v22 = vld [vmem:[%s913_s25 + $0x68] sm:$0xf]  ;;  %v637_v23 = vld [vmem:[%s913_s25 + $0x80] sm:$0xf] }
  0x19   : > { %169 = vst [vmem:[%s918_s26 + $0x60] sm:$0xff] %v168_v8  ;;  %v639_v24 = vld [vmem:[%s913_s25 + $0x98] sm:$0xf]  ;;  %v641_v25 = vld [vmem:[%s913_s25 + $0xb0] sm:$0xf] }
  0x1a   : > { %171 = vst [vmem:[%s918_s26 + $0x6c] sm:$0xff] %v170_v9  ;;  %v643_v26 = vld [vmem:[%s913_s25 + $0xc8] sm:$0xf]  ;;  %v645_v27 = vld [vmem:[%s913_s25 + $0xe0] sm:$0xf] }
  0x1b   : > { %173 = vst [vmem:[%s918_s26 + $0x78] sm:$0xff] %v172_v10  ;;  %v647_v28 = vld [vmem:[%s913_s25 + $0xf8] sm:$0xf]  ;;  %v649_v29 = vld [vmem:[%s913_s25 + $0x110] sm:$0xf] }
  0x1c   : > { %175 = vst [vmem:[%s918_s26 + $0x84] sm:$0xff] %v174_v11  ;;  %v651_v30 = vld [vmem:[%s913_s25 + $0x128] sm:$0xf]  ;;  %v653_v31 = vld [vmem:[%s913_s25 + $0x140] sm:$0xf] }
  0x1d   : > { %177 = vst [vmem:[%s918_s26 + $0x90] sm:$0xff] %v176_v12  ;;  %v655_v32 = vld [vmem:[%s913_s25 + $0x158] sm:$0xf]  ;;  %v657_v33 = vld [vmem:[%s913_s25 + $0x170] sm:$0xf] }
  0x1e   : > { %179 = vst [vmem:[%s918_s26 + $0x9c] sm:$0xff] %v178_v13  ;;  %v659_v34 = vld [vmem:[%s913_s25 + $0x188] sm:$0xf]  ;;  %v661_v35 = vld [vmem:[%s913_s25 + $0x1a0] sm:$0xf] }
  0x1f   : > { %181 = vst [vmem:[%s918_s26 + $0xa8] sm:$0xff] %v180_v14 }
  0x20   : > { %183 = vst [vmem:[%s918_s26 + $0xb4] sm:$0xff] %v182_v15 }
  0x21   : > { %185 = vst [vmem:[%s918_s26 + $0xc0] sm:$0xff] %v184_v16 }
  0x22   : > { %187 = vst [vmem:[%s918_s26 + $0xcc] sm:$0xff] %v186_v17 }
  0x23   : > { %628 = vst [vmem:[%s918_s26 + $0x8] sm:$0xf] %v627_v18 }
  0x24   : > { %630 = vst [vmem:[%s918_s26 + $0x14] sm:$0xf] %v629_v19 }
  0x25   : > { %632 = vst [vmem:[%s918_s26 + $0x20] sm:$0xf] %v631_v20 }
  0x26   : > { %634 = vst [vmem:[%s918_s26 + $0x2c] sm:$0xf] %v633_v21 }
  0x27   : > { %636 = vst [vmem:[%s918_s26 + $0x38] sm:$0xf] %v635_v22 }
  0x28   : > { %638 = vst [vmem:[%s918_s26 + $0x44] sm:$0xf] %v637_v23 }
  0x29   : > { %640 = vst [vmem:[%s918_s26 + $0x50] sm:$0xf] %v639_v24 }
  0x2a   : > { %642 = vst [vmem:[%s918_s26 + $0x5c] sm:$0xf] %v641_v25 }
  0x2b   : > { %644 = vst [vmem:[%s918_s26 + $0x68] sm:$0xf] %v643_v26 }
  0x2c   : > { %646 = vst [vmem:[%s918_s26 + $0x74] sm:$0xf] %v645_v27 }
  0x2d   : > { %648 = vst [vmem:[%s918_s26 + $0x80] sm:$0xf] %v647_v28 }
  0x2e   : > { %650 = vst [vmem:[%s918_s26 + $0x8c] sm:$0xf] %v649_v29 }
  0x2f   : > { %652 = vst [vmem:[%s918_s26 + $0x98] sm:$0xf] %v651_v30 }
  0x30   : > { %654 = vst [vmem:[%s918_s26 + $0xa4] sm:$0xf] %v653_v31 }
  0x31   : > { %656 = vst [vmem:[%s918_s26 + $0xb0] sm:$0xf] %v655_v32 }
  0x32   : > { %658 = vst [vmem:[%s918_s26 + $0xbc] sm:$0xf] %v657_v33 }
  0x33   : > { %660 = vst [vmem:[%s918_s26 + $0xc8] sm:$0xf] %v659_v34 }
  0x34   : > { %662 = vst [vmem:[%s918_s26 + $0xd4] sm:$0xf] %v661_v35 }
  0x35 PF: > { %p663_p5 = scmp.ge.s32.totalorder %s856_s14, 1  ;;  %p236_p6 = scmp.lt.s32.totalorder %s856_s14, 3 }
  0x37   : > { %p237_p7 = pnand %p663_p5, %p236_p6 }
  0x38   : > { %s243_s27 = sand.u32 (!%p237_p7), 1, %s848_s12   ;;  %s267_s7 = smul.u32 (!%p237_p7), 3, %s622_s15 }
  0x39   : > { %240 = sbr.rel (%p237_p7) target bundleno = 239 (0xef), region = 54 }
  0x3a   : > { %s807_s28 = smul.u32 (!%p237_p7), 216, %s243_s27  ;;  %p268_p8 = scmp.lt.s32.totalorder (!%p237_p7), %s267_s7, 5 }
  0x3c   : > { %s997_s4 = scalar_lea.vmem (!%p237_p7), [#allocation2], %s807_s28 }
  0x3e   : > { %v995_v36 = vld [vmem:[%s1081_s0] sm:$0xff]  ;;  %v801_v38 = vld [vmem:[%s997_s4 + $0xb0] sm:$0xf0]  ;;  %v753_v43 = vld [vmem:[%s997_s4 + $0xb4] sm:$0xf0]  ;;  %vm467_vm0 = vcmask 130048  }
  0x3f   : > { %v751_v37 = vld [vmem:[%s997_s4 + $0xa8] sm:$0xf]  ;;  %v763_v39 = vld [vmem:[%s997_s4 + $0xc0] sm:$0xf]  ;;  %v804_v41 = vld [vmem:[%s997_s4 + $0xc8] sm:$0xf0]  ;;  %v319_v49 = vunpack.c.h.b16 %v995_v36 }
  0x40   : > { %v752_v40 = vor.u32 %v801_v38, %v751_v37  ;;  %v800_v42 = vld [vmem:[%s997_s4 + $0xac] sm:$0xf]  ;;  %v764_v44 = vor.u32 %v804_v41, %v763_v39  ;;  %v759_v46 = vld [vmem:[%s997_s4 + $0xb0] sm:$0xf]  ;;  %v802_v47 = vld [vmem:[%s997_s4 + $0xb8] sm:$0xf0] }
  0x41   : > { %v756_v45 = vor.u32 %v800_v42, %v753_v43  ;;  %v739_v48 = vld [vmem:[%s997_s4 + $0x90] sm:$0xf]  ;;  %v760_v50 = vor.u32 %v802_v47, %v759_v46  ;;  %v798_v51 = vld [vmem:[%s997_s4 + $0x98] sm:$0xf0]  ;;  %v797_v52 = vld [vmem:[%s997_s4 + $0x94] sm:$0xf]  ;;  %v1020_v2 = vpack.c.b16 %v319_v49, %v319_v49 }
  0x42   : > { %471 = vmatpush.bf16.msra.mxu0 %v752_v40  ;;  %v741_v53 = vld [vmem:[%s997_s4 + $0x9c] sm:$0xf0]  ;;  %491 = vmatpush.bf16.msra.mxu1 %v764_v44  ;;  %v740_v54 = vor.u32 %v798_v51, %v739_v48  ;;  %v803_v56 = vld [vmem:[%s997_s4 + $0xc4] sm:$0xf]  ;;  %v765_v57 = vld [vmem:[%s997_s4 + $0xcc] sm:$0xf0] }
  0x43   : > { %497 = vmatpush.bf16.msra.mxu2 %v756_v45  ;;  %v744_v55 = vor.u32 %v797_v52, %v741_v53  ;;  %v747_v58 = vld [vmem:[%s997_s4 + $0x98] sm:$0xf]  ;;  %v768_v59 = vor.u32 %v803_v56, %v765_v57  ;;  %v799_v60 = vld [vmem:[%s997_s4 + $0xa0] sm:$0xf0]  ;;  %v794_v0 = vld [vmem:[%s997_s4 + $0x7c] sm:$0xf]  ;;  %v318_v56 = vunpack.c.l.b16 %v995_v36 }
  0x44   : > { %v727_v61 = vld [vmem:[%s997_s4 + $0x78] sm:$0xf]  ;;  %v795_v62 = vld [vmem:[%s997_s4 + $0x80] sm:$0xf0]  ;;  %v748_v63 = vor.u32 %v799_v60, %v747_v58  ;;  %v729_v1 = vld [vmem:[%s997_s4 + $0x84] sm:$0xf0] }
  0x45   : > { %v735_v3 = vld [vmem:[%s997_s4 + $0x80] sm:$0xf]  ;;  %517 = vmatpush.bf16.msra.mxu3 %v768_v59  ;;  %v728_v4 = vor.u32 %v795_v62, %v727_v61  ;;  %v796_v5 = vld [vmem:[%s997_s4 + $0x88] sm:$0xf0]  ;;  %v732_v6 = vor.u32 %v794_v0, %v729_v1  ;;  %773 = vmatmul.msk.bf16.vlgmr.msra.gmra.mxu1 %vm467_vm0, %v1020_v2  ;;  %v791_v10 = vld [vmem:[%s997_s4 + $0x64] sm:$0xf]  ;;  %v320_v60 = vpack.c.b16 %v318_v56, %v318_v56 }
  0x46   : > { %523 = vmatpush.bf16.msrb.mxu1 %v760_v50  ;;  %472 = vmatpush.bf16.msra.mxu0 %v740_v54  ;;  %v715_v7 = vld [vmem:[%s997_s4 + $0x60] sm:$0xf]  ;;  %v792_v8 = vld [vmem:[%s997_s4 + $0x68] sm:$0xf0]  ;;  %v736_v9 = vor.u32 %v796_v5, %v735_v3  ;;  %v717_v11 = vld [vmem:[%s997_s4 + $0x6c] sm:$0xf0] }
  0x47   : > { %498 = vmatpush.bf16.msra.mxu2 %v744_v55  ;;  %v723_v12 = vld [vmem:[%s997_s4 + $0x68] sm:$0xf]  ;;  %v793_v13 = vld [vmem:[%s997_s4 + $0x70] sm:$0xf0]  ;;  %v716_v15 = vor.u32 %v792_v8, %v715_v7  ;;  %v720_v17 = vor.u32 %v791_v10, %v717_v11  ;;  %v788_v22 = vld [vmem:[%s997_s4 + $0x4c] sm:$0xf] }
  0x48   : > { %774 = vmatmul.msk.bf16.vlgmr.msra.gmra.mxu3 %vm467_vm0, %v1020_v2  ;;  %v771_v14 = vld [vmem:[%s997_s4 + $0xc8] sm:$0xf]  ;;  %v805_v16 = vld [vmem:[%s997_s4 + $0xd0] sm:$0xf0]  ;;  %v724_v21 = vor.u32 %v793_v13, %v723_v12  ;;  %v705_v23 = vld [vmem:[%s997_s4 + $0x54] sm:$0xf0] }
  0x49   : > { %v703_v18 = vld [vmem:[%s997_s4 + $0x48] sm:$0xf]  ;;  %v789_v19 = vld [vmem:[%s997_s4 + $0x50] sm:$0xf0]  ;;  %v772_v20 = vor.u32 %v805_v16, %v771_v14  ;;  %v711_v24 = vld [vmem:[%s997_s4 + $0x50] sm:$0xf]  ;;  %v708_v27 = vor.u32 %v788_v22, %v705_v23 }
  0x4a   : > { %524 = vmatpush.bf16.msrb.mxu1 %v748_v63  ;;  %473 = vmatpush.bf16.msra.mxu0 %v728_v4  ;;  %v790_v25 = vld [vmem:[%s997_s4 + $0x58] sm:$0xf0]  ;;  %v704_v26 = vor.u32 %v789_v19, %v703_v18  ;;  %v691_v28 = vld [vmem:[%s997_s4 + $0x30] sm:$0xf]  ;;  %v785_v31 = vld [vmem:[%s997_s4 + $0x34] sm:$0xf] }
  0x4b   : > { %499 = vmatpush.bf16.msra.mxu2 %v732_v6  ;;  %543 = vmatpush.bf16.msrb.mxu3 %v772_v20  ;;  %v786_v29 = vld [vmem:[%s997_s4 + $0x38] sm:$0xf0]  ;;  %v712_v30 = vor.u32 %v790_v25, %v711_v24  ;;  %v693_v32 = vld [vmem:[%s997_s4 + $0x3c] sm:$0xf0]  ;;  %v699_v33 = vld [vmem:[%s997_s4 + $0x38] sm:$0xf] }
  0x4c   : > { %v787_v34 = vld [vmem:[%s997_s4 + $0x40] sm:$0xf0]  ;;  %v692_v37 = vor.u32 %v786_v29, %v691_v28  ;;  %v858_v38 = vmov 0   ;;  %v696_v39 = vor.u32 %v785_v31, %v693_v32  ;;  %v679_v40 = vld [vmem:[%s997_s4 + $0x18] sm:$0xf]  ;;  %s1089_s7 = smov (!%p268_p8, %s267_s7), 5 }
  0x4d   : > { %v311_v35 = vld [vmem:[%s1082_s1] sm:$0xff]  ;;  %833 = vset.pattern.permute.xlu0 %v858_v38  ;;  %v700_v42 = vor.u32 %v787_v34, %v699_v33  ;;  %v782_v43 = vld [vmem:[%s997_s4 + $0x1c] sm:$0xf]  ;;  %v669_v53 = vld [vmem:[%s997_s4 + $0xc] sm:$0xf0]  ;;  %s664_s8 = sshll.u32 %s1089_s7, 2 }
  0x4e   : > { %525 = vmatpush.bf16.msrb.mxu1 %v736_v9  ;;  %474 = vmatpush.bf16.msra.mxu0 %v716_v15  ;;  %v783_v41 = vld [vmem:[%s997_s4 + $0x20] sm:$0xf0]  ;;  %v681_v44 = vld [vmem:[%s997_s4 + $0x24] sm:$0xf0]  ;;  %v687_v45 = vld [vmem:[%s997_s4 + $0x20] sm:$0xf]  ;;  %s271_s11 = scalar_lea.vmem %s1084_s3, %s664_s8 }
  0x4f   : > { %500 = vmatpush.bf16.msra.mxu2 %v720_v17  ;;  %314 = vperm.xlu0 %833, %v311_v35   ;;  %v784_v46 = vld [vmem:[%s997_s4 + $0x28] sm:$0xf0]  ;;  %v680_v47 = vor.u32 %v783_v41, %v679_v40  ;;  %v684_v48 = vor.u32 %v782_v43, %v681_v44  ;;  %v667_v49 = vld [vmem:[%s997_s4] sm:$0xf]  ;;  %v779_v52 = vld [vmem:[%s997_s4 + $0x4] sm:$0xf] }
  0x50   : > { %v780_v50 = vld [vmem:[%s997_s4 + $0x8] sm:$0xf0]  ;;  %v688_v51 = vor.u32 %v784_v46, %v687_v45  ;;  %v675_v54 = vld [vmem:[%s997_s4 + $0x8] sm:$0xf]  ;;  %v781_v55 = vld [vmem:[%s997_s4 + $0x10] sm:$0xf0]  ;;  %v672_v58 = vor.u32 %v779_v52, %v669_v53 }
  0x51   : > { %v668_v57 = vor.u32 %v780_v50, %v667_v49  ;;  %v676_v59 = vor.u32 %v781_v55, %v675_v54 }
  0x52   : > { %526 = vmatpush.bf16.msrb.mxu1 %v724_v21  ;;  %475 = vmatpush.bf16.msra.mxu0 %v704_v26 }
  0x53   : > { %501 = vmatpush.bf16.msra.mxu2 %v708_v27 }
  0x56   : > { %527 = vmatpush.bf16.msrb.mxu1 %v712_v30  ;;  %476 = vmatpush.bf16.msra.mxu0 %v692_v37 }
  0x57   : > { %502 = vmatpush.bf16.msra.mxu2 %v696_v39 }
  0x58   : > { %775 = vmatmul.msk.bf16.vlgmr.msrb.gmra.mxu3 %vm467_vm0, %v1020_v2 }
  0x5a   : > { %528 = vmatpush.bf16.msrb.mxu1 %v700_v42  ;;  %477 = vmatpush.bf16.msra.mxu0 %v680_v47 }
  0x5b   : > { %503 = vmatpush.bf16.msra.mxu2 %v684_v48 }
  0x5e   : > { %529 = vmatpush.bf16.msrb.mxu1 %v688_v51  ;;  %478 = vmatpush.bf16.msra.mxu0 %v668_v57 }
  0x5f   : > { %504 = vmatpush.bf16.msra.mxu2 %v672_v58 }
  0x61   : > { %479 = vmatmul.bf16.vlgmr.msra.gmra.mxu0 %v320_v60 }
  0x62   : > { %530 = vmatpush.bf16.msrb.mxu1 %v676_v59  ;;  %505 = vmatmul.bf16.vlgmr.msra.gmra.mxu2 %v320_v60 }
  0x65   : > { %531 = vmatmul.bf16.vlgmr.msrb.gmra.mxu1 %v320_v60 }
  0xc1   : > { %v315_v2 = vpop.permute.xlu0 %314 }
  0xc2   : > { %v493_v61 = vpop.f32.mrf.mxu1 }
  0xca   : > { %v495_v63 = vpop.f32.mrf.mxu1 }
  0xcb   : > { %v519_v62 = vpop.f32.mrf.mxu3 }
  0xd3   : > { %v521_v0 = vpop.f32.mrf.mxu3 }
  0xdb   : > { %v545_v36 = vpop.f32.mrf.mxu3 }
  0xde   : > { %v480_v1 = vpop.f32.mrf.mxu0 }
  0xdf   : > { %v481_v5 = vadd.f32 %v480_v1, %v315_v2 }
  0xe1   : > { %v494_v10 = vadd.f32 %v493_v61, %v481_v5 }
  0xe2   : > { %v532_v3 = vpop.f32.mrf.mxu1 }
  0xe3   : > { %v533_v4 = vadd.f32 %v532_v3, %v315_v2  ;;  %v547_v7 = vpop.f32.mrf.mxu3  ;;  %v549_v16 = vmax.f32 %v494_v10, 0.0 }
  0xe5   : > { %v546_v6 = vadd.f32 %v545_v36, %v533_v4  ;;  %v506_v9 = vpop.f32.mrf.mxu2 }
  0xe6   : > { %v507_v11 = vadd.f32 %v506_v9, %v315_v2  ;;  %v482_v12 = vpop.f32.mrf.mxu0 }
  0xe7   : > { %v551_v8 = vmax.f32 %v546_v6, 0.0 }
  0xe8   : > { %v520_v14 = vadd.f32 %v519_v62, %v507_v11 }
  0xe9   : > { %v553_v13 = vpack.c.bf16 %v551_v8, %v551_v8 }
  0xea   : > { %v534_v15 = vpop.f32.mrf.mxu1  ;;  %v550_v17 = vmax.f32 %v520_v14, 0.0 }
  0xeb   : > { %555 = vst [vmem:[%s271_s11 + $0x8] sm:$0xf] %v553_v13 }
  0xec   : > { %v552_v18 = vpack.c.bf16 %v550_v17, %v549_v16 }
  0xed   : > { %v508_v19 = vpop.f32.mrf.mxu2 }
  0xee   : > { %554 = vst [vmem:[%s271_s11] sm:$0xff] %v552_v18 }
  0xef PF: > { %p10_p9 = scmp.ge.s32.totalorder %s896_s16, 4   ;;  %s1085_s12 = smov %s852_s13 }
  0xf0   : > { %s1086_s13 = smov %s905_s19  ;;  %s1087_s14 = smov %s896_s16 }
  0xf1   :  { %12 = sbr.rel (!%p10_p9) target bundleno = 2 (0x2), region = 99 }

// kernel: conv_autoencoder_forward.23
= control target key start
LH: loop header
LB: loop body
LE: loop exit
PB: predicated region body
PF: predicated region fallthrough
CT: control target
= control target key end

     0   :  { %s977_s12 = smov 0   ;;  %s979_s13 = smov 0   ;;  %s1213_s0 = inlined_call_operand.vmem [shape: bf16[4,72], index: 0, kind: input, shape index: {}]   ;;  %s1214_s1 = inlined_call_operand.vmem [shape: f32[4,1], index: 1, kind: input, shape index: {}]   ;;  %s1215_s2 = inlined_call_operand.vmem [shape: bf16[72,3072], index: 2, kind: input, shape index: {}]   ;;  %s1216_s3 = inlined_call_operand.vmem [shape: bf16[4,3072], index: 3, kind: output, shape index: {}]  }
   0x1   :  { %s981_s14 = smov 0  }
   0x2 LB: > { %s724_s15 = sadd.s32 4294967295, %s954_s14   ;;  %s994_s16 = sadd.s32 1, %s954_s14   ;;  %s954_s14 = sphi %s981_s14, %s1219_s14   ;;  %s950_s13 = sphi %s979_s13, %s1218_s13   ;;  %s946_s12 = sphi %s977_s12, %s1217_s12  }
   0x3   : > { %s59_s17 = ssub.s32 %s954_s14, %s994_s16  ;;  %s62_s18 = sadd.s32 1, %s950_s13 }
   0x4   : > { %p60_p0 = scmp.eq.s32.totalorder %s59_s17, 0  ;;  %p69_p1 = scmp.ne.s32.totalorder %s950_s13, %s946_s12 }
   0x5   : > { %p70_p2 = scmp.eq.s32.totalorder %s954_s14, 0  ;;  %p727_p4 = scmp.ge.s32.totalorder %s954_s14, 3 }
   0x6   : > { %s1003_s19 = scalar_select %p60_p0, %s950_s13, %s62_s18  }
   0x7   : > { %p71_p3 = por %p70_p2, %p69_p1  ;;  %127 = sbr.rel (%p727_p4) target bundleno = 52 (0x34), region = 24 }
   0xc   : > { %130 = sbr.rel (!%p71_p3) target bundleno = 52 (0x34), region = 28  ;;  %s132_s20 = sand.u32 (%p71_p3), 1, %s950_s13  }
   0xd   : > { %s871_s21 = sshll.u32 (%p71_p3), %s954_s14, 5  ;;  %s904_s22 = smul.u32 (%p71_p3), 288, %s132_s20 }
   0xe   : > { %s1011_s25 = scalar_lea.vmem (%p71_p3), %s1215_s2, %s871_s21 }
   0xf   : > { %v150_v0 = vld [vmem:[%s1011_s25] sm:$0xff] (%p71_p3)  ;;  %v152_v1 = vld [vmem:[%s1011_s25 + $0x8] sm:$0xff] (%p71_p3)  ;;  %v154_v2 = vld [vmem:[%s1011_s25 + $0x10] sm:$0xff] (%p71_p3)  ;;  %s1016_s26 = scalar_lea.vmem (%p71_p3), [#allocation2], %s904_s22 }
  0x10   : > { %151 = vst [vmem:[%s1016_s26] sm:$0xff] (%p71_p3), %v150_v0  ;;  %v156_v3 = vld [vmem:[%s1011_s25 + $0x18] sm:$0xff] (%p71_p3)  ;;  %v158_v4 = vld [vmem:[%s1011_s25 + $0x60] sm:$0xff] (%p71_p3)  ;;  %v160_v5 = vld [vmem:[%s1011_s25 + $0x68] sm:$0xff] (%p71_p3) }
  0x11   : > { %153 = vst [vmem:[%s1016_s26 + $0x8] sm:$0xff] %v152_v1  ;;  %v162_v6 = vld [vmem:[%s1011_s25 + $0x70] sm:$0xff]  ;;  %v164_v7 = vld [vmem:[%s1011_s25 + $0x78] sm:$0xff]  ;;  %v166_v8 = vld [vmem:[%s1011_s25 + $0xc0] sm:$0xff] }
  0x12   : > { %155 = vst [vmem:[%s1016_s26 + $0x10] sm:$0xff] %v154_v2  ;;  %v168_v9 = vld [vmem:[%s1011_s25 + $0xc8] sm:$0xff]  ;;  %v170_v10 = vld [vmem:[%s1011_s25 + $0xd0] sm:$0xff]  ;;  %v172_v11 = vld [vmem:[%s1011_s25 + $0xd8] sm:$0xff] }
  0x13   : > { %157 = vst [vmem:[%s1016_s26 + $0x18] sm:$0xff] %v156_v3  ;;  %v174_v12 = vld [vmem:[%s1011_s25 + $0x120] sm:$0xff]  ;;  %v176_v13 = vld [vmem:[%s1011_s25 + $0x128] sm:$0xff]  ;;  %v178_v14 = vld [vmem:[%s1011_s25 + $0x130] sm:$0xff] }
  0x14   : > { %159 = vst [vmem:[%s1016_s26 + $0x20] sm:$0xff] %v158_v4  ;;  %v180_v15 = vld [vmem:[%s1011_s25 + $0x138] sm:$0xff]  ;;  %v182_v16 = vld [vmem:[%s1011_s25 + $0x180] sm:$0xff]  ;;  %v184_v17 = vld [vmem:[%s1011_s25 + $0x188] sm:$0xff] }
  0x15   : > { %161 = vst [vmem:[%s1016_s26 + $0x28] sm:$0xff] %v160_v5  ;;  %v186_v18 = vld [vmem:[%s1011_s25 + $0x190] sm:$0xff]  ;;  %v188_v19 = vld [vmem:[%s1011_s25 + $0x198] sm:$0xff]  ;;  %v190_v20 = vld [vmem:[%s1011_s25 + $0x1e0] sm:$0xff] }
  0x16   : > { %163 = vst [vmem:[%s1016_s26 + $0x30] sm:$0xff] %v162_v6  ;;  %v192_v21 = vld [vmem:[%s1011_s25 + $0x1e8] sm:$0xff]  ;;  %v194_v22 = vld [vmem:[%s1011_s25 + $0x1f0] sm:$0xff]  ;;  %v196_v23 = vld [vmem:[%s1011_s25 + $0x1f8] sm:$0xff] }
  0x17   : > { %165 = vst [vmem:[%s1016_s26 + $0x38] sm:$0xff] %v164_v7  ;;  %v198_v24 = vld [vmem:[%s1011_s25 + $0x240] sm:$0xff]  ;;  %v200_v25 = vld [vmem:[%s1011_s25 + $0x248] sm:$0xff]  ;;  %v202_v26 = vld [vmem:[%s1011_s25 + $0x250] sm:$0xff] }
  0x18   : > { %167 = vst [vmem:[%s1016_s26 + $0x40] sm:$0xff] %v166_v8  ;;  %v204_v27 = vld [vmem:[%s1011_s25 + $0x258] sm:$0xff]  ;;  %v206_v28 = vld [vmem:[%s1011_s25 + $0x2a0] sm:$0xff]  ;;  %v208_v29 = vld [vmem:[%s1011_s25 + $0x2a8] sm:$0xff] }
  0x19   : > { %169 = vst [vmem:[%s1016_s26 + $0x48] sm:$0xff] %v168_v9  ;;  %v210_v30 = vld [vmem:[%s1011_s25 + $0x2b0] sm:$0xff]  ;;  %v212_v31 = vld [vmem:[%s1011_s25 + $0x2b8] sm:$0xff]  ;;  %v214_v32 = vld [vmem:[%s1011_s25 + $0x300] sm:$0xff] }
  0x1a   : > { %171 = vst [vmem:[%s1016_s26 + $0x50] sm:$0xff] %v170_v10  ;;  %v216_v33 = vld [vmem:[%s1011_s25 + $0x308] sm:$0xff]  ;;  %v218_v34 = vld [vmem:[%s1011_s25 + $0x310] sm:$0xff]  ;;  %v220_v35 = vld [vmem:[%s1011_s25 + $0x318] sm:$0xff] }
  0x1b   : > { %173 = vst [vmem:[%s1016_s26 + $0x58] sm:$0xff] %v172_v11 }
  0x1c   : > { %175 = vst [vmem:[%s1016_s26 + $0x60] sm:$0xff] %v174_v12 }
  0x1d   : > { %177 = vst [vmem:[%s1016_s26 + $0x68] sm:$0xff] %v176_v13 }
  0x1e   : > { %179 = vst [vmem:[%s1016_s26 + $0x70] sm:$0xff] %v178_v14 }
  0x1f   : > { %181 = vst [vmem:[%s1016_s26 + $0x78] sm:$0xff] %v180_v15 }
  0x20   : > { %183 = vst [vmem:[%s1016_s26 + $0x80] sm:$0xff] %v182_v16 }
  0x21   : > { %185 = vst [vmem:[%s1016_s26 + $0x88] sm:$0xff] %v184_v17 }
  0x22   : > { %187 = vst [vmem:[%s1016_s26 + $0x90] sm:$0xff] %v186_v18 }
  0x23   : > { %189 = vst [vmem:[%s1016_s26 + $0x98] sm:$0xff] %v188_v19 }
  0x24   : > { %191 = vst [vmem:[%s1016_s26 + $0xa0] sm:$0xff] %v190_v20 }
  0x25   : > { %193 = vst [vmem:[%s1016_s26 + $0xa8] sm:$0xff] %v192_v21 }
  0x26   : > { %195 = vst [vmem:[%s1016_s26 + $0xb0] sm:$0xff] %v194_v22 }
  0x27   : > { %197 = vst [vmem:[%s1016_s26 + $0xb8] sm:$0xff] %v196_v23 }
  0x28   : > { %199 = vst [vmem:[%s1016_s26 + $0xc0] sm:$0xff] %v198_v24 }
  0x29   : > { %201 = vst [vmem:[%s1016_s26 + $0xc8] sm:$0xff] %v200_v25 }
  0x2a   : > { %203 = vst [vmem:[%s1016_s26 + $0xd0] sm:$0xff] %v202_v26 }
  0x2b   : > { %205 = vst [vmem:[%s1016_s26 + $0xd8] sm:$0xff] %v204_v27 }
  0x2c   : > { %207 = vst [vmem:[%s1016_s26 + $0xe0] sm:$0xff] %v206_v28 }
  0x2d   : > { %209 = vst [vmem:[%s1016_s26 + $0xe8] sm:$0xff] %v208_v29 }
  0x2e   : > { %211 = vst [vmem:[%s1016_s26 + $0xf0] sm:$0xff] %v210_v30 }
  0x2f   : > { %213 = vst [vmem:[%s1016_s26 + $0xf8] sm:$0xff] %v212_v31 }
  0x30   : > { %215 = vst [vmem:[%s1016_s26 + $0x100] sm:$0xff] %v214_v32 }
  0x31   : > { %217 = vst [vmem:[%s1016_s26 + $0x108] sm:$0xff] %v216_v33 }
  0x32   : > { %219 = vst [vmem:[%s1016_s26 + $0x110] sm:$0xff] %v218_v34 }
  0x33   : > { %221 = vst [vmem:[%s1016_s26 + $0x118] sm:$0xff] %v220_v35 }
  0x34 PF: > { %p730_p5 = scmp.ge.s32.totalorder %s954_s14, 1  ;;  %p226_p6 = scmp.lt.s32.totalorder %s954_s14, 4 }
  0x36   : > { %p227_p7 = pnand %p730_p5, %p226_p6 }
  0x37   : > { %s233_s27 = sand.u32 (!%p227_p7), 1, %s946_s12   ;;  %s731_s7 = sshll.u32 (!%p227_p7), %s724_s15, 3 }
  0x38   : > { %230 = sbr.rel (%p227_p7) target bundleno = 250 (0xfa), region = 51  ;;  %p258_p8 = scmp.lt.s32.totalorder (!%p227_p7), %s731_s7, 23 }
  0x39   : > { %s905_s28 = smul.u32 (!%p227_p7), 288, %s233_s27 }
  0x3b   : > { %s1090_s29 = scalar_lea.vmem (!%p227_p7), [#allocation2], %s905_s28 }
  0x3d   : > { %v297_v36 = vld [vmem:[%s1090_s29 + $0x100] sm:$0xff]  ;;  %v298_v37 = vld [vmem:[%s1090_s29 + $0x108] sm:$0xff]  ;;  %vm491_vm0 = vcmask 1043456   ;;  %v299_v18 = vld [vmem:[%s1090_s29 + $0x110] sm:$0xff]  ;;  %v956_v22 = vmov 0   ;;  %vm487_vm1 = vcmask 588800  }
  0x3e   : > { %v407_v38 = vunpack.c.l.b16 %v297_v36  ;;  %v408_v39 = vunpack.c.h.b16 %v297_v36  ;;  %v409_v40 = vunpack.c.l.b16 %v298_v37  ;;  %v410_v41 = vunpack.c.h.b16 %v298_v37  ;;  %v831_v42 = vld [vmem:[%s1090_s29 + $0xc0] sm:$0xf]  ;;  %v896_v48 = vld [vmem:[%s1090_s29 + $0xc4] sm:$0xf]  ;;  %v839_v50 = vld [vmem:[%s1090_s29 + $0xc8] sm:$0xf]  ;;  %931 = vset.pattern.permute.xlu0 %v956_v22 }
  0x3f   : > { %v900_v43 = vld [vmem:[%s1090_s29 + $0xdc] sm:$0xf0]  ;;  %v833_v49 = vld [vmem:[%s1090_s29 + $0xe0] sm:$0xf0]  ;;  %v901_v51 = vld [vmem:[%s1090_s29 + $0xe4] sm:$0xf0]  ;;  %v411_v20 = vunpack.c.l.b16 %v299_v18  ;;  %v412_v21 = vunpack.c.h.b16 %v299_v18 }
  0x40   : > { %v447_v44 = vpack.c.b16 %v407_v38, %v407_v38  ;;  %v448_v45 = vpack.c.b16 %v408_v39, %v408_v39  ;;  %v449_v46 = vpack.c.b16 %v409_v40, %v409_v40  ;;  %v450_v47 = vpack.c.b16 %v410_v41, %v410_v41  ;;  %v897_v52 = vld [vmem:[%s1090_s29 + $0xcc] sm:$0xf]  ;;  %v799_v60 = vld [vmem:[%s1090_s29 + $0x80] sm:$0xf]  ;;  %v888_v0 = vld [vmem:[%s1090_s29 + $0x84] sm:$0xf] }
  0x41   : > { %v841_v53 = vld [vmem:[%s1090_s29 + $0xe8] sm:$0xf0]  ;;  %v832_v58 = vor.u32 %v900_v43, %v831_v42  ;;  %v836_v59 = vor.u32 %v896_v48, %v833_v49  ;;  %v892_v61 = vld [vmem:[%s1090_s29 + $0x9c] sm:$0xf0]  ;;  %v840_v62 = vor.u32 %v901_v51, %v839_v50  ;;  %v801_v1 = vld [vmem:[%s1090_s29 + $0xa0] sm:$0xf0]  ;;  %v451_v38 = vpack.c.b16 %v411_v20, %v411_v20 }
  0x42   : > { %v493_v54 = vsel %vm491_vm0, %v447_v44, 0  ;;  %v496_v55 = vsel %vm491_vm0, %v448_v45, 0  ;;  %v499_v56 = vsel %vm491_vm0, %v449_v46, 0  ;;  %v502_v57 = vsel %vm491_vm0, %v450_v47, 0  ;;  %v807_v2 = vld [vmem:[%s1090_s29 + $0x88] sm:$0xf] }
  0x43   : > { %519 = vmatpush.bf16.msra.mxu0 %v493_v54  ;;  %532 = vmatpush.bf16.msra.mxu1 %v496_v55  ;;  %v844_v63 = vor.u32 %v897_v52, %v841_v53  ;;  %v893_v3 = vld [vmem:[%s1090_s29 + $0xa4] sm:$0xf0]  ;;  %v889_v4 = vld [vmem:[%s1090_s29 + $0x8c] sm:$0xf]  ;;  %v767_v6 = vld [vmem:[%s1090_s29 + $0x40] sm:$0xf]  ;;  %v800_v7 = vor.u32 %v892_v61, %v799_v60  ;;  %v804_v8 = vor.u32 %v888_v0, %v801_v1 }
  0x44   : > { %545 = vmatpush.bf16.msra.mxu2 %v499_v56  ;;  %558 = vmatpush.bf16.msra.mxu3 %v502_v57  ;;  %v809_v5 = vld [vmem:[%s1090_s29 + $0xa8] sm:$0xf0]  ;;  %v884_v9 = vld [vmem:[%s1090_s29 + $0x5c] sm:$0xf0]  ;;  %v880_v10 = vld [vmem:[%s1090_s29 + $0x44] sm:$0xf]  ;;  %v808_v12 = vor.u32 %v893_v3, %v807_v2  ;;  %v452_v39 = vpack.c.b16 %v412_v21, %v412_v21 }
  0x45   : > { %v769_v11 = vld [vmem:[%s1090_s29 + $0x60] sm:$0xf0]  ;;  %v812_v13 = vor.u32 %v889_v4, %v809_v5  ;;  %v775_v14 = vld [vmem:[%s1090_s29 + $0x48] sm:$0xf]  ;;  %v881_v16 = vld [vmem:[%s1090_s29 + $0x4c] sm:$0xf]  ;;  %v768_v23 = vor.u32 %v884_v9, %v767_v6 }
  0x46   : > { %v885_v15 = vld [vmem:[%s1090_s29 + $0x64] sm:$0xf0]  ;;  %v777_v17 = vld [vmem:[%s1090_s29 + $0x68] sm:$0xf0]  ;;  %v300_v19 = vld [vmem:[%s1090_s29 + $0x118] sm:$0xff]  ;;  %v772_v24 = vor.u32 %v880_v10, %v769_v11  ;;  %v505_v49 = vsel %vm491_vm0, %v451_v38, 0 }
  0x47   : > { %520 = vmatpush.bf16.msra.mxu0 %v832_v58  ;;  %533 = vmatpush.bf16.msra.mxu1 %v836_v59  ;;  %v735_v25 = vld [vmem:[%s1090_s29] sm:$0xf]  ;;  %v413_v27 = vunpack.c.l.b16 %v300_v19  ;;  %v414_v28 = vunpack.c.h.b16 %v300_v19  ;;  %v776_v29 = vor.u32 %v885_v15, %v775_v14  ;;  %v780_v30 = vor.u32 %v881_v16, %v777_v17  ;;  %v872_v31 = vld [vmem:[%s1090_s29 + $0x4] sm:$0xf]  ;;  %v743_v33 = vld [vmem:[%s1090_s29 + $0x8] sm:$0xf] }
  0x48   : > { %546 = vmatpush.bf16.msra.mxu2 %v840_v62  ;;  %559 = vmatpush.bf16.msra.mxu3 %v844_v63  ;;  %v876_v26 = vld [vmem:[%s1090_s29 + $0x1c] sm:$0xf0]  ;;  %v737_v32 = vld [vmem:[%s1090_s29 + $0x20] sm:$0xf0]  ;;  %v877_v34 = vld [vmem:[%s1090_s29 + $0x24] sm:$0xf0] }
  0x49   : > { %v873_v35 = vld [vmem:[%s1090_s29 + $0xc] sm:$0xf]  ;;  %v736_v37 = vor.u32 %v876_v26, %v735_v25  ;;  %v740_v40 = vor.u32 %v872_v31, %v737_v32  ;;  %v453_v41 = vpack.c.b16 %v413_v27, %v413_v27  ;;  %v454_v42 = vpack.c.b16 %v414_v28, %v414_v28  ;;  %v847_v45 = vld [vmem:[%s1090_s29 + $0xd0] sm:$0xf]  ;;  %v898_v47 = vld [vmem:[%s1090_s29 + $0xd4] sm:$0xf] }
  0x4a   : > { %v745_v36 = vld [vmem:[%s1090_s29 + $0x28] sm:$0xf0]  ;;  %v744_v43 = vor.u32 %v877_v34, %v743_v33  ;;  %v902_v46 = vld [vmem:[%s1090_s29 + $0xec] sm:$0xf0]  ;;  %v849_v48 = vld [vmem:[%s1090_s29 + $0xf0] sm:$0xf0] }
  0x4b   : > { %521 = vmatpush.bf16.msra.mxu0 %v800_v7  ;;  %534 = vmatpush.bf16.msra.mxu1 %v804_v8  ;;  %v748_v44 = vor.u32 %v873_v35, %v745_v36  ;;  %v508_v50 = vsel %vm491_vm0, %v452_v39, 0  ;;  %v855_v51 = vld [vmem:[%s1090_s29 + $0xd8] sm:$0xf]  ;;  %v511_v53 = vsel %vm491_vm0, %v453_v41, 0  ;;  %v514_v54 = vsel %vm491_vm0, %v454_v42, 0  ;;  %s1221_s7 = smov (!%p258_p8, %s731_s7), 23 }
  0x4c   : > { %547 = vmatpush.bf16.msra.mxu2 %v808_v12  ;;  %560 = vmatpush.bf16.msra.mxu3 %v812_v13  ;;  %v903_v52 = vld [vmem:[%s1090_s29 + $0xf4] sm:$0xf0]  ;;  %v899_v55 = vld [vmem:[%s1090_s29 + $0xdc] sm:$0xf]  ;;  %v1147_v57 = vld [vmem:[%s1213_s0] sm:$0x3]  ;;  %v848_v58 = vor.u32 %v902_v46, %v847_v45  ;;  %v852_v59 = vor.u32 %v898_v47, %v849_v48 }
  0x4d   : > { %v857_v56 = vld [vmem:[%s1090_s29 + $0xf8] sm:$0xf0]  ;;  %v815_v60 = vld [vmem:[%s1090_s29 + $0x90] sm:$0xf]  ;;  %v856_v62 = vor.u32 %v903_v52, %v855_v51  ;;  %v890_v0 = vld [vmem:[%s1090_s29 + $0x94] sm:$0xf] }
  0x4e   : > { %v894_v61 = vld [vmem:[%s1090_s29 + $0xac] sm:$0xf0]  ;;  %v860_v63 = vor.u32 %v899_v55, %v857_v56  ;;  %v817_v1 = vld [vmem:[%s1090_s29 + $0xb0] sm:$0xf0]  ;;  %v823_v2 = vld [vmem:[%s1090_s29 + $0x98] sm:$0xf] }
  0x4f   : > { %522 = vmatpush.bf16.msra.mxu0 %v768_v23  ;;  %535 = vmatpush.bf16.msra.mxu1 %v772_v24  ;;  %v895_v3 = vld [vmem:[%s1090_s29 + $0xb4] sm:$0xf0]  ;;  %v891_v4 = vld [vmem:[%s1090_s29 + $0x9c] sm:$0xf]  ;;  %v301_v6 = vld [vmem:[%s1214_s1] sm:$0xf]  ;;  %v816_v7 = vor.u32 %v894_v61, %v815_v60  ;;  %v820_v8 = vor.u32 %v890_v0, %v817_v1 }
  0x50   : > { %548 = vmatpush.bf16.msra.mxu2 %v776_v29  ;;  %561 = vmatpush.bf16.msra.mxu3 %v780_v30  ;;  %v825_v5 = vld [vmem:[%s1090_s29 + $0xb8] sm:$0xf0]  ;;  %v783_v9 = vld [vmem:[%s1090_s29 + $0x50] sm:$0xf]  ;;  %v824_v11 = vor.u32 %v895_v3, %v823_v2  ;;  %v882_v13 = vld [vmem:[%s1090_s29 + $0x54] sm:$0xf] }
  0x51   : > { %v886_v10 = vld [vmem:[%s1090_s29 + $0x6c] sm:$0xf0]  ;;  %v828_v12 = vor.u32 %v891_v4, %v825_v5  ;;  %v785_v14 = vld [vmem:[%s1090_s29 + $0x70] sm:$0xf0]  ;;  %v791_v15 = vld [vmem:[%s1090_s29 + $0x58] sm:$0xf]  ;;  %304 = vperm.xlu0 %931, %v301_v6  }
  0x52   : > { %v887_v16 = vld [vmem:[%s1090_s29 + $0x74] sm:$0xf0]  ;;  %v883_v17 = vld [vmem:[%s1090_s29 + $0x5c] sm:$0xf]  ;;  %v784_v19 = vor.u32 %v886_v10, %v783_v9  ;;  %v788_v20 = vor.u32 %v882_v13, %v785_v14  ;;  %v751_v21 = vld [vmem:[%s1090_s29 + $0x10] sm:$0xf] }
  0x53   : > { %523 = vmatpush.bf16.msra.mxu0 %v736_v37  ;;  %536 = vmatpush.bf16.msra.mxu1 %v740_v40  ;;  %v793_v18 = vld [vmem:[%s1090_s29 + $0x78] sm:$0xf0]  ;;  %v878_v22 = vld [vmem:[%s1090_s29 + $0x2c] sm:$0xf0]  ;;  %v792_v23 = vor.u32 %v887_v16, %v791_v15  ;;  %v874_v25 = vld [vmem:[%s1090_s29 + $0x14] sm:$0xf] }
  0x54   : > { %549 = vmatpush.bf16.msra.mxu2 %v744_v43  ;;  %562 = vmatpush.bf16.msra.mxu3 %v748_v44  ;;  %v796_v24 = vor.u32 %v883_v17, %v793_v18  ;;  %v753_v26 = vld [vmem:[%s1090_s29 + $0x30] sm:$0xf0]  ;;  %v759_v27 = vld [vmem:[%s1090_s29 + $0x18] sm:$0xf]  ;;  %v875_v29 = vld [vmem:[%s1090_s29 + $0x1c] sm:$0xf]  ;;  %v752_v31 = vor.u32 %v878_v22, %v751_v21 }
  0x55   : > { %v879_v28 = vld [vmem:[%s1090_s29 + $0x34] sm:$0xf0]  ;;  %v761_v30 = vld [vmem:[%s1090_s29 + $0x38] sm:$0xf0]  ;;  %v756_v32 = vor.u32 %v874_v25, %v753_v26  ;;  %vm642_vm2 = vcmask 1041408   ;;  %s732_s8 = sshll.u32 %s1221_s7, 1 }
  0x56   : > { %861 = vmatmul.msk.bf16.vlgmr.msra.gmra.mxu0 %vm487_vm1, %v1147_v57  ;;  %862 = vmatmul.msk.bf16.vlgmr.msra.gmra.mxu1 %vm487_vm1, %v1147_v57  ;;  %v760_v33 = vor.u32 %v879_v28, %v759_v27  ;;  %v764_v34 = vor.u32 %v875_v29, %v761_v30  ;;  %vm646_vm3 = vcmask 1045508   ;;  %s261_s11 = scalar_lea.vmem %s1216_s3, %s732_s8 }
  0x57   : > { %571 = vmatpush.bf16.msrb.mxu0 %v505_v49  ;;  %584 = vmatpush.bf16.msrb.mxu1 %v508_v50 }
  0x58   : > { %597 = vmatpush.bf16.msrb.mxu2 %v511_v53  ;;  %610 = vmatpush.bf16.msrb.mxu3 %v514_v54 }
  0x59   : > { %863 = vmatmul.msk.bf16.vlgmr.msra.gmra.mxu2 %vm487_vm1, %v1147_v57  ;;  %864 = vmatmul.msk.bf16.vlgmr.msra.gmra.mxu3 %vm487_vm1, %v1147_v57 }
  0x5b   : > { %572 = vmatpush.bf16.msrb.mxu0 %v848_v58  ;;  %585 = vmatpush.bf16.msrb.mxu1 %v852_v59 }
  0x5c   : > { %598 = vmatpush.bf16.msrb.mxu2 %v856_v62  ;;  %611 = vmatpush.bf16.msrb.mxu3 %v860_v63 }
  0x5f   : > { %573 = vmatpush.bf16.msrb.mxu0 %v816_v7  ;;  %586 = vmatpush.bf16.msrb.mxu1 %v820_v8 }
  0x60   : > { %599 = vmatpush.bf16.msrb.mxu2 %v824_v11  ;;  %612 = vmatpush.bf16.msrb.mxu3 %v828_v12 }
  0x63   : > { %574 = vmatpush.bf16.msrb.mxu0 %v784_v19  ;;  %587 = vmatpush.bf16.msrb.mxu1 %v788_v20 }
  0x64   : > { %600 = vmatpush.bf16.msrb.mxu2 %v792_v23  ;;  %613 = vmatpush.bf16.msrb.mxu3 %v796_v24 }
  0x67   : > { %575 = vmatpush.bf16.msrb.mxu0 %v752_v31  ;;  %588 = vmatpush.bf16.msrb.mxu1 %v756_v32 }
  0x68   : > { %601 = vmatpush.bf16.msrb.mxu2 %v760_v33  ;;  %614 = vmatpush.bf16.msrb.mxu3 %v764_v34 }
  0x6a   : > { %865 = vmatmul.msk.bf16.vlgmr.msrb.gmra.mxu0 %vm487_vm1, %v1147_v57  ;;  %866 = vmatmul.msk.bf16.vlgmr.msrb.gmra.mxu1 %vm487_vm1, %v1147_v57 }
  0x6b   : > { %867 = vmatmul.msk.bf16.vlgmr.msrb.gmra.mxu2 %vm487_vm1, %v1147_v57  ;;  %868 = vmatmul.msk.bf16.vlgmr.msrb.gmra.mxu3 %vm487_vm1, %v1147_v57 }
  0xc3   : > { %v305_v35 = vpop.permute.xlu0 %304 }
  0xd3   : > { %v525_v36 = vpop.f32.mrf.mxu0  ;;  %v538_v37 = vpop.f32.mrf.mxu1 }
  0xd4   : > { %v526_v38 = vadd.f32 %v525_v36, %v305_v35  ;;  %v539_v39 = vadd.f32 %v538_v37, %v305_v35 }
  0xd6   : > { %v620_v40 = vmax.f32 %v526_v38, 0.0  ;;  %v621_v41 = vmax.f32 %v539_v39, 0.0 }
  0xd8   : > { %v628_v42 = vpack.c.bf16 %v621_v41, %v620_v40 }
  0xda   : > { %v636_v51 = vrot.slane %v628_v42, 2 }
  0xdb   : > { %v527_v47 = vpop.f32.mrf.mxu0  ;;  %v540_v48 = vpop.f32.mrf.mxu1 }
  0xdc   : > { %v551_v43 = vpop.f32.mrf.mxu2  ;;  %v564_v44 = vpop.f32.mrf.mxu3  ;;  %v645_v55 = vsel %vm642_vm2, %v628_v42, %v636_v51 }
  0xdd   : > { %v552_v45 = vadd.f32 %v551_v43, %v305_v35  ;;  %v565_v46 = vadd.f32 %v564_v44, %v305_v35 }
  0xdf   : > { %v622_v49 = vmax.f32 %v552_v45, 0.0  ;;  %v623_v50 = vmax.f32 %v565_v46, 0.0 }
  0xe1   : > { %v629_v52 = vpack.c.bf16 %v623_v50, %v622_v49 }
  0xe3   : > { %v637_v53 = vrot.slane %v629_v52, 4  ;;  %v638_v54 = vrot.slane %v629_v52, 6 }
  0xe4   : > { %v553_v56 = vpop.f32.mrf.mxu2  ;;  %v566_v57 = vpop.f32.mrf.mxu3 }
  0xe5   : > { %v649_v58 = vsel %vm646_vm3, %v637_v53, %v638_v54 }
  0xe6   : > { %v650_v61 = vsel %vm491_vm0, %v645_v55, %v649_v58 }
  0xe7   : > { %v577_v59 = vpop.f32.mrf.mxu0  ;;  %v590_v60 = vpop.f32.mrf.mxu1  ;;  %660 = vst [vmem:[%s261_s11] sm:$0xff] %v650_v61 }
  0xe8   : > { %v578_v62 = vadd.f32 %v577_v59, %v305_v35  ;;  %v591_v63 = vadd.f32 %v590_v60, %v305_v35 }
  0xea   : > { %v624_v0 = vmax.f32 %v578_v62, 0.0  ;;  %v625_v1 = vmax.f32 %v591_v63, 0.0 }
  0xec   : > { %v630_v4 = vpack.c.bf16 %v625_v1, %v624_v0 }
  0xee   : > { %v603_v2 = vpop.f32.mrf.mxu2  ;;  %v616_v3 = vpop.f32.mrf.mxu3  ;;  %v639_v11 = vrot.slane %v630_v4, 2 }
  0xef   : > { %v604_v5 = vadd.f32 %v603_v2, %v305_v35  ;;  %v617_v6 = vadd.f32 %v616_v3, %v305_v35  ;;  %v579_v7 = vpop.f32.mrf.mxu0  ;;  %v592_v8 = vpop.f32.mrf.mxu1 }
  0xf0   : > { %v653_v17 = vsel %vm642_vm2, %v630_v4, %v639_v11 }
  0xf1   : > { %v626_v9 = vmax.f32 %v604_v5, 0.0  ;;  %v627_v10 = vmax.f32 %v617_v6, 0.0 }
  0xf3   : > { %v631_v12 = vpack.c.bf16 %v627_v10, %v626_v9 }
  0xf5   : > { %v640_v13 = vrot.slane %v631_v12, 4  ;;  %v641_v14 = vrot.slane %v631_v12, 6 }
  0xf6   : > { %v605_v15 = vpop.f32.mrf.mxu2  ;;  %v618_v16 = vpop.f32.mrf.mxu3 }
  0xf7   : > { %v656_v18 = vsel %vm646_vm3, %v640_v13, %v641_v14 }
  0xf8   : > { %v657_v19 = vsel %vm491_vm0, %v653_v17, %v656_v18 }
  0xf9   : > { %661 = vst [vmem:[%s261_s11 + $0x8] sm:$0xff] %v657_v19 }
  0xfa PF: > { %p10_p9 = scmp.ge.s32.totalorder %s994_s16, 5   ;;  %s1217_s12 = smov %s950_s13 }
  0xfb   : > { %s1218_s13 = smov %s1003_s19  ;;  %s1219_s14 = smov %s994_s16 }
  0xfc   :  { %12 = sbr.rel (!%p10_p9) target bundleno = 2 (0x2), region = 90 }

// kernel: conv_autoencoder_forward.24
= control target key start
LH: loop header
LB: loop body
LE: loop exit
PB: predicated region body
PF: predicated region fallthrough
CT: control target
= control target key end

     0   :  { %s921_s12 = smov 0   ;;  %s923_s13 = smov 0   ;;  %s1137_s0 = inlined_call_operand.vmem [shape: bf16[4,64], index: 0, kind: input, shape index: {}]   ;;  %s1138_s1 = inlined_call_operand.vmem [shape: f32[4,1], index: 1, kind: input, shape index: {}]   ;;  %s1139_s2 = inlined_call_operand.vmem [shape: bf16[64,3072], index: 2, kind: input, shape index: {}]   ;;  %s1140_s3 = inlined_call_operand.vmem [shape: bf16[4,3072], index: 3, kind: output, shape index: {}]  }
   0x1   :  { %s925_s14 = smov 0  }
   0x2 LB: > { %s668_s15 = sadd.s32 4294967295, %s898_s14   ;;  %s938_s16 = sadd.s32 1, %s898_s14   ;;  %s898_s14 = sphi %s925_s14, %s1143_s14   ;;  %s894_s13 = sphi %s923_s13, %s1142_s13   ;;  %s890_s12 = sphi %s921_s12, %s1141_s12  }
   0x3   : > { %s59_s17 = ssub.s32 %s898_s14, %s938_s16  ;;  %s62_s18 = sadd.s32 1, %s894_s13 }
   0x4   : > { %p60_p0 = scmp.eq.s32.totalorder %s59_s17, 0  ;;  %p69_p1 = scmp.ne.s32.totalorder %s894_s13, %s890_s12 }
   0x5   : > { %p70_p2 = scmp.eq.s32.totalorder %s898_s14, 0  ;;  %p671_p4 = scmp.ge.s32.totalorder %s898_s14, 3 }
   0x6   : > { %s947_s19 = scalar_select %p60_p0, %s894_s13, %s62_s18  }
   0x7   : > { %p71_p3 = por %p70_p2, %p69_p1  ;;  %127 = sbr.rel (%p671_p4) target bundleno = 48 (0x30), region = 24 }
   0xc   : > { %130 = sbr.rel (!%p71_p3) target bundleno = 48 (0x30), region = 28  ;;  %s132_s20 = sand.u32 (%p71_p3), 1, %s894_s13  }
   0xd   : > { %s817_s21 = sshll.u32 (%p71_p3), %s898_s14, 5  ;;  %s672_s22 = sshll.u32 (%p71_p3), %s132_s20, 8 }
   0xe   : > { %s955_s25 = scalar_lea.vmem (%p71_p3), %s1139_s2, %s817_s21  ;;  %s960_s26 = scalar_lea.vmem (%p71_p3), [#allocation2], %s672_s22 }
   0xf   : > { %v150_v0 = vld [vmem:[%s955_s25] sm:$0xff] (%p71_p3)  ;;  %v152_v1 = vld [vmem:[%s955_s25 + $0x8] sm:$0xff] (%p71_p3)  ;;  %v154_v2 = vld [vmem:[%s955_s25 + $0x10] sm:$0xff] (%p71_p3) }
  0x10   : > { %151 = vst [vmem:[%s960_s26] sm:$0xff] (%p71_p3), %v150_v0  ;;  %v156_v3 = vld [vmem:[%s955_s25 + $0x18] sm:$0xff] (%p71_p3)  ;;  %v158_v4 = vld [vmem:[%s955_s25 + $0x60] sm:$0xff] (%p71_p3)  ;;  %v160_v5 = vld [vmem:[%s955_s25 + $0x68] sm:$0xff] (%p71_p3) }
  0x11   : > { %153 = vst [vmem:[%s960_s26 + $0x8] sm:$0xff] %v152_v1  ;;  %v162_v6 = vld [vmem:[%s955_s25 + $0x70] sm:$0xff]  ;;  %v164_v7 = vld [vmem:[%s955_s25 + $0x78] sm:$0xff]  ;;  %v166_v8 = vld [vmem:[%s955_s25 + $0xc0] sm:$0xff] }
  0x12   : > { %155 = vst [vmem:[%s960_s26 + $0x10] sm:$0xff] %v154_v2  ;;  %v168_v9 = vld [vmem:[%s955_s25 + $0xc8] sm:$0xff]  ;;  %v170_v10 = vld [vmem:[%s955_s25 + $0xd0] sm:$0xff]  ;;  %v172_v11 = vld [vmem:[%s955_s25 + $0xd8] sm:$0xff] }
  0x13   : > { %157 = vst [vmem:[%s960_s26 + $0x18] sm:$0xff] %v156_v3  ;;  %v174_v12 = vld [vmem:[%s955_s25 + $0x120] sm:$0xff]  ;;  %v176_v13 = vld [vmem:[%s955_s25 + $0x128] sm:$0xff]  ;;  %v178_v14 = vld [vmem:[%s955_s25 + $0x130] sm:$0xff] }
  0x14   : > { %159 = vst [vmem:[%s960_s26 + $0x20] sm:$0xff] %v158_v4  ;;  %v180_v15 = vld [vmem:[%s955_s25 + $0x138] sm:$0xff]  ;;  %v182_v16 = vld [vmem:[%s955_s25 + $0x180] sm:$0xff]  ;;  %v184_v17 = vld [vmem:[%s955_s25 + $0x188] sm:$0xff] }
  0x15   : > { %161 = vst [vmem:[%s960_s26 + $0x28] sm:$0xff] %v160_v5  ;;  %v186_v18 = vld [vmem:[%s955_s25 + $0x190] sm:$0xff]  ;;  %v188_v19 = vld [vmem:[%s955_s25 + $0x198] sm:$0xff]  ;;  %v190_v20 = vld [vmem:[%s955_s25 + $0x1e0] sm:$0xff] }
  0x16   : > { %163 = vst [vmem:[%s960_s26 + $0x30] sm:$0xff] %v162_v6  ;;  %v192_v21 = vld [vmem:[%s955_s25 + $0x1e8] sm:$0xff]  ;;  %v194_v22 = vld [vmem:[%s955_s25 + $0x1f0] sm:$0xff]  ;;  %v196_v23 = vld [vmem:[%s955_s25 + $0x1f8] sm:$0xff] }
  0x17   : > { %165 = vst [vmem:[%s960_s26 + $0x38] sm:$0xff] %v164_v7  ;;  %v198_v24 = vld [vmem:[%s955_s25 + $0x240] sm:$0xff]  ;;  %v200_v25 = vld [vmem:[%s955_s25 + $0x248] sm:$0xff]  ;;  %v202_v26 = vld [vmem:[%s955_s25 + $0x250] sm:$0xff] }
  0x18   : > { %167 = vst [vmem:[%s960_s26 + $0x40] sm:$0xff] %v166_v8  ;;  %v204_v27 = vld [vmem:[%s955_s25 + $0x258] sm:$0xff]  ;;  %v206_v28 = vld [vmem:[%s955_s25 + $0x2a0] sm:$0xff]  ;;  %v208_v29 = vld [vmem:[%s955_s25 + $0x2a8] sm:$0xff] }
  0x19   : > { %169 = vst [vmem:[%s960_s26 + $0x48] sm:$0xff] %v168_v9  ;;  %v210_v30 = vld [vmem:[%s955_s25 + $0x2b0] sm:$0xff]  ;;  %v212_v31 = vld [vmem:[%s955_s25 + $0x2b8] sm:$0xff] }
  0x1a   : > { %171 = vst [vmem:[%s960_s26 + $0x50] sm:$0xff] %v170_v10 }
  0x1b   : > { %173 = vst [vmem:[%s960_s26 + $0x58] sm:$0xff] %v172_v11 }
  0x1c   : > { %175 = vst [vmem:[%s960_s26 + $0x60] sm:$0xff] %v174_v12 }
  0x1d   : > { %177 = vst [vmem:[%s960_s26 + $0x68] sm:$0xff] %v176_v13 }
  0x1e   : > { %179 = vst [vmem:[%s960_s26 + $0x70] sm:$0xff] %v178_v14 }
  0x1f   : > { %181 = vst [vmem:[%s960_s26 + $0x78] sm:$0xff] %v180_v15 }
  0x20   : > { %183 = vst [vmem:[%s960_s26 + $0x80] sm:$0xff] %v182_v16 }
  0x21   : > { %185 = vst [vmem:[%s960_s26 + $0x88] sm:$0xff] %v184_v17 }
  0x22   : > { %187 = vst [vmem:[%s960_s26 + $0x90] sm:$0xff] %v186_v18 }
  0x23   : > { %189 = vst [vmem:[%s960_s26 + $0x98] sm:$0xff] %v188_v19 }
  0x24   : > { %191 = vst [vmem:[%s960_s26 + $0xa0] sm:$0xff] %v190_v20 }
  0x25   : > { %193 = vst [vmem:[%s960_s26 + $0xa8] sm:$0xff] %v192_v21 }
  0x26   : > { %195 = vst [vmem:[%s960_s26 + $0xb0] sm:$0xff] %v194_v22 }
  0x27   : > { %197 = vst [vmem:[%s960_s26 + $0xb8] sm:$0xff] %v196_v23 }
  0x28   : > { %199 = vst [vmem:[%s960_s26 + $0xc0] sm:$0xff] %v198_v24 }
  0x29   : > { %201 = vst [vmem:[%s960_s26 + $0xc8] sm:$0xff] %v200_v25 }
  0x2a   : > { %203 = vst [vmem:[%s960_s26 + $0xd0] sm:$0xff] %v202_v26 }
  0x2b   : > { %205 = vst [vmem:[%s960_s26 + $0xd8] sm:$0xff] %v204_v27 }
  0x2c   : > { %207 = vst [vmem:[%s960_s26 + $0xe0] sm:$0xff] %v206_v28 }
  0x2d   : > { %209 = vst [vmem:[%s960_s26 + $0xe8] sm:$0xff] %v208_v29 }
  0x2e   : > { %211 = vst [vmem:[%s960_s26 + $0xf0] sm:$0xff] %v210_v30 }
  0x2f   : > { %213 = vst [vmem:[%s960_s26 + $0xf8] sm:$0xff] %v212_v31 }
  0x30 PF: > { %p675_p5 = scmp.ge.s32.totalorder %s898_s14, 1  ;;  %p218_p6 = scmp.lt.s32.totalorder %s898_s14, 4 }
  0x32   : > { %p219_p7 = pnand %p675_p5, %p218_p6 }
  0x33   : > { %s225_s27 = sand.u32 (!%p219_p7), 1, %s890_s12   ;;  %s677_s7 = sshll.u32 (!%p219_p7), %s668_s15, 3 }
  0x34   : > { %222 = sbr.rel (%p219_p7) target bundleno = 237 (0xed), region = 51  ;;  %s676_s28 = sshll.u32 (!%p219_p7), %s225_s27, 8 }
  0x35   : > { %s1026_s29 = scalar_lea.vmem (!%p219_p7), [#allocation2], %s676_s28  ;;  %p250_p8 = scmp.lt.s32.totalorder (!%p219_p7), %s677_s7, 23 }
  0x39   : > { %v777_v32 = vld [vmem:[%s1026_s29 + $0xc0] sm:$0xf]  ;;  %v842_v34 = vld [vmem:[%s1026_s29 + $0xc4] sm:$0xf]  ;;  %v785_v37 = vld [vmem:[%s1026_s29 + $0xc8] sm:$0xf] }
  0x3a   : > { %v846_v33 = vld [vmem:[%s1026_s29 + $0xdc] sm:$0xf0]  ;;  %v779_v36 = vld [vmem:[%s1026_s29 + $0xe0] sm:$0xf0]  ;;  %v847_v38 = vld [vmem:[%s1026_s29 + $0xe4] sm:$0xf0] }
  0x3b   : > { %v778_v35 = vor.u32 %v846_v33, %v777_v32  ;;  %v782_v39 = vor.u32 %v842_v34, %v779_v36  ;;  %v786_v40 = vor.u32 %v847_v38, %v785_v37  ;;  %v843_v41 = vld [vmem:[%s1026_s29 + $0xcc] sm:$0xf]  ;;  %v745_v43 = vld [vmem:[%s1026_s29 + $0x80] sm:$0xf]  ;;  %v834_v46 = vld [vmem:[%s1026_s29 + $0x84] sm:$0xf] }
  0x3c   : > { %v787_v42 = vld [vmem:[%s1026_s29 + $0xe8] sm:$0xf0]  ;;  %v838_v45 = vld [vmem:[%s1026_s29 + $0x9c] sm:$0xf0]  ;;  %v747_v47 = vld [vmem:[%s1026_s29 + $0xa0] sm:$0xf0] }
  0x3d   : > { %463 = vmatpush.bf16.msra.mxu0 %v778_v35  ;;  %v790_v44 = vor.u32 %v843_v41, %v787_v42  ;;  %476 = vmatpush.bf16.msra.mxu1 %v782_v39  ;;  %v746_v48 = vor.u32 %v838_v45, %v745_v43  ;;  %v750_v49 = vor.u32 %v834_v46, %v747_v47  ;;  %v753_v50 = vld [vmem:[%s1026_s29 + $0x88] sm:$0xf]  ;;  %v835_v52 = vld [vmem:[%s1026_s29 + $0x8c] sm:$0xf]  ;;  %v713_v55 = vld [vmem:[%s1026_s29 + $0x40] sm:$0xf] }
  0x3e   : > { %489 = vmatpush.bf16.msra.mxu2 %v786_v40  ;;  %v839_v51 = vld [vmem:[%s1026_s29 + $0xa4] sm:$0xf0]  ;;  %v755_v54 = vld [vmem:[%s1026_s29 + $0xa8] sm:$0xf0]  ;;  %v830_v56 = vld [vmem:[%s1026_s29 + $0x5c] sm:$0xf0] }
  0x3f   : > { %502 = vmatpush.bf16.msra.mxu3 %v790_v44  ;;  %v754_v53 = vor.u32 %v839_v51, %v753_v50  ;;  %v758_v57 = vor.u32 %v835_v52, %v755_v54  ;;  %v826_v58 = vld [vmem:[%s1026_s29 + $0x44] sm:$0xf]  ;;  %v721_v60 = vld [vmem:[%s1026_s29 + $0x48] sm:$0xf]  ;;  %v714_v61 = vor.u32 %v830_v56, %v713_v55  ;;  %v827_v63 = vld [vmem:[%s1026_s29 + $0x4c] sm:$0xf] }
  0x40   : > { %v715_v59 = vld [vmem:[%s1026_s29 + $0x60] sm:$0xf0]  ;;  %v831_v62 = vld [vmem:[%s1026_s29 + $0x64] sm:$0xf0]  ;;  %v723_v0 = vld [vmem:[%s1026_s29 + $0x68] sm:$0xf0] }
  0x41   : > { %464 = vmatpush.bf16.msra.mxu0 %v746_v48  ;;  %477 = vmatpush.bf16.msra.mxu1 %v750_v49  ;;  %v718_v1 = vor.u32 %v826_v58, %v715_v59  ;;  %v722_v2 = vor.u32 %v831_v62, %v721_v60  ;;  %v681_v3 = vld [vmem:[%s1026_s29] sm:$0xf]  ;;  %v818_v5 = vld [vmem:[%s1026_s29 + $0x4] sm:$0xf]  ;;  %v726_v6 = vor.u32 %v827_v63, %v723_v0  ;;  %v689_v8 = vld [vmem:[%s1026_s29 + $0x8] sm:$0xf] }
  0x42   : > { %490 = vmatpush.bf16.msra.mxu2 %v754_v53  ;;  %v822_v4 = vld [vmem:[%s1026_s29 + $0x1c] sm:$0xf0]  ;;  %v683_v7 = vld [vmem:[%s1026_s29 + $0x20] sm:$0xf0]  ;;  %v823_v9 = vld [vmem:[%s1026_s29 + $0x24] sm:$0xf0] }
  0x43   : > { %503 = vmatpush.bf16.msra.mxu3 %v758_v57  ;;  %v819_v10 = vld [vmem:[%s1026_s29 + $0xc] sm:$0xf]  ;;  %v801_v12 = vld [vmem:[%s1026_s29 + $0xd8] sm:$0xf]  ;;  %v682_v13 = vor.u32 %v822_v4, %v681_v3  ;;  %v845_v15 = vld [vmem:[%s1026_s29 + $0xdc] sm:$0xf]  ;;  %v686_v17 = vor.u32 %v818_v5, %v683_v7  ;;  %v690_v18 = vor.u32 %v823_v9, %v689_v8 }
  0x44   : > { %v691_v11 = vld [vmem:[%s1026_s29 + $0x28] sm:$0xf0]  ;;  %v849_v14 = vld [vmem:[%s1026_s29 + $0xf4] sm:$0xf0]  ;;  %v803_v16 = vld [vmem:[%s1026_s29 + $0xf8] sm:$0xf0] }
  0x45   : > { %465 = vmatpush.bf16.msra.mxu0 %v714_v61  ;;  %478 = vmatpush.bf16.msra.mxu1 %v718_v1  ;;  %v694_v19 = vor.u32 %v819_v10, %v691_v11  ;;  %v1067_v20 = vld [vmem:[%s1137_s0] sm:$0x3]  ;;  %v802_v21 = vor.u32 %v849_v14, %v801_v12  ;;  %v793_v22 = vld [vmem:[%s1026_s29 + $0xd0] sm:$0xf]  ;;  %v844_v24 = vld [vmem:[%s1026_s29 + $0xd4] sm:$0xf]  ;;  %v806_v25 = vor.u32 %v845_v15, %v803_v16 }
  0x46   : > { %491 = vmatpush.bf16.msra.mxu2 %v722_v2  ;;  %v848_v23 = vld [vmem:[%s1026_s29 + $0xec] sm:$0xf0]  ;;  %v795_v26 = vld [vmem:[%s1026_s29 + $0xf0] sm:$0xf0]  ;;  %v769_v27 = vld [vmem:[%s1026_s29 + $0x98] sm:$0xf] }
  0x47   : > { %504 = vmatpush.bf16.msra.mxu3 %v726_v6  ;;  %v841_v28 = vld [vmem:[%s1026_s29 + $0xb4] sm:$0xf0]  ;;  %vm455_vm0 = vcmask 523264   ;;  %v837_v29 = vld [vmem:[%s1026_s29 + $0x9c] sm:$0xf]  ;;  %v794_v31 = vor.u32 %v848_v23, %v793_v22  ;;  %v798_v32 = vor.u32 %v844_v24, %v795_v26  ;;  %v900_v54 = vmov 0  }
  0x48   : > { %v771_v30 = vld [vmem:[%s1026_s29 + $0xb8] sm:$0xf0]  ;;  %v770_v33 = vor.u32 %v841_v28, %v769_v27  ;;  %v761_v34 = vld [vmem:[%s1026_s29 + $0x90] sm:$0xf]  ;;  %v836_v36 = vld [vmem:[%s1026_s29 + $0x94] sm:$0xf]  ;;  %875 = vset.pattern.permute.xlu0 %v900_v54 }
  0x49   : > { %466 = vmatpush.bf16.msra.mxu0 %v682_v13  ;;  %479 = vmatpush.bf16.msra.mxu1 %v686_v17  ;;  %v840_v35 = vld [vmem:[%s1026_s29 + $0xac] sm:$0xf0]  ;;  %v774_v37 = vor.u32 %v837_v29, %v771_v30  ;;  %v763_v38 = vld [vmem:[%s1026_s29 + $0xb0] sm:$0xf0]  ;;  %v737_v39 = vld [vmem:[%s1026_s29 + $0x58] sm:$0xf] }
  0x4a   : > { %492 = vmatpush.bf16.msra.mxu2 %v690_v18  ;;  %v833_v40 = vld [vmem:[%s1026_s29 + $0x74] sm:$0xf0]  ;;  %v829_v41 = vld [vmem:[%s1026_s29 + $0x5c] sm:$0xf]  ;;  %v762_v43 = vor.u32 %v840_v35, %v761_v34  ;;  %v729_v44 = vld [vmem:[%s1026_s29 + $0x50] sm:$0xf]  ;;  %v766_v46 = vor.u32 %v836_v36, %v763_v38 }
  0x4b   : > { %505 = vmatpush.bf16.msra.mxu3 %v694_v19  ;;  %v739_v42 = vld [vmem:[%s1026_s29 + $0x78] sm:$0xf0]  ;;  %v832_v45 = vld [vmem:[%s1026_s29 + $0x6c] sm:$0xf0]  ;;  %v738_v47 = vor.u32 %v833_v40, %v737_v39  ;;  %v828_v48 = vld [vmem:[%s1026_s29 + $0x54] sm:$0xf] }
  0x4c   : > { %807 = vmatmul.msk.bf16.vlgmr.msra.gmra.mxu0 %vm455_vm0, %v1067_v20  ;;  %808 = vmatmul.msk.bf16.vlgmr.msra.gmra.mxu1 %vm455_vm0, %v1067_v20  ;;  %v289_v49 = vld [vmem:[%s1138_s1] sm:$0xf]  ;;  %v742_v50 = vor.u32 %v829_v41, %v739_v42  ;;  %v731_v51 = vld [vmem:[%s1026_s29 + $0x70] sm:$0xf0]  ;;  %v705_v52 = vld [vmem:[%s1026_s29 + $0x18] sm:$0xf]  ;;  %v730_v57 = vor.u32 %v832_v45, %v729_v44 }
  0x4d   : > { %809 = vmatmul.msk.bf16.vlgmr.msra.gmra.mxu2 %vm455_vm0, %v1067_v20  ;;  %515 = vmatpush.bf16.msrb.mxu0 %v794_v31  ;;  %v825_v53 = vld [vmem:[%s1026_s29 + $0x34] sm:$0xf0]  ;;  %v821_v55 = vld [vmem:[%s1026_s29 + $0x1c] sm:$0xf]  ;;  %v734_v58 = vor.u32 %v828_v48, %v731_v51  ;;  %v697_v60 = vld [vmem:[%s1026_s29 + $0x10] sm:$0xf] }
  0x4e   : > { %541 = vmatpush.bf16.msrb.mxu2 %v802_v21  ;;  %810 = vmatmul.msk.bf16.vlgmr.msra.gmra.mxu3 %vm455_vm0, %v1067_v20  ;;  %v707_v56 = vld [vmem:[%s1026_s29 + $0x38] sm:$0xf0]  ;;  %v706_v59 = vor.u32 %v825_v53, %v705_v52  ;;  %v824_v61 = vld [vmem:[%s1026_s29 + $0x2c] sm:$0xf0]  ;;  %v820_v63 = vld [vmem:[%s1026_s29 + $0x14] sm:$0xf] }
  0x4f   : > { %554 = vmatpush.bf16.msrb.mxu3 %v806_v25  ;;  %528 = vmatpush.bf16.msrb.mxu1 %v798_v32  ;;  %v710_v62 = vor.u32 %v821_v55, %v707_v56  ;;  %v699_v0 = vld [vmem:[%s1026_s29 + $0x30] sm:$0xf0]  ;;  %v698_v1 = vor.u32 %v824_v61, %v697_v60  ;;  %s1145_s7 = smov (!%p250_p8, %s677_s7), 23  ;;  %vm589_vm1 = vcmask 1045508   ;;  %vm585_vm2 = vcmask 1041408  }
  0x50   : > { %292 = vperm.xlu0 %875, %v289_v49   ;;  %v702_v2 = vor.u32 %v820_v63, %v699_v0  ;;  %s678_s8 = sshll.u32 %s1145_s7, 1  ;;  %vm593_vm3 = vcmask 1043456  }
  0x51   : > { %516 = vmatpush.bf16.msrb.mxu0 %v762_v43  ;;  %s253_s11 = scalar_lea.vmem %s1140_s3, %s678_s8 }
  0x52   : > { %542 = vmatpush.bf16.msrb.mxu2 %v770_v33 }
  0x53   : > { %555 = vmatpush.bf16.msrb.mxu3 %v774_v37  ;;  %529 = vmatpush.bf16.msrb.mxu1 %v766_v46 }
  0x55   : > { %517 = vmatpush.bf16.msrb.mxu0 %v730_v57 }
  0x56   : > { %543 = vmatpush.bf16.msrb.mxu2 %v738_v47 }
  0x57   : > { %556 = vmatpush.bf16.msrb.mxu3 %v742_v50  ;;  %530 = vmatpush.bf16.msrb.mxu1 %v734_v58 }
  0x59   : > { %518 = vmatpush.bf16.msrb.mxu0 %v698_v1 }
  0x5a   : > { %544 = vmatpush.bf16.msrb.mxu2 %v706_v59 }
  0x5b   : > { %557 = vmatpush.bf16.msrb.mxu3 %v710_v62  ;;  %531 = vmatpush.bf16.msrb.mxu1 %v702_v2 }
  0x5c   : > { %811 = vmatmul.msk.bf16.vlgmr.msrb.gmra.mxu0 %vm455_vm0, %v1067_v20 }
  0x5d   : > { %813 = vmatmul.msk.bf16.vlgmr.msrb.gmra.mxu2 %vm455_vm0, %v1067_v20 }
  0x5e   : > { %812 = vmatmul.msk.bf16.vlgmr.msrb.gmra.mxu1 %vm455_vm0, %v1067_v20  ;;  %814 = vmatmul.msk.bf16.vlgmr.msrb.gmra.mxu3 %vm455_vm0, %v1067_v20 }
  0xc2   : > { %v293_v3 = vpop.permute.xlu0 %292 }
  0xc9   : > { %v468_v4 = vpop.f32.mrf.mxu0  ;;  %v481_v5 = vpop.f32.mrf.mxu1 }
  0xca   : > { %v469_v6 = vadd.f32 %v468_v4, %v293_v3  ;;  %v482_v7 = vadd.f32 %v481_v5, %v293_v3 }
  0xcc   : > { %v563_v8 = vmax.f32 %v469_v6, 0.0  ;;  %v564_v9 = vmax.f32 %v482_v7, 0.0 }
  0xce   : > { %v571_v16 = vpack.c.bf16 %v564_v9, %v563_v8 }
  0xd0   : > { %v494_v10 = vpop.f32.mrf.mxu2  ;;  %v579_v20 = vrot.slane %v571_v16, 2 }
  0xd1   : > { %v495_v11 = vadd.f32 %v494_v10, %v293_v3  ;;  %v507_v12 = vpop.f32.mrf.mxu3  ;;  %v470_v13 = vpop.f32.mrf.mxu0 }
  0xd2   : > { %v508_v14 = vadd.f32 %v507_v12, %v293_v3  ;;  %v483_v15 = vpop.f32.mrf.mxu1  ;;  %v588_v27 = vsel %vm585_vm2, %v571_v16, %v579_v20 }
  0xd3   : > { %v565_v17 = vmax.f32 %v495_v11, 0.0 }
  0xd4   : > { %v566_v18 = vmax.f32 %v508_v14, 0.0 }
  0xd6   : > { %v572_v19 = vpack.c.bf16 %v566_v18, %v565_v17 }
  0xd8   : > { %v580_v21 = vrot.slane %v572_v19, 4  ;;  %v581_v22 = vrot.slane %v572_v19, 6  ;;  %v496_v23 = vpop.f32.mrf.mxu2 }
  0xd9   : > { %v509_v24 = vpop.f32.mrf.mxu3  ;;  %v520_v26 = vpop.f32.mrf.mxu0 }
  0xda   : > { %v592_v25 = vsel %vm589_vm1, %v580_v21, %v581_v22  ;;  %v521_v28 = vadd.f32 %v520_v26, %v293_v3 }
  0xdb   : > { %v533_v29 = vpop.f32.mrf.mxu1  ;;  %v594_v30 = vsel %vm593_vm3, %v588_v27, %v592_v25 }
  0xdc   : > { %v534_v31 = vadd.f32 %v533_v29, %v293_v3  ;;  %604 = vst [vmem:[%s253_s11] sm:$0xff] %v594_v30  ;;  %v567_v32 = vmax.f32 %v521_v28, 0.0 }
  0xde   : > { %v568_v33 = vmax.f32 %v534_v31, 0.0 }
  0xe0   : > { %v546_v34 = vpop.f32.mrf.mxu2  ;;  %v573_v37 = vpack.c.bf16 %v568_v33, %v567_v32 }
  0xe1   : > { %v547_v35 = vadd.f32 %v546_v34, %v293_v3  ;;  %v559_v36 = vpop.f32.mrf.mxu3  ;;  %v522_v39 = vpop.f32.mrf.mxu0 }
  0xe2   : > { %v560_v38 = vadd.f32 %v559_v36, %v293_v3  ;;  %v582_v43 = vrot.slane %v573_v37, 2 }
  0xe3   : > { %v569_v40 = vmax.f32 %v547_v35, 0.0  ;;  %v535_v41 = vpop.f32.mrf.mxu1 }
  0xe4   : > { %v570_v42 = vmax.f32 %v560_v38, 0.0  ;;  %v597_v49 = vsel %vm585_vm2, %v573_v37, %v582_v43 }
  0xe6   : > { %v574_v44 = vpack.c.bf16 %v570_v42, %v569_v40 }
  0xe8   : > { %v583_v45 = vrot.slane %v574_v44, 4  ;;  %v584_v46 = vrot.slane %v574_v44, 6  ;;  %v548_v47 = vpop.f32.mrf.mxu2 }
  0xe9   : > { %v561_v48 = vpop.f32.mrf.mxu3 }
  0xea   : > { %v600_v50 = vsel %vm589_vm1, %v583_v45, %v584_v46 }
  0xeb   : > { %v601_v51 = vsel %vm593_vm3, %v597_v49, %v600_v50 }
  0xec   : > { %605 = vst [vmem:[%s253_s11 + $0x8] sm:$0xff] %v601_v51 }
  0xed PF: > { %p10_p9 = scmp.ge.s32.totalorder %s938_s16, 5   ;;  %s1141_s12 = smov %s894_s13 }
  0xee   : > { %s1142_s13 = smov %s947_s19  ;;  %s1143_s14 = smov %s938_s16 }
  0xef   :  { %12 = sbr.rel (!%p10_p9) target bundleno = 2 (0x2), region = 90 }

// kernel: conv_autoencoder_forward.25
= control target key start
LH: loop header
LB: loop body
LE: loop exit
PB: predicated region body
PF: predicated region fallthrough
CT: control target
= control target key end

     0   :  { %s1847_s0 = inlined_call_operand.vmem [shape: bf16[1,100], index: 0, kind: input, shape index: {}]   ;;  %s1848_s1 = inlined_call_operand.<no memory space> [shape: f32[1,1], index: 1, kind: input, shape index: {}]   ;;  %s1849_s2 = inlined_call_operand.vmem [shape: bf16[100,3072], index: 2, kind: input, shape index: {}]   ;;  %s1850_s3 = inlined_call_operand.vmem [shape: f32[1,3072], index: 3, kind: output, shape index: {}]  }
   0x1   :  { %v8_v0 = vstv %s1848_s1 }
   0x2   :  { %9 = vst [vmem:[#allocation2] sm:$0x1] %v8_v0 }
   0x3   :  { %s1362_s14 = smov 0   ;;  %s1364_s15 = smov 0  }
   0x4   :  { %s1366_s16 = smov 0  }
   0x5 LB: > { %s987_s1 = sadd.s32 4294967295, %s1336_s16   ;;  %s1379_s17 = sadd.s32 1, %s1336_s16   ;;  %s1336_s16 = sphi %s1366_s16, %s1873_s16   ;;  %s1332_s15 = sphi %s1364_s15, %s1872_s15   ;;  %s1328_s14 = sphi %s1362_s14, %s1871_s14  }
   0x6   : > { %s61_s18 = ssub.s32 %s1336_s16, %s1379_s17  ;;  %s64_s19 = sadd.s32 1, %s1332_s15 }
   0x7   : > { %p62_p0 = scmp.eq.s32.totalorder %s61_s18, 0  ;;  %p71_p1 = scmp.ne.s32.totalorder %s1332_s15, %s1328_s14 }
   0x8   : > { %p72_p2 = scmp.eq.s32.totalorder %s1336_s16, 0  ;;  %p990_p4 = scmp.ge.s32.totalorder %s1336_s16, 3 }
   0x9   : > { %s1388_s20 = scalar_select %p62_p0, %s1332_s15, %s64_s19  }
   0xa   : > { %p73_p3 = por %p72_p2, %p71_p1  ;;  %129 = sbr.rel (%p990_p4) target bundleno = 71 (0x47), region = 24 }
   0xf   : > { %132 = sbr.rel (!%p73_p3) target bundleno = 71 (0x47), region = 28  ;;  %s134_s21 = sand.u32 (%p73_p3), 1, %s1332_s15  }
  0x10   : > { %s1205_s22 = sshll.u32 (%p73_p3), %s1336_s16, 5  ;;  %s1254_s23 = smul.u32 (%p73_p3), 416, %s134_s21 }
  0x11   : > { %s1396_s26 = scalar_lea.vmem (%p73_p3), %s1849_s2, %s1205_s22 }
  0x12   : > { %v152_v1 = vld [vmem:[%s1396_s26] sm:$0xff] (%p73_p3)  ;;  %v154_v2 = vld [vmem:[%s1396_s26 + $0x8] sm:$0xff] (%p73_p3)  ;;  %v156_v3 = vld [vmem:[%s1396_s26 + $0x10] sm:$0xff] (%p73_p3)  ;;  %s1401_s27 = scalar_lea.vmem (%p73_p3), [#allocation3], %s1254_s23 }
  0x13   : > { %153 = vst [vmem:[%s1401_s27] sm:$0xff] (%p73_p3), %v152_v1  ;;  %v158_v4 = vld [vmem:[%s1396_s26 + $0x18] sm:$0xff] (%p73_p3)  ;;  %v160_v5 = vld [vmem:[%s1396_s26 + $0x60] sm:$0xff] (%p73_p3)  ;;  %v162_v6 = vld [vmem:[%s1396_s26 + $0x68] sm:$0xff] (%p73_p3) }
  0x14   : > { %155 = vst [vmem:[%s1401_s27 + $0x8] sm:$0xff] %v154_v2  ;;  %v164_v7 = vld [vmem:[%s1396_s26 + $0x70] sm:$0xff]  ;;  %v166_v8 = vld [vmem:[%s1396_s26 + $0x78] sm:$0xff]  ;;  %v168_v9 = vld [vmem:[%s1396_s26 + $0xc0] sm:$0xff] }
  0x15   : > { %157 = vst [vmem:[%s1401_s27 + $0x10] sm:$0xff] %v156_v3  ;;  %v170_v10 = vld [vmem:[%s1396_s26 + $0xc8] sm:$0xff]  ;;  %v172_v11 = vld [vmem:[%s1396_s26 + $0xd0] sm:$0xff]  ;;  %v174_v12 = vld [vmem:[%s1396_s26 + $0xd8] sm:$0xff] }
  0x16   : > { %159 = vst [vmem:[%s1401_s27 + $0x18] sm:$0xff] %v158_v4  ;;  %v176_v13 = vld [vmem:[%s1396_s26 + $0x120] sm:$0xff]  ;;  %v178_v14 = vld [vmem:[%s1396_s26 + $0x128] sm:$0xff]  ;;  %v180_v15 = vld [vmem:[%s1396_s26 + $0x130] sm:$0xff] }
  0x17   : > { %161 = vst [vmem:[%s1401_s27 + $0x20] sm:$0xff] %v160_v5  ;;  %v182_v16 = vld [vmem:[%s1396_s26 + $0x138] sm:$0xff]  ;;  %v184_v17 = vld [vmem:[%s1396_s26 + $0x180] sm:$0xff]  ;;  %v186_v18 = vld [vmem:[%s1396_s26 + $0x188] sm:$0xff] }
  0x18   : > { %163 = vst [vmem:[%s1401_s27 + $0x28] sm:$0xff] %v162_v6  ;;  %v188_v19 = vld [vmem:[%s1396_s26 + $0x190] sm:$0xff]  ;;  %v190_v20 = vld [vmem:[%s1396_s26 + $0x198] sm:$0xff]  ;;  %v192_v21 = vld [vmem:[%s1396_s26 + $0x1e0] sm:$0xff] }
  0x19   : > { %165 = vst [vmem:[%s1401_s27 + $0x30] sm:$0xff] %v164_v7  ;;  %v194_v22 = vld [vmem:[%s1396_s26 + $0x1e8] sm:$0xff]  ;;  %v196_v23 = vld [vmem:[%s1396_s26 + $0x1f0] sm:$0xff]  ;;  %v198_v24 = vld [vmem:[%s1396_s26 + $0x1f8] sm:$0xff] }
  0x1a   : > { %167 = vst [vmem:[%s1401_s27 + $0x38] sm:$0xff] %v166_v8  ;;  %v200_v25 = vld [vmem:[%s1396_s26 + $0x240] sm:$0xff]  ;;  %v202_v26 = vld [vmem:[%s1396_s26 + $0x248] sm:$0xff]  ;;  %v204_v27 = vld [vmem:[%s1396_s26 + $0x250] sm:$0xff] }
  0x1b   : > { %169 = vst [vmem:[%s1401_s27 + $0x40] sm:$0xff] %v168_v9  ;;  %v206_v28 = vld [vmem:[%s1396_s26 + $0x258] sm:$0xff]  ;;  %v208_v29 = vld [vmem:[%s1396_s26 + $0x2a0] sm:$0xff]  ;;  %v210_v30 = vld [vmem:[%s1396_s26 + $0x2a8] sm:$0xff] }
  0x1c   : > { %171 = vst [vmem:[%s1401_s27 + $0x48] sm:$0xff] %v170_v10  ;;  %v212_v31 = vld [vmem:[%s1396_s26 + $0x2b0] sm:$0xff]  ;;  %v214_v32 = vld [vmem:[%s1396_s26 + $0x2b8] sm:$0xff]  ;;  %v216_v33 = vld [vmem:[%s1396_s26 + $0x300] sm:$0xff] }
  0x1d   : > { %173 = vst [vmem:[%s1401_s27 + $0x50] sm:$0xff] %v172_v11  ;;  %v218_v34 = vld [vmem:[%s1396_s26 + $0x308] sm:$0xff]  ;;  %v220_v35 = vld [vmem:[%s1396_s26 + $0x310] sm:$0xff]  ;;  %v222_v36 = vld [vmem:[%s1396_s26 + $0x318] sm:$0xff] }
  0x1e   : > { %175 = vst [vmem:[%s1401_s27 + $0x58] sm:$0xff] %v174_v12  ;;  %v224_v37 = vld [vmem:[%s1396_s26 + $0x360] sm:$0xff]  ;;  %v226_v38 = vld [vmem:[%s1396_s26 + $0x368] sm:$0xff]  ;;  %v228_v39 = vld [vmem:[%s1396_s26 + $0x370] sm:$0xff] }
  0x1f   : > { %177 = vst [vmem:[%s1401_s27 + $0x60] sm:$0xff] %v176_v13  ;;  %v230_v40 = vld [vmem:[%s1396_s26 + $0x378] sm:$0xff]  ;;  %v232_v41 = vld [vmem:[%s1396_s26 + $0x3c0] sm:$0xff]  ;;  %v234_v42 = vld [vmem:[%s1396_s26 + $0x3c8] sm:$0xff] }
  0x20   : > { %179 = vst [vmem:[%s1401_s27 + $0x68] sm:$0xff] %v178_v14  ;;  %v236_v43 = vld [vmem:[%s1396_s26 + $0x3d0] sm:$0xff]  ;;  %v238_v44 = vld [vmem:[%s1396_s26 + $0x3d8] sm:$0xff]  ;;  %v240_v45 = vld [vmem:[%s1396_s26 + $0x420] sm:$0xff] }
  0x21   : > { %181 = vst [vmem:[%s1401_s27 + $0x70] sm:$0xff] %v180_v15  ;;  %v242_v46 = vld [vmem:[%s1396_s26 + $0x428] sm:$0xff]  ;;  %v244_v47 = vld [vmem:[%s1396_s26 + $0x430] sm:$0xff]  ;;  %v246_v48 = vld [vmem:[%s1396_s26 + $0x438] sm:$0xff] }
  0x22   : > { %183 = vst [vmem:[%s1401_s27 + $0x78] sm:$0xff] %v182_v16  ;;  %v248_v49 = vld [vmem:[%s1396_s26 + $0x480] sm:$0xff]  ;;  %v250_v50 = vld [vmem:[%s1396_s26 + $0x488] sm:$0xff]  ;;  %v252_v51 = vld [vmem:[%s1396_s26 + $0x490] sm:$0xff] }
  0x23   : > { %185 = vst [vmem:[%s1401_s27 + $0x80] sm:$0xff] %v184_v17  ;;  %v254_v52 = vld [vmem:[%s1396_s26 + $0x498] sm:$0xff] }
  0x24   : > { %187 = vst [vmem:[%s1401_s27 + $0x88] sm:$0xff] %v186_v18 }
  0x25   : > { %189 = vst [vmem:[%s1401_s27 + $0x90] sm:$0xff] %v188_v19 }
  0x26   : > { %191 = vst [vmem:[%s1401_s27 + $0x98] sm:$0xff] %v190_v20 }
  0x27   : > { %193 = vst [vmem:[%s1401_s27 + $0xa0] sm:$0xff] %v192_v21 }
  0x28   : > { %195 = vst [vmem:[%s1401_s27 + $0xa8] sm:$0xff] %v194_v22 }
  0x29   : > { %197 = vst [vmem:[%s1401_s27 + $0xb0] sm:$0xff] %v196_v23 }
  0x2a   : > { %199 = vst [vmem:[%s1401_s27 + $0xb8] sm:$0xff] %v198_v24 }
  0x2b   : > { %201 = vst [vmem:[%s1401_s27 + $0xc0] sm:$0xff] %v200_v25 }
  0x2c   : > { %203 = vst [vmem:[%s1401_s27 + $0xc8] sm:$0xff] %v202_v26 }
  0x2d   : > { %205 = vst [vmem:[%s1401_s27 + $0xd0] sm:$0xff] %v204_v27 }
  0x2e   : > { %207 = vst [vmem:[%s1401_s27 + $0xd8] sm:$0xff] %v206_v28 }
  0x2f   : > { %209 = vst [vmem:[%s1401_s27 + $0xe0] sm:$0xff] %v208_v29 }
  0x30   : > { %211 = vst [vmem:[%s1401_s27 + $0xe8] sm:$0xff] %v210_v30 }
  0x31   : > { %213 = vst [vmem:[%s1401_s27 + $0xf0] sm:$0xff] %v212_v31 }
  0x32   : > { %215 = vst [vmem:[%s1401_s27 + $0xf8] sm:$0xff] %v214_v32 }
  0x33   : > { %217 = vst [vmem:[%s1401_s27 + $0x100] sm:$0xff] %v216_v33 }
  0x34   : > { %219 = vst [vmem:[%s1401_s27 + $0x108] sm:$0xff] %v218_v34 }
  0x35   : > { %221 = vst [vmem:[%s1401_s27 + $0x110] sm:$0xff] %v220_v35 }
  0x36   : > { %223 = vst [vmem:[%s1401_s27 + $0x118] sm:$0xff] %v222_v36 }
  0x37   : > { %225 = vst [vmem:[%s1401_s27 + $0x120] sm:$0xff] %v224_v37 }
  0x38   : > { %227 = vst [vmem:[%s1401_s27 + $0x128] sm:$0xff] %v226_v38 }
  0x39   : > { %229 = vst [vmem:[%s1401_s27 + $0x130] sm:$0xff] %v228_v39 }
  0x3a   : > { %231 = vst [vmem:[%s1401_s27 + $0x138] sm:$0xff] %v230_v40 }
  0x3b   : > { %233 = vst [vmem:[%s1401_s27 + $0x140] sm:$0xff] %v232_v41 }
  0x3c   : > { %235 = vst [vmem:[%s1401_s27 + $0x148] sm:$0xff] %v234_v42 }
  0x3d   : > { %237 = vst [vmem:[%s1401_s27 + $0x150] sm:$0xff] %v236_v43 }
  0x3e   : > { %239 = vst [vmem:[%s1401_s27 + $0x158] sm:$0xff] %v238_v44 }
  0x3f   : > { %241 = vst [vmem:[%s1401_s27 + $0x160] sm:$0xff] %v240_v45 }
  0x40   : > { %243 = vst [vmem:[%s1401_s27 + $0x168] sm:$0xff] %v242_v46 }
  0x41   : > { %245 = vst [vmem:[%s1401_s27 + $0x170] sm:$0xff] %v244_v47 }
  0x42   : > { %247 = vst [vmem:[%s1401_s27 + $0x178] sm:$0xff] %v246_v48 }
  0x43   : > { %249 = vst [vmem:[%s1401_s27 + $0x180] sm:$0xff] %v248_v49 }
  0x44   : > { %251 = vst [vmem:[%s1401_s27 + $0x188] sm:$0xff] %v250_v50 }
  0x45   : > { %253 = vst [vmem:[%s1401_s27 + $0x190] sm:$0xff] %v252_v51 }
  0x46   : > { %255 = vst [vmem:[%s1401_s27 + $0x198] sm:$0xff] %v254_v52 }
  0x47 PF: > { %p993_p5 = scmp.ge.s32.totalorder %s1336_s16, 1  ;;  %p260_p6 = scmp.lt.s32.totalorder %s1336_s16, 4 }
  0x49   : > { %p261_p7 = pnand %p993_p5, %p260_p6 }
  0x4a   : > { %s267_s28 = sand.u32 (!%p261_p7), 1, %s1328_s14   ;;  %s1808_s6 = sshll.u32 (!%p261_p7), %s987_s1, 3 }
  0x4b   : > { %264 = sbr.rel (%p261_p7) target bundleno = 311 (0x137), region = 51  ;;  %p291_p8 = scmp.lt.s32.totalorder (!%p261_p7), %s1808_s6, 23 }
  0x4c   : > { %s1255_s29 = smul.u32 (!%p261_p7), 416, %s267_s28 }
  0x4e   : > { %s1507_s30 = scalar_lea.vmem (!%p261_p7), [#allocation3], %s1255_s29 }
  0x50   : > { %v345_v53 = vld [vmem:[%s1507_s30 + $0x180] sm:$0x33]  ;;  %v346_v54 = vld [vmem:[%s1507_s30 + $0x188] sm:$0x33]  ;;  %vm620_vm0 = vcmask 1041408   ;;  %vm616_vm1 = vcmask 818176  }
  0x51   : > { %v504_v55 = vunpack.c.l.b16 %v345_v53  ;;  %v505_v56 = vunpack.c.h.b16 %v345_v53  ;;  %v506_v57 = vunpack.c.l.b16 %v346_v54  ;;  %v507_v58 = vunpack.c.h.b16 %v346_v54  ;;  %v1157_v59 = vld [vmem:[%s1507_s30 + $0x140] sm:$0xf]  ;;  %v1246_v1 = vld [vmem:[%s1507_s30 + $0x144] sm:$0xf]  ;;  %v1165_v3 = vld [vmem:[%s1507_s30 + $0x148] sm:$0xf] }
  0x52   : > { %v1250_v60 = vld [vmem:[%s1507_s30 + $0x15c] sm:$0xf0]  ;;  %v1159_v2 = vld [vmem:[%s1507_s30 + $0x160] sm:$0xf0]  ;;  %v1251_v4 = vld [vmem:[%s1507_s30 + $0x164] sm:$0xf0] }
  0x53   : > { %v560_v61 = vpack.c.b16 %v504_v55, %v504_v55  ;;  %v561_v62 = vpack.c.b16 %v505_v56, %v505_v56  ;;  %v562_v63 = vpack.c.b16 %v506_v57, %v506_v57  ;;  %v563_v0 = vpack.c.b16 %v507_v58, %v507_v58  ;;  %v1247_v5 = vld [vmem:[%s1507_s30 + $0x14c] sm:$0xf]  ;;  %v1125_v13 = vld [vmem:[%s1507_s30 + $0x100] sm:$0xf]  ;;  %v1238_v17 = vld [vmem:[%s1507_s30 + $0x104] sm:$0xf] }
  0x54   : > { %v1167_v6 = vld [vmem:[%s1507_s30 + $0x168] sm:$0xf0]  ;;  %v1158_v11 = vor.u32 %v1250_v60, %v1157_v59  ;;  %v1162_v12 = vor.u32 %v1246_v1, %v1159_v2  ;;  %v1242_v14 = vld [vmem:[%s1507_s30 + $0x11c] sm:$0xf0]  ;;  %v1166_v15 = vor.u32 %v1251_v4, %v1165_v3  ;;  %v1127_v18 = vld [vmem:[%s1507_s30 + $0x120] sm:$0xf0] }
  0x55   : > { %v622_v7 = vsel %vm620_vm0, %v560_v61, 0  ;;  %v625_v8 = vsel %vm620_vm0, %v561_v62, 0  ;;  %v628_v9 = vsel %vm620_vm0, %v562_v63, 0  ;;  %v631_v10 = vsel %vm620_vm0, %v563_v0, 0  ;;  %v1133_v19 = vld [vmem:[%s1507_s30 + $0x108] sm:$0xf] }
  0x56   : > { %646 = vmatpush.bf16.msra.mxu0 %v622_v7  ;;  %659 = vmatpush.bf16.msra.mxu1 %v625_v8  ;;  %v1170_v16 = vor.u32 %v1247_v5, %v1167_v6  ;;  %v1243_v20 = vld [vmem:[%s1507_s30 + $0x124] sm:$0xf0]  ;;  %v1239_v21 = vld [vmem:[%s1507_s30 + $0x10c] sm:$0xf]  ;;  %v1126_v23 = vor.u32 %v1242_v14, %v1125_v13  ;;  %v1130_v24 = vor.u32 %v1238_v17, %v1127_v18  ;;  %v1093_v25 = vld [vmem:[%s1507_s30 + $0xc0] sm:$0xf] }
  0x57   : > { %672 = vmatpush.bf16.msra.mxu2 %v628_v9  ;;  %685 = vmatpush.bf16.msra.mxu3 %v631_v10  ;;  %v1135_v22 = vld [vmem:[%s1507_s30 + $0x128] sm:$0xf0]  ;;  %v1234_v26 = vld [vmem:[%s1507_s30 + $0xdc] sm:$0xf0]  ;;  %v1134_v27 = vor.u32 %v1243_v20, %v1133_v19  ;;  %v1230_v29 = vld [vmem:[%s1507_s30 + $0xc4] sm:$0xf] }
  0x58   : > { %v1138_v28 = vor.u32 %v1239_v21, %v1135_v22  ;;  %v1095_v30 = vld [vmem:[%s1507_s30 + $0xe0] sm:$0xf0]  ;;  %v1101_v31 = vld [vmem:[%s1507_s30 + $0xc8] sm:$0xf]  ;;  %v1231_v33 = vld [vmem:[%s1507_s30 + $0xcc] sm:$0xf]  ;;  %v1094_v35 = vor.u32 %v1234_v26, %v1093_v25 }
  0x59   : > { %v1235_v32 = vld [vmem:[%s1507_s30 + $0xe4] sm:$0xf0]  ;;  %v1103_v34 = vld [vmem:[%s1507_s30 + $0xe8] sm:$0xf0]  ;;  %v1098_v36 = vor.u32 %v1230_v29, %v1095_v30  ;;  %v1061_v37 = vld [vmem:[%s1507_s30 + $0x80] sm:$0xf] }
  0x5a   : > { %647 = vmatpush.bf16.msra.mxu0 %v1158_v11  ;;  %660 = vmatpush.bf16.msra.mxu1 %v1162_v12  ;;  %v1226_v38 = vld [vmem:[%s1507_s30 + $0x9c] sm:$0xf0]  ;;  %v1102_v39 = vor.u32 %v1235_v32, %v1101_v31  ;;  %v1106_v40 = vor.u32 %v1231_v33, %v1103_v34  ;;  %v1222_v41 = vld [vmem:[%s1507_s30 + $0x84] sm:$0xf]  ;;  %v1069_v43 = vld [vmem:[%s1507_s30 + $0x88] sm:$0xf] }
  0x5b   : > { %673 = vmatpush.bf16.msra.mxu2 %v1166_v15  ;;  %686 = vmatpush.bf16.msra.mxu3 %v1170_v16  ;;  %v1063_v42 = vld [vmem:[%s1507_s30 + $0xa0] sm:$0xf0]  ;;  %v1227_v44 = vld [vmem:[%s1507_s30 + $0xa4] sm:$0xf0]  ;;  %v1223_v45 = vld [vmem:[%s1507_s30 + $0x8c] sm:$0xf]  ;;  %v1062_v49 = vor.u32 %v1226_v38, %v1061_v37 }
  0x5c   : > { %v1071_v46 = vld [vmem:[%s1507_s30 + $0xa8] sm:$0xf0]  ;;  %v1029_v47 = vld [vmem:[%s1507_s30 + $0x40] sm:$0xf]  ;;  %v1066_v50 = vor.u32 %v1222_v41, %v1063_v42  ;;  %v1214_v51 = vld [vmem:[%s1507_s30 + $0x44] sm:$0xf]  ;;  %v1070_v54 = vor.u32 %v1227_v44, %v1069_v43 }
  0x5d   : > { %v1218_v48 = vld [vmem:[%s1507_s30 + $0x5c] sm:$0xf0]  ;;  %v1031_v52 = vld [vmem:[%s1507_s30 + $0x60] sm:$0xf0]  ;;  %v347_v53 = vld [vmem:[%s1507_s30 + $0x190] sm:$0x33]  ;;  %v1074_v55 = vor.u32 %v1223_v45, %v1071_v46 }
  0x5e   : > { %648 = vmatpush.bf16.msra.mxu0 %v1126_v23  ;;  %661 = vmatpush.bf16.msra.mxu1 %v1130_v24  ;;  %v1037_v56 = vld [vmem:[%s1507_s30 + $0x48] sm:$0xf]  ;;  %v348_v57 = vld [vmem:[%s1507_s30 + $0x198] sm:$0x33]  ;;  %v1215_v59 = vld [vmem:[%s1507_s30 + $0x4c] sm:$0xf]  ;;  %v508_v62 = vunpack.c.l.b16 %v347_v53  ;;  %v509_v63 = vunpack.c.h.b16 %v347_v53  ;;  %v1030_v0 = vor.u32 %v1218_v48, %v1029_v47  ;;  %v1034_v1 = vor.u32 %v1214_v51, %v1031_v52 }
  0x5f   : > { %674 = vmatpush.bf16.msra.mxu2 %v1134_v27  ;;  %687 = vmatpush.bf16.msra.mxu3 %v1138_v28  ;;  %v1219_v58 = vld [vmem:[%s1507_s30 + $0x64] sm:$0xf0]  ;;  %v1039_v60 = vld [vmem:[%s1507_s30 + $0x68] sm:$0xf0]  ;;  %v1338_v61 = vmov 0   ;;  %v510_v4 = vunpack.c.l.b16 %v348_v57  ;;  %v511_v5 = vunpack.c.h.b16 %v348_v57  ;;  %s1875_s6 = smov (!%p291_p8, %s1808_s6), 23 }
  0x60   : > { %1281 = vset.pattern.permute.xlu0 %v1338_v61  ;;  %v997_v2 = vld [vmem:[%s1507_s30] sm:$0xf]  ;;  %v1038_v6 = vor.u32 %v1219_v58, %v1037_v56  ;;  %v1042_v7 = vor.u32 %v1215_v59, %v1039_v60  ;;  %v1206_v8 = vld [vmem:[%s1507_s30 + $0x4] sm:$0xf]  ;;  %v1005_v10 = vld [vmem:[%s1507_s30 + $0x8] sm:$0xf]  ;;  %v564_v15 = vpack.c.b16 %v508_v62, %v508_v62  ;;  %v565_v16 = vpack.c.b16 %v509_v63, %v509_v63  ;;  %s293_s9 = scalar_lea.vmem %s1850_s3, %s1875_s6 }
  0x61   : > { %v1210_v3 = vld [vmem:[%s1507_s30 + $0x1c] sm:$0xf0]  ;;  %v999_v9 = vld [vmem:[%s1507_s30 + $0x20] sm:$0xf0]  ;;  %v1211_v11 = vld [vmem:[%s1507_s30 + $0x24] sm:$0xf0]  ;;  %v566_v19 = vpack.c.b16 %v510_v4, %v510_v4  ;;  %v567_v20 = vpack.c.b16 %v511_v5, %v511_v5 }
  0x62   : > { %649 = vmatpush.bf16.msra.mxu0 %v1094_v35  ;;  %662 = vmatpush.bf16.msra.mxu1 %v1098_v36  ;;  %v1207_v12 = vld [vmem:[%s1507_s30 + $0xc] sm:$0xf]  ;;  %v998_v14 = vor.u32 %v1210_v3, %v997_v2  ;;  %v349_v17 = vld [vmem:[#allocation2] sm:$0x1]  ;;  %v1002_v18 = vor.u32 %v1206_v8, %v999_v9  ;;  %v1006_v21 = vor.u32 %v1211_v11, %v1005_v10  ;;  %v1173_v23 = vld [vmem:[%s1507_s30 + $0x150] sm:$0xf] }
  0x63   : > { %675 = vmatpush.bf16.msra.mxu2 %v1102_v39  ;;  %688 = vmatpush.bf16.msra.mxu3 %v1106_v40  ;;  %v1007_v13 = vld [vmem:[%s1507_s30 + $0x28] sm:$0xf0]  ;;  %v1252_v24 = vld [vmem:[%s1507_s30 + $0x16c] sm:$0xf0]  ;;  %v1248_v25 = vld [vmem:[%s1507_s30 + $0x154] sm:$0xf] }
  0x64   : > { %v1010_v22 = vor.u32 %v1207_v12, %v1007_v13  ;;  %v1175_v26 = vld [vmem:[%s1507_s30 + $0x170] sm:$0xf0]  ;;  %352 = vperm.xlu0 %1281, %v349_v17   ;;  %v634_v27 = vsel %vm620_vm0, %v564_v15, 0  ;;  %v637_v28 = vsel %vm620_vm0, %v565_v16, 0  ;;  %v1181_v29 = vld [vmem:[%s1507_s30 + $0x158] sm:$0xf]  ;;  %v1174_v36 = vor.u32 %v1252_v24, %v1173_v23 }
  0x65   : > { %v1253_v30 = vld [vmem:[%s1507_s30 + $0x174] sm:$0xf0]  ;;  %v640_v31 = vsel %vm620_vm0, %v566_v19, 0  ;;  %v643_v32 = vsel %vm620_vm0, %v567_v20, 0  ;;  %v1249_v33 = vld [vmem:[%s1507_s30 + $0x15c] sm:$0xf]  ;;  %v1178_v37 = vor.u32 %v1248_v25, %v1175_v26 }
  0x66   : > { %650 = vmatpush.bf16.msra.mxu0 %v1062_v49  ;;  %663 = vmatpush.bf16.msra.mxu1 %v1066_v50  ;;  %v1183_v34 = vld [vmem:[%s1507_s30 + $0x178] sm:$0xf0]  ;;  %v1141_v38 = vld [vmem:[%s1507_s30 + $0x110] sm:$0xf]  ;;  %v1182_v40 = vor.u32 %v1253_v30, %v1181_v29  ;;  %v1240_v42 = vld [vmem:[%s1507_s30 + $0x114] sm:$0xf] }
  0x67   : > { %676 = vmatpush.bf16.msra.mxu2 %v1070_v54  ;;  %689 = vmatpush.bf16.msra.mxu3 %v1074_v55  ;;  %v1580_v35 = vld [vmem:[%s1847_s0] sm:$0x1]  ;;  %v1244_v39 = vld [vmem:[%s1507_s30 + $0x12c] sm:$0xf0]  ;;  %v1186_v41 = vor.u32 %v1249_v33, %v1183_v34  ;;  %v1143_v43 = vld [vmem:[%s1507_s30 + $0x130] sm:$0xf0] }
  0x68   : > { %v1149_v44 = vld [vmem:[%s1507_s30 + $0x118] sm:$0xf]  ;;  %v1241_v46 = vld [vmem:[%s1507_s30 + $0x11c] sm:$0xf]  ;;  %v1142_v48 = vor.u32 %v1244_v39, %v1141_v38  ;;  %v1146_v49 = vor.u32 %v1240_v42, %v1143_v43  ;;  %v1109_v50 = vld [vmem:[%s1507_s30 + $0xd0] sm:$0xf] }
  0x69   : > { %v1245_v45 = vld [vmem:[%s1507_s30 + $0x134] sm:$0xf0]  ;;  %v1151_v47 = vld [vmem:[%s1507_s30 + $0x138] sm:$0xf0]  ;;  %v1236_v51 = vld [vmem:[%s1507_s30 + $0xec] sm:$0xf0] }
  0x6a   : > { %651 = vmatpush.bf16.msra.mxu0 %v1030_v0  ;;  %664 = vmatpush.bf16.msra.mxu1 %v1034_v1  ;;  %v1150_v52 = vor.u32 %v1245_v45, %v1149_v44  ;;  %v1154_v53 = vor.u32 %v1241_v46, %v1151_v47  ;;  %v1232_v54 = vld [vmem:[%s1507_s30 + $0xd4] sm:$0xf]  ;;  %v1117_v56 = vld [vmem:[%s1507_s30 + $0xd8] sm:$0xf]  ;;  %v1233_v58 = vld [vmem:[%s1507_s30 + $0xdc] sm:$0xf]  ;;  %v1110_v60 = vor.u32 %v1236_v51, %v1109_v50 }
  0x6b   : > { %677 = vmatpush.bf16.msra.mxu2 %v1038_v6  ;;  %690 = vmatpush.bf16.msra.mxu3 %v1042_v7  ;;  %v1111_v55 = vld [vmem:[%s1507_s30 + $0xf0] sm:$0xf0]  ;;  %v1237_v57 = vld [vmem:[%s1507_s30 + $0xf4] sm:$0xf0]  ;;  %v1119_v59 = vld [vmem:[%s1507_s30 + $0xf8] sm:$0xf0] }
  0x6c   : > { %v1114_v61 = vor.u32 %v1232_v54, %v1111_v55  ;;  %v1077_v62 = vld [vmem:[%s1507_s30 + $0x90] sm:$0xf]  ;;  %v1118_v0 = vor.u32 %v1237_v57, %v1117_v56  ;;  %v1122_v1 = vor.u32 %v1233_v58, %v1119_v59  ;;  %v1224_v2 = vld [vmem:[%s1507_s30 + $0x94] sm:$0xf]  ;;  %v1085_v4 = vld [vmem:[%s1507_s30 + $0x98] sm:$0xf] }
  0x6d   : > { %v1228_v63 = vld [vmem:[%s1507_s30 + $0xac] sm:$0xf0]  ;;  %v1079_v3 = vld [vmem:[%s1507_s30 + $0xb0] sm:$0xf0]  ;;  %v1229_v5 = vld [vmem:[%s1507_s30 + $0xb4] sm:$0xf0] }
  0x6e   : > { %652 = vmatpush.bf16.msra.mxu0 %v998_v14  ;;  %665 = vmatpush.bf16.msra.mxu1 %v1002_v18  ;;  %v1225_v6 = vld [vmem:[%s1507_s30 + $0x9c] sm:$0xf]  ;;  %v1078_v8 = vor.u32 %v1228_v63, %v1077_v62  ;;  %v1082_v9 = vor.u32 %v1224_v2, %v1079_v3  ;;  %v1045_v10 = vld [vmem:[%s1507_s30 + $0x50] sm:$0xf]  ;;  %v1086_v12 = vor.u32 %v1229_v5, %v1085_v4  ;;  %v1216_v14 = vld [vmem:[%s1507_s30 + $0x54] sm:$0xf] }
  0x6f   : > { %678 = vmatpush.bf16.msra.mxu2 %v1006_v21  ;;  %691 = vmatpush.bf16.msra.mxu3 %v1010_v22  ;;  %v1087_v7 = vld [vmem:[%s1507_s30 + $0xb8] sm:$0xf0]  ;;  %v1220_v11 = vld [vmem:[%s1507_s30 + $0x6c] sm:$0xf0]  ;;  %v1047_v15 = vld [vmem:[%s1507_s30 + $0x70] sm:$0xf0] }
  0x70   : > { %v1090_v13 = vor.u32 %v1225_v6, %v1087_v7  ;;  %v1053_v16 = vld [vmem:[%s1507_s30 + $0x58] sm:$0xf]  ;;  %v1217_v18 = vld [vmem:[%s1507_s30 + $0x5c] sm:$0xf]  ;;  %v1046_v20 = vor.u32 %v1220_v11, %v1045_v10  ;;  %v1050_v21 = vor.u32 %v1216_v14, %v1047_v15  ;;  %v1013_v22 = vld [vmem:[%s1507_s30 + $0x10] sm:$0xf] }
  0x71   : > { %1188 = vmatmul.msk.bf16.vlgmr.msra.gmra.mxu1 %vm616_vm1, %v1580_v35  ;;  %1187 = vmatmul.msk.bf16.vlgmr.msra.gmra.mxu0 %vm616_vm1, %v1580_v35  ;;  %v1221_v17 = vld [vmem:[%s1507_s30 + $0x74] sm:$0xf0]  ;;  %v1055_v19 = vld [vmem:[%s1507_s30 + $0x78] sm:$0xf0]  ;;  %v1212_v23 = vld [vmem:[%s1507_s30 + $0x2c] sm:$0xf0] }
  0x72   : > { %698 = vmatpush.bf16.msrb.mxu0 %v634_v27  ;;  %711 = vmatpush.bf16.msrb.mxu1 %v637_v28  ;;  %v1054_v24 = vor.u32 %v1221_v17, %v1053_v16  ;;  %v1058_v25 = vor.u32 %v1217_v18, %v1055_v19  ;;  %v1208_v26 = vld [vmem:[%s1507_s30 + $0x14] sm:$0xf]  ;;  %v1021_v28 = vld [vmem:[%s1507_s30 + $0x18] sm:$0xf]  ;;  %v1209_v30 = vld [vmem:[%s1507_s30 + $0x1c] sm:$0xf] }
  0x73   : > { %724 = vmatpush.bf16.msrb.mxu2 %v640_v31  ;;  %737 = vmatpush.bf16.msrb.mxu3 %v643_v32  ;;  %v1015_v27 = vld [vmem:[%s1507_s30 + $0x30] sm:$0xf0]  ;;  %v1213_v29 = vld [vmem:[%s1507_s30 + $0x34] sm:$0xf0]  ;;  %v1023_v31 = vld [vmem:[%s1507_s30 + $0x38] sm:$0xf0]  ;;  %v1014_v32 = vor.u32 %v1212_v23, %v1013_v22 }
  0x74   : > { %1189 = vmatmul.msk.bf16.vlgmr.msra.gmra.mxu2 %vm616_vm1, %v1580_v35  ;;  %1190 = vmatmul.msk.bf16.vlgmr.msra.gmra.mxu3 %vm616_vm1, %v1580_v35  ;;  %v1018_v33 = vor.u32 %v1208_v26, %v1015_v27  ;;  %v1022_v34 = vor.u32 %v1213_v29, %v1021_v28 }
  0x76   : > { %699 = vmatpush.bf16.msrb.mxu0 %v1174_v36  ;;  %712 = vmatpush.bf16.msrb.mxu1 %v1178_v37  ;;  %v1026_v36 = vor.u32 %v1209_v30, %v1023_v31 }
  0x77   : > { %725 = vmatpush.bf16.msrb.mxu2 %v1182_v40  ;;  %738 = vmatpush.bf16.msrb.mxu3 %v1186_v41 }
  0x7a   : > { %700 = vmatpush.bf16.msrb.mxu0 %v1142_v48  ;;  %713 = vmatpush.bf16.msrb.mxu1 %v1146_v49 }
  0x7b   : > { %726 = vmatpush.bf16.msrb.mxu2 %v1150_v52  ;;  %739 = vmatpush.bf16.msrb.mxu3 %v1154_v53 }
  0x7e   : > { %701 = vmatpush.bf16.msrb.mxu0 %v1110_v60  ;;  %714 = vmatpush.bf16.msrb.mxu1 %v1114_v61 }
  0x7f   : > { %727 = vmatpush.bf16.msrb.mxu2 %v1118_v0  ;;  %740 = vmatpush.bf16.msrb.mxu3 %v1122_v1 }
  0x82   : > { %702 = vmatpush.bf16.msrb.mxu0 %v1078_v8  ;;  %715 = vmatpush.bf16.msrb.mxu1 %v1082_v9 }
  0x83   : > { %728 = vmatpush.bf16.msrb.mxu2 %v1086_v12  ;;  %741 = vmatpush.bf16.msrb.mxu3 %v1090_v13 }
  0x86   : > { %703 = vmatpush.bf16.msrb.mxu0 %v1046_v20  ;;  %716 = vmatpush.bf16.msrb.mxu1 %v1050_v21 }
  0x87   : > { %729 = vmatpush.bf16.msrb.mxu2 %v1054_v24  ;;  %742 = vmatpush.bf16.msrb.mxu3 %v1058_v25 }
  0x8a   : > { %704 = vmatpush.bf16.msrb.mxu0 %v1014_v32  ;;  %717 = vmatpush.bf16.msrb.mxu1 %v1018_v33 }
  0x8b   : > { %730 = vmatpush.bf16.msrb.mxu2 %v1022_v34  ;;  %743 = vmatpush.bf16.msrb.mxu3 %v1026_v36 }
  0x8d   : > { %1191 = vmatmul.msk.bf16.vlgmr.msrb.gmra.mxu0 %vm616_vm1, %v1580_v35  ;;  %1192 = vmatmul.msk.bf16.vlgmr.msrb.gmra.mxu1 %vm616_vm1, %v1580_v35 }
  0x8e   : > { %1193 = vmatmul.msk.bf16.vlgmr.msrb.gmra.mxu2 %vm616_vm1, %v1580_v35  ;;  %1194 = vmatmul.msk.bf16.vlgmr.msrb.gmra.mxu3 %vm616_vm1, %v1580_v35 }
  0xd6   : > { %v353_v37 = vpop.permute.xlu0 %352 }
  0xd7   : > { %v355_v38 = vperm.slane %v353_v37, 0 }
  0xee   : > { %v667_v39 = vpop.f32.mrf.mxu1  ;;  %v654_v41 = vpop.f32.mrf.mxu0 }
  0xef   : > { %v668_v40 = vadd.f32 %v667_v39, %v355_v38  ;;  %v655_v46 = vadd.f32 %v654_v41, %v355_v38 }
  0xf1   : > { %v1196_v42 = vmul.f32 -1.442695, %v668_v40  ;;  %v1195_v52 = vmul.f32 -1.442695, %v655_v46 }
  0xf3   : > { %1282 = vpow2.f32 %v1196_v42 }
  0xf6   : > { %v669_v48 = vpop.f32.mrf.mxu1  ;;  %v656_v50 = vpop.f32.mrf.mxu0 }
  0xf7   : > { %v680_v43 = vpop.f32.mrf.mxu2  ;;  %v693_v45 = vpop.f32.mrf.mxu3 }
  0xf8   : > { %v681_v44 = vadd.f32 %v680_v43, %v355_v38  ;;  %v694_v47 = vadd.f32 %v693_v45, %v355_v38 }
  0xf9   : > { %v1283_v53 = vpop.eup %1282 }
  0xfa   : > { %v1197_v49 = vmul.f32 -1.442695, %v681_v44  ;;  %v1198_v51 = vmul.f32 -1.442695, %v694_v47  ;;  %v1638_v56 = vadd.f32 1.0, %v1283_v53 }
  0xfc   : > { %1284 = vpow2.f32 %v1197_v49  ;;  %v805_v23 = vand.u32 2147483647, %v1638_v56  ;;  %v807_v25 = vand.u32 2147483648, %v1638_v56  ;;  %vm801_vm2 = vweird.f32 %v1638_v56 }
  0xfd   : > { %1286 = vpow2.f32 %v1198_v51 }
  0xfe   : > { %1288 = vpow2.f32 %v1195_v52  ;;  %vm1680_vm5 = vcmp.eq.f32.partialorder %v805_v23, 8.507059e+37  ;;  %v808_v36 = vor.u32 1.1754944e-38, %v807_v25 }
  0xff   : > { %v682_v35 = vpop.f32.mrf.mxu2  ;;  %v695_v54 = vpop.f32.mrf.mxu3  ;;  %1290 = vrcp.f32 %v1638_v56 }
 0x102   : > { %v1285_v55 = vpop.eup %1284 }
 0x103   : > { %v1287_v57 = vpop.eup %1286  ;;  %v1640_v58 = vadd.f32 1.0, %v1285_v55 }
 0x104   : > { %v1289_v59 = vpop.eup %1288  ;;  %v1643_v60 = vadd.f32 1.0, %v1287_v57 }
 0x105   : > { %1292 = vrcp.f32 %v1640_v58  ;;  %v1646_v61 = vadd.f32 1.0, %v1289_v59  ;;  %v1649_v2 = vpop.eup %1290  ;;  %vm816_vm6 = vweird.f32 %v1640_v58  ;;  %v820_v46 = vand.u32 2147483647, %v1640_v58 }
 0x106   : > { %1294 = vrcp.f32 %v1643_v60  ;;  %v797_v6 = vmul.f32 %v1649_v2, %v1638_v56  ;;  %vm802_vm3 = vweird.f32 %v1649_v2  ;;  %v822_v49 = vand.u32 2147483648, %v1640_v58 }
 0x107   : > { %1296 = vrcp.f32 %v1646_v61  ;;  %v792_v29 = vand.u32 2147483648, %v1646_v61  ;;  %vm786_vm4 = vweird.f32 %v1646_v61  ;;  %vm1690_vm7 = vmor %vm801_vm2, %vm802_vm3  ;;  %vm831_vm9 = vweird.f32 %v1643_v60 }
 0x108   : > { %v798_v16 = vsub.f32 1.0, %v797_v6  ;;  %v835_v50 = vand.u32 2147483647, %v1643_v60  ;;  %v837_v53 = vand.u32 2147483648, %v1643_v60  ;;  %vm821_vm13 = vcmp.eq.f32.partialorder %v820_v46, 8.507059e+37 }
 0x109   : > { %v1686_v41 = vor.u32 1.1754944e-38, %v792_v29 }
 0x10a   : > { %v706_v62 = vpop.f32.mrf.mxu0  ;;  %v719_v63 = vpop.f32.mrf.mxu1  ;;  %v799_v28 = vmul.f32 %v1649_v2, %v798_v16  ;;  %vm1731_vm14 = vcmp.eq.f32.partialorder %v835_v50, 8.507059e+37 }
 0x10b   : > { %v707_v0 = vadd.f32 %v706_v62, %v355_v38  ;;  %v720_v1 = vadd.f32 %v719_v63, %v355_v38  ;;  %v1651_v4 = vpop.eup %1292 }
 0x10c   : > { %v1656_v7 = vpop.eup %1294  ;;  %v812_v8 = vmul.f32 %v1651_v4, %v1640_v58  ;;  %v800_v40 = vadd.f32 %v1649_v2, %v799_v28  ;;  %vm817_vm8 = vweird.f32 %v1651_v4  ;;  %v823_v58 = vor.u32 1.1754944e-38, %v822_v49 }
 0x10d   : > { %v1199_v3 = vmul.f32 -1.442695, %v707_v0  ;;  %v1200_v5 = vmul.f32 -1.442695, %v720_v1  ;;  %v1660_v15 = vpop.eup %1296  ;;  %v827_v17 = vmul.f32 %v1656_v7, %v1643_v60  ;;  %vm1718_vm10 = vmor %vm816_vm6, %vm817_vm8  ;;  %vm832_vm11 = vweird.f32 %v1656_v7 }
 0x10e   : > { %v813_v21 = vsub.f32 1.0, %v812_v8  ;;  %v782_v26 = vmul.f32 %v1660_v15, %v1646_v61  ;;  %v804_v55 = vsel %vm1690_vm7, %v1649_v2, %v800_v40  ;;  %vm787_vm12 = vweird.f32 %v1660_v15  ;;  %vm1744_vm15 = vmor %vm831_vm9, %vm832_vm11 }
 0x10f   : > { %1298 = vpow2.f32 %v1199_v3  ;;  %v828_v30 = vsub.f32 1.0, %v827_v17  ;;  %v1737_v2 = vsel %vm1680_vm5, %v808_v36, %v804_v55  ;;  %vm1751_vm1 = vmor %vm786_vm4, %vm787_vm12  ;;  %vm918_vm7 = vcmask 1042434  }
 0x110   : > { %1300 = vpow2.f32 %v1200_v5  ;;  %v814_v31 = vmul.f32 %v1651_v4, %v813_v21  ;;  %v783_v37 = vsub.f32 1.0, %v782_v26  ;;  %v838_v5 = vor.u32 1.1754944e-38, %v837_v53 }
 0x111   : > { %v732_v9 = vpop.f32.mrf.mxu2  ;;  %v745_v10 = vpop.f32.mrf.mxu3  ;;  %v829_v42 = vmul.f32 %v1656_v7, %v828_v30 }
 0x112   : > { %v733_v11 = vadd.f32 %v732_v9, %v355_v38  ;;  %v746_v12 = vadd.f32 %v745_v10, %v355_v38  ;;  %v708_v13 = vpop.f32.mrf.mxu0  ;;  %v721_v14 = vpop.f32.mrf.mxu1  ;;  %v790_v38 = vand.u32 2147483647, %v1646_v61  ;;  %v815_v45 = vadd.f32 %v1651_v4, %v814_v31 }
 0x113   : > { %v784_v35 = vmul.f32 %v1660_v15, %v783_v37  ;;  %v830_v57 = vadd.f32 %v1656_v7, %v829_v42 }
 0x114   : > { %v1201_v18 = vmul.f32 -1.442695, %v733_v11  ;;  %v1202_v19 = vmul.f32 -1.442695, %v746_v12  ;;  %v819_v62 = vsel %vm1718_vm10, %v1651_v4, %v815_v45  ;;  %vm1766_vm5 = vcmp.eq.f32.partialorder %v790_v38, 8.507059e+37 }
 0x115   : > { %v1299_v20 = vpop.eup %1298  ;;  %v1740_v3 = vadd.f32 %v1660_v15, %v784_v35  ;;  %v1755_v9 = vsel %vm821_vm13, %v823_v58, %v819_v62  ;;  %v834_v10 = vsel %vm1744_vm15, %v1656_v7, %v830_v57  ;;  %vm916_vm10 = vcmask 1040384  }
 0x116   : > { %v1301_v22 = vpop.eup %1300  ;;  %v1665_v24 = vadd.f32 1.0, %v1299_v20  ;;  %1302 = vpow2.f32 %v1201_v18 }
 0x117   : > { %v1670_v27 = vadd.f32 1.0, %v1301_v22  ;;  %1304 = vpow2.f32 %v1202_v19  ;;  %v789_v18 = vsel %vm1751_vm1, %v1660_v15, %v1740_v3  ;;  %v910_v19 = vrot.slane %v1755_v9, 6 }
 0x118   : > { %1306 = vrcp.f32 %v1665_v24  ;;  %v850_v60 = vand.u32 2147483647, %v1665_v24  ;;  %vm846_vm2 = vweird.f32 %v1665_v24  ;;  %v852_v61 = vand.u32 2147483648, %v1665_v24 }
 0x119   : > { %1308 = vrcp.f32 %v1670_v27  ;;  %v734_v32 = vpop.f32.mrf.mxu2  ;;  %v747_v33 = vpop.f32.mrf.mxu3  ;;  %vm861_vm4 = vweird.f32 %v1670_v27  ;;  %v865_v20 = vand.u32 2147483647, %v1670_v27  ;;  %v867_v21 = vand.u32 2147483648, %v1670_v27 }
 0x11a   : > { %v839_v22 = vsel %vm1731_vm14, %v838_v5, %v834_v10  ;;  %vm1791_vm9 = vcmp.eq.f32.partialorder %v850_v60, 8.507059e+37  ;;  %v853_v28 = vor.u32 1.1754944e-38, %v852_v61 }
 0x11b   : > { %vm866_vm13 = vcmp.eq.f32.partialorder %v865_v20, 8.507059e+37  ;;  %v868_v34 = vor.u32 1.1754944e-38, %v867_v21  ;;  %v911_v40 = vrot.slane %v839_v22, 5 }
 0x11c   : > { %v1303_v39 = vpop.eup %1302 }
 0x11d   : > { %v1305_v43 = vpop.eup %1304  ;;  %v1697_v47 = vadd.f32 1.0, %v1303_v39 }
 0x11e   : > { %v1699_v48 = vpop.eup %1306  ;;  %v1704_v51 = vadd.f32 1.0, %v1305_v43 }
 0x11f   : > { %v1706_v52 = vpop.eup %1308  ;;  %v842_v54 = vmul.f32 %v1699_v48, %v1665_v24  ;;  %1310 = vrcp.f32 %v1697_v47  ;;  %vm847_vm3 = vweird.f32 %v1699_v48  ;;  %v880_v24 = vand.u32 2147483647, %v1697_v47 }
 0x120   : > { %v857_v59 = vmul.f32 %v1706_v52, %v1670_v27  ;;  %1312 = vrcp.f32 %v1704_v51  ;;  %vm862_vm6 = vweird.f32 %v1706_v52  ;;  %vm1787_vm8 = vmor %vm846_vm2, %vm847_vm3  ;;  %v882_v30 = vand.u32 2147483648, %v1697_v47 }
 0x121   : > { %v843_v63 = vsub.f32 1.0, %v842_v54  ;;  %vm1800_vm11 = vmor %vm861_vm4, %vm862_vm6  ;;  %v895_v36 = vand.u32 2147483647, %v1704_v51  ;;  %v897_v37 = vand.u32 2147483648, %v1704_v51  ;;  %vm876_vm14 = vweird.f32 %v1697_v47 }
 0x122   : > { %v858_v1 = vsub.f32 1.0, %v857_v59  ;;  %v883_v44 = vor.u32 1.1754944e-38, %v882_v30  ;;  %vm881_vm2 = vcmp.eq.f32.partialorder %v880_v24, 8.507059e+37  ;;  %vm891_vm3 = vweird.f32 %v1704_v51 }
 0x123   : > { %v844_v6 = vmul.f32 %v1699_v48, %v843_v63  ;;  %vm896_vm6 = vcmp.eq.f32.partialorder %v895_v36, 8.507059e+37  ;;  %v898_v49 = vor.u32 1.1754944e-38, %v897_v37  ;;  %v794_v54 = vsel %vm1766_vm5, %v1686_v41, %v789_v18 }
 0x124   : > { %v859_v11 = vmul.f32 %v1706_v52, %v858_v1 }
 0x125   : > { %v1311_v12 = vpop.eup %1310  ;;  %v845_v14 = vadd.f32 %v1699_v48, %v844_v6 }
 0x126   : > { %v860_v7 = vadd.f32 %v1706_v52, %v859_v11  ;;  %v872_v16 = vmul.f32 %v1311_v12, %v1697_v47  ;;  %v1313_v17 = vpop.eup %1312  ;;  %vm877_vm12 = vweird.f32 %v1311_v12  ;;  %v909_v47 = vrot.slane %v1737_v2, 7 }
 0x127   : > { %v887_v26 = vmul.f32 %v1313_v17, %v1704_v51  ;;  %v849_v31 = vsel %vm1787_vm8, %v1699_v48, %v845_v14  ;;  %vm892_vm15 = vweird.f32 %v1313_v17  ;;  %vm878_vm1 = vmor %vm876_vm14, %vm877_vm12  ;;  %vm921_vm8 = vcmask 1044484  }
 0x128   : > { %v873_v25 = vsub.f32 1.0, %v872_v16  ;;  %v864_v27 = vsel %vm1800_vm11, %v1706_v52, %v860_v7  ;;  %v854_v42 = vsel %vm1791_vm9, %v853_v28, %v849_v31  ;;  %vm893_vm4 = vmor %vm891_vm3, %vm892_vm15  ;;  %vm923_vm9 = vcmask 1046534  }
 0x129   : > { %v888_v33 = vsub.f32 1.0, %v887_v26  ;;  %v869_v43 = vsel %vm866_vm13, %v868_v34, %v864_v27  ;;  %v912_v50 = vrot.slane %v854_v42, 4  ;;  %v919_v51 = vsel %vm918_vm7, %v910_v19, %v911_v40 }
 0x12a   : > { %v874_v32 = vmul.f32 %v1311_v12, %v873_v25  ;;  %v913_v52 = vrot.slane %v869_v43, 3  ;;  %vm925_vm11 = vcmask 1045508   ;;  %vm927_vm12 = vcmask 1043456  }
 0x12b   : > { %v889_v39 = vmul.f32 %v1313_v17, %v888_v33  ;;  %v917_v57 = vsel %vm916_vm10, %v794_v54, %v909_v47 }
 0x12c   : > { %v875_v38 = vadd.f32 %v1311_v12, %v874_v32  ;;  %v922_v59 = vsel %vm921_vm8, %v912_v50, %v913_v52  ;;  %v920_v63 = vsel %vm620_vm0, %v917_v57, %v919_v51 }
 0x12d   : > { %v890_v46 = vadd.f32 %v1313_v17, %v889_v39 }
 0x12e   : > { %v879_v45 = vsel %vm878_vm1, %v1311_v12, %v875_v38 }
 0x12f   : > { %v884_v48 = vsel %vm881_vm2, %v883_v44, %v879_v45  ;;  %v894_v53 = vsel %vm893_vm4, %v1313_v17, %v890_v46 }
 0x130   : > { %v914_v35 = vrot.slane %v884_v48, 2  ;;  %v899_v55 = vsel %vm896_vm6, %v898_v49, %v894_v53 }
 0x131   : > { %v915_v56 = vrot.slane %v899_v55, 1 }
 0x133   : > { %v924_v62 = vsel %vm923_vm9, %v914_v35, %v915_v56 }
 0x134   : > { %v926_v58 = vsel %vm925_vm11, %v922_v59, %v924_v62 }
 0x135   : > { %v928_v41 = vsel %vm927_vm12, %v920_v63, %v926_v58 }
 0x136   : > { %930 = vst [vmem:[%s293_s9] sm:$0xff] %v928_v41 }
 0x137 PF: > { %p12_p9 = scmp.ge.s32.totalorder %s1379_s17, 5   ;;  %s1871_s14 = smov %s1332_s15 }
 0x138   : > { %s1872_s15 = smov %s1388_s20  ;;  %s1873_s16 = smov %s1379_s17 }
 0x139   :  { %14 = sbr.rel (!%p12_p9) target bundleno = 5 (0x5), region = 90 }

</bundles_post_ra>
